<compile_context>
chip_gen: v7x
topology: tpu7x:2x2x1
jax: 0.10.0
libtpu: 0.0.40
codegen_flags: <defaults>
</compile_context>

<pallas_src>
import functools
import math

import numpy as np
import jax
import jax.numpy as jnp
from jax.experimental import pallas as pl
from jax.experimental.pallas import tpu as pltpu  # noqa: F401  (TPU backend namespace)

# ------------------------- model hyper-parameters --------------------------
SERIES_EMB_SIZE = 128
TOPIC_EMB_SIZE = 512
HIDDEN_SIZE = 60
SENTI_SIZE = 128
MHA_D = 64
MHA_DV = 64
MHA_H = 2

# "args"
INPUT_SIZE = 16
BERT_SIZE = 32
OUTPUT_SIZE = 4
SKEP_SIZE = 48
NUM_CLUSTERS = 3

HP = 128        # lane-padded hidden size for the 60-wide LSTMs / final MLP
OUT_PAD = 128   # lane-padded width of the final output (real = OUTPUT_SIZE)

# Matmul operand dtype.  f32 keeps bit-faithful semantics everywhere (incl.
# v5e); set to jnp.bfloat16 on v6e/v7x for 2x MXU / vld bandwidth if desired.
MM_DTYPE = jnp.float32


# ------------------------------ kernel helpers ------------------------------
def _mm(a, b):
    return jnp.dot(a.astype(MM_DTYPE), b.astype(MM_DTYPE),
                   preferred_element_type=jnp.float32)


def _mm_t(a, b):
    # a @ b.T (contract last dims of both operands)
    return jnp.dot(a.astype(MM_DTYPE), b.astype(MM_DTYPE).T,
                   preferred_element_type=jnp.float32)


def _lstm_cell(gates, c, hp):
    """PyTorch LSTM cell; gates laid out gate-major, each gate padded to hp lanes."""
    i = jax.nn.sigmoid(gates[:, 0 * hp:1 * hp])
    f = jax.nn.sigmoid(gates[:, 1 * hp:2 * hp])
    g = jnp.tanh(gates[:, 2 * hp:3 * hp])
    o = jax.nn.sigmoid(gates[:, 3 * hp:4 * hp])
    c_new = f * c + i * g
    h_new = o * jnp.tanh(c_new)
    return h_new, c_new


# ------------------------------ fused kernel --------------------------------
def _ours_fused_kernel(
    # sequence inputs
    x_ref, topic_ref,
    # series / topic embedding Dense
    sw_ref, sb_ref, tw_ref, tb_ref,
    # lstm1 (gate-padded, input split into series/topic halves -> no concat)
    l1wih_s_ref, l1wih_t_ref, l1whh_ref, l1b_ref,
    # lstm2 (gate-padded, input padded to HP)
    l2wih_ref, l2whh_ref, l2b_ref,
    # user module: padded histories + per-step validity mask
    hist_ref, hmask_ref,
    # user LSTM (H == 128, already lane aligned)
    uwih_ref, uwhh_ref, ub_ref,
    # role scaled-dot-product attention
    uvec_ref, center_ref, rmask_ref,
    # multi-head role attention, weights pre-split per head
    wq_ref, bq_ref, wk_ref, bk_ref, wv_ref, bv_ref, wo_ref, bo_ref,
    # final MLP (lane padded, concat folded into split matmuls)
    lin1wh_ref, lin1wu_ref, lin1b_ref, lin2w_ref, lin2b_ref,
    # output
    out_ref,
    *, seq_len, hist_len, n_heads, d_head):
    f32 = jnp.float32

    # ---- series / topic embedding Dense + ReLU (all timesteps at once) ----
    s = jnp.maximum(_mm(x_ref[...], sw_ref[...]) + sb_ref[...], 0.0)      # (T, 128)
    t = jnp.maximum(_mm(topic_ref[...], tw_ref[...]) + tb_ref[...], 0.0)  # (T, 512)

    # ---- stacked LSTM1 -> LSTM2, timesteps fully unrolled -------------------
    # One MXU pass for every timestep's input projection of LSTM1.
    xproj1 = _mm(s, l1wih_s_ref[...]) + _mm(t, l1wih_t_ref[...]) + l1b_ref[...]  # (T, 4*HP)
    h1 = jnp.zeros((1, HP), f32); c1 = jnp.zeros((1, HP), f32)
    h2 = jnp.zeros((1, HP), f32); c2 = jnp.zeros((1, HP), f32)
    for step in range(seq_len):                       # static unroll, h/c in vregs
        g1 = xproj1[step:step + 1, :] + _mm(h1, l1whh_ref[...])
        h1, c1 = _lstm_cell(g1, c1, HP)
        g2 = _mm(h1, l2wih_ref[...]) + l2b_ref[...] + _mm(h2, l2whh_ref[...])
        h2, c2 = _lstm_cell(g2, c2, HP)
    # h2: last hidden state of LSTM2, exactly zero beyond HIDDEN_SIZE lanes.

    # ---- per-user history LSTM, all selected users batched on sublanes ------
    n_users = hist_ref.shape[1]
    hu = jnp.zeros((n_users, SENTI_SIZE), f32)
    cu = jnp.zeros((n_users, SENTI_SIZE), f32)
    for step in range(hist_len):
        xt = hist_ref[step]                           # (U, SKEP)
        m = hmask_ref[step]                           # (U, 1), 1.0 while step < len(user)
        gu = _mm(xt, uwih_ref[...]) + ub_ref[...] + _mm(hu, uwhh_ref[...])
        hn, cn = _lstm_cell(gu, cu, SENTI_SIZE)
        hu = m * hn + (1.0 - m) * hu                  # freeze after true length
        cu = m * cn + (1.0 - m) * cu
    # hu[u] == h_n of user u (matches pack_sequence h_n semantics).

    # ---- role-level SDPA: all roles in one masked softmax -------------------
    scores = _mm_t(center_ref[...], uvec_ref[...]) * (1.0 / math.sqrt(SENTI_SIZE))  # (R, U)
    scores = jnp.where(rmask_ref[...] > 0.0, scores, -1e30)
    scores = scores - jnp.max(scores, axis=-1, keepdims=True)
    e = jnp.exp(scores)
    attn = e * pl.reciprocal(jnp.sum(e, axis=-1, keepdims=True), approx=True)
    role_senti = _mm(attn, hu)                        # (R, SENTI)

    # ---- multi-head role self-attention (heads pre-split, no lane slicing) --
    mha_out = jnp.zeros(role_senti.shape, f32)
    inv_sqrt_d = 1.0 / math.sqrt(d_head)
    for hh in range(n_heads):
        qh = _mm(role_senti, wq_ref[hh]) + bq_ref[hh]     # (R, d)
        kh = _mm(role_senti, wk_ref[hh]) + bk_ref[hh]     # (R, d)
        vh = _mm(role_senti, wv_ref[hh]) + bv_ref[hh]     # (R, dv)
        att = _mm_t(qh, kh) * inv_sqrt_d                  # (R, R)
        att = att - jnp.max(att, axis=-1, keepdims=True)
        ea = jnp.exp(att)
        att = ea * pl.reciprocal(jnp.sum(ea, axis=-1, keepdims=True), approx=True)
        # concat-over-heads followed by fc_o  ==  sum_h (att_h @ v_h) @ Wo[h]
        mha_out = mha_out + _mm(_mm(att, vh), wo_ref[hh])
    mha_out = mha_out + bo_ref[...]                       # (R, SENTI)
    public = jnp.mean(mha_out, axis=0, keepdims=True)     # (1, SENTI)

    # ---- final MLP (torch.cat folded into split matmuls, lane padded) -------
    # TODO(synk): F.dropout(p=0.2) before linear1 treated as eval-mode identity.
    y = _mm(h2, lin1wh_ref[...]) + _mm(public, lin1wu_ref[...]) + lin1b_ref[...]
    y = jnp.maximum(y, 0.0)
    y = _mm(y, lin2w_ref[...]) + lin2b_ref[...]
    out_ref[...] = y.astype(out_ref.dtype)


# --------------------------- host-side preprocessing ------------------------
def _pad_gate_params(w_ih, w_hh, b_ih, b_hh, hp, in_pad=None):
    """PyTorch LSTM params (4H,D),(4H,H),(4H,),(4H,) -> transposed, gate-major,
    each i/f/g/o gate padded to `hp` lanes (zero pads are inert: sigmoid(0)=.5,
    tanh(0)=0 => padded c/h stay exactly 0)."""
    w_ih = np.asarray(w_ih, np.float32)
    w_hh = np.asarray(w_hh, np.float32)
    bsum = np.asarray(b_ih, np.float32) + np.asarray(b_hh, np.float32)
    H4, D = w_ih.shape
    H = H4 // 4
    Din = D if in_pad is None else in_pad
    wih = np.zeros((Din, 4 * hp), np.float32)
    whh = np.zeros((hp, 4 * hp), np.float32)
    b = np.zeros((1, 4 * hp), np.float32)
    for g in range(4):
        wih[:D, g * hp:g * hp + H] = w_ih[g * H:(g + 1) * H, :].T
        whh[:H, g * hp:g * hp + H] = w_hh[g * H:(g + 1) * H, :].T
        b[0, g * hp:g * hp + H] = bsum[g * H:(g + 1) * H]
    return jnp.asarray(wih), jnp.asarray(whh), jnp.asarray(b)


def _prepare_user_inputs(user_hist, up):
    """Flatten the ragged user histories / cluster assignment into dense,
    sublane-padded arrays + masks (pure Python/numpy; no device compute)."""
    cluster = up["cluster_result"]
    text_embed = up["text_embed"]
    user_vec = np.asarray(cluster["user_vec"], np.float32)
    centers = np.asarray(cluster["cluster_center"], np.float32)
    cluster_id = cluster["cluster_id"]
    is_selected = cluster["is_selected"]

    sel = [i for i in range(len(user_hist)) if is_selected[i]]
    assert sel, "USER module needs at least one selected user"
    role_order = []
    for i in sel:
        if cluster_id[i] not in role_order:
            role_order.append(cluster_id[i])

    n_sel = len(sel)
    u_pad = -(-n_sel // 8) * 8                       # pad users to 8 sublanes
    lens = [max(1, len(user_hist[i])) for i in sel]
    max_t = max(lens)

    hist = np.zeros((max_t, u_pad, SKEP_SIZE), np.float32)
    mask = np.zeros((max_t, u_pad, 1), np.float32)
    uvec = np.zeros((u_pad, SENTI_SIZE), np.float32)
    for u, i in enumerate(sel):
        uvec[u] = user_vec[i]
        posts = user_hist[i]
        if len(posts) == 0:
            mask[0, u, 0] = 1.0                      # single zero row (as in torch code)
        else:
            for t, pid in enumerate(posts):
                hist[t, u] = np.asarray(text_embed[pid], np.float32)
                mask[t, u, 0] = 1.0

    n_roles = len(role_order)
    center = np.zeros((n_roles, SENTI_SIZE), np.float32)
    rmask = np.zeros((n_roles, u_pad), np.float32)
    for r, rid in enumerate(role_order):
        center[r] = centers[rid]
        for u, i in enumerate(sel):
            if cluster_id[i] == rid:
                rmask[r, u] = 1.0
    return (jnp.asarray(hist), jnp.asarray(mask), jnp.asarray(uvec),
            jnp.asarray(center), jnp.asarray(rmask))


# ------------------------------ module forward ------------------------------
def ours_forward(params, x, topic, user_hist):
    B, T, _ = x.shape
    assert B == 1, "USER module produces a single public-sentiment vector"
    up = params["user"]

    # --- weight layout prep (host-side, once per call; no device compute) ---
    l1wih, l1whh, l1b = _pad_gate_params(
        params["lstm1_w_ih"], params["lstm1_w_hh"],
        params["lstm1_b_ih"], params["lstm1_b_hh"], HP)
    l1wih_s, l1wih_t = l1wih[:SERIES_EMB_SIZE], l1wih[SERIES_EMB_SIZE:]
    l2wih, l2whh, l2b = _pad_gate_params(
        params["lstm2_w_ih"], params["lstm2_w_hh"],
        params["lstm2_b_ih"], params["lstm2_b_hh"], HP, in_pad=HP)
    uwih, uwhh, ub = _pad_gate_params(
        up["lstm_w_ih"], up["lstm_w_hh"], up["lstm_b_ih"], up["lstm_b_hh"],
        SENTI_SIZE)

    mha = up["mha"]
    wq = np.asarray(mha["wq"]).reshape(SENTI_SIZE, MHA_H, MHA_D).transpose(1, 0, 2)
    wk = np.asarray(mha["wk"]).reshape(SENTI_SIZE, MHA_H, MHA_D).transpose(1, 0, 2)
    wv = np.asarray(mha["wv"]).reshape(SENTI_SIZE, MHA_H, MHA_DV).transpose(1, 0, 2)
    wo = np.asarray(mha["wo"]).reshape(MHA_H, MHA_DV, SENTI_SIZE)
    bq = np.asarray(mha["bq"]).reshape(MHA_H, 1, MHA_D)
    bk = np.asarray(mha["bk"]).reshape(MHA_H, 1, MHA_D)
    bv = np.asarray(mha["bv"]).reshape(MHA_H, 1, MHA_DV)
    bo = np.asarray(mha["bo"]).reshape(1, SENTI_SIZE)

    lin1_w = np.asarray(params["lin1_w"], np.float32)      # (H+senti, H)
    lin1wh = np.zeros((HP, HP), np.float32)
    lin1wh[:HIDDEN_SIZE, :HIDDEN_SIZE] = lin1_w[:HIDDEN_SIZE]
    lin1wu = np.zeros((SENTI_SIZE, HP), np.float32)
    lin1wu[:, :HIDDEN_SIZE] = lin1_w[HIDDEN_SIZE:]
    lin1b = np.zeros((1, HP), np.float32)
    lin1b[0, :HIDDEN_SIZE] = np.asarray(params["lin1_b"])
    lin2w = np.zeros((HP, OUT_PAD), np.float32)
    lin2w[:HIDDEN_SIZE, :OUTPUT_SIZE] = np.asarray(params["lin2_w"])
    lin2b = np.zeros((1, OUT_PAD), np.float32)
    lin2b[0, :OUTPUT_SIZE] = np.asarray(params["lin2_b"])

    hist, hmask, uvec, center, rmask = _prepare_user_inputs(user_hist, up)

    kernel = functools.partial(
        _ours_fused_kernel, seq_len=int(T), hist_len=int(hist.shape[0]),
        n_heads=MHA_H, d_head=MHA_D)

    out = pl.pallas_call(
        kernel,
        out_shape=jax.ShapeDtypeStruct((1, OUT_PAD), jnp.float32),
    )(
        x.reshape(T, INPUT_SIZE), topic.reshape(T, BERT_SIZE),
        params["series_w"], params["series_b"].reshape(1, -1),
        params["topic_w"], params["topic_b"].reshape(1, -1),
        l1wih_s, l1wih_t, l1whh, l1b,
        l2wih, l2whh, l2b,
        hist, hmask,
        uwih, uwhh, ub,
        uvec, center, rmask,
        jnp.asarray(wq), jnp.asarray(bq), jnp.asarray(wk), jnp.asarray(bk),
        jnp.asarray(wv), jnp.asarray(bv), jnp.asarray(wo), jnp.asarray(bo),
        jnp.asarray(lin1wh), jnp.asarray(lin1wu), jnp.asarray(lin1b),
        jnp.asarray(lin2w), jnp.asarray(lin2b),
    )
    return out[:, :OUTPUT_SIZE]                       # drop lane padding


# ------------------------------ param / data init ---------------------------
def init_params(key):
    ks = iter(jax.random.split(key, 40))

    def w(shape, scale=0.1):
        return jax.random.normal(next(ks), shape, jnp.float32) * scale

    def z(shape):
        return jnp.zeros(shape, jnp.float32)

    H4_1 = 4 * HIDDEN_SIZE
    H4_U = 4 * SENTI_SIZE
    params = {
        "series_w": w((INPUT_SIZE, SERIES_EMB_SIZE)), "series_b": z((SERIES_EMB_SIZE,)),
        "topic_w": w((BERT_SIZE, TOPIC_EMB_SIZE)), "topic_b": z((TOPIC_EMB_SIZE,)),
        "lstm1_w_ih": w((H4_1, SERIES_EMB_SIZE + TOPIC_EMB_SIZE)),
        "lstm1_w_hh": w((H4_1, HIDDEN_SIZE)),
        "lstm1_b_ih": z((H4_1,)), "lstm1_b_hh": z((H4_1,)),
        "lstm2_w_ih": w((H4_1, HIDDEN_SIZE)), "lstm2_w_hh": w((H4_1, HIDDEN_SIZE)),
        "lstm2_b_ih": z((H4_1,)), "lstm2_b_hh": z((H4_1,)),
        "lin1_w": w((HIDDEN_SIZE + SENTI_SIZE, HIDDEN_SIZE)), "lin1_b": z((HIDDEN_SIZE,)),
        "lin2_w": w((HIDDEN_SIZE, OUTPUT_SIZE)), "lin2_b": z((OUTPUT_SIZE,)),
    }

    num_users = 6
    num_posts = 8
    user_params = {
        "lstm_w_ih": w((H4_U, SKEP_SIZE)), "lstm_w_hh": w((H4_U, SENTI_SIZE)),
        "lstm_b_ih": z((H4_U,)), "lstm_b_hh": z((H4_U,)),
        "mha": {
            "wq": w((SENTI_SIZE, MHA_H * MHA_D), 0.001), "bq": z((MHA_H * MHA_D,)),
            "wk": w((SENTI_SIZE, MHA_H * MHA_D), 0.001), "bk": z((MHA_H * MHA_D,)),
            "wv": w((SENTI_SIZE, MHA_H * MHA_DV), 0.001), "bv": z((MHA_H * MHA_DV,)),
            "wo": w((MHA_H * MHA_DV, SENTI_SIZE), 0.001), "bo": z((SENTI_SIZE,)),
        },
        # synthetic stand-ins for the .npy files the torch module loads
        "cluster_result": {
            "user_vec": w((num_users, SENTI_SIZE), 1.0),
            "cluster_center": w((NUM_CLUSTERS, SENTI_SIZE), 1.0),
            "cluster_id": [0, 1, 2, 0, 1, 2],
            "is_selected": [True, True, True, True, True, False],
        },
        "text_embed": {pid: w((SKEP_SIZE,), 1.0) for pid in range(num_posts)},
    }
    params["user"] = user_params
    return params


# ----------------------------------- main -----------------------------------
if __name__ == "__main__":
    key = jax.random.PRNGKey(0)
    k_param, k_x, k_topic = jax.random.split(key, 3)

    params = init_params(k_param)

    B, T = 1, 8
    x = jax.random.normal(k_x, (B, T, INPUT_SIZE), jnp.float32)
    topic = jax.random.normal(k_topic, (B, T, BERT_SIZE), jnp.float32)
    # ragged per-user post-id histories (one user with empty history, one unselected)
    user_hist = [[0, 1], [2], [], [3, 4, 5], [6], [7]]

    out = ours_forward(params, x, topic, user_hist)
    out = jax.block_until_ready(out)
    assert out.shape == (1, OUTPUT_SIZE)
    print("KERNEL_OK")
</pallas_src>

<mosaic_0001>
module attributes {stable_mosaic.version = 11 : i64} {
  func.func @_ours_fused_kernel(%arg0: memref<8x16xf32, #tpu.memory_space<vmem>>, %arg1: memref<8x32xf32, #tpu.memory_space<vmem>>, %arg2: memref<16x128xf32, #tpu.memory_space<vmem>>, %arg3: memref<1x128xf32, #tpu.memory_space<vmem>>, %arg4: memref<32x512xf32, #tpu.memory_space<vmem>>, %arg5: memref<1x512xf32, #tpu.memory_space<vmem>>, %arg6: memref<128x512xf32, #tpu.memory_space<vmem>>, %arg7: memref<512x512xf32, #tpu.memory_space<vmem>>, %arg8: memref<128x512xf32, #tpu.memory_space<vmem>>, %arg9: memref<1x512xf32, #tpu.memory_space<vmem>>, %arg10: memref<128x512xf32, #tpu.memory_space<vmem>>, %arg11: memref<128x512xf32, #tpu.memory_space<vmem>>, %arg12: memref<1x512xf32, #tpu.memory_space<vmem>>, %arg13: memref<3x8x48xf32, #tpu.memory_space<vmem>>, %arg14: memref<3x8x1xf32, #tpu.memory_space<vmem>>, %arg15: memref<48x512xf32, #tpu.memory_space<vmem>>, %arg16: memref<128x512xf32, #tpu.memory_space<vmem>>, %arg17: memref<1x512xf32, #tpu.memory_space<vmem>>, %arg18: memref<8x128xf32, #tpu.memory_space<vmem>>, %arg19: memref<3x128xf32, #tpu.memory_space<vmem>>, %arg20: memref<3x8xf32, #tpu.memory_space<vmem>>, %arg21: memref<2x128x64xf32, #tpu.memory_space<vmem>>, %arg22: memref<2x1x64xf32, #tpu.memory_space<vmem>>, %arg23: memref<2x128x64xf32, #tpu.memory_space<vmem>>, %arg24: memref<2x1x64xf32, #tpu.memory_space<vmem>>, %arg25: memref<2x128x64xf32, #tpu.memory_space<vmem>>, %arg26: memref<2x1x64xf32, #tpu.memory_space<vmem>>, %arg27: memref<2x64x128xf32, #tpu.memory_space<vmem>>, %arg28: memref<1x128xf32, #tpu.memory_space<vmem>>, %arg29: memref<128x128xf32, #tpu.memory_space<vmem>>, %arg30: memref<128x128xf32, #tpu.memory_space<vmem>>, %arg31: memref<1x128xf32, #tpu.memory_space<vmem>>, %arg32: memref<128x128xf32, #tpu.memory_space<vmem>>, %arg33: memref<1x128xf32, #tpu.memory_space<vmem>>, %arg34: memref<1x128xf32, #tpu.memory_space<vmem>>) attributes {dimension_semantics = [], scalar_prefetch = 0 : i64, scratch_operands = 0 : i64, tpu.core_type = #tpu.core_type<tc>} {
    %c0 = arith.constant 0 : index
    %c0_0 = arith.constant 0 : index
    %0 = vector.load %arg0[%c0, %c0_0] : memref<8x16xf32, #tpu.memory_space<vmem>>, vector<8x16xf32>
    %c0_1 = arith.constant 0 : index
    %c0_2 = arith.constant 0 : index
    %1 = vector.load %arg2[%c0_1, %c0_2] : memref<16x128xf32, #tpu.memory_space<vmem>>, vector<16x128xf32>
    %cst = arith.constant dense<0.000000e+00> : vector<8x128xf32>
    %2 = tpu.matmul %0, %1, %cst {dimension_numbers = #tpu.dot_dimension_numbers<[1], [0], [0], [1], [0, 0, 1, 1], [], []>} : vector<8x16xf32>, vector<16x128xf32>, vector<8x128xf32> -> vector<8x128xf32>
    %c0_3 = arith.constant 0 : index
    %c0_4 = arith.constant 0 : index
    %3 = vector.load %arg3[%c0_3, %c0_4] : memref<1x128xf32, #tpu.memory_space<vmem>>, vector<1x128xf32>
    %4 = vector.broadcast %3 : vector<1x128xf32> to vector<8x128xf32>
    %5 = arith.addf %2, %4 : vector<8x128xf32>
    %cst_5 = arith.constant 0.000000e+00 : f32
    %6 = vector.broadcast %cst_5 : f32 to vector<8x128xf32>
    %7 = arith.maximumf %5, %6 : vector<8x128xf32>
    %c0_6 = arith.constant 0 : index
    %c0_7 = arith.constant 0 : index
    %8 = vector.load %arg1[%c0_6, %c0_7] : memref<8x32xf32, #tpu.memory_space<vmem>>, vector<8x32xf32>
    %c0_8 = arith.constant 0 : index
    %c0_9 = arith.constant 0 : index
    %9 = vector.load %arg4[%c0_8, %c0_9] : memref<32x512xf32, #tpu.memory_space<vmem>>, vector<32x512xf32>
    %cst_10 = arith.constant dense<0.000000e+00> : vector<8x512xf32>
    %10 = tpu.matmul %8, %9, %cst_10 {dimension_numbers = #tpu.dot_dimension_numbers<[1], [0], [0], [1], [0, 0, 1, 1], [], []>} : vector<8x32xf32>, vector<32x512xf32>, vector<8x512xf32> -> vector<8x512xf32>
    %c0_11 = arith.constant 0 : index
    %c0_12 = arith.constant 0 : index
    %11 = vector.load %arg5[%c0_11, %c0_12] : memref<1x512xf32, #tpu.memory_space<vmem>>, vector<1x512xf32>
    %12 = vector.broadcast %11 : vector<1x512xf32> to vector<8x512xf32>
    %13 = arith.addf %10, %12 : vector<8x512xf32>
    %cst_13 = arith.constant 0.000000e+00 : f32
    %14 = vector.broadcast %cst_13 : f32 to vector<8x512xf32>
    %15 = arith.maximumf %13, %14 : vector<8x512xf32>
    %c0_14 = arith.constant 0 : index
    %c0_15 = arith.constant 0 : index
    %16 = vector.load %arg6[%c0_14, %c0_15] : memref<128x512xf32, #tpu.memory_space<vmem>>, vector<128x512xf32>
    %cst_16 = arith.constant dense<0.000000e+00> : vector<8x512xf32>
    %17 = tpu.matmul %7, %16, %cst_16 {dimension_numbers = #tpu.dot_dimension_numbers<[1], [0], [0], [1], [0, 0, 1, 1], [], []>} : vector<8x128xf32>, vector<128x512xf32>, vector<8x512xf32> -> vector<8x512xf32>
    %c0_17 = arith.constant 0 : index
    %c0_18 = arith.constant 0 : index
    %18 = vector.load %arg7[%c0_17, %c0_18] : memref<512x512xf32, #tpu.memory_space<vmem>>, vector<512x512xf32>
    %cst_19 = arith.constant dense<0.000000e+00> : vector<8x512xf32>
    %19 = tpu.matmul %15, %18, %cst_19 {dimension_numbers = #tpu.dot_dimension_numbers<[1], [0], [0], [1], [0, 0, 1, 1], [], []>} : vector<8x512xf32>, vector<512x512xf32>, vector<8x512xf32> -> vector<8x512xf32>
    %20 = arith.addf %17, %19 : vector<8x512xf32>
    %c0_20 = arith.constant 0 : index
    %c0_21 = arith.constant 0 : index
    %21 = vector.load %arg9[%c0_20, %c0_21] : memref<1x512xf32, #tpu.memory_space<vmem>>, vector<1x512xf32>
    %22 = vector.broadcast %21 : vector<1x512xf32> to vector<8x512xf32>
    %23 = arith.addf %20, %22 : vector<8x512xf32>
    %cst_22 = arith.constant 0.000000e+00 : f32
    %24 = vector.broadcast %cst_22 : f32 to vector<1x128xf32>
    %cst_23 = arith.constant 0.000000e+00 : f32
    %25 = vector.broadcast %cst_23 : f32 to vector<1x128xf32>
    %cst_24 = arith.constant 0.000000e+00 : f32
    %26 = vector.broadcast %cst_24 : f32 to vector<1x128xf32>
    %cst_25 = arith.constant 0.000000e+00 : f32
    %27 = vector.broadcast %cst_25 : f32 to vector<1x128xf32>
    %28 = vector.extract_strided_slice %23 {offsets = [0, 0], sizes = [1, 512], strides = [1, 1]} : vector<8x512xf32> to vector<1x512xf32>
    %c0_26 = arith.constant 0 : index
    %c0_27 = arith.constant 0 : index
    %29 = vector.load %arg8[%c0_26, %c0_27] : memref<128x512xf32, #tpu.memory_space<vmem>>, vector<128x512xf32>
    %cst_28 = arith.constant dense<0.000000e+00> : vector<1x512xf32>
    %30 = tpu.matmul %24, %29, %cst_28 {dimension_numbers = #tpu.dot_dimension_numbers<[1], [0], [0], [1], [0, 0, 1, 1], [], []>} : vector<1x128xf32>, vector<128x512xf32>, vector<1x512xf32> -> vector<1x512xf32>
    %31 = arith.addf %28, %30 : vector<1x512xf32>
    %32 = vector.extract_strided_slice %31 {offsets = [0, 0], sizes = [1, 128], strides = [1, 1]} : vector<1x512xf32> to vector<1x128xf32>
    %33 = arith.negf %32 : vector<1x128xf32>
    %34 = math.exp %33 : vector<1x128xf32>
    %cst_29 = arith.constant 1.000000e+00 : f32
    %35 = vector.broadcast %cst_29 : f32 to vector<1x128xf32>
    %36 = arith.addf %35, %34 : vector<1x128xf32>
    %37 = arith.divf %35, %36 : vector<1x128xf32>
    %38 = vector.extract_strided_slice %31 {offsets = [0, 128], sizes = [1, 128], strides = [1, 1]} : vector<1x512xf32> to vector<1x128xf32>
    %39 = arith.negf %38 : vector<1x128xf32>
    %40 = math.exp %39 : vector<1x128xf32>
    %cst_30 = arith.constant 1.000000e+00 : f32
    %41 = vector.broadcast %cst_30 : f32 to vector<1x128xf32>
    %42 = arith.addf %41, %40 : vector<1x128xf32>
    %43 = arith.divf %41, %42 : vector<1x128xf32>
    %44 = vector.extract_strided_slice %31 {offsets = [0, 256], sizes = [1, 128], strides = [1, 1]} : vector<1x512xf32> to vector<1x128xf32>
    %45 = math.tanh %44 : vector<1x128xf32>
    %46 = vector.extract_strided_slice %31 {offsets = [0, 384], sizes = [1, 128], strides = [1, 1]} : vector<1x512xf32> to vector<1x128xf32>
    %47 = arith.negf %46 : vector<1x128xf32>
    %48 = math.exp %47 : vector<1x128xf32>
    %cst_31 = arith.constant 1.000000e+00 : f32
    %49 = vector.broadcast %cst_31 : f32 to vector<1x128xf32>
    %50 = arith.addf %49, %48 : vector<1x128xf32>
    %51 = arith.divf %49, %50 : vector<1x128xf32>
    %52 = arith.mulf %43, %25 : vector<1x128xf32>
    %53 = arith.mulf %37, %45 : vector<1x128xf32>
    %54 = arith.addf %52, %53 : vector<1x128xf32>
    %55 = math.tanh %54 : vector<1x128xf32>
    %56 = arith.mulf %51, %55 : vector<1x128xf32>
    %c0_32 = arith.constant 0 : index
    %c0_33 = arith.constant 0 : index
    %57 = vector.load %arg10[%c0_32, %c0_33] : memref<128x512xf32, #tpu.memory_space<vmem>>, vector<128x512xf32>
    %cst_34 = arith.constant dense<0.000000e+00> : vector<1x512xf32>
    %58 = tpu.matmul %56, %57, %cst_34 {dimension_numbers = #tpu.dot_dimension_numbers<[1], [0], [0], [1], [0, 0, 1, 1], [], []>} : vector<1x128xf32>, vector<128x512xf32>, vector<1x512xf32> -> vector<1x512xf32>
    %c0_35 = arith.constant 0 : index
    %c0_36 = arith.constant 0 : index
    %59 = vector.load %arg12[%c0_35, %c0_36] : memref<1x512xf32, #tpu.memory_space<vmem>>, vector<1x512xf32>
    %60 = arith.addf %58, %59 : vector<1x512xf32>
    %c0_37 = arith.constant 0 : index
    %c0_38 = arith.constant 0 : index
    %61 = vector.load %arg11[%c0_37, %c0_38] : memref<128x512xf32, #tpu.memory_space<vmem>>, vector<128x512xf32>
    %cst_39 = arith.constant dense<0.000000e+00> : vector<1x512xf32>
    %62 = tpu.matmul %26, %61, %cst_39 {dimension_numbers = #tpu.dot_dimension_numbers<[1], [0], [0], [1], [0, 0, 1, 1], [], []>} : vector<1x128xf32>, vector<128x512xf32>, vector<1x512xf32> -> vector<1x512xf32>
    %63 = arith.addf %60, %62 : vector<1x512xf32>
    %64 = vector.extract_strided_slice %63 {offsets = [0, 0], sizes = [1, 128], strides = [1, 1]} : vector<1x512xf32> to vector<1x128xf32>
    %65 = arith.negf %64 : vector<1x128xf32>
    %66 = math.exp %65 : vector<1x128xf32>
    %cst_40 = arith.constant 1.000000e+00 : f32
    %67 = vector.broadcast %cst_40 : f32 to vector<1x128xf32>
    %68 = arith.addf %67, %66 : vector<1x128xf32>
    %69 = arith.divf %67, %68 : vector<1x128xf32>
    %70 = vector.extract_strided_slice %63 {offsets = [0, 128], sizes = [1, 128], strides = [1, 1]} : vector<1x512xf32> to vector<1x128xf32>
    %71 = arith.negf %70 : vector<1x128xf32>
    %72 = math.exp %71 : vector<1x128xf32>
    %cst_41 = arith.constant 1.000000e+00 : f32
    %73 = vector.broadcast %cst_41 : f32 to vector<1x128xf32>
    %74 = arith.addf %73, %72 : vector<1x128xf32>
    %75 = arith.divf %73, %74 : vector<1x128xf32>
    %76 = vector.extract_strided_slice %63 {offsets = [0, 256], sizes = [1, 128], strides = [1, 1]} : vector<1x512xf32> to vector<1x128xf32>
    %77 = math.tanh %76 : vector<1x128xf32>
    %78 = vector.extract_strided_slice %63 {offsets = [0, 384], sizes = [1, 128], strides = [1, 1]} : vector<1x512xf32> to vector<1x128xf32>
    %79 = arith.negf %78 : vector<1x128xf32>
    %80 = math.exp %79 : vector<1x128xf32>
    %cst_42 = arith.constant 1.000000e+00 : f32
    %81 = vector.broadcast %cst_42 : f32 to vector<1x128xf32>
    %82 = arith.addf %81, %80 : vector<1x128xf32>
    %83 = arith.divf %81, %82 : vector<1x128xf32>
    %84 = arith.mulf %75, %27 : vector<1x128xf32>
    %85 = arith.mulf %69, %77 : vector<1x128xf32>
    %86 = arith.addf %84, %85 : vector<1x128xf32>
    %87 = math.tanh %86 : vector<1x128xf32>
    %88 = arith.mulf %83, %87 : vector<1x128xf32>
    %89 = vector.extract_strided_slice %23 {offsets = [1, 0], sizes = [1, 512], strides = [1, 1]} : vector<8x512xf32> to vector<1x512xf32>
    %c0_43 = arith.constant 0 : index
    %c0_44 = arith.constant 0 : index
    %90 = vector.load %arg8[%c0_43, %c0_44] : memref<128x512xf32, #tpu.memory_space<vmem>>, vector<128x512xf32>
    %cst_45 = arith.constant dense<0.000000e+00> : vector<1x512xf32>
    %91 = tpu.matmul %56, %90, %cst_45 {dimension_numbers = #tpu.dot_dimension_numbers<[1], [0], [0], [1], [0, 0, 1, 1], [], []>} : vector<1x128xf32>, vector<128x512xf32>, vector<1x512xf32> -> vector<1x512xf32>
    %92 = arith.addf %89, %91 : vector<1x512xf32>
    %93 = vector.extract_strided_slice %92 {offsets = [0, 0], sizes = [1, 128], strides = [1, 1]} : vector<1x512xf32> to vector<1x128xf32>
    %94 = arith.negf %93 : vector<1x128xf32>
    %95 = math.exp %94 : vector<1x128xf32>
    %cst_46 = arith.constant 1.000000e+00 : f32
    %96 = vector.broadcast %cst_46 : f32 to vector<1x128xf32>
    %97 = arith.addf %96, %95 : vector<1x128xf32>
    %98 = arith.divf %96, %97 : vector<1x128xf32>
    %99 = vector.extract_strided_slice %92 {offsets = [0, 128], sizes = [1, 128], strides = [1, 1]} : vector<1x512xf32> to vector<1x128xf32>
    %100 = arith.negf %99 : vector<1x128xf32>
    %101 = math.exp %100 : vector<1x128xf32>
    %cst_47 = arith.constant 1.000000e+00 : f32
    %102 = vector.broadcast %cst_47 : f32 to vector<1x128xf32>
    %103 = arith.addf %102, %101 : vector<1x128xf32>
    %104 = arith.divf %102, %103 : vector<1x128xf32>
    %105 = vector.extract_strided_slice %92 {offsets = [0, 256], sizes = [1, 128], strides = [1, 1]} : vector<1x512xf32> to vector<1x128xf32>
    %106 = math.tanh %105 : vector<1x128xf32>
    %107 = vector.extract_strided_slice %92 {offsets = [0, 384], sizes = [1, 128], strides = [1, 1]} : vector<1x512xf32> to vector<1x128xf32>
    %108 = arith.negf %107 : vector<1x128xf32>
    %109 = math.exp %108 : vector<1x128xf32>
    %cst_48 = arith.constant 1.000000e+00 : f32
    %110 = vector.broadcast %cst_48 : f32 to vector<1x128xf32>
    %111 = arith.addf %110, %109 : vector<1x128xf32>
    %112 = arith.divf %110, %111 : vector<1x128xf32>
    %113 = arith.mulf %104, %54 : vector<1x128xf32>
    %114 = arith.mulf %98, %106 : vector<1x128xf32>
    %115 = arith.addf %113, %114 : vector<1x128xf32>
    %116 = math.tanh %115 : vector<1x128xf32>
    %117 = arith.mulf %112, %116 : vector<1x128xf32>
    %c0_49 = arith.constant 0 : index
    %c0_50 = arith.constant 0 : index
    %118 = vector.load %arg10[%c0_49, %c0_50] : memref<128x512xf32, #tpu.memory_space<vmem>>, vector<128x512xf32>
    %cst_51 = arith.constant dense<0.000000e+00> : vector<1x512xf32>
    %119 = tpu.matmul %117, %118, %cst_51 {dimension_numbers = #tpu.dot_dimension_numbers<[1], [0], [0], [1], [0, 0, 1, 1], [], []>} : vector<1x128xf32>, vector<128x512xf32>, vector<1x512xf32> -> vector<1x512xf32>
    %c0_52 = arith.constant 0 : index
    %c0_53 = arith.constant 0 : index
    %120 = vector.load %arg12[%c0_52, %c0_53] : memref<1x512xf32, #tpu.memory_space<vmem>>, vector<1x512xf32>
    %121 = arith.addf %119, %120 : vector<1x512xf32>
    %c0_54 = arith.constant 0 : index
    %c0_55 = arith.constant 0 : index
    %122 = vector.load %arg11[%c0_54, %c0_55] : memref<128x512xf32, #tpu.memory_space<vmem>>, vector<128x512xf32>
    %cst_56 = arith.constant dense<0.000000e+00> : vector<1x512xf32>
    %123 = tpu.matmul %88, %122, %cst_56 {dimension_numbers = #tpu.dot_dimension_numbers<[1], [0], [0], [1], [0, 0, 1, 1], [], []>} : vector<1x128xf32>, vector<128x512xf32>, vector<1x512xf32> -> vector<1x512xf32>
    %124 = arith.addf %121, %123 : vector<1x512xf32>
    %125 = vector.extract_strided_slice %124 {offsets = [0, 0], sizes = [1, 128], strides = [1, 1]} : vector<1x512xf32> to vector<1x128xf32>
    %126 = arith.negf %125 : vector<1x128xf32>
    %127 = math.exp %126 : vector<1x128xf32>
    %cst_57 = arith.constant 1.000000e+00 : f32
    %128 = vector.broadcast %cst_57 : f32 to vector<1x128xf32>
    %129 = arith.addf %128, %127 : vector<1x128xf32>
    %130 = arith.divf %128, %129 : vector<1x128xf32>
    %131 = vector.extract_strided_slice %124 {offsets = [0, 128], sizes = [1, 128], strides = [1, 1]} : vector<1x512xf32> to vector<1x128xf32>
    %132 = arith.negf %131 : vector<1x128xf32>
    %133 = math.exp %132 : vector<1x128xf32>
    %cst_58 = arith.constant 1.000000e+00 : f32
    %134 = vector.broadcast %cst_58 : f32 to vector<1x128xf32>
    %135 = arith.addf %134, %133 : vector<1x128xf32>
    %136 = arith.divf %134, %135 : vector<1x128xf32>
    %137 = vector.extract_strided_slice %124 {offsets = [0, 256], sizes = [1, 128], strides = [1, 1]} : vector<1x512xf32> to vector<1x128xf32>
    %138 = math.tanh %137 : vector<1x128xf32>
    %139 = vector.extract_strided_slice %124 {offsets = [0, 384], sizes = [1, 128], strides = [1, 1]} : vector<1x512xf32> to vector<1x128xf32>
    %140 = arith.negf %139 : vector<1x128xf32>
    %141 = math.exp %140 : vector<1x128xf32>
    %cst_59 = arith.constant 1.000000e+00 : f32
    %142 = vector.broadcast %cst_59 : f32 to vector<1x128xf32>
    %143 = arith.addf %142, %141 : vector<1x128xf32>
    %144 = arith.divf %142, %143 : vector<1x128xf32>
    %145 = arith.mulf %136, %86 : vector<1x128xf32>
    %146 = arith.mulf %130, %138 : vector<1x128xf32>
    %147 = arith.addf %145, %146 : vector<1x128xf32>
    %148 = math.tanh %147 : vector<1x128xf32>
    %149 = arith.mulf %144, %148 : vector<1x128xf32>
    %150 = vector.extract_strided_slice %23 {offsets = [2, 0], sizes = [1, 512], strides = [1, 1]} : vector<8x512xf32> to vector<1x512xf32>
    %c0_60 = arith.constant 0 : index
    %c0_61 = arith.constant 0 : index
    %151 = vector.load %arg8[%c0_60, %c0_61] : memref<128x512xf32, #tpu.memory_space<vmem>>, vector<128x512xf32>
    %cst_62 = arith.constant dense<0.000000e+00> : vector<1x512xf32>
    %152 = tpu.matmul %117, %151, %cst_62 {dimension_numbers = #tpu.dot_dimension_numbers<[1], [0], [0], [1], [0, 0, 1, 1], [], []>} : vector<1x128xf32>, vector<128x512xf32>, vector<1x512xf32> -> vector<1x512xf32>
    %153 = arith.addf %150, %152 : vector<1x512xf32>
    %154 = vector.extract_strided_slice %153 {offsets = [0, 0], sizes = [1, 128], strides = [1, 1]} : vector<1x512xf32> to vector<1x128xf32>
    %155 = arith.negf %154 : vector<1x128xf32>
    %156 = math.exp %155 : vector<1x128xf32>
    %cst_63 = arith.constant 1.000000e+00 : f32
    %157 = vector.broadcast %cst_63 : f32 to vector<1x128xf32>
    %158 = arith.addf %157, %156 : vector<1x128xf32>
    %159 = arith.divf %157, %158 : vector<1x128xf32>
    %160 = vector.extract_strided_slice %153 {offsets = [0, 128], sizes = [1, 128], strides = [1, 1]} : vector<1x512xf32> to vector<1x128xf32>
    %161 = arith.negf %160 : vector<1x128xf32>
    %162 = math.exp %161 : vector<1x128xf32>
    %cst_64 = arith.constant 1.000000e+00 : f32
    %163 = vector.broadcast %cst_64 : f32 to vector<1x128xf32>
    %164 = arith.addf %163, %162 : vector<1x128xf32>
    %165 = arith.divf %163, %164 : vector<1x128xf32>
    %166 = vector.extract_strided_slice %153 {offsets = [0, 256], sizes = [1, 128], strides = [1, 1]} : vector<1x512xf32> to vector<1x128xf32>
    %167 = math.tanh %166 : vector<1x128xf32>
    %168 = vector.extract_strided_slice %153 {offsets = [0, 384], sizes = [1, 128], strides = [1, 1]} : vector<1x512xf32> to vector<1x128xf32>
    %169 = arith.negf %168 : vector<1x128xf32>
    %170 = math.exp %169 : vector<1x128xf32>
    %cst_65 = arith.constant 1.000000e+00 : f32
    %171 = vector.broadcast %cst_65 : f32 to vector<1x128xf32>
    %172 = arith.addf %171, %170 : vector<1x128xf32>
    %173 = arith.divf %171, %172 : vector<1x128xf32>
    %174 = arith.mulf %165, %115 : vector<1x128xf32>
    %175 = arith.mulf %159, %167 : vector<1x128xf32>
    %176 = arith.addf %174, %175 : vector<1x128xf32>
    %177 = math.tanh %176 : vector<1x128xf32>
    %178 = arith.mulf %173, %177 : vector<1x128xf32>
    %c0_66 = arith.constant 0 : index
    %c0_67 = arith.constant 0 : index
    %179 = vector.load %arg10[%c0_66, %c0_67] : memref<128x512xf32, #tpu.memory_space<vmem>>, vector<128x512xf32>
    %cst_68 = arith.constant dense<0.000000e+00> : vector<1x512xf32>
    %180 = tpu.matmul %178, %179, %cst_68 {dimension_numbers = #tpu.dot_dimension_numbers<[1], [0], [0], [1], [0, 0, 1, 1], [], []>} : vector<1x128xf32>, vector<128x512xf32>, vector<1x512xf32> -> vector<1x512xf32>
    %c0_69 = arith.constant 0 : index
    %c0_70 = arith.constant 0 : index
    %181 = vector.load %arg12[%c0_69, %c0_70] : memref<1x512xf32, #tpu.memory_space<vmem>>, vector<1x512xf32>
    %182 = arith.addf %180, %181 : vector<1x512xf32>
    %c0_71 = arith.constant 0 : index
    %c0_72 = arith.constant 0 : index
    %183 = vector.load %arg11[%c0_71, %c0_72] : memref<128x512xf32, #tpu.memory_space<vmem>>, vector<128x512xf32>
    %cst_73 = arith.constant dense<0.000000e+00> : vector<1x512xf32>
    %184 = tpu.matmul %149, %183, %cst_73 {dimension_numbers = #tpu.dot_dimension_numbers<[1], [0], [0], [1], [0, 0, 1, 1], [], []>} : vector<1x128xf32>, vector<128x512xf32>, vector<1x512xf32> -> vector<1x512xf32>
    %185 = arith.addf %182, %184 : vector<1x512xf32>
    %186 = vector.extract_strided_slice %185 {offsets = [0, 0], sizes = [1, 128], strides = [1, 1]} : vector<1x512xf32> to vector<1x128xf32>
    %187 = arith.negf %186 : vector<1x128xf32>
    %188 = math.exp %187 : vector<1x128xf32>
    %cst_74 = arith.constant 1.000000e+00 : f32
    %189 = vector.broadcast %cst_74 : f32 to vector<1x128xf32>
    %190 = arith.addf %189, %188 : vector<1x128xf32>
    %191 = arith.divf %189, %190 : vector<1x128xf32>
    %192 = vector.extract_strided_slice %185 {offsets = [0, 128], sizes = [1, 128], strides = [1, 1]} : vector<1x512xf32> to vector<1x128xf32>
    %193 = arith.negf %192 : vector<1x128xf32>
    %194 = math.exp %193 : vector<1x128xf32>
    %cst_75 = arith.constant 1.000000e+00 : f32
    %195 = vector.broadcast %cst_75 : f32 to vector<1x128xf32>
    %196 = arith.addf %195, %194 : vector<1x128xf32>
    %197 = arith.divf %195, %196 : vector<1x128xf32>
    %198 = vector.extract_strided_slice %185 {offsets = [0, 256], sizes = [1, 128], strides = [1, 1]} : vector<1x512xf32> to vector<1x128xf32>
    %199 = math.tanh %198 : vector<1x128xf32>
    %200 = vector.extract_strided_slice %185 {offsets = [0, 384], sizes = [1, 128], strides = [1, 1]} : vector<1x512xf32> to vector<1x128xf32>
    %201 = arith.negf %200 : vector<1x128xf32>
    %202 = math.exp %201 : vector<1x128xf32>
    %cst_76 = arith.constant 1.000000e+00 : f32
    %203 = vector.broadcast %cst_76 : f32 to vector<1x128xf32>
    %204 = arith.addf %203, %202 : vector<1x128xf32>
    %205 = arith.divf %203, %204 : vector<1x128xf32>
    %206 = arith.mulf %197, %147 : vector<1x128xf32>
    %207 = arith.mulf %191, %199 : vector<1x128xf32>
    %208 = arith.addf %206, %207 : vector<1x128xf32>
    %209 = math.tanh %208 : vector<1x128xf32>
    %210 = arith.mulf %205, %209 : vector<1x128xf32>
    %211 = vector.extract_strided_slice %23 {offsets = [3, 0], sizes = [1, 512], strides = [1, 1]} : vector<8x512xf32> to vector<1x512xf32>
    %c0_77 = arith.constant 0 : index
    %c0_78 = arith.constant 0 : index
    %212 = vector.load %arg8[%c0_77, %c0_78] : memref<128x512xf32, #tpu.memory_space<vmem>>, vector<128x512xf32>
    %cst_79 = arith.constant dense<0.000000e+00> : vector<1x512xf32>
    %213 = tpu.matmul %178, %212, %cst_79 {dimension_numbers = #tpu.dot_dimension_numbers<[1], [0], [0], [1], [0, 0, 1, 1], [], []>} : vector<1x128xf32>, vector<128x512xf32>, vector<1x512xf32> -> vector<1x512xf32>
    %214 = arith.addf %211, %213 : vector<1x512xf32>
    %215 = vector.extract_strided_slice %214 {offsets = [0, 0], sizes = [1, 128], strides = [1, 1]} : vector<1x512xf32> to vector<1x128xf32>
    %216 = arith.negf %215 : vector<1x128xf32>
    %217 = math.exp %216 : vector<1x128xf32>
    %cst_80 = arith.constant 1.000000e+00 : f32
    %218 = vector.broadcast %cst_80 : f32 to vector<1x128xf32>
    %219 = arith.addf %218, %217 : vector<1x128xf32>
    %220 = arith.divf %218, %219 : vector<1x128xf32>
    %221 = vector.extract_strided_slice %214 {offsets = [0, 128], sizes = [1, 128], strides = [1, 1]} : vector<1x512xf32> to vector<1x128xf32>
    %222 = arith.negf %221 : vector<1x128xf32>
    %223 = math.exp %222 : vector<1x128xf32>
    %cst_81 = arith.constant 1.000000e+00 : f32
    %224 = vector.broadcast %cst_81 : f32 to vector<1x128xf32>
    %225 = arith.addf %224, %223 : vector<1x128xf32>
    %226 = arith.divf %224, %225 : vector<1x128xf32>
    %227 = vector.extract_strided_slice %214 {offsets = [0, 256], sizes = [1, 128], strides = [1, 1]} : vector<1x512xf32> to vector<1x128xf32>
    %228 = math.tanh %227 : vector<1x128xf32>
    %229 = vector.extract_strided_slice %214 {offsets = [0, 384], sizes = [1, 128], strides = [1, 1]} : vector<1x512xf32> to vector<1x128xf32>
    %230 = arith.negf %229 : vector<1x128xf32>
    %231 = math.exp %230 : vector<1x128xf32>
    %cst_82 = arith.constant 1.000000e+00 : f32
    %232 = vector.broadcast %cst_82 : f32 to vector<1x128xf32>
    %233 = arith.addf %232, %231 : vector<1x128xf32>
    %234 = arith.divf %232, %233 : vector<1x128xf32>
    %235 = arith.mulf %226, %176 : vector<1x128xf32>
    %236 = arith.mulf %220, %228 : vector<1x128xf32>
    %237 = arith.addf %235, %236 : vector<1x128xf32>
    %238 = math.tanh %237 : vector<1x128xf32>
    %239 = arith.mulf %234, %238 : vector<1x128xf32>
    %c0_83 = arith.constant 0 : index
    %c0_84 = arith.constant 0 : index
    %240 = vector.load %arg10[%c0_83, %c0_84] : memref<128x512xf32, #tpu.memory_space<vmem>>, vector<128x512xf32>
    %cst_85 = arith.constant dense<0.000000e+00> : vector<1x512xf32>
    %241 = tpu.matmul %239, %240, %cst_85 {dimension_numbers = #tpu.dot_dimension_numbers<[1], [0], [0], [1], [0, 0, 1, 1], [], []>} : vector<1x128xf32>, vector<128x512xf32>, vector<1x512xf32> -> vector<1x512xf32>
    %c0_86 = arith.constant 0 : index
    %c0_87 = arith.constant 0 : index
    %242 = vector.load %arg12[%c0_86, %c0_87] : memref<1x512xf32, #tpu.memory_space<vmem>>, vector<1x512xf32>
    %243 = arith.addf %241, %242 : vector<1x512xf32>
    %c0_88 = arith.constant 0 : index
    %c0_89 = arith.constant 0 : index
    %244 = vector.load %arg11[%c0_88, %c0_89] : memref<128x512xf32, #tpu.memory_space<vmem>>, vector<128x512xf32>
    %cst_90 = arith.constant dense<0.000000e+00> : vector<1x512xf32>
    %245 = tpu.matmul %210, %244, %cst_90 {dimension_numbers = #tpu.dot_dimension_numbers<[1], [0], [0], [1], [0, 0, 1, 1], [], []>} : vector<1x128xf32>, vector<128x512xf32>, vector<1x512xf32> -> vector<1x512xf32>
    %246 = arith.addf %243, %245 : vector<1x512xf32>
    %247 = vector.extract_strided_slice %246 {offsets = [0, 0], sizes = [1, 128], strides = [1, 1]} : vector<1x512xf32> to vector<1x128xf32>
    %248 = arith.negf %247 : vector<1x128xf32>
    %249 = math.exp %248 : vector<1x128xf32>
    %cst_91 = arith.constant 1.000000e+00 : f32
    %250 = vector.broadcast %cst_91 : f32 to vector<1x128xf32>
    %251 = arith.addf %250, %249 : vector<1x128xf32>
    %252 = arith.divf %250, %251 : vector<1x128xf32>
    %253 = vector.extract_strided_slice %246 {offsets = [0, 128], sizes = [1, 128], strides = [1, 1]} : vector<1x512xf32> to vector<1x128xf32>
    %254 = arith.negf %253 : vector<1x128xf32>
    %255 = math.exp %254 : vector<1x128xf32>
    %cst_92 = arith.constant 1.000000e+00 : f32
    %256 = vector.broadcast %cst_92 : f32 to vector<1x128xf32>
    %257 = arith.addf %256, %255 : vector<1x128xf32>
    %258 = arith.divf %256, %257 : vector<1x128xf32>
    %259 = vector.extract_strided_slice %246 {offsets = [0, 256], sizes = [1, 128], strides = [1, 1]} : vector<1x512xf32> to vector<1x128xf32>
    %260 = math.tanh %259 : vector<1x128xf32>
    %261 = vector.extract_strided_slice %246 {offsets = [0, 384], sizes = [1, 128], strides = [1, 1]} : vector<1x512xf32> to vector<1x128xf32>
    %262 = arith.negf %261 : vector<1x128xf32>
    %263 = math.exp %262 : vector<1x128xf32>
    %cst_93 = arith.constant 1.000000e+00 : f32
    %264 = vector.broadcast %cst_93 : f32 to vector<1x128xf32>
    %265 = arith.addf %264, %263 : vector<1x128xf32>
    %266 = arith.divf %264, %265 : vector<1x128xf32>
    %267 = arith.mulf %258, %208 : vector<1x128xf32>
    %268 = arith.mulf %252, %260 : vector<1x128xf32>
    %269 = arith.addf %267, %268 : vector<1x128xf32>
    %270 = math.tanh %269 : vector<1x128xf32>
    %271 = arith.mulf %266, %270 : vector<1x128xf32>
    %272 = vector.extract_strided_slice %23 {offsets = [4, 0], sizes = [1, 512], strides = [1, 1]} : vector<8x512xf32> to vector<1x512xf32>
    %c0_94 = arith.constant 0 : index
    %c0_95 = arith.constant 0 : index
    %273 = vector.load %arg8[%c0_94, %c0_95] : memref<128x512xf32, #tpu.memory_space<vmem>>, vector<128x512xf32>
    %cst_96 = arith.constant dense<0.000000e+00> : vector<1x512xf32>
    %274 = tpu.matmul %239, %273, %cst_96 {dimension_numbers = #tpu.dot_dimension_numbers<[1], [0], [0], [1], [0, 0, 1, 1], [], []>} : vector<1x128xf32>, vector<128x512xf32>, vector<1x512xf32> -> vector<1x512xf32>
    %275 = arith.addf %272, %274 : vector<1x512xf32>
    %276 = vector.extract_strided_slice %275 {offsets = [0, 0], sizes = [1, 128], strides = [1, 1]} : vector<1x512xf32> to vector<1x128xf32>
    %277 = arith.negf %276 : vector<1x128xf32>
    %278 = math.exp %277 : vector<1x128xf32>
    %cst_97 = arith.constant 1.000000e+00 : f32
    %279 = vector.broadcast %cst_97 : f32 to vector<1x128xf32>
    %280 = arith.addf %279, %278 : vector<1x128xf32>
    %281 = arith.divf %279, %280 : vector<1x128xf32>
    %282 = vector.extract_strided_slice %275 {offsets = [0, 128], sizes = [1, 128], strides = [1, 1]} : vector<1x512xf32> to vector<1x128xf32>
    %283 = arith.negf %282 : vector<1x128xf32>
    %284 = math.exp %283 : vector<1x128xf32>
    %cst_98 = arith.constant 1.000000e+00 : f32
    %285 = vector.broadcast %cst_98 : f32 to vector<1x128xf32>
    %286 = arith.addf %285, %284 : vector<1x128xf32>
    %287 = arith.divf %285, %286 : vector<1x128xf32>
    %288 = vector.extract_strided_slice %275 {offsets = [0, 256], sizes = [1, 128], strides = [1, 1]} : vector<1x512xf32> to vector<1x128xf32>
    %289 = math.tanh %288 : vector<1x128xf32>
    %290 = vector.extract_strided_slice %275 {offsets = [0, 384], sizes = [1, 128], strides = [1, 1]} : vector<1x512xf32> to vector<1x128xf32>
    %291 = arith.negf %290 : vector<1x128xf32>
    %292 = math.exp %291 : vector<1x128xf32>
    %cst_99 = arith.constant 1.000000e+00 : f32
    %293 = vector.broadcast %cst_99 : f32 to vector<1x128xf32>
    %294 = arith.addf %293, %292 : vector<1x128xf32>
    %295 = arith.divf %293, %294 : vector<1x128xf32>
    %296 = arith.mulf %287, %237 : vector<1x128xf32>
    %297 = arith.mulf %281, %289 : vector<1x128xf32>
    %298 = arith.addf %296, %297 : vector<1x128xf32>
    %299 = math.tanh %298 : vector<1x128xf32>
    %300 = arith.mulf %295, %299 : vector<1x128xf32>
    %c0_100 = arith.constant 0 : index
    %c0_101 = arith.constant 0 : index
    %301 = vector.load %arg10[%c0_100, %c0_101] : memref<128x512xf32, #tpu.memory_space<vmem>>, vector<128x512xf32>
    %cst_102 = arith.constant dense<0.000000e+00> : vector<1x512xf32>
    %302 = tpu.matmul %300, %301, %cst_102 {dimension_numbers = #tpu.dot_dimension_numbers<[1], [0], [0], [1], [0, 0, 1, 1], [], []>} : vector<1x128xf32>, vector<128x512xf32>, vector<1x512xf32> -> vector<1x512xf32>
    %c0_103 = arith.constant 0 : index
    %c0_104 = arith.constant 0 : index
    %303 = vector.load %arg12[%c0_103, %c0_104] : memref<1x512xf32, #tpu.memory_space<vmem>>, vector<1x512xf32>
    %304 = arith.addf %302, %303 : vector<1x512xf32>
    %c0_105 = arith.constant 0 : index
    %c0_106 = arith.constant 0 : index
    %305 = vector.load %arg11[%c0_105, %c0_106] : memref<128x512xf32, #tpu.memory_space<vmem>>, vector<128x512xf32>
    %cst_107 = arith.constant dense<0.000000e+00> : vector<1x512xf32>
    %306 = tpu.matmul %271, %305, %cst_107 {dimension_numbers = #tpu.dot_dimension_numbers<[1], [0], [0], [1], [0, 0, 1, 1], [], []>} : vector<1x128xf32>, vector<128x512xf32>, vector<1x512xf32> -> vector<1x512xf32>
    %307 = arith.addf %304, %306 : vector<1x512xf32>
    %308 = vector.extract_strided_slice %307 {offsets = [0, 0], sizes = [1, 128], strides = [1, 1]} : vector<1x512xf32> to vector<1x128xf32>
    %309 = arith.negf %308 : vector<1x128xf32>
    %310 = math.exp %309 : vector<1x128xf32>
    %cst_108 = arith.constant 1.000000e+00 : f32
    %311 = vector.broadcast %cst_108 : f32 to vector<1x128xf32>
    %312 = arith.addf %311, %310 : vector<1x128xf32>
    %313 = arith.divf %311, %312 : vector<1x128xf32>
    %314 = vector.extract_strided_slice %307 {offsets = [0, 128], sizes = [1, 128], strides = [1, 1]} : vector<1x512xf32> to vector<1x128xf32>
    %315 = arith.negf %314 : vector<1x128xf32>
    %316 = math.exp %315 : vector<1x128xf32>
    %cst_109 = arith.constant 1.000000e+00 : f32
    %317 = vector.broadcast %cst_109 : f32 to vector<1x128xf32>
    %318 = arith.addf %317, %316 : vector<1x128xf32>
    %319 = arith.divf %317, %318 : vector<1x128xf32>
    %320 = vector.extract_strided_slice %307 {offsets = [0, 256], sizes = [1, 128], strides = [1, 1]} : vector<1x512xf32> to vector<1x128xf32>
    %321 = math.tanh %320 : vector<1x128xf32>
    %322 = vector.extract_strided_slice %307 {offsets = [0, 384], sizes = [1, 128], strides = [1, 1]} : vector<1x512xf32> to vector<1x128xf32>
    %323 = arith.negf %322 : vector<1x128xf32>
    %324 = math.exp %323 : vector<1x128xf32>
    %cst_110 = arith.constant 1.000000e+00 : f32
    %325 = vector.broadcast %cst_110 : f32 to vector<1x128xf32>
    %326 = arith.addf %325, %324 : vector<1x128xf32>
    %327 = arith.divf %325, %326 : vector<1x128xf32>
    %328 = arith.mulf %319, %269 : vector<1x128xf32>
    %329 = arith.mulf %313, %321 : vector<1x128xf32>
    %330 = arith.addf %328, %329 : vector<1x128xf32>
    %331 = math.tanh %330 : vector<1x128xf32>
    %332 = arith.mulf %327, %331 : vector<1x128xf32>
    %333 = vector.extract_strided_slice %23 {offsets = [5, 0], sizes = [1, 512], strides = [1, 1]} : vector<8x512xf32> to vector<1x512xf32>
    %c0_111 = arith.constant 0 : index
    %c0_112 = arith.constant 0 : index
    %334 = vector.load %arg8[%c0_111, %c0_112] : memref<128x512xf32, #tpu.memory_space<vmem>>, vector<128x512xf32>
    %cst_113 = arith.constant dense<0.000000e+00> : vector<1x512xf32>
    %335 = tpu.matmul %300, %334, %cst_113 {dimension_numbers = #tpu.dot_dimension_numbers<[1], [0], [0], [1], [0, 0, 1, 1], [], []>} : vector<1x128xf32>, vector<128x512xf32>, vector<1x512xf32> -> vector<1x512xf32>
    %336 = arith.addf %333, %335 : vector<1x512xf32>
    %337 = vector.extract_strided_slice %336 {offsets = [0, 0], sizes = [1, 128], strides = [1, 1]} : vector<1x512xf32> to vector<1x128xf32>
    %338 = arith.negf %337 : vector<1x128xf32>
    %339 = math.exp %338 : vector<1x128xf32>
    %cst_114 = arith.constant 1.000000e+00 : f32
    %340 = vector.broadcast %cst_114 : f32 to vector<1x128xf32>
    %341 = arith.addf %340, %339 : vector<1x128xf32>
    %342 = arith.divf %340, %341 : vector<1x128xf32>
    %343 = vector.extract_strided_slice %336 {offsets = [0, 128], sizes = [1, 128], strides = [1, 1]} : vector<1x512xf32> to vector<1x128xf32>
    %344 = arith.negf %343 : vector<1x128xf32>
    %345 = math.exp %344 : vector<1x128xf32>
    %cst_115 = arith.constant 1.000000e+00 : f32
    %346 = vector.broadcast %cst_115 : f32 to vector<1x128xf32>
    %347 = arith.addf %346, %345 : vector<1x128xf32>
    %348 = arith.divf %346, %347 : vector<1x128xf32>
    %349 = vector.extract_strided_slice %336 {offsets = [0, 256], sizes = [1, 128], strides = [1, 1]} : vector<1x512xf32> to vector<1x128xf32>
    %350 = math.tanh %349 : vector<1x128xf32>
    %351 = vector.extract_strided_slice %336 {offsets = [0, 384], sizes = [1, 128], strides = [1, 1]} : vector<1x512xf32> to vector<1x128xf32>
    %352 = arith.negf %351 : vector<1x128xf32>
    %353 = math.exp %352 : vector<1x128xf32>
    %cst_116 = arith.constant 1.000000e+00 : f32
    %354 = vector.broadcast %cst_116 : f32 to vector<1x128xf32>
    %355 = arith.addf %354, %353 : vector<1x128xf32>
    %356 = arith.divf %354, %355 : vector<1x128xf32>
    %357 = arith.mulf %348, %298 : vector<1x128xf32>
    %358 = arith.mulf %342, %350 : vector<1x128xf32>
    %359 = arith.addf %357, %358 : vector<1x128xf32>
    %360 = math.tanh %359 : vector<1x128xf32>
    %361 = arith.mulf %356, %360 : vector<1x128xf32>
    %c0_117 = arith.constant 0 : index
    %c0_118 = arith.constant 0 : index
    %362 = vector.load %arg10[%c0_117, %c0_118] : memref<128x512xf32, #tpu.memory_space<vmem>>, vector<128x512xf32>
    %cst_119 = arith.constant dense<0.000000e+00> : vector<1x512xf32>
    %363 = tpu.matmul %361, %362, %cst_119 {dimension_numbers = #tpu.dot_dimension_numbers<[1], [0], [0], [1], [0, 0, 1, 1], [], []>} : vector<1x128xf32>, vector<128x512xf32>, vector<1x512xf32> -> vector<1x512xf32>
    %c0_120 = arith.constant 0 : index
    %c0_121 = arith.constant 0 : index
    %364 = vector.load %arg12[%c0_120, %c0_121] : memref<1x512xf32, #tpu.memory_space<vmem>>, vector<1x512xf32>
    %365 = arith.addf %363, %364 : vector<1x512xf32>
    %c0_122 = arith.constant 0 : index
    %c0_123 = arith.constant 0 : index
    %366 = vector.load %arg11[%c0_122, %c0_123] : memref<128x512xf32, #tpu.memory_space<vmem>>, vector<128x512xf32>
    %cst_124 = arith.constant dense<0.000000e+00> : vector<1x512xf32>
    %367 = tpu.matmul %332, %366, %cst_124 {dimension_numbers = #tpu.dot_dimension_numbers<[1], [0], [0], [1], [0, 0, 1, 1], [], []>} : vector<1x128xf32>, vector<128x512xf32>, vector<1x512xf32> -> vector<1x512xf32>
    %368 = arith.addf %365, %367 : vector<1x512xf32>
    %369 = vector.extract_strided_slice %368 {offsets = [0, 0], sizes = [1, 128], strides = [1, 1]} : vector<1x512xf32> to vector<1x128xf32>
    %370 = arith.negf %369 : vector<1x128xf32>
    %371 = math.exp %370 : vector<1x128xf32>
    %cst_125 = arith.constant 1.000000e+00 : f32
    %372 = vector.broadcast %cst_125 : f32 to vector<1x128xf32>
    %373 = arith.addf %372, %371 : vector<1x128xf32>
    %374 = arith.divf %372, %373 : vector<1x128xf32>
    %375 = vector.extract_strided_slice %368 {offsets = [0, 128], sizes = [1, 128], strides = [1, 1]} : vector<1x512xf32> to vector<1x128xf32>
    %376 = arith.negf %375 : vector<1x128xf32>
    %377 = math.exp %376 : vector<1x128xf32>
    %cst_126 = arith.constant 1.000000e+00 : f32
    %378 = vector.broadcast %cst_126 : f32 to vector<1x128xf32>
    %379 = arith.addf %378, %377 : vector<1x128xf32>
    %380 = arith.divf %378, %379 : vector<1x128xf32>
    %381 = vector.extract_strided_slice %368 {offsets = [0, 256], sizes = [1, 128], strides = [1, 1]} : vector<1x512xf32> to vector<1x128xf32>
    %382 = math.tanh %381 : vector<1x128xf32>
    %383 = vector.extract_strided_slice %368 {offsets = [0, 384], sizes = [1, 128], strides = [1, 1]} : vector<1x512xf32> to vector<1x128xf32>
    %384 = arith.negf %383 : vector<1x128xf32>
    %385 = math.exp %384 : vector<1x128xf32>
    %cst_127 = arith.constant 1.000000e+00 : f32
    %386 = vector.broadcast %cst_127 : f32 to vector<1x128xf32>
    %387 = arith.addf %386, %385 : vector<1x128xf32>
    %388 = arith.divf %386, %387 : vector<1x128xf32>
    %389 = arith.mulf %380, %330 : vector<1x128xf32>
    %390 = arith.mulf %374, %382 : vector<1x128xf32>
    %391 = arith.addf %389, %390 : vector<1x128xf32>
    %392 = math.tanh %391 : vector<1x128xf32>
    %393 = arith.mulf %388, %392 : vector<1x128xf32>
    %394 = vector.extract_strided_slice %23 {offsets = [6, 0], sizes = [1, 512], strides = [1, 1]} : vector<8x512xf32> to vector<1x512xf32>
    %c0_128 = arith.constant 0 : index
    %c0_129 = arith.constant 0 : index
    %395 = vector.load %arg8[%c0_128, %c0_129] : memref<128x512xf32, #tpu.memory_space<vmem>>, vector<128x512xf32>
    %cst_130 = arith.constant dense<0.000000e+00> : vector<1x512xf32>
    %396 = tpu.matmul %361, %395, %cst_130 {dimension_numbers = #tpu.dot_dimension_numbers<[1], [0], [0], [1], [0, 0, 1, 1], [], []>} : vector<1x128xf32>, vector<128x512xf32>, vector<1x512xf32> -> vector<1x512xf32>
    %397 = arith.addf %394, %396 : vector<1x512xf32>
    %398 = vector.extract_strided_slice %397 {offsets = [0, 0], sizes = [1, 128], strides = [1, 1]} : vector<1x512xf32> to vector<1x128xf32>
    %399 = arith.negf %398 : vector<1x128xf32>
    %400 = math.exp %399 : vector<1x128xf32>
    %cst_131 = arith.constant 1.000000e+00 : f32
    %401 = vector.broadcast %cst_131 : f32 to vector<1x128xf32>
    %402 = arith.addf %401, %400 : vector<1x128xf32>
    %403 = arith.divf %401, %402 : vector<1x128xf32>
    %404 = vector.extract_strided_slice %397 {offsets = [0, 128], sizes = [1, 128], strides = [1, 1]} : vector<1x512xf32> to vector<1x128xf32>
    %405 = arith.negf %404 : vector<1x128xf32>
    %406 = math.exp %405 : vector<1x128xf32>
    %cst_132 = arith.constant 1.000000e+00 : f32
    %407 = vector.broadcast %cst_132 : f32 to vector<1x128xf32>
    %408 = arith.addf %407, %406 : vector<1x128xf32>
    %409 = arith.divf %407, %408 : vector<1x128xf32>
    %410 = vector.extract_strided_slice %397 {offsets = [0, 256], sizes = [1, 128], strides = [1, 1]} : vector<1x512xf32> to vector<1x128xf32>
    %411 = math.tanh %410 : vector<1x128xf32>
    %412 = vector.extract_strided_slice %397 {offsets = [0, 384], sizes = [1, 128], strides = [1, 1]} : vector<1x512xf32> to vector<1x128xf32>
    %413 = arith.negf %412 : vector<1x128xf32>
    %414 = math.exp %413 : vector<1x128xf32>
    %cst_133 = arith.constant 1.000000e+00 : f32
    %415 = vector.broadcast %cst_133 : f32 to vector<1x128xf32>
    %416 = arith.addf %415, %414 : vector<1x128xf32>
    %417 = arith.divf %415, %416 : vector<1x128xf32>
    %418 = arith.mulf %409, %359 : vector<1x128xf32>
    %419 = arith.mulf %403, %411 : vector<1x128xf32>
    %420 = arith.addf %418, %419 : vector<1x128xf32>
    %421 = math.tanh %420 : vector<1x128xf32>
    %422 = arith.mulf %417, %421 : vector<1x128xf32>
    %c0_134 = arith.constant 0 : index
    %c0_135 = arith.constant 0 : index
    %423 = vector.load %arg10[%c0_134, %c0_135] : memref<128x512xf32, #tpu.memory_space<vmem>>, vector<128x512xf32>
    %cst_136 = arith.constant dense<0.000000e+00> : vector<1x512xf32>
    %424 = tpu.matmul %422, %423, %cst_136 {dimension_numbers = #tpu.dot_dimension_numbers<[1], [0], [0], [1], [0, 0, 1, 1], [], []>} : vector<1x128xf32>, vector<128x512xf32>, vector<1x512xf32> -> vector<1x512xf32>
    %c0_137 = arith.constant 0 : index
    %c0_138 = arith.constant 0 : index
    %425 = vector.load %arg12[%c0_137, %c0_138] : memref<1x512xf32, #tpu.memory_space<vmem>>, vector<1x512xf32>
    %426 = arith.addf %424, %425 : vector<1x512xf32>
    %c0_139 = arith.constant 0 : index
    %c0_140 = arith.constant 0 : index
    %427 = vector.load %arg11[%c0_139, %c0_140] : memref<128x512xf32, #tpu.memory_space<vmem>>, vector<128x512xf32>
    %cst_141 = arith.constant dense<0.000000e+00> : vector<1x512xf32>
    %428 = tpu.matmul %393, %427, %cst_141 {dimension_numbers = #tpu.dot_dimension_numbers<[1], [0], [0], [1], [0, 0, 1, 1], [], []>} : vector<1x128xf32>, vector<128x512xf32>, vector<1x512xf32> -> vector<1x512xf32>
    %429 = arith.addf %426, %428 : vector<1x512xf32>
    %430 = vector.extract_strided_slice %429 {offsets = [0, 0], sizes = [1, 128], strides = [1, 1]} : vector<1x512xf32> to vector<1x128xf32>
    %431 = arith.negf %430 : vector<1x128xf32>
    %432 = math.exp %431 : vector<1x128xf32>
    %cst_142 = arith.constant 1.000000e+00 : f32
    %433 = vector.broadcast %cst_142 : f32 to vector<1x128xf32>
    %434 = arith.addf %433, %432 : vector<1x128xf32>
    %435 = arith.divf %433, %434 : vector<1x128xf32>
    %436 = vector.extract_strided_slice %429 {offsets = [0, 128], sizes = [1, 128], strides = [1, 1]} : vector<1x512xf32> to vector<1x128xf32>
    %437 = arith.negf %436 : vector<1x128xf32>
    %438 = math.exp %437 : vector<1x128xf32>
    %cst_143 = arith.constant 1.000000e+00 : f32
    %439 = vector.broadcast %cst_143 : f32 to vector<1x128xf32>
    %440 = arith.addf %439, %438 : vector<1x128xf32>
    %441 = arith.divf %439, %440 : vector<1x128xf32>
    %442 = vector.extract_strided_slice %429 {offsets = [0, 256], sizes = [1, 128], strides = [1, 1]} : vector<1x512xf32> to vector<1x128xf32>
    %443 = math.tanh %442 : vector<1x128xf32>
    %444 = vector.extract_strided_slice %429 {offsets = [0, 384], sizes = [1, 128], strides = [1, 1]} : vector<1x512xf32> to vector<1x128xf32>
    %445 = arith.negf %444 : vector<1x128xf32>
    %446 = math.exp %445 : vector<1x128xf32>
    %cst_144 = arith.constant 1.000000e+00 : f32
    %447 = vector.broadcast %cst_144 : f32 to vector<1x128xf32>
    %448 = arith.addf %447, %446 : vector<1x128xf32>
    %449 = arith.divf %447, %448 : vector<1x128xf32>
    %450 = arith.mulf %441, %391 : vector<1x128xf32>
    %451 = arith.mulf %435, %443 : vector<1x128xf32>
    %452 = arith.addf %450, %451 : vector<1x128xf32>
    %453 = math.tanh %452 : vector<1x128xf32>
    %454 = arith.mulf %449, %453 : vector<1x128xf32>
    %455 = vector.extract_strided_slice %23 {offsets = [7, 0], sizes = [1, 512], strides = [1, 1]} : vector<8x512xf32> to vector<1x512xf32>
    %c0_145 = arith.constant 0 : index
    %c0_146 = arith.constant 0 : index
    %456 = vector.load %arg8[%c0_145, %c0_146] : memref<128x512xf32, #tpu.memory_space<vmem>>, vector<128x512xf32>
    %cst_147 = arith.constant dense<0.000000e+00> : vector<1x512xf32>
    %457 = tpu.matmul %422, %456, %cst_147 {dimension_numbers = #tpu.dot_dimension_numbers<[1], [0], [0], [1], [0, 0, 1, 1], [], []>} : vector<1x128xf32>, vector<128x512xf32>, vector<1x512xf32> -> vector<1x512xf32>
    %458 = arith.addf %455, %457 : vector<1x512xf32>
    %459 = vector.extract_strided_slice %458 {offsets = [0, 0], sizes = [1, 128], strides = [1, 1]} : vector<1x512xf32> to vector<1x128xf32>
    %460 = arith.negf %459 : vector<1x128xf32>
    %461 = math.exp %460 : vector<1x128xf32>
    %cst_148 = arith.constant 1.000000e+00 : f32
    %462 = vector.broadcast %cst_148 : f32 to vector<1x128xf32>
    %463 = arith.addf %462, %461 : vector<1x128xf32>
    %464 = arith.divf %462, %463 : vector<1x128xf32>
    %465 = vector.extract_strided_slice %458 {offsets = [0, 128], sizes = [1, 128], strides = [1, 1]} : vector<1x512xf32> to vector<1x128xf32>
    %466 = arith.negf %465 : vector<1x128xf32>
    %467 = math.exp %466 : vector<1x128xf32>
    %cst_149 = arith.constant 1.000000e+00 : f32
    %468 = vector.broadcast %cst_149 : f32 to vector<1x128xf32>
    %469 = arith.addf %468, %467 : vector<1x128xf32>
    %470 = arith.divf %468, %469 : vector<1x128xf32>
    %471 = vector.extract_strided_slice %458 {offsets = [0, 256], sizes = [1, 128], strides = [1, 1]} : vector<1x512xf32> to vector<1x128xf32>
    %472 = math.tanh %471 : vector<1x128xf32>
    %473 = vector.extract_strided_slice %458 {offsets = [0, 384], sizes = [1, 128], strides = [1, 1]} : vector<1x512xf32> to vector<1x128xf32>
    %474 = arith.negf %473 : vector<1x128xf32>
    %475 = math.exp %474 : vector<1x128xf32>
    %cst_150 = arith.constant 1.000000e+00 : f32
    %476 = vector.broadcast %cst_150 : f32 to vector<1x128xf32>
    %477 = arith.addf %476, %475 : vector<1x128xf32>
    %478 = arith.divf %476, %477 : vector<1x128xf32>
    %479 = arith.mulf %470, %420 : vector<1x128xf32>
    %480 = arith.mulf %464, %472 : vector<1x128xf32>
    %481 = arith.addf %479, %480 : vector<1x128xf32>
    %482 = math.tanh %481 : vector<1x128xf32>
    %483 = arith.mulf %478, %482 : vector<1x128xf32>
    %c0_151 = arith.constant 0 : index
    %c0_152 = arith.constant 0 : index
    %484 = vector.load %arg10[%c0_151, %c0_152] : memref<128x512xf32, #tpu.memory_space<vmem>>, vector<128x512xf32>
    %cst_153 = arith.constant dense<0.000000e+00> : vector<1x512xf32>
    %485 = tpu.matmul %483, %484, %cst_153 {dimension_numbers = #tpu.dot_dimension_numbers<[1], [0], [0], [1], [0, 0, 1, 1], [], []>} : vector<1x128xf32>, vector<128x512xf32>, vector<1x512xf32> -> vector<1x512xf32>
    %c0_154 = arith.constant 0 : index
    %c0_155 = arith.constant 0 : index
    %486 = vector.load %arg12[%c0_154, %c0_155] : memref<1x512xf32, #tpu.memory_space<vmem>>, vector<1x512xf32>
    %487 = arith.addf %485, %486 : vector<1x512xf32>
    %c0_156 = arith.constant 0 : index
    %c0_157 = arith.constant 0 : index
    %488 = vector.load %arg11[%c0_156, %c0_157] : memref<128x512xf32, #tpu.memory_space<vmem>>, vector<128x512xf32>
    %cst_158 = arith.constant dense<0.000000e+00> : vector<1x512xf32>
    %489 = tpu.matmul %454, %488, %cst_158 {dimension_numbers = #tpu.dot_dimension_numbers<[1], [0], [0], [1], [0, 0, 1, 1], [], []>} : vector<1x128xf32>, vector<128x512xf32>, vector<1x512xf32> -> vector<1x512xf32>
    %490 = arith.addf %487, %489 : vector<1x512xf32>
    %491 = vector.extract_strided_slice %490 {offsets = [0, 0], sizes = [1, 128], strides = [1, 1]} : vector<1x512xf32> to vector<1x128xf32>
    %492 = arith.negf %491 : vector<1x128xf32>
    %493 = math.exp %492 : vector<1x128xf32>
    %cst_159 = arith.constant 1.000000e+00 : f32
    %494 = vector.broadcast %cst_159 : f32 to vector<1x128xf32>
    %495 = arith.addf %494, %493 : vector<1x128xf32>
    %496 = arith.divf %494, %495 : vector<1x128xf32>
    %497 = vector.extract_strided_slice %490 {offsets = [0, 128], sizes = [1, 128], strides = [1, 1]} : vector<1x512xf32> to vector<1x128xf32>
    %498 = arith.negf %497 : vector<1x128xf32>
    %499 = math.exp %498 : vector<1x128xf32>
    %cst_160 = arith.constant 1.000000e+00 : f32
    %500 = vector.broadcast %cst_160 : f32 to vector<1x128xf32>
    %501 = arith.addf %500, %499 : vector<1x128xf32>
    %502 = arith.divf %500, %501 : vector<1x128xf32>
    %503 = vector.extract_strided_slice %490 {offsets = [0, 256], sizes = [1, 128], strides = [1, 1]} : vector<1x512xf32> to vector<1x128xf32>
    %504 = math.tanh %503 : vector<1x128xf32>
    %505 = vector.extract_strided_slice %490 {offsets = [0, 384], sizes = [1, 128], strides = [1, 1]} : vector<1x512xf32> to vector<1x128xf32>
    %506 = arith.negf %505 : vector<1x128xf32>
    %507 = math.exp %506 : vector<1x128xf32>
    %cst_161 = arith.constant 1.000000e+00 : f32
    %508 = vector.broadcast %cst_161 : f32 to vector<1x128xf32>
    %509 = arith.addf %508, %507 : vector<1x128xf32>
    %510 = arith.divf %508, %509 : vector<1x128xf32>
    %511 = arith.mulf %502, %452 : vector<1x128xf32>
    %512 = arith.mulf %496, %504 : vector<1x128xf32>
    %513 = arith.addf %511, %512 : vector<1x128xf32>
    %514 = math.tanh %513 : vector<1x128xf32>
    %515 = arith.mulf %510, %514 : vector<1x128xf32>
    %cst_162 = arith.constant 0.000000e+00 : f32
    %516 = vector.broadcast %cst_162 : f32 to vector<8x128xf32>
    %cst_163 = arith.constant 0.000000e+00 : f32
    %517 = vector.broadcast %cst_163 : f32 to vector<8x128xf32>
    %c0_164 = arith.constant 0 : index
    %c0_165 = arith.constant 0 : index
    %c0_166 = arith.constant 0 : index
    %518 = vector.load %arg13[%c0_164, %c0_165, %c0_166] : memref<3x8x48xf32, #tpu.memory_space<vmem>>, vector<1x8x48xf32>
    %519 = vector.shape_cast %518 : vector<1x8x48xf32> to vector<8x48xf32>
    %c0_167 = arith.constant 0 : index
    %c0_168 = arith.constant 0 : index
    %c0_169 = arith.constant 0 : index
    %520 = vector.load %arg14[%c0_167, %c0_168, %c0_169] : memref<3x8x1xf32, #tpu.memory_space<vmem>>, vector<1x8x1xf32>
    %521 = vector.shape_cast %520 : vector<1x8x1xf32> to vector<8x1xf32>
    %c0_170 = arith.constant 0 : index
    %c0_171 = arith.constant 0 : index
    %522 = vector.load %arg15[%c0_170, %c0_171] : memref<48x512xf32, #tpu.memory_space<vmem>>, vector<48x512xf32>
    %cst_172 = arith.constant dense<0.000000e+00> : vector<8x512xf32>
    %523 = tpu.matmul %519, %522, %cst_172 {dimension_numbers = #tpu.dot_dimension_numbers<[1], [0], [0], [1], [0, 0, 1, 1], [], []>} : vector<8x48xf32>, vector<48x512xf32>, vector<8x512xf32> -> vector<8x512xf32>
    %c0_173 = arith.constant 0 : index
    %c0_174 = arith.constant 0 : index
    %524 = vector.load %arg17[%c0_173, %c0_174] : memref<1x512xf32, #tpu.memory_space<vmem>>, vector<1x512xf32>
    %525 = vector.broadcast %524 : vector<1x512xf32> to vector<8x512xf32>
    %526 = arith.addf %523, %525 : vector<8x512xf32>
    %c0_175 = arith.constant 0 : index
    %c0_176 = arith.constant 0 : index
    %527 = vector.load %arg16[%c0_175, %c0_176] : memref<128x512xf32, #tpu.memory_space<vmem>>, vector<128x512xf32>
    %cst_177 = arith.constant dense<0.000000e+00> : vector<8x512xf32>
    %528 = tpu.matmul %516, %527, %cst_177 {dimension_numbers = #tpu.dot_dimension_numbers<[1], [0], [0], [1], [0, 0, 1, 1], [], []>} : vector<8x128xf32>, vector<128x512xf32>, vector<8x512xf32> -> vector<8x512xf32>
    %529 = arith.addf %526, %528 : vector<8x512xf32>
    %530 = vector.extract_strided_slice %529 {offsets = [0, 0], sizes = [8, 128], strides = [1, 1]} : vector<8x512xf32> to vector<8x128xf32>
    %531 = arith.negf %530 : vector<8x128xf32>
    %532 = math.exp %531 : vector<8x128xf32>
    %cst_178 = arith.constant 1.000000e+00 : f32
    %533 = vector.broadcast %cst_178 : f32 to vector<8x128xf32>
    %534 = arith.addf %533, %532 : vector<8x128xf32>
    %535 = arith.divf %533, %534 : vector<8x128xf32>
    %536 = vector.extract_strided_slice %529 {offsets = [0, 128], sizes = [8, 128], strides = [1, 1]} : vector<8x512xf32> to vector<8x128xf32>
    %537 = arith.negf %536 : vector<8x128xf32>
    %538 = math.exp %537 : vector<8x128xf32>
    %cst_179 = arith.constant 1.000000e+00 : f32
    %539 = vector.broadcast %cst_179 : f32 to vector<8x128xf32>
    %540 = arith.addf %539, %538 : vector<8x128xf32>
    %541 = arith.divf %539, %540 : vector<8x128xf32>
    %542 = vector.extract_strided_slice %529 {offsets = [0, 256], sizes = [8, 128], strides = [1, 1]} : vector<8x512xf32> to vector<8x128xf32>
    %543 = math.tanh %542 : vector<8x128xf32>
    %544 = vector.extract_strided_slice %529 {offsets = [0, 384], sizes = [8, 128], strides = [1, 1]} : vector<8x512xf32> to vector<8x128xf32>
    %545 = arith.negf %544 : vector<8x128xf32>
    %546 = math.exp %545 : vector<8x128xf32>
    %cst_180 = arith.constant 1.000000e+00 : f32
    %547 = vector.broadcast %cst_180 : f32 to vector<8x128xf32>
    %548 = arith.addf %547, %546 : vector<8x128xf32>
    %549 = arith.divf %547, %548 : vector<8x128xf32>
    %550 = arith.mulf %541, %517 : vector<8x128xf32>
    %551 = arith.mulf %535, %543 : vector<8x128xf32>
    %552 = arith.addf %550, %551 : vector<8x128xf32>
    %553 = math.tanh %552 : vector<8x128xf32>
    %554 = arith.mulf %549, %553 : vector<8x128xf32>
    %555 = vector.broadcast %521 : vector<8x1xf32> to vector<8x128xf32>
    %556 = arith.mulf %555, %554 : vector<8x128xf32>
    %cst_181 = arith.constant 1.000000e+00 : f32
    %557 = vector.broadcast %cst_181 : f32 to vector<8x1xf32>
    %558 = arith.subf %557, %521 : vector<8x1xf32>
    %559 = vector.broadcast %558 : vector<8x1xf32> to vector<8x128xf32>
    %560 = arith.mulf %559, %516 : vector<8x128xf32>
    %561 = arith.addf %556, %560 : vector<8x128xf32>
    %562 = vector.broadcast %521 : vector<8x1xf32> to vector<8x128xf32>
    %563 = arith.mulf %562, %552 : vector<8x128xf32>
    %cst_182 = arith.constant 1.000000e+00 : f32
    %564 = vector.broadcast %cst_182 : f32 to vector<8x1xf32>
    %565 = arith.subf %564, %521 : vector<8x1xf32>
    %566 = vector.broadcast %565 : vector<8x1xf32> to vector<8x128xf32>
    %567 = arith.mulf %566, %517 : vector<8x128xf32>
    %568 = arith.addf %563, %567 : vector<8x128xf32>
    %c1 = arith.constant 1 : index
    %c0_183 = arith.constant 0 : index
    %c0_184 = arith.constant 0 : index
    %569 = vector.load %arg13[%c1, %c0_183, %c0_184] : memref<3x8x48xf32, #tpu.memory_space<vmem>>, vector<1x8x48xf32>
    %570 = vector.shape_cast %569 : vector<1x8x48xf32> to vector<8x48xf32>
    %c1_185 = arith.constant 1 : index
    %c0_186 = arith.constant 0 : index
    %c0_187 = arith.constant 0 : index
    %571 = vector.load %arg14[%c1_185, %c0_186, %c0_187] : memref<3x8x1xf32, #tpu.memory_space<vmem>>, vector<1x8x1xf32>
    %572 = vector.shape_cast %571 : vector<1x8x1xf32> to vector<8x1xf32>
    %c0_188 = arith.constant 0 : index
    %c0_189 = arith.constant 0 : index
    %573 = vector.load %arg15[%c0_188, %c0_189] : memref<48x512xf32, #tpu.memory_space<vmem>>, vector<48x512xf32>
    %cst_190 = arith.constant dense<0.000000e+00> : vector<8x512xf32>
    %574 = tpu.matmul %570, %573, %cst_190 {dimension_numbers = #tpu.dot_dimension_numbers<[1], [0], [0], [1], [0, 0, 1, 1], [], []>} : vector<8x48xf32>, vector<48x512xf32>, vector<8x512xf32> -> vector<8x512xf32>
    %c0_191 = arith.constant 0 : index
    %c0_192 = arith.constant 0 : index
    %575 = vector.load %arg17[%c0_191, %c0_192] : memref<1x512xf32, #tpu.memory_space<vmem>>, vector<1x512xf32>
    %576 = vector.broadcast %575 : vector<1x512xf32> to vector<8x512xf32>
    %577 = arith.addf %574, %576 : vector<8x512xf32>
    %c0_193 = arith.constant 0 : index
    %c0_194 = arith.constant 0 : index
    %578 = vector.load %arg16[%c0_193, %c0_194] : memref<128x512xf32, #tpu.memory_space<vmem>>, vector<128x512xf32>
    %cst_195 = arith.constant dense<0.000000e+00> : vector<8x512xf32>
    %579 = tpu.matmul %561, %578, %cst_195 {dimension_numbers = #tpu.dot_dimension_numbers<[1], [0], [0], [1], [0, 0, 1, 1], [], []>} : vector<8x128xf32>, vector<128x512xf32>, vector<8x512xf32> -> vector<8x512xf32>
    %580 = arith.addf %577, %579 : vector<8x512xf32>
    %581 = vector.extract_strided_slice %580 {offsets = [0, 0], sizes = [8, 128], strides = [1, 1]} : vector<8x512xf32> to vector<8x128xf32>
    %582 = arith.negf %581 : vector<8x128xf32>
    %583 = math.exp %582 : vector<8x128xf32>
    %cst_196 = arith.constant 1.000000e+00 : f32
    %584 = vector.broadcast %cst_196 : f32 to vector<8x128xf32>
    %585 = arith.addf %584, %583 : vector<8x128xf32>
    %586 = arith.divf %584, %585 : vector<8x128xf32>
    %587 = vector.extract_strided_slice %580 {offsets = [0, 128], sizes = [8, 128], strides = [1, 1]} : vector<8x512xf32> to vector<8x128xf32>
    %588 = arith.negf %587 : vector<8x128xf32>
    %589 = math.exp %588 : vector<8x128xf32>
    %cst_197 = arith.constant 1.000000e+00 : f32
    %590 = vector.broadcast %cst_197 : f32 to vector<8x128xf32>
    %591 = arith.addf %590, %589 : vector<8x128xf32>
    %592 = arith.divf %590, %591 : vector<8x128xf32>
    %593 = vector.extract_strided_slice %580 {offsets = [0, 256], sizes = [8, 128], strides = [1, 1]} : vector<8x512xf32> to vector<8x128xf32>
    %594 = math.tanh %593 : vector<8x128xf32>
    %595 = vector.extract_strided_slice %580 {offsets = [0, 384], sizes = [8, 128], strides = [1, 1]} : vector<8x512xf32> to vector<8x128xf32>
    %596 = arith.negf %595 : vector<8x128xf32>
    %597 = math.exp %596 : vector<8x128xf32>
    %cst_198 = arith.constant 1.000000e+00 : f32
    %598 = vector.broadcast %cst_198 : f32 to vector<8x128xf32>
    %599 = arith.addf %598, %597 : vector<8x128xf32>
    %600 = arith.divf %598, %599 : vector<8x128xf32>
    %601 = arith.mulf %592, %568 : vector<8x128xf32>
    %602 = arith.mulf %586, %594 : vector<8x128xf32>
    %603 = arith.addf %601, %602 : vector<8x128xf32>
    %604 = math.tanh %603 : vector<8x128xf32>
    %605 = arith.mulf %600, %604 : vector<8x128xf32>
    %606 = vector.broadcast %572 : vector<8x1xf32> to vector<8x128xf32>
    %607 = arith.mulf %606, %605 : vector<8x128xf32>
    %cst_199 = arith.constant 1.000000e+00 : f32
    %608 = vector.broadcast %cst_199 : f32 to vector<8x1xf32>
    %609 = arith.subf %608, %572 : vector<8x1xf32>
    %610 = vector.broadcast %609 : vector<8x1xf32> to vector<8x128xf32>
    %611 = arith.mulf %610, %561 : vector<8x128xf32>
    %612 = arith.addf %607, %611 : vector<8x128xf32>
    %613 = vector.broadcast %572 : vector<8x1xf32> to vector<8x128xf32>
    %614 = arith.mulf %613, %603 : vector<8x128xf32>
    %cst_200 = arith.constant 1.000000e+00 : f32
    %615 = vector.broadcast %cst_200 : f32 to vector<8x1xf32>
    %616 = arith.subf %615, %572 : vector<8x1xf32>
    %617 = vector.broadcast %616 : vector<8x1xf32> to vector<8x128xf32>
    %618 = arith.mulf %617, %568 : vector<8x128xf32>
    %619 = arith.addf %614, %618 : vector<8x128xf32>
    %c2 = arith.constant 2 : index
    %c0_201 = arith.constant 0 : index
    %c0_202 = arith.constant 0 : index
    %620 = vector.load %arg13[%c2, %c0_201, %c0_202] : memref<3x8x48xf32, #tpu.memory_space<vmem>>, vector<1x8x48xf32>
    %621 = vector.shape_cast %620 : vector<1x8x48xf32> to vector<8x48xf32>
    %c2_203 = arith.constant 2 : index
    %c0_204 = arith.constant 0 : index
    %c0_205 = arith.constant 0 : index
    %622 = vector.load %arg14[%c2_203, %c0_204, %c0_205] : memref<3x8x1xf32, #tpu.memory_space<vmem>>, vector<1x8x1xf32>
    %623 = vector.shape_cast %622 : vector<1x8x1xf32> to vector<8x1xf32>
    %c0_206 = arith.constant 0 : index
    %c0_207 = arith.constant 0 : index
    %624 = vector.load %arg15[%c0_206, %c0_207] : memref<48x512xf32, #tpu.memory_space<vmem>>, vector<48x512xf32>
    %cst_208 = arith.constant dense<0.000000e+00> : vector<8x512xf32>
    %625 = tpu.matmul %621, %624, %cst_208 {dimension_numbers = #tpu.dot_dimension_numbers<[1], [0], [0], [1], [0, 0, 1, 1], [], []>} : vector<8x48xf32>, vector<48x512xf32>, vector<8x512xf32> -> vector<8x512xf32>
    %c0_209 = arith.constant 0 : index
    %c0_210 = arith.constant 0 : index
    %626 = vector.load %arg17[%c0_209, %c0_210] : memref<1x512xf32, #tpu.memory_space<vmem>>, vector<1x512xf32>
    %627 = vector.broadcast %626 : vector<1x512xf32> to vector<8x512xf32>
    %628 = arith.addf %625, %627 : vector<8x512xf32>
    %c0_211 = arith.constant 0 : index
    %c0_212 = arith.constant 0 : index
    %629 = vector.load %arg16[%c0_211, %c0_212] : memref<128x512xf32, #tpu.memory_space<vmem>>, vector<128x512xf32>
    %cst_213 = arith.constant dense<0.000000e+00> : vector<8x512xf32>
    %630 = tpu.matmul %612, %629, %cst_213 {dimension_numbers = #tpu.dot_dimension_numbers<[1], [0], [0], [1], [0, 0, 1, 1], [], []>} : vector<8x128xf32>, vector<128x512xf32>, vector<8x512xf32> -> vector<8x512xf32>
    %631 = arith.addf %628, %630 : vector<8x512xf32>
    %632 = vector.extract_strided_slice %631 {offsets = [0, 0], sizes = [8, 128], strides = [1, 1]} : vector<8x512xf32> to vector<8x128xf32>
    %633 = arith.negf %632 : vector<8x128xf32>
    %634 = math.exp %633 : vector<8x128xf32>
    %cst_214 = arith.constant 1.000000e+00 : f32
    %635 = vector.broadcast %cst_214 : f32 to vector<8x128xf32>
    %636 = arith.addf %635, %634 : vector<8x128xf32>
    %637 = arith.divf %635, %636 : vector<8x128xf32>
    %638 = vector.extract_strided_slice %631 {offsets = [0, 128], sizes = [8, 128], strides = [1, 1]} : vector<8x512xf32> to vector<8x128xf32>
    %639 = arith.negf %638 : vector<8x128xf32>
    %640 = math.exp %639 : vector<8x128xf32>
    %cst_215 = arith.constant 1.000000e+00 : f32
    %641 = vector.broadcast %cst_215 : f32 to vector<8x128xf32>
    %642 = arith.addf %641, %640 : vector<8x128xf32>
    %643 = arith.divf %641, %642 : vector<8x128xf32>
    %644 = vector.extract_strided_slice %631 {offsets = [0, 256], sizes = [8, 128], strides = [1, 1]} : vector<8x512xf32> to vector<8x128xf32>
    %645 = math.tanh %644 : vector<8x128xf32>
    %646 = vector.extract_strided_slice %631 {offsets = [0, 384], sizes = [8, 128], strides = [1, 1]} : vector<8x512xf32> to vector<8x128xf32>
    %647 = arith.negf %646 : vector<8x128xf32>
    %648 = math.exp %647 : vector<8x128xf32>
    %cst_216 = arith.constant 1.000000e+00 : f32
    %649 = vector.broadcast %cst_216 : f32 to vector<8x128xf32>
    %650 = arith.addf %649, %648 : vector<8x128xf32>
    %651 = arith.divf %649, %650 : vector<8x128xf32>
    %652 = arith.mulf %643, %619 : vector<8x128xf32>
    %653 = arith.mulf %637, %645 : vector<8x128xf32>
    %654 = arith.addf %652, %653 : vector<8x128xf32>
    %655 = math.tanh %654 : vector<8x128xf32>
    %656 = arith.mulf %651, %655 : vector<8x128xf32>
    %657 = vector.broadcast %623 : vector<8x1xf32> to vector<8x128xf32>
    %658 = arith.mulf %657, %656 : vector<8x128xf32>
    %cst_217 = arith.constant 1.000000e+00 : f32
    %659 = vector.broadcast %cst_217 : f32 to vector<8x1xf32>
    %660 = arith.subf %659, %623 : vector<8x1xf32>
    %661 = vector.broadcast %660 : vector<8x1xf32> to vector<8x128xf32>
    %662 = arith.mulf %661, %612 : vector<8x128xf32>
    %663 = arith.addf %658, %662 : vector<8x128xf32>
    %c0_218 = arith.constant 0 : index
    %c0_219 = arith.constant 0 : index
    %664 = vector.load %arg19[%c0_218, %c0_219] : memref<3x128xf32, #tpu.memory_space<vmem>>, vector<3x128xf32>
    %c0_220 = arith.constant 0 : index
    %c0_221 = arith.constant 0 : index
    %665 = vector.load %arg18[%c0_220, %c0_221] : memref<8x128xf32, #tpu.memory_space<vmem>>, vector<8x128xf32>
    %666 = tpu.transpose %665, [1, 0] : vector<8x128xf32> -> vector<128x8xf32>
    %cst_222 = arith.constant dense<0.000000e+00> : vector<3x8xf32>
    %667 = tpu.matmul %664, %666, %cst_222 {dimension_numbers = #tpu.dot_dimension_numbers<[1], [0], [0], [1], [0, 0, 1, 1], [], []>} : vector<3x128xf32>, vector<128x8xf32>, vector<3x8xf32> -> vector<3x8xf32>
    %cst_223 = arith.constant 0.0883883461 : f32
    %668 = vector.broadcast %cst_223 : f32 to vector<3x8xf32>
    %669 = arith.mulf %667, %668 : vector<3x8xf32>
    %c0_224 = arith.constant 0 : index
    %c0_225 = arith.constant 0 : index
    %670 = vector.load %arg20[%c0_224, %c0_225] : memref<3x8xf32, #tpu.memory_space<vmem>>, vector<3x8xf32>
    %cst_226 = arith.constant 0.000000e+00 : f32
    %671 = vector.broadcast %cst_226 : f32 to vector<3x8xf32>
    %672 = arith.cmpf ogt, %670, %671 : vector<3x8xf32>
    %cst_227 = arith.constant -1.000000e+30 : f32
    %673 = vector.broadcast %cst_227 : f32 to vector<3x8xf32>
    %674 = arith.select %672, %669, %673 : vector<3x8xi1>, vector<3x8xf32>
    %cst_228 = arith.constant dense<0xFF800000> : vector<3xf32>
    %675 = vector.multi_reduction <maximumf>, %674, %cst_228 [1] : vector<3x8xf32> to vector<3xf32>
    %676 = vector.shape_cast %675 : vector<3xf32> to vector<3x1xf32>
    %677 = vector.broadcast %676 : vector<3x1xf32> to vector<3x8xf32>
    %678 = arith.subf %674, %677 : vector<3x8xf32>
    %679 = math.exp %678 : vector<3x8xf32>
    %cst_229 = arith.constant dense<0.000000e+00> : vector<3xf32>
    %680 = vector.multi_reduction <add>, %679, %cst_229 [1] : vector<3x8xf32> to vector<3xf32>
    %681 = vector.shape_cast %680 : vector<3xf32> to vector<3x1xf32>
    %682 = tpu.reciprocal %681 {approx = true} : vector<3x1xf32> -> vector<3x1xf32>
    %683 = vector.broadcast %682 : vector<3x1xf32> to vector<3x8xf32>
    %684 = arith.mulf %679, %683 : vector<3x8xf32>
    %cst_230 = arith.constant dense<0.000000e+00> : vector<3x128xf32>
    %685 = tpu.matmul %684, %663, %cst_230 {dimension_numbers = #tpu.dot_dimension_numbers<[1], [0], [0], [1], [0, 0, 1, 1], [], []>} : vector<3x8xf32>, vector<8x128xf32>, vector<3x128xf32> -> vector<3x128xf32>
    %cst_231 = arith.constant 0.000000e+00 : f32
    %686 = vector.broadcast %cst_231 : f32 to vector<3x128xf32>
    %c0_232 = arith.constant 0 : index
    %c0_233 = arith.constant 0 : index
    %c0_234 = arith.constant 0 : index
    %687 = vector.load %arg21[%c0_232, %c0_233, %c0_234] : memref<2x128x64xf32, #tpu.memory_space<vmem>>, vector<1x128x64xf32>
    %688 = vector.shape_cast %687 : vector<1x128x64xf32> to vector<128x64xf32>
    %cst_235 = arith.constant dense<0.000000e+00> : vector<3x64xf32>
    %689 = tpu.matmul %685, %688, %cst_235 {dimension_numbers = #tpu.dot_dimension_numbers<[1], [0], [0], [1], [0, 0, 1, 1], [], []>} : vector<3x128xf32>, vector<128x64xf32>, vector<3x64xf32> -> vector<3x64xf32>
    %c0_236 = arith.constant 0 : index
    %c0_237 = arith.constant 0 : index
    %c0_238 = arith.constant 0 : index
    %690 = vector.load %arg22[%c0_236, %c0_237, %c0_238] : memref<2x1x64xf32, #tpu.memory_space<vmem>>, vector<1x1x64xf32>
    %691 = vector.shape_cast %690 : vector<1x1x64xf32> to vector<1x64xf32>
    %692 = vector.broadcast %691 : vector<1x64xf32> to vector<3x64xf32>
    %693 = arith.addf %689, %692 : vector<3x64xf32>
    %c0_239 = arith.constant 0 : index
    %c0_240 = arith.constant 0 : index
    %c0_241 = arith.constant 0 : index
    %694 = vector.load %arg23[%c0_239, %c0_240, %c0_241] : memref<2x128x64xf32, #tpu.memory_space<vmem>>, vector<1x128x64xf32>
    %695 = vector.shape_cast %694 : vector<1x128x64xf32> to vector<128x64xf32>
    %cst_242 = arith.constant dense<0.000000e+00> : vector<3x64xf32>
    %696 = tpu.matmul %685, %695, %cst_242 {dimension_numbers = #tpu.dot_dimension_numbers<[1], [0], [0], [1], [0, 0, 1, 1], [], []>} : vector<3x128xf32>, vector<128x64xf32>, vector<3x64xf32> -> vector<3x64xf32>
    %c0_243 = arith.constant 0 : index
    %c0_244 = arith.constant 0 : index
    %c0_245 = arith.constant 0 : index
    %697 = vector.load %arg24[%c0_243, %c0_244, %c0_245] : memref<2x1x64xf32, #tpu.memory_space<vmem>>, vector<1x1x64xf32>
    %698 = vector.shape_cast %697 : vector<1x1x64xf32> to vector<1x64xf32>
    %699 = vector.broadcast %698 : vector<1x64xf32> to vector<3x64xf32>
    %700 = arith.addf %696, %699 : vector<3x64xf32>
    %c0_246 = arith.constant 0 : index
    %c0_247 = arith.constant 0 : index
    %c0_248 = arith.constant 0 : index
    %701 = vector.load %arg25[%c0_246, %c0_247, %c0_248] : memref<2x128x64xf32, #tpu.memory_space<vmem>>, vector<1x128x64xf32>
    %702 = vector.shape_cast %701 : vector<1x128x64xf32> to vector<128x64xf32>
    %cst_249 = arith.constant dense<0.000000e+00> : vector<3x64xf32>
    %703 = tpu.matmul %685, %702, %cst_249 {dimension_numbers = #tpu.dot_dimension_numbers<[1], [0], [0], [1], [0, 0, 1, 1], [], []>} : vector<3x128xf32>, vector<128x64xf32>, vector<3x64xf32> -> vector<3x64xf32>
    %c0_250 = arith.constant 0 : index
    %c0_251 = arith.constant 0 : index
    %c0_252 = arith.constant 0 : index
    %704 = vector.load %arg26[%c0_250, %c0_251, %c0_252] : memref<2x1x64xf32, #tpu.memory_space<vmem>>, vector<1x1x64xf32>
    %705 = vector.shape_cast %704 : vector<1x1x64xf32> to vector<1x64xf32>
    %706 = vector.broadcast %705 : vector<1x64xf32> to vector<3x64xf32>
    %707 = arith.addf %703, %706 : vector<3x64xf32>
    %708 = tpu.transpose %700, [1, 0] : vector<3x64xf32> -> vector<64x3xf32>
    %cst_253 = arith.constant dense<0.000000e+00> : vector<3x3xf32>
    %709 = tpu.matmul %693, %708, %cst_253 {dimension_numbers = #tpu.dot_dimension_numbers<[1], [0], [0], [1], [0, 0, 1, 1], [], []>} : vector<3x64xf32>, vector<64x3xf32>, vector<3x3xf32> -> vector<3x3xf32>
    %cst_254 = arith.constant 1.250000e-01 : f32
    %710 = vector.broadcast %cst_254 : f32 to vector<3x3xf32>
    %711 = arith.mulf %709, %710 : vector<3x3xf32>
    %cst_255 = arith.constant dense<0xFF800000> : vector<3xf32>
    %712 = vector.multi_reduction <maximumf>, %711, %cst_255 [1] : vector<3x3xf32> to vector<3xf32>
    %713 = vector.shape_cast %712 : vector<3xf32> to vector<3x1xf32>
    %714 = vector.broadcast %713 : vector<3x1xf32> to vector<3x3xf32>
    %715 = arith.subf %711, %714 : vector<3x3xf32>
    %716 = math.exp %715 : vector<3x3xf32>
    %cst_256 = arith.constant dense<0.000000e+00> : vector<3xf32>
    %717 = vector.multi_reduction <add>, %716, %cst_256 [1] : vector<3x3xf32> to vector<3xf32>
    %718 = vector.shape_cast %717 : vector<3xf32> to vector<3x1xf32>
    %719 = tpu.reciprocal %718 {approx = true} : vector<3x1xf32> -> vector<3x1xf32>
    %720 = vector.broadcast %719 : vector<3x1xf32> to vector<3x3xf32>
    %721 = arith.mulf %716, %720 : vector<3x3xf32>
    %cst_257 = arith.constant dense<0.000000e+00> : vector<3x64xf32>
    %722 = tpu.matmul %721, %707, %cst_257 {dimension_numbers = #tpu.dot_dimension_numbers<[1], [0], [0], [1], [0, 0, 1, 1], [], []>} : vector<3x3xf32>, vector<3x64xf32>, vector<3x64xf32> -> vector<3x64xf32>
    %c0_258 = arith.constant 0 : index
    %c0_259 = arith.constant 0 : index
    %c0_260 = arith.constant 0 : index
    %723 = vector.load %arg27[%c0_258, %c0_259, %c0_260] : memref<2x64x128xf32, #tpu.memory_space<vmem>>, vector<1x64x128xf32>
    %724 = vector.shape_cast %723 : vector<1x64x128xf32> to vector<64x128xf32>
    %cst_261 = arith.constant dense<0.000000e+00> : vector<3x128xf32>
    %725 = tpu.matmul %722, %724, %cst_261 {dimension_numbers = #tpu.dot_dimension_numbers<[1], [0], [0], [1], [0, 0, 1, 1], [], []>} : vector<3x64xf32>, vector<64x128xf32>, vector<3x128xf32> -> vector<3x128xf32>
    %726 = arith.addf %686, %725 : vector<3x128xf32>
    %c1_262 = arith.constant 1 : index
    %c0_263 = arith.constant 0 : index
    %c0_264 = arith.constant 0 : index
    %727 = vector.load %arg21[%c1_262, %c0_263, %c0_264] : memref<2x128x64xf32, #tpu.memory_space<vmem>>, vector<1x128x64xf32>
    %728 = vector.shape_cast %727 : vector<1x128x64xf32> to vector<128x64xf32>
    %cst_265 = arith.constant dense<0.000000e+00> : vector<3x64xf32>
    %729 = tpu.matmul %685, %728, %cst_265 {dimension_numbers = #tpu.dot_dimension_numbers<[1], [0], [0], [1], [0, 0, 1, 1], [], []>} : vector<3x128xf32>, vector<128x64xf32>, vector<3x64xf32> -> vector<3x64xf32>
    %c1_266 = arith.constant 1 : index
    %c0_267 = arith.constant 0 : index
    %c0_268 = arith.constant 0 : index
    %730 = vector.load %arg22[%c1_266, %c0_267, %c0_268] : memref<2x1x64xf32, #tpu.memory_space<vmem>>, vector<1x1x64xf32>
    %731 = vector.shape_cast %730 : vector<1x1x64xf32> to vector<1x64xf32>
    %732 = vector.broadcast %731 : vector<1x64xf32> to vector<3x64xf32>
    %733 = arith.addf %729, %732 : vector<3x64xf32>
    %c1_269 = arith.constant 1 : index
    %c0_270 = arith.constant 0 : index
    %c0_271 = arith.constant 0 : index
    %734 = vector.load %arg23[%c1_269, %c0_270, %c0_271] : memref<2x128x64xf32, #tpu.memory_space<vmem>>, vector<1x128x64xf32>
    %735 = vector.shape_cast %734 : vector<1x128x64xf32> to vector<128x64xf32>
    %cst_272 = arith.constant dense<0.000000e+00> : vector<3x64xf32>
    %736 = tpu.matmul %685, %735, %cst_272 {dimension_numbers = #tpu.dot_dimension_numbers<[1], [0], [0], [1], [0, 0, 1, 1], [], []>} : vector<3x128xf32>, vector<128x64xf32>, vector<3x64xf32> -> vector<3x64xf32>
    %c1_273 = arith.constant 1 : index
    %c0_274 = arith.constant 0 : index
    %c0_275 = arith.constant 0 : index
    %737 = vector.load %arg24[%c1_273, %c0_274, %c0_275] : memref<2x1x64xf32, #tpu.memory_space<vmem>>, vector<1x1x64xf32>
    %738 = vector.shape_cast %737 : vector<1x1x64xf32> to vector<1x64xf32>
    %739 = vector.broadcast %738 : vector<1x64xf32> to vector<3x64xf32>
    %740 = arith.addf %736, %739 : vector<3x64xf32>
    %c1_276 = arith.constant 1 : index
    %c0_277 = arith.constant 0 : index
    %c0_278 = arith.constant 0 : index
    %741 = vector.load %arg25[%c1_276, %c0_277, %c0_278] : memref<2x128x64xf32, #tpu.memory_space<vmem>>, vector<1x128x64xf32>
    %742 = vector.shape_cast %741 : vector<1x128x64xf32> to vector<128x64xf32>
    %cst_279 = arith.constant dense<0.000000e+00> : vector<3x64xf32>
    %743 = tpu.matmul %685, %742, %cst_279 {dimension_numbers = #tpu.dot_dimension_numbers<[1], [0], [0], [1], [0, 0, 1, 1], [], []>} : vector<3x128xf32>, vector<128x64xf32>, vector<3x64xf32> -> vector<3x64xf32>
    %c1_280 = arith.constant 1 : index
    %c0_281 = arith.constant 0 : index
    %c0_282 = arith.constant 0 : index
    %744 = vector.load %arg26[%c1_280, %c0_281, %c0_282] : memref<2x1x64xf32, #tpu.memory_space<vmem>>, vector<1x1x64xf32>
    %745 = vector.shape_cast %744 : vector<1x1x64xf32> to vector<1x64xf32>
    %746 = vector.broadcast %745 : vector<1x64xf32> to vector<3x64xf32>
    %747 = arith.addf %743, %746 : vector<3x64xf32>
    %748 = tpu.transpose %740, [1, 0] : vector<3x64xf32> -> vector<64x3xf32>
    %cst_283 = arith.constant dense<0.000000e+00> : vector<3x3xf32>
    %749 = tpu.matmul %733, %748, %cst_283 {dimension_numbers = #tpu.dot_dimension_numbers<[1], [0], [0], [1], [0, 0, 1, 1], [], []>} : vector<3x64xf32>, vector<64x3xf32>, vector<3x3xf32> -> vector<3x3xf32>
    %cst_284 = arith.constant 1.250000e-01 : f32
    %750 = vector.broadcast %cst_284 : f32 to vector<3x3xf32>
    %751 = arith.mulf %749, %750 : vector<3x3xf32>
    %cst_285 = arith.constant dense<0xFF800000> : vector<3xf32>
    %752 = vector.multi_reduction <maximumf>, %751, %cst_285 [1] : vector<3x3xf32> to vector<3xf32>
    %753 = vector.shape_cast %752 : vector<3xf32> to vector<3x1xf32>
    %754 = vector.broadcast %753 : vector<3x1xf32> to vector<3x3xf32>
    %755 = arith.subf %751, %754 : vector<3x3xf32>
    %756 = math.exp %755 : vector<3x3xf32>
    %cst_286 = arith.constant dense<0.000000e+00> : vector<3xf32>
    %757 = vector.multi_reduction <add>, %756, %cst_286 [1] : vector<3x3xf32> to vector<3xf32>
    %758 = vector.shape_cast %757 : vector<3xf32> to vector<3x1xf32>
    %759 = tpu.reciprocal %758 {approx = true} : vector<3x1xf32> -> vector<3x1xf32>
    %760 = vector.broadcast %759 : vector<3x1xf32> to vector<3x3xf32>
    %761 = arith.mulf %756, %760 : vector<3x3xf32>
    %cst_287 = arith.constant dense<0.000000e+00> : vector<3x64xf32>
    %762 = tpu.matmul %761, %747, %cst_287 {dimension_numbers = #tpu.dot_dimension_numbers<[1], [0], [0], [1], [0, 0, 1, 1], [], []>} : vector<3x3xf32>, vector<3x64xf32>, vector<3x64xf32> -> vector<3x64xf32>
    %c1_288 = arith.constant 1 : index
    %c0_289 = arith.constant 0 : index
    %c0_290 = arith.constant 0 : index
    %763 = vector.load %arg27[%c1_288, %c0_289, %c0_290] : memref<2x64x128xf32, #tpu.memory_space<vmem>>, vector<1x64x128xf32>
    %764 = vector.shape_cast %763 : vector<1x64x128xf32> to vector<64x128xf32>
    %cst_291 = arith.constant dense<0.000000e+00> : vector<3x128xf32>
    %765 = tpu.matmul %762, %764, %cst_291 {dimension_numbers = #tpu.dot_dimension_numbers<[1], [0], [0], [1], [0, 0, 1, 1], [], []>} : vector<3x64xf32>, vector<64x128xf32>, vector<3x128xf32> -> vector<3x128xf32>
    %766 = arith.addf %726, %765 : vector<3x128xf32>
    %c0_292 = arith.constant 0 : index
    %c0_293 = arith.constant 0 : index
    %767 = vector.load %arg28[%c0_292, %c0_293] : memref<1x128xf32, #tpu.memory_space<vmem>>, vector<1x128xf32>
    %768 = vector.broadcast %767 : vector<1x128xf32> to vector<3x128xf32>
    %769 = arith.addf %766, %768 : vector<3x128xf32>
    %cst_294 = arith.constant dense<0.000000e+00> : vector<128xf32>
    %770 = vector.multi_reduction <add>, %769, %cst_294 [0] : vector<3x128xf32> to vector<128xf32>
    %771 = vector.shape_cast %770 : vector<128xf32> to vector<1x128xf32>
    %cst_295 = arith.constant 3.000000e+00 : f32
    %772 = vector.broadcast %cst_295 : f32 to vector<1x128xf32>
    %773 = arith.divf %771, %772 : vector<1x128xf32>
    %c0_296 = arith.constant 0 : index
    %c0_297 = arith.constant 0 : index
    %774 = vector.load %arg29[%c0_296, %c0_297] : memref<128x128xf32, #tpu.memory_space<vmem>>, vector<128x128xf32>
    %cst_298 = arith.constant dense<0.000000e+00> : vector<1x128xf32>
    %775 = tpu.matmul %515, %774, %cst_298 {dimension_numbers = #tpu.dot_dimension_numbers<[1], [0], [0], [1], [0, 0, 1, 1], [], []>} : vector<1x128xf32>, vector<128x128xf32>, vector<1x128xf32> -> vector<1x128xf32>
    %c0_299 = arith.constant 0 : index
    %c0_300 = arith.constant 0 : index
    %776 = vector.load %arg30[%c0_299, %c0_300] : memref<128x128xf32, #tpu.memory_space<vmem>>, vector<128x128xf32>
    %cst_301 = arith.constant dense<0.000000e+00> : vector<1x128xf32>
    %777 = tpu.matmul %773, %776, %cst_301 {dimension_numbers = #tpu.dot_dimension_numbers<[1], [0], [0], [1], [0, 0, 1, 1], [], []>} : vector<1x128xf32>, vector<128x128xf32>, vector<1x128xf32> -> vector<1x128xf32>
    %778 = arith.addf %775, %777 : vector<1x128xf32>
    %c0_302 = arith.constant 0 : index
    %c0_303 = arith.constant 0 : index
    %779 = vector.load %arg31[%c0_302, %c0_303] : memref<1x128xf32, #tpu.memory_space<vmem>>, vector<1x128xf32>
    %780 = arith.addf %778, %779 : vector<1x128xf32>
    %cst_304 = arith.constant 0.000000e+00 : f32
    %781 = vector.broadcast %cst_304 : f32 to vector<1x128xf32>
    %782 = arith.maximumf %780, %781 : vector<1x128xf32>
    %c0_305 = arith.constant 0 : index
    %c0_306 = arith.constant 0 : index
    %783 = vector.load %arg32[%c0_305, %c0_306] : memref<128x128xf32, #tpu.memory_space<vmem>>, vector<128x128xf32>
    %cst_307 = arith.constant dense<0.000000e+00> : vector<1x128xf32>
    %784 = tpu.matmul %782, %783, %cst_307 {dimension_numbers = #tpu.dot_dimension_numbers<[1], [0], [0], [1], [0, 0, 1, 1], [], []>} : vector<1x128xf32>, vector<128x128xf32>, vector<1x128xf32> -> vector<1x128xf32>
    %c0_308 = arith.constant 0 : index
    %c0_309 = arith.constant 0 : index
    %785 = vector.load %arg33[%c0_308, %c0_309] : memref<1x128xf32, #tpu.memory_space<vmem>>, vector<1x128xf32>
    %786 = arith.addf %784, %785 : vector<1x128xf32>
    %c0_310 = arith.constant 0 : index
    %c0_311 = arith.constant 0 : index
    %787 = vector.load %arg34[%c0_310, %c0_311] : memref<1x128xf32, #tpu.memory_space<vmem>>, vector<1x128xf32>
    tpu.vector_store %arg34[%c0_310, %c0_311], %786 {strides = array<i32>} : memref<1x128xf32, #tpu.memory_space<vmem>>, vector<1x128xf32>,
    return
  }
}

</mosaic_0001>

<bundles_post_ra>
// kernel: tpu_custom_call.1
= control target key start
LH: loop header
LB: loop body
LE: loop exit
PB: predicated region body
PF: predicated region fallthrough
CT: control target
= control target key end

     0   :  { %s12257_s6 = smov 1   ;;  %s12258_s10 = smov 2   ;;  %s14583_s0 = inlined_call_operand.smem [shape: u32[35], index: -1, kind: input, shape index: {}] }
   0x1   :  { %s12325_s5 = sld [smem:[%s14583_s0]]   ;;  %s12259_s14 = smov 3  }
   0x2   :  { %s12330_s9 = sld [smem:[%s14583_s0 + %s12257_s6]]   ;;  %s12260_s18 = smov 4  }
   0x3   :  { %s12335_s13 = sld [smem:[%s14583_s0 + %s12258_s10]]   ;;  %s12261_s22 = smov 5  }
   0x4   :  { %s12340_s17 = sld [smem:[%s14583_s0 + %s12259_s14]]   ;;  %s12262_s26 = smov 6  }
   0x5   :  { %s12345_s21 = sld [smem:[%s14583_s0 + %s12260_s18]]   ;;  %s12263_s30 = smov 7  }
   0x6   :  { %s12350_s25 = sld [smem:[%s14583_s0 + %s12261_s22]]   ;;  %s12264_s4 = smov 8  }
   0x7   :  { %14781 = sst [smem:[#allocation40_spill]] %s12325_s5  ;;  %s12265_s10 = smov 9  }
   0x8   :  { %s12355_s29 = sld [smem:[%s14583_s0 + %s12262_s26]]   ;;  %s12266_s15 = smov 10  }
   0x9   :  { %s12360_s3 = sld [smem:[%s14583_s0 + %s12263_s30]]   ;;  %s12267_s20 = smov 11  }
   0xa   :  { %s12365_s8 = sld [smem:[%s14583_s0 + %s12264_s4]]   ;;  %s12268_s26 = smov 12  }
   0xb   :  { %s12370_s14 = sld [smem:[%s14583_s0 + %s12265_s10]]   ;;  %s12269_s1 = smov 13  }
   0xc   :  { %s12375_s19 = sld [smem:[%s14583_s0 + %s12266_s15]]   ;;  %s12270_s7 = smov 14  }
   0xd   :  { %s12380_s24 = sld [smem:[%s14583_s0 + %s12267_s20]]   ;;  %s12271_s15 = smov 15  }
   0xe   :  { %14782 = sst [smem:[#allocation41_spill]] %s12355_s29  ;;  %s12272_s22 = smov 16  }
   0xf   :  { %s12385_s30 = sld [smem:[%s14583_s0 + %s12268_s26]]   ;;  %s12273_s28 = smov 17  }
  0x10   :  { %14783 = sst [smem:[#allocation42_spill]] %s12365_s8 }
  0x11   :  { %s12390_s6 = sld [smem:[%s14583_s0 + %s12269_s1]]  }
  0x12   :  { %s12395_s12 = sld [smem:[%s14583_s0 + %s12270_s7]]   ;;  %s12274_s7 = smov 18  }
  0x13   :  { %s12400_s20 = sld [smem:[%s14583_s0 + %s12271_s15]]   ;;  %s12275_s15 = smov 19  }
  0x14   :  { %s12405_s27 = sld [smem:[%s14583_s0 + %s12272_s22]]   ;;  %s12276_s22 = smov 20  }
  0x15   :  { %s12410_s4 = sld [smem:[%s14583_s0 + %s12273_s28]]   ;;  %s12277_s28 = smov 21  }
  0x16   :  { %s12425_s8 = sld [smem:[%s14583_s0 + %s12276_s22]]   ;;  %s12280_s22 = smov 24  }
  0x18   :  { %14784 = sst [smem:[#allocation43_spill]] %s12395_s12 }
  0x19   :  { %14785 = sst [smem:[#allocation44_spill]] %s12400_s20 }
  0x1a   :  { %s12415_s12 = sld [smem:[%s14583_s0 + %s12274_s7]]   ;;  %s12278_s7 = smov 22  }
  0x1b   :  { %14786 = sst [smem:[#allocation45_spill]] %s12410_s4 }
  0x1c   :  { %s12420_s20 = sld [smem:[%s14583_s0 + %s12275_s15]]   ;;  %s12279_s15 = smov 23  }
  0x1d   :  { %14789 = sst [smem:[#allocation48_spill]] %s12425_s8 }
  0x1e   :  { %s12430_s4 = sld [smem:[%s14583_s0 + %s12277_s28]]   ;;  %s12281_s28 = smov 25  }
  0x1f   :  { %s12440_s29 = sld [smem:[%s14583_s0 + %s12279_s15]]   ;;  %s12283_s15 = smov 27  }
  0x20   :  { %14787 = sst [smem:[#allocation46_spill]] %s12415_s12 }
  0x21   :  { %s12435_s12 = sld [smem:[%s14583_s0 + %s12278_s7]]   ;;  %s12282_s7 = smov 26  }
  0x22   :  { %14788 = sst [smem:[#allocation47_spill]] %s12420_s20 }
  0x23   :  { %s12445_s8 = sld [smem:[%s14583_s0 + %s12280_s22]]   ;;  %s12284_s22 = smov 28  }
  0x24   :  { %14790 = sst [smem:[#allocation49_spill]] %s12430_s4 }
  0x25   :  { %14792 = sst [smem:[#allocation51_spill]] %s12440_s29 }
  0x26   :  { %s12450_s4 = sld [smem:[%s14583_s0 + %s12281_s28]]   ;;  %s12285_s28 = smov 29  }
  0x27   :  { %14791 = sst [smem:[#allocation50_spill]] %s12435_s12 }
  0x28   :  { %s12455_s12 = sld [smem:[%s14583_s0 + %s12282_s7]]   ;;  %s12286_s7 = smov 30  }
  0x29   :  { %14793 = sst [smem:[#allocation52_spill]] %s12445_s8 }
  0x2a   :  { %s12460_s29 = sld [smem:[%s14583_s0 + %s12283_s15]]   ;;  %s12287_s15 = smov 31  }
  0x2b   :  { %s12465_s8 = sld [smem:[%s14583_s0 + %s12284_s22]]   ;;  %s12288_s22 = smov 32  }
  0x2c   :  { %14794 = sst [smem:[#allocation53_spill]] %s12450_s4 }
  0x2d   :  { %s12470_s4 = sld [smem:[%s14583_s0 + %s12285_s28]]   ;;  %s12289_s28 = smov 33  }
  0x2e   :  { %14795 = sst [smem:[#allocation54_spill]] %s12455_s12 }
  0x2f   :  { %s12475_s12 = sld [smem:[%s14583_s0 + %s12286_s7]]   ;;  %s12290_s7 = smov 34  }
  0x30   :  { %s12480_s5 = sld [smem:[%s14583_s0 + %s12287_s15]]  }
  0x31   :  { %14796 = sst [smem:[#allocation55_spill]] %s12465_s8 }
  0x32   :  { %s12485_s8 = sld [smem:[%s14583_s0 + %s12288_s22]]  }
  0x33   :  { %14797 = sst [smem:[#allocation56_spill]] %s12470_s4 }
  0x34   :  { %s12490_s4 = sld [smem:[%s14583_s0 + %s12289_s28]]  }
  0x35   :  { %s12495_s20 = sld [smem:[%s14583_s0 + %s12290_s7]]  }
  0x36   :  { %74 = vsyncpa [#allocation3], 0 }
  0x37   :  { %75 = vsyncpa [#allocation6], 0 }
  0x38   :  { %76 = vsyncpa [#allocation9], 0 }
  0x39   :  { %77 = vsyncpa [#allocation12], 0 }
  0x3a   :  { %78 = vsyncpa [#allocation15], 0 }
  0x3b   :  { %79 = vsyncpa [#allocation18], 0 }
  0x3c   :  { %80 = vsyncpa [#allocation21], 0 }
  0x3d   :  { %81 = vsyncpa [#allocation24], 0 }
  0x3e   :  { %82 = vsyncpa [#allocation27], 0 }
  0x3f   :  { %83 = vsyncpa [#allocation4], 0  ;;  %s12291_s15 = smov [#allocation5]   ;;  %s11841_s18 = scalar_lea.hbm %s12335_s13, 256 }
  0x40   :  { %s101_s16 = sshll.u32 %s12291_s15, 4  ;;  %p11842_p0 = scmp.ne.s32.totalorder %s12335_s13, %s11841_s18  ;;  %s102_s16 = int_to_ptr.vmem [resolvable:$true] %s101_s16 }
  0x41   :  { %p11845_p1 = scmp.lt.u32.totalorder %s11841_s18, %s12335_s13 }
  0x43   :  { %p11847_p2 = pnand %p11845_p1, %p11842_p0 }
  0x45   :  { %11850 = shalt.err (!%p11847_p2)
}
  0x46   :  { %s11851_s0 = scalar_lea.vmem %s102_s16, 256  ;;  %p11856_p4 = scmp.lt.s32.totalorder %s102_s16, %s102_s16 }
  0x47   :  { %p11852_p3 = scmp.ne.s32.totalorder %s102_s16, %s11851_s0  ;;  %p11857_p5 = scmp.lt.s32.totalorder %s11851_s0, %s11851_s0 }
  0x49   :  { %p11858_p6 = por %p11857_p5, %p11856_p4 }
  0x4b   :  { %p11859_p7 = pnand %p11858_p6, %p11852_p3 }
  0x4d   :  { %11862 = shalt.err (!%p11859_p7)
}
  0x4e   :  { %s12292_s22 = smov 128   ;;  %s12293_s23 = smov 8  }
  0x4f   :  { %107 = dma.hbm_to_vmem [thread:$0]  %s12335_s13, 256, %s102_s16, [#allocation6], %s12292_s22, %s12292_s22, %s12293_s23  }
  0x50   :  { %s12294_s26 = smov [#allocation8]   ;;  %s11863_s1 = scalar_lea.hbm %s12345_s21, 2048 }
  0x51   :  { %s123_s28 = sshll.u32 %s12294_s26, 4  ;;  %p11864_p8 = scmp.ne.s32.totalorder %s12345_s21, %s11863_s1  ;;  %s124_s28 = int_to_ptr.vmem [resolvable:$true] %s123_s28 }
  0x52   :  { %p11867_p9 = scmp.lt.u32.totalorder %s11863_s1, %s12345_s21 }
  0x54   :  { %p11869_p10 = pnand %p11867_p9, %p11864_p8 }
  0x56   :  { %11872 = shalt.err (!%p11869_p10)
}
  0x57   :  { %s11873_s2 = scalar_lea.vmem %s124_s28, 2048  ;;  %p11878_p12 = scmp.lt.s32.totalorder %s124_s28, %s124_s28 }
  0x58   :  { %p11874_p11 = scmp.ne.s32.totalorder %s124_s28, %s11873_s2  ;;  %p11879_p13 = scmp.lt.s32.totalorder %s11873_s2, %s11873_s2 }
  0x5a   :  { %p11880_p0 = por %p11879_p13, %p11878_p12 }
  0x5c   :  { %p11881_p1 = pnand %p11880_p0, %p11874_p11 }
  0x5e   :  { %11884 = shalt.err (!%p11881_p1)
}
  0x5f   :  { %s12295_s7 = smov 512   ;;  %s12296_s13 = smov 32  }
  0x60   :  { %129 = dma.hbm_to_vmem [thread:$0]  %s12345_s21, 2048, %s124_s28, [#allocation9], %s12295_s7, %s12295_s7, %s12296_s13  }
  0x61   :  { %s12297_s10 = smov [#allocation11]   ;;  %s12298_s15 = smov [#allocation14]  }
  0x62   :  { %s147_s11 = sshll.u32 %s12297_s10, 4  ;;  %s171_s16 = sshll.u32 %s12298_s15, 4  ;;  %s148_s11 = int_to_ptr.vmem [resolvable:$true] %s147_s11  ;;  %s12511_s16 = int_to_ptr.vmem [resolvable:$true] %s171_s16 }
  0x63   :  { %s11885_s18 = scalar_lea.hbm %s12360_s3, 32768 }
  0x64   :  { %p11886_p2 = scmp.ne.s32.totalorder %s12360_s3, %s11885_s18  ;;  %p11889_p3 = scmp.lt.u32.totalorder %s11885_s18, %s12360_s3 }
  0x66   :  { %p11891_p4 = pnand %p11889_p3, %p11886_p2 }
  0x68   :  { %11894 = shalt.err (!%p11891_p4)
}
  0x69   :  { %s11895_s0 = scalar_lea.vmem %s148_s11, 32768  ;;  %p11900_p6 = scmp.lt.s32.totalorder %s148_s11, %s148_s11 }
  0x6a   :  { %p11896_p5 = scmp.ne.s32.totalorder %s148_s11, %s11895_s0  ;;  %p11901_p7 = scmp.lt.s32.totalorder %s11895_s0, %s11895_s0 }
  0x6c   :  { %p11902_p8 = por %p11901_p7, %p11900_p6 }
  0x6e   :  { %p11903_p9 = pnand %p11902_p8, %p11896_p5 }
  0x70   :  { %11906 = shalt.err (!%p11903_p9)
}
  0x71   :  { %153 = dma.hbm_to_vmem [thread:$0]  %s12360_s3, 32768, %s148_s11, [#allocation12], %s12295_s7, %s12295_s7, %s12296_s13  }
  0x72   :  { %s11907_s21 = scalar_lea.hbm %s12375_s19, 8192 }
  0x73   :  { %p11908_p10 = scmp.ne.s32.totalorder %s12375_s19, %s11907_s21  ;;  %p11911_p11 = scmp.lt.u32.totalorder %s11907_s21, %s12375_s19 }
  0x75   :  { %p11913_p12 = pnand %p11911_p11, %p11908_p10 }
  0x77   :  { %11916 = shalt.err (!%p11913_p12)
}
  0x78   :  { %s11917_s26 = scalar_lea.vmem %s12511_s16, 8192  ;;  %p11922_p0 = scmp.lt.s32.totalorder %s12511_s16, %s12511_s16 }
  0x79   :  { %p11918_p13 = scmp.ne.s32.totalorder %s12511_s16, %s11917_s26  ;;  %p11923_p1 = scmp.lt.s32.totalorder %s11917_s26, %s11917_s26 }
  0x7b   :  { %p11924_p2 = por %p11923_p1, %p11922_p0 }
  0x7d   :  { %p11925_p3 = pnand %p11924_p2, %p11918_p13 }
  0x7f   :  { %11928 = shalt.err (!%p11925_p3)
}
  0x80   :  { %177 = dma.hbm_to_vmem [thread:$0]  %s12375_s19, 8192, %s12511_s16, [#allocation15], %s12295_s7, %s12295_s7, %s12296_s13  }
  0x81   :  { %s12299_s3 = smov [#allocation17]   ;;  %s12300_s1 = smov [#allocation20]  }
  0x82   :  { %s196_s28 = sshll.u32 %s12299_s3, 4  ;;  %s221_s2 = sshll.u32 %s12300_s1, 4  ;;  %s197_s28 = int_to_ptr.vmem [resolvable:$true] %s196_s28  ;;  %s12532_s2 = int_to_ptr.vmem [resolvable:$true] %s221_s2 }
  0x83   :  { %s11929_s10 = scalar_lea.hbm %s12385_s30, 64 }
  0x84   :  { %p11930_p4 = scmp.ne.s32.totalorder %s12385_s30, %s11929_s10  ;;  %p11933_p5 = scmp.lt.u32.totalorder %s11929_s10, %s12385_s30 }
  0x86   :  { %p11935_p6 = pnand %p11933_p5, %p11930_p4 }
  0x88   :  { %11938 = shalt.err (!%p11935_p6)
}
  0x89   :  { %s11939_s11 = scalar_lea.vmem %s197_s28, 64  ;;  %p11944_p8 = scmp.lt.s32.totalorder %s197_s28, %s197_s28 }
  0x8a   :  { %p11940_p7 = scmp.ne.s32.totalorder %s197_s28, %s11939_s11  ;;  %p11945_p9 = scmp.lt.s32.totalorder %s11939_s11, %s11939_s11 }
  0x8c   :  { %p11946_p10 = por %p11945_p9, %p11944_p8 }
  0x8e   :  { %p11947_p11 = pnand %p11946_p10, %p11940_p7 }
  0x90   :  { %11950 = shalt.err (!%p11947_p11)
}
  0x91   :  { %199 = dma.hbm_to_vmem [thread:$0]  %s12385_s30, 64, %s197_s28, [#allocation18]  }
  0x92   :  { %s11951_s19 = scalar_lea.hbm %s12405_s27, 8192 }
  0x93   :  { %p11952_p12 = scmp.ne.s32.totalorder %s12405_s27, %s11951_s19  ;;  %p11955_p13 = scmp.lt.u32.totalorder %s11951_s19, %s12405_s27 }
  0x95   :  { %p11957_p0 = pnand %p11955_p13, %p11952_p12 }
  0x97   :  { %11960 = shalt.err (!%p11957_p0)
}
  0x98   :  { %s11961_s15 = scalar_lea.vmem %s12532_s2, 8192  ;;  %p11966_p2 = scmp.lt.s32.totalorder %s12532_s2, %s12532_s2 }
  0x99   :  { %p11962_p1 = scmp.ne.s32.totalorder %s12532_s2, %s11961_s15  ;;  %p11967_p3 = scmp.lt.s32.totalorder %s11961_s15, %s11961_s15 }
  0x9b   :  { %p11968_p4 = por %p11967_p3, %p11966_p2 }
  0x9d   :  { %p11969_p5 = pnand %p11968_p4, %p11962_p1 }
  0x9f   :  { %11972 = shalt.err (!%p11969_p5)
}
  0xa0   :  { %227 = dma.hbm_to_vmem [thread:$0]  %s12405_s27, 8192, %s12532_s2, [#allocation21], %s12295_s7, %s12295_s7, %s12296_s13  }
  0xa1   :  { %s12301_s30 = smov [#allocation23]   ;;  %s12302_s18 = smov [#allocation26]  }
  0xa2   :  { %s261_s16 = sshll.u32 %s12301_s30, 4  ;;  %s287_s0 = sshll.u32 %s12302_s18, 4  ;;  %s262_s16 = int_to_ptr.vmem [resolvable:$true] %s261_s16  ;;  %s12550_s0 = int_to_ptr.vmem [resolvable:$true] %s287_s0 }
  0xa3   :  { %s11973_s21 = scalar_lea.hbm %s12460_s29, 2048 }
  0xa4   :  { %p11974_p6 = scmp.ne.s32.totalorder %s12460_s29, %s11973_s21  ;;  %p11977_p7 = scmp.lt.u32.totalorder %s11973_s21, %s12460_s29 }
  0xa6   :  { %p11979_p8 = pnand %p11977_p7, %p11974_p6 }
  0xa8   :  { %11982 = shalt.err (!%p11979_p8)
}
  0xa9   :  { %s11983_s26 = scalar_lea.vmem %s262_s16, 2048  ;;  %p11988_p10 = scmp.lt.s32.totalorder %s262_s16, %s262_s16 }
  0xaa   :  { %p11984_p9 = scmp.ne.s32.totalorder %s262_s16, %s11983_s26  ;;  %p11989_p11 = scmp.lt.s32.totalorder %s11983_s26, %s11983_s26 }
  0xac   :  { %p11990_p12 = por %p11989_p11, %p11988_p10 }
  0xae   :  { %p11991_p13 = pnand %p11990_p12, %p11984_p9 }
  0xb0   :  { %11994 = shalt.err (!%p11991_p13)
}
  0xb1   :  { %267 = dma.hbm_to_vmem [thread:$0]  %s12460_s29, 2048, %s262_s16, [#allocation24], %s12292_s22, %s12292_s22, %s12293_s23  }
  0xb2   :  { %s11995_s27 = scalar_lea.hbm %s12475_s12, 2048 }
  0xb3   :  { %p11996_p0 = scmp.ne.s32.totalorder %s12475_s12, %s11995_s27  ;;  %p11999_p1 = scmp.lt.u32.totalorder %s11995_s27, %s12475_s12 }
  0xb5   :  { %p12001_p2 = pnand %p11999_p1, %p11996_p0 }
  0xb7   :  { %12004 = shalt.err (!%p12001_p2)
}
  0xb8   :  { %s12005_s3 = scalar_lea.vmem %s12550_s0, 2048  ;;  %p12010_p4 = scmp.lt.s32.totalorder %s12550_s0, %s12550_s0 }
  0xb9   :  { %p12006_p3 = scmp.ne.s32.totalorder %s12550_s0, %s12005_s3  ;;  %p12011_p5 = scmp.lt.s32.totalorder %s12005_s3, %s12005_s3 }
  0xbb   :  { %p12012_p6 = por %p12011_p5, %p12010_p4 }
  0xbd   :  { %p12013_p7 = pnand %p12012_p6, %p12006_p3 }
  0xbf   :  { %12016 = shalt.err (!%p12013_p7)
}
  0xc0   :  { %293 = dma.hbm_to_vmem [thread:$0]  %s12475_s12, 2048, %s12550_s0, [#allocation27], %s12292_s22, %s12292_s22, %s12293_s23  }
  0xc1   :  { %s12303_s29 = smov [#allocation2]   ;;  %s12304_s1 = smov [#allocation7]  }
  0xc2   :  { %s92_s28 = sshll.u32 %s12303_s29, 4  ;;  %s114_s2 = sshll.u32 %s12304_s1, 4  ;;  %s93_s28 = int_to_ptr.vmem [resolvable:$true] %s92_s28  ;;  %s115_s2 = int_to_ptr.vmem [resolvable:$true] %s114_s2 }
  0xc3   :  { %s12017_s10 = scalar_lea.hbm %s12330_s9, 128 }
  0xc4   :  { %p12018_p8 = scmp.ne.s32.totalorder %s12330_s9, %s12017_s10  ;;  %p12021_p9 = scmp.lt.u32.totalorder %s12017_s10, %s12330_s9 }
  0xc6   :  { %p12023_p10 = pnand %p12021_p9, %p12018_p8 }
  0xc8   :  { %12026 = shalt.err (!%p12023_p10)
}
  0xc9   :  { %s12027_s11 = scalar_lea.vmem %s93_s28, 128  ;;  %p12032_p12 = scmp.lt.s32.totalorder %s93_s28, %s93_s28 }
  0xca   :  { %p12028_p11 = scmp.ne.s32.totalorder %s93_s28, %s12027_s11  ;;  %p12033_p13 = scmp.lt.s32.totalorder %s12027_s11, %s12027_s11 }
  0xcc   :  { %p12034_p0 = por %p12033_p13, %p12032_p12 }
  0xce   :  { %p12035_p1 = pnand %p12034_p0, %p12028_p11 }
  0xd0   :  { %12038 = shalt.err (!%p12035_p1)
}
  0xd1   :  { %95 = dma.hbm_to_vmem [thread:$0]  %s12330_s9, 128, %s93_s28, [#allocation3]  }
  0xd2   :  { %s12039_s12 = scalar_lea.hbm %s12340_s17, 16 }
  0xd3   :  { %p12040_p2 = scmp.ne.s32.totalorder %s12340_s17, %s12039_s12  ;;  %p12043_p3 = scmp.lt.u32.totalorder %s12039_s12, %s12340_s17 }
  0xd5   :  { %p12045_p4 = pnand %p12043_p3, %p12040_p2 }
  0xd7   :  { %12048 = shalt.err (!%p12045_p4)
}
  0xd8   :  { %s12049_s19 = scalar_lea.vmem %s115_s2, 16  ;;  %s12053_s15 = scalar_lea.vmem %s115_s2, 32 }
  0xd9   :  { %p12050_p5 = scmp.ne.s32.totalorder %s115_s2, %s12049_s19  ;;  %p12054_p6 = scmp.lt.s32.totalorder %s115_s2, %s115_s2 }
  0xda   :  { %p12055_p7 = scmp.lt.s32.totalorder %s12053_s15, %s12049_s19 }
  0xdc   :  { %p12056_p8 = por %p12055_p7, %p12054_p6 }
  0xde   :  { %p12057_p9 = pnand %p12056_p8, %p12050_p5 }
  0xe0   :  { %12060 = shalt.err (!%p12057_p9)
}
  0xe1   :  { %117 = dma.hbm_to_vmem [thread:$0]  %s12340_s17, 16, %s115_s2, [#allocation6]  }
  0xe2   :  { %s12305_s30 = smov [#allocation10]   ;;  %s12306_s16 = smov [#allocation13]  }
  0xe3   :  { %s136_s9 = sshll.u32 %s12305_s30, 4  ;;  %s162_s18 = sshll.u32 %s12306_s16, 4  ;;  %s137_s9 = int_to_ptr.vmem [resolvable:$true] %s136_s9  ;;  %s163_s18 = int_to_ptr.vmem [resolvable:$true] %s162_s18 }
  0xe4   :  { %s12061_s0 = scalar_lea.hbm %s12350_s25, 64 }
  0xe5   :  { %p12062_p10 = scmp.ne.s32.totalorder %s12350_s25, %s12061_s0  ;;  %p12065_p11 = scmp.lt.u32.totalorder %s12061_s0, %s12350_s25 }
  0xe7   :  { %p12067_p12 = pnand %p12065_p11, %p12062_p10 }
  0xe9   :  { %12070 = shalt.err (!%p12067_p12)
}
  0xea   :  { %s12071_s21 = scalar_lea.vmem %s137_s9, 64  ;;  %p12076_p0 = scmp.lt.s32.totalorder %s137_s9, %s137_s9 }
  0xeb   :  { %p12072_p13 = scmp.ne.s32.totalorder %s137_s9, %s12071_s21  ;;  %p12077_p1 = scmp.lt.s32.totalorder %s12071_s21, %s12071_s21 }
  0xed   :  { %p12078_p2 = por %p12077_p1, %p12076_p0 }
  0xef   :  { %p12079_p3 = pnand %p12078_p2, %p12072_p13 }
  0xf1   :  { %12082 = shalt.err (!%p12079_p3)
}
  0xf2   :  { %139 = dma.hbm_to_vmem [thread:$0]  %s12350_s25, 64, %s137_s9, [#allocation9]  }
  0xf3   :  { %s12083_s17 = scalar_lea.hbm %s12370_s14, 64 }
  0xf4   :  { %p12084_p4 = scmp.ne.s32.totalorder %s12370_s14, %s12083_s17  ;;  %p12087_p5 = scmp.lt.u32.totalorder %s12083_s17, %s12370_s14 }
  0xf6   :  { %p12089_p6 = pnand %p12087_p5, %p12084_p4 }
  0xf8   :  { %12092 = shalt.err (!%p12089_p6)
}
  0xf9   :  { %s12093_s26 = scalar_lea.vmem %s163_s18, 64  ;;  %p12098_p8 = scmp.lt.s32.totalorder %s163_s18, %s163_s18 }
  0xfa   :  { %p12094_p7 = scmp.ne.s32.totalorder %s163_s18, %s12093_s26  ;;  %p12099_p9 = scmp.lt.s32.totalorder %s12093_s26, %s12093_s26 }
  0xfc   :  { %p12100_p10 = por %p12099_p9, %p12098_p8 }
  0xfe   :  { %p12101_p11 = pnand %p12100_p10, %p12094_p7 }
 0x100   :  { %12104 = shalt.err (!%p12101_p11)
}
 0x101   :  { %165 = dma.hbm_to_vmem [thread:$0]  %s12370_s14, 64, %s163_s18, [#allocation12]  }
 0x102   :  { %s12307_s27 = smov [#allocation16]   ;;  %s12308_s25 = smov [#allocation19]  }
 0x103   :  { %s183_s3 = sshll.u32 %s12307_s27, 4  ;;  %s205_s29 = sshll.u32 %s12308_s25, 4  ;;  %s184_s3 = int_to_ptr.vmem [resolvable:$true] %s183_s3  ;;  %s12587_s29 = int_to_ptr.vmem [resolvable:$true] %s205_s29 }
 0x104   :  { %s12105_s28 = scalar_lea.hbm %s12380_s24, 8192 }
 0x105   :  { %p12106_p12 = scmp.ne.s32.totalorder %s12380_s24, %s12105_s28  ;;  %p12109_p13 = scmp.lt.u32.totalorder %s12105_s28, %s12380_s24 }
 0x107   :  { %p12111_p0 = pnand %p12109_p13, %p12106_p12 }
 0x109   :  { %12114 = shalt.err (!%p12111_p0)
}
 0x10a   :  { %s12115_s1 = scalar_lea.vmem %s184_s3, 8192  ;;  %p12120_p2 = scmp.lt.s32.totalorder %s184_s3, %s184_s3 }
 0x10b   :  { %p12116_p1 = scmp.ne.s32.totalorder %s184_s3, %s12115_s1  ;;  %p12121_p3 = scmp.lt.s32.totalorder %s12115_s1, %s12115_s1 }
 0x10d   :  { %p12122_p4 = por %p12121_p3, %p12120_p2 }
 0x10f   :  { %p12123_p5 = pnand %p12122_p4, %p12116_p1 }
 0x111   :  { %12126 = shalt.err (!%p12123_p5)
}
 0x112   :  { %189 = dma.hbm_to_vmem [thread:$0]  %s12380_s24, 8192, %s184_s3, [#allocation15], %s12295_s7, %s12295_s7, %s12296_s13  }
 0x113   :  { %s12127_s14 = scalar_lea.hbm %s12390_s6, 384 }
 0x114   :  { %p12128_p6 = scmp.ne.s32.totalorder %s12390_s6, %s12127_s14  ;;  %p12131_p7 = scmp.lt.u32.totalorder %s12127_s14, %s12390_s6 }
 0x116   :  { %p12133_p8 = pnand %p12131_p7, %p12128_p6 }
 0x118   :  { %12136 = shalt.err (!%p12133_p8)
}
 0x119   :  { %s12137_s2 = scalar_lea.vmem %s12587_s29, 384  ;;  %p12142_p10 = scmp.lt.s32.totalorder %s12587_s29, %s12587_s29 }
 0x11a   :  { %p12138_p9 = scmp.ne.s32.totalorder %s12587_s29, %s12137_s2  ;;  %p12143_p11 = scmp.lt.s32.totalorder %s12137_s2, %s12137_s2 }
 0x11c   :  { %p12144_p12 = por %p12143_p11, %p12142_p10 }
 0x11e   :  { %p12145_p13 = pnand %p12144_p12, %p12138_p9 }
 0x120   :  { %12148 = shalt.err (!%p12145_p13)
}
 0x121   :  { %s14798_s24 = sld [smem:[#allocation47_spill]]  ;;  %s12309_s7 = smov [#allocation22]  }
 0x122   :  { %211 = dma.hbm_to_vmem [thread:$0]  %s12390_s6, 384, %s12587_s29, [#allocation18], %s12292_s22, %s12292_s22, %s12293_s23  }
 0x123   :  { %s238_s13 = sshll.u32 %s12309_s7, 4  ;;  %s12310_s10 = smov [#allocation25]   ;;  %s239_s13 = int_to_ptr.vmem [resolvable:$true] %s238_s13 }
 0x124   :  { %s275_s11 = sshll.u32 %s12310_s10, 4  ;;  %s12608_s11 = int_to_ptr.vmem [resolvable:$true] %s275_s11 }
 0x127   :  { %s12149_s12 = scalar_lea.hbm %s14798_s24, 64 }
 0x128   :  { %p12150_p0 = scmp.ne.s32.totalorder %s14798_s24, %s12149_s12  ;;  %p12153_p1 = scmp.lt.u32.totalorder %s12149_s12, %s14798_s24 }
 0x12a   :  { %p12155_p2 = pnand %p12153_p1, %p12150_p0 }
 0x12c   :  { %12158 = shalt.err (!%p12155_p2)
}
 0x12d   :  { %s12159_s19 = scalar_lea.vmem %s239_s13, 64  ;;  %p12164_p4 = scmp.lt.s32.totalorder %s239_s13, %s239_s13 }
 0x12e   :  { %p12160_p3 = scmp.ne.s32.totalorder %s239_s13, %s12159_s19  ;;  %p12165_p5 = scmp.lt.s32.totalorder %s12159_s19, %s12159_s19 }
 0x130   :  { %p12166_p6 = por %p12165_p5, %p12164_p4 }
 0x132   :  { %p12167_p7 = pnand %p12166_p6, %p12160_p3 }
 0x134   :  { %12170 = shalt.err (!%p12167_p7)
}
 0x135   :  { %s14799_s6 = sld [smem:[#allocation56_spill]] }
 0x136   :  { %241 = dma.hbm_to_vmem [thread:$0]  %s14798_s24, 64, %s239_s13, [#allocation21]  }
 0x13b   :  { %s12171_s15 = scalar_lea.hbm %s14799_s6, 2048 }
 0x13c   :  { %p12172_p8 = scmp.ne.s32.totalorder %s14799_s6, %s12171_s15  ;;  %p12175_p9 = scmp.lt.u32.totalorder %s12171_s15, %s14799_s6 }
 0x13e   :  { %p12177_p10 = pnand %p12175_p9, %p12172_p8 }
 0x140   :  { %12180 = shalt.err (!%p12177_p10)
}
 0x141   :  { %s12181_s30 = scalar_lea.vmem %s12608_s11, 2048  ;;  %p12186_p12 = scmp.lt.s32.totalorder %s12608_s11, %s12608_s11 }
 0x142   :  { %p12182_p11 = scmp.ne.s32.totalorder %s12608_s11, %s12181_s30  ;;  %p12187_p13 = scmp.lt.s32.totalorder %s12181_s30, %s12181_s30 }
 0x144   :  { %p12188_p0 = por %p12187_p13, %p12186_p12 }
 0x146   :  { %p12189_p1 = pnand %p12188_p0, %p12182_p11 }
 0x148   :  { %12192 = shalt.err (!%p12189_p1)
}
 0x149   :  { %281 = dma.hbm_to_vmem [thread:$0]  %s14799_s6, 2048, %s12608_s11, [#allocation24], %s12292_s22, %s12292_s22, %s12293_s23  }
 0x14a   :  { %s12311_s9 = smov [#allocation28]   ;;  %s12193_s18 = scalar_lea.hbm %s12485_s8, 2048 }
 0x14b   :  { %s301_s16 = sshll.u32 %s12311_s9, 4  ;;  %p12194_p2 = scmp.ne.s32.totalorder %s12485_s8, %s12193_s18  ;;  %s302_s16 = int_to_ptr.vmem [resolvable:$true] %s301_s16 }
 0x14c   :  { %p12197_p3 = scmp.lt.u32.totalorder %s12193_s18, %s12485_s8 }
 0x14e   :  { %p12199_p4 = pnand %p12197_p3, %p12194_p2 }
 0x150   :  { %12202 = shalt.err (!%p12199_p4)
}
 0x151   :  { %s12203_s0 = scalar_lea.vmem %s302_s16, 2048  ;;  %p12208_p6 = scmp.lt.s32.totalorder %s302_s16, %s302_s16 }
 0x152   :  { %p12204_p5 = scmp.ne.s32.totalorder %s302_s16, %s12203_s0  ;;  %p12209_p7 = scmp.lt.s32.totalorder %s12203_s0, %s12203_s0 }
 0x154   :  { %p12210_p8 = por %p12209_p7, %p12208_p6 }
 0x156   :  { %p12211_p9 = pnand %p12210_p8, %p12204_p5 }
 0x158   :  { %12214 = shalt.err (!%p12211_p9)
}
 0x159   :  { %307 = dma.hbm_to_vmem [thread:$0]  %s12485_s8, 2048, %s302_s16, [#allocation27], %s12292_s22, %s12292_s22, %s12293_s23  }
 0x15a   :  { %12237 = dma.done.wait [#allocation3], 128  }
 0x15b   :  { %12238 = vsyncadd [#allocation3], 4294967168 }
 0x15c   :  { %12239 = dma.done.wait [#allocation6], 272  }
 0x15d   :  { %12240 = vsyncadd [#allocation6], 4294967024 }
 0x15e   :  { %12241 = dma.done.wait [#allocation9], 2112  }
 0x15f   :  { %12242 = vsyncadd [#allocation9], 4294965184 }
 0x160   :  { %12243 = dma.done.wait [#allocation12], 32832  }
 0x161   :  { %12244 = vsyncadd [#allocation12], 4294934464 }
 0x162   :  { %12245 = dma.done.wait [#allocation15], 16384  }
 0x163   :  { %12246 = vsyncadd [#allocation15], 4294950912 }
 0x164   :  { %12247 = dma.done.wait [#allocation18], 448  }
 0x165   :  { %12248 = vsyncadd [#allocation18], 4294966848 }
 0x166   :  { %12249 = dma.done.wait [#allocation21], 8256  }
 0x167   :  { %12250 = vsyncadd [#allocation21], 4294959040 }
 0x168   :  { %12251 = dma.done.wait [#allocation24], 4096  }
 0x169   :  { %12252 = vsyncadd [#allocation24], 4294963200 }
 0x16a   :  { %12253 = dma.done.wait [#allocation27], 4096  }
 0x16b   :  { %12254 = vsyncadd [#allocation27], 4294963200  ;;  %v14598_v0 = vmov 0.0   ;;  %v14596_v1 = vmov 0.0|0.0   ;;  %vm12314_vm0 = vmmov 0   ;;  %v448_v2 = vld [vmem:[#allocation8 + $0x8] sm:$0xff] }
 0x16c   :  { %553 = vmatprep.mubr.f32.mxu1 %v14598_v0  ;;  %8988 = vmatprep.subr.bf16.mxu0 %v14596_v1  ;;  %v452_v3 = vld [vmem:[#allocation8 + $0x28] sm:$0xff]  ;;  %v447_v4 = vld [vmem:[#allocation8] sm:$0xff]  ;;  %s14800_s8 = sld [smem:[#allocation40_spill]]  ;;  %v363_v14 = vld [vmem:[#allocation5 + $0x8] sm:$0xff]  ;;  %vm371_vm1 = vcmask 130048   ;;  %vm485_vm2 = vcmask 261120  }
 0x16d   :  { %8602 = vmatprep.mubr.msk.f32.mxu0 %vm12314_vm0, %v14598_v0  ;;  %v8991_v5 = vpack.c.bf16 %v452_v3, %v448_v2  ;;  %v451_v6 = vld [vmem:[#allocation8 + $0x20] sm:$0xff]  ;;  %v456_v7 = vld [vmem:[#allocation8 + $0x48] sm:$0xff]  ;;  %v450_v15 = vld [vmem:[#allocation8 + $0x18] sm:$0xff]  ;;  %s14805_s22 = sld [smem:[#allocation41_spill]]  ;;  %s14806_s23 = sld [smem:[#allocation42_spill]]  ;;  %vm5651_vm3 = vcmask 392192  }
 0x16e   :  { %v460_v8 = vld [vmem:[#allocation8 + $0x68] sm:$0xff]  ;;  %v8993_v9 = vpack.c.bf16 %v451_v6, %v447_v4  ;;  %v455_v11 = vld [vmem:[#allocation8 + $0x40] sm:$0xff]  ;;  %v454_v18 = vld [vmem:[#allocation8 + $0x38] sm:$0xff]  ;;  %s15294_s21 = sld [smem:[#allocation43_spill]]  ;;  %s15295_s17 = sld [smem:[#allocation44_spill]]  ;;  %vm6792_vm5 = vcmask 59392  }
 0x16f   :  { %v8995_v10 = vpack.c.bf16 %v460_v8, %v456_v7  ;;  %v459_v12 = vld [vmem:[#allocation8 + $0x60] sm:$0xff]  ;;  %8992 = vmatprep.subr.bf16.mxu1 %v8991_v5  ;;  %v362_v13 = vld [vmem:[#allocation5] sm:$0xff]  ;;  %v8999_v20 = vpack.c.bf16 %v454_v18, %v450_v15  ;;  %v458_v22 = vld [vmem:[#allocation8 + $0x58] sm:$0xff]  ;;  %s15298_s26 = sld [smem:[#allocation45_spill]]  ;;  %s15305_s27 = sld [smem:[#allocation46_spill]]  ;;  %vm6804_vm6 = vcmask 64512  }
 0x170   :  { %8994 = vmatpush1.bf16.msra.mxu1 %v8993_v9  ;;  %v8997_v16 = vpack.c.bf16 %v459_v12, %v455_v11  ;;  %v8989_v17 = vpack.c.bf16 %v363_v14, %v362_v13  ;;  %v449_v19 = vld [vmem:[#allocation8 + $0x10] sm:$0xff]  ;;  %v462_v23 = vld [vmem:[#allocation8 + $0x78] sm:$0xff]  ;;  %v446_v24 = vld [vmem:[#allocation2] sm:$0xff]  ;;  %s15306_s3 = sld [smem:[#allocation48_spill]]  ;;  %s15308_s25 = sld [smem:[#allocation49_spill]]  ;;  %vm7157_vm7 = vcmask 523264  }
 0x171   :  { %8996 = vmatprep.subr.bf16.mxu1 %v8995_v10  ;;  %v453_v21 = vld [vmem:[#allocation8 + $0x30] sm:$0xff]  ;;  %v9003_v29 = vpack.c.bf16 %v462_v23, %v458_v22  ;;  %v702_v32 = vld [vmem:[#allocation11 + $0x18] sm:$0xff]  ;;  %v699_v35 = vld [vmem:[#allocation11] sm:$0xff]  ;;  %s15309_s29 = sld [smem:[#allocation51_spill]]  ;;  %s15310_s28 = sld [smem:[#allocation53_spill]]  ;;  %vm7251_vm8 = vcmask 1042432  }
 0x172   :  { %8990 = vmatpush3.bf16.msra.mxu0 %v8989_v17  ;;  %v361_v25 = vld [vmem:[%s14800_s8] sm:$0xff]  ;;  %v9001_v26 = vpack.c.bf16 %v453_v21, %v449_v19  ;;  %v457_v27 = vld [vmem:[#allocation8 + $0x50] sm:$0xff]  ;;  %v706_v34 = vld [vmem:[#allocation11 + $0x38] sm:$0xff]  ;;  %s15311_s1 = sld [smem:[#allocation52_spill]]  ;;  %s15312_s14 = sld [smem:[#allocation50_spill]]  ;;  %vm7235_vm9 = vcmask 18432  }
 0x173   :  { %v700_v28 = vld [vmem:[#allocation11 + $0x8] sm:$0xff]  ;;  %9000 = vmatprep.subr.bf16.mxu0 %v8999_v20  ;;  %v703_v36 = vld [vmem:[#allocation11 + $0x20] sm:$0xff]  ;;  %v701_v41 = vld [vmem:[#allocation11 + $0x10] sm:$0xff]  ;;  %v9135_v44 = vpack.c.bf16 %v706_v34, %v702_v32  ;;  %s15313_s2 = sld [smem:[#allocation54_spill]]  ;;  %vm7247_vm10 = vcmask 23552   ;;  %s15314_s24 = sld [smem:[#allocation55_spill]] }
 0x174   :  { %v461_v30 = vld [vmem:[#allocation8 + $0x70] sm:$0xff]  ;;  %8998 = vmatpush1.bf16.msra.mxu1 %v8997_v16  ;;  %v9009_v37 = vpack.c.bf16 %v703_v36, %v699_v35  ;;  %v707_v43 = vld [vmem:[#allocation11 + $0x40] sm:$0xff]  ;;  %v710_v46 = vld [vmem:[#allocation11 + $0x58] sm:$0xff]  ;;  %s12316_s7 = smov [#allocation29]  }
 0x175   :  { %v704_v31 = vld [vmem:[#allocation11 + $0x28] sm:$0xff]  ;;  %8603 = vmatmul.mubr.msk.f32.vlgmr.msra.gmra.mrb[0].mxu0 %vm371_vm1, %v361_v25  ;;  %v9005_v40 = vpack.c.bf16 %v461_v30, %v457_v27  ;;  %v705_v45 = vld [vmem:[#allocation11 + $0x30] sm:$0xff]  ;;  %v711_v47 = vld [vmem:[#allocation11 + $0x60] sm:$0xff]  ;;  %s8223_s13 = sshll.u32 %s12316_s7, 4  ;;  %s8224_s13 = int_to_ptr.vmem [resolvable:$true] %s8223_s13 }
 0x176   :  { %v9007_v33 = vpack.c.bf16 %v704_v31, %v700_v28  ;;  %v708_v38 = vld [vmem:[#allocation11 + $0x48] sm:$0xff]  ;;  %9002 = vmatpush1.bf16.msra.mxu0 %v9001_v26  ;;  %624 = vmatprep.mubr.f32.mxu0 %v14598_v0  ;;  %v714_v48 = vld [vmem:[#allocation11 + $0x78] sm:$0xff]  ;;  %v9013_v51 = vpack.c.bf16 %v711_v47, %v707_v43  ;;  %v9137_v52 = vpack.c.bf16 %v705_v45, %v701_v41  ;;  %v709_v53 = vld [vmem:[#allocation11 + $0x50] sm:$0xff]  ;;  %s12215_s10 = scalar_lea.vmem %s8224_s13, 16  ;;  %s12219_s11 = scalar_lea.vmem %s8224_s13, 32 }
 0x177   :  { %v712_v39 = vld [vmem:[#allocation11 + $0x68] sm:$0xff]  ;;  %8276 = vmatmul.mubr.msk.f32.vlgmr.msra.gmra.mrb[0].mxu1 %vm485_vm2, %v446_v24  ;;  %9004 = vmatprep.subr.bf16.mxu0 %v9003_v29  ;;  %v715_v55 = vld [vmem:[#allocation11 + $0x80] sm:$0xff]  ;;  %v9139_v57 = vpack.c.bf16 %v714_v48, %v710_v46  ;;  %v713_v58 = vld [vmem:[#allocation11 + $0x70] sm:$0xff]  ;;  %p12216_p10 = scmp.ne.s32.totalorder %s8224_s13, %s12215_s10  ;;  %p12220_p11 = scmp.lt.s32.totalorder %s8224_s13, %s8224_s13 }
 0x178   :  { %v9011_v42 = vpack.c.bf16 %v712_v39, %v708_v38  ;;  %9008 = vmatprep.subr.bf16.mxu1 %v9007_v33  ;;  %v716_v49 = vld [vmem:[#allocation11 + $0x88] sm:$0xff]  ;;  %v719_v56 = vld [vmem:[#allocation11 + $0xa0] sm:$0xff]  ;;  %v718_v61 = vld [vmem:[#allocation11 + $0x98] sm:$0xff]  ;;  %v9141_v2 = vpack.c.bf16 %v713_v58, %v709_v53  ;;  %p12221_p12 = scmp.lt.s32.totalorder %s12219_s11, %s12215_s10 }
 0x179   :  { %v720_v50 = vld [vmem:[#allocation11 + $0xa8] sm:$0xff]  ;;  %9010 = vmatpush1.bf16.msra.mxu1 %v9009_v37  ;;  %v722_v62 = vld [vmem:[#allocation11 + $0xb8] sm:$0xff]  ;;  %v9017_v63 = vpack.c.bf16 %v719_v56, %v715_v55  ;;  %v717_v3 = vld [vmem:[#allocation11 + $0x90] sm:$0xff] }
 0x17a   :  { %9006 = vmatpush1.bf16.msra.mxu0 %v9005_v40  ;;  %9012 = vmatprep.subr.bf16.mxu1 %v9011_v42  ;;  %v9015_v54 = vpack.c.bf16 %v720_v50, %v716_v49  ;;  %v724_v59 = vld [vmem:[#allocation11 + $0xc8] sm:$0xff]  ;;  %v723_v5 = vld [vmem:[#allocation11 + $0xc0] sm:$0xff]  ;;  %v9143_v7 = vpack.c.bf16 %v722_v62, %v718_v61  ;;  %v721_v8 = vld [vmem:[#allocation11 + $0xb0] sm:$0xff]  ;;  %p12222_p13 = por %p12221_p12, %p12220_p11 }
 0x17b   :  { %9136 = vmatprep.subr.bf16.mxu0 %v9135_v44  ;;  %v728_v60 = vld [vmem:[#allocation11 + $0xe8] sm:$0xff]  ;;  %v727_v6 = vld [vmem:[#allocation11 + $0xe0] sm:$0xff]  ;;  %v726_v11 = vld [vmem:[#allocation11 + $0xd8] sm:$0xff]  ;;  %v9145_v14 = vpack.c.bf16 %v721_v8, %v717_v3 }
 0x17c   :  { %v9019_v4 = vpack.c.bf16 %v728_v60, %v724_v59  ;;  %v732_v9 = vld [vmem:[#allocation11 + $0x108] sm:$0xff]  ;;  %v730_v12 = vld [vmem:[#allocation11 + $0xf8] sm:$0xff]  ;;  %v9021_v13 = vpack.c.bf16 %v727_v6, %v723_v5  ;;  %v725_v15 = vld [vmem:[#allocation11 + $0xd0] sm:$0xff]  ;;  %p12223_p0 = pnand %p12222_p13, %p12216_p10 }
 0x17d   :  { %8277 = vmatmul.mubr.msk.f32.vlgmr.msra.gmra.mrb[2].mxu0 %vm485_vm2, %v446_v24  ;;  %9014 = vmatpush1.bf16.msra.mxu1 %v9013_v51  ;;  %v736_v10 = vld [vmem:[#allocation11 + $0x128] sm:$0xff]  ;;  %v731_v17 = vld [vmem:[#allocation11 + $0x100] sm:$0xff]  ;;  %v9147_v19 = vpack.c.bf16 %v730_v12, %v726_v11  ;;  %v729_v20 = vld [vmem:[#allocation11 + $0xf0] sm:$0xff] }
 0x17e   :  { %9138 = vmatpush1.bf16.msra.mxu0 %v9137_v52  ;;  %9016 = vmatprep.subr.bf16.mxu1 %v9015_v54  ;;  %v9023_v16 = vpack.c.bf16 %v736_v10, %v732_v9  ;;  %v735_v18 = vld [vmem:[#allocation11 + $0x120] sm:$0xff]  ;;  %v740_v21 = vld [vmem:[#allocation11 + $0x148] sm:$0xff]  ;;  %v734_v23 = vld [vmem:[#allocation11 + $0x118] sm:$0xff]  ;;  %v9149_v26 = vpack.c.bf16 %v729_v20, %v725_v15 }
 0x17f   :  { %9140 = vmatprep.subr.bf16.mxu0 %v9139_v57  ;;  %v744_v22 = vld [vmem:[#allocation11 + $0x168] sm:$0xff]  ;;  %v738_v24 = vld [vmem:[#allocation11 + $0x138] sm:$0xff]  ;;  %v9025_v25 = vpack.c.bf16 %v735_v18, %v731_v17  ;;  %v733_v27 = vld [vmem:[#allocation11 + $0x110] sm:$0xff] }
 0x180   :  { %v9027_v28 = vpack.c.bf16 %v744_v22, %v740_v21  ;;  %v739_v29 = vld [vmem:[#allocation11 + $0x140] sm:$0xff]  ;;  %v9151_v31 = vpack.c.bf16 %v738_v24, %v734_v23  ;;  %v737_v32 = vld [vmem:[#allocation11 + $0x130] sm:$0xff]  ;;  %v748_v33 = vld [vmem:[#allocation11 + $0x188] sm:$0xff] }
 0x181   :  { %9018 = vmatpush1.bf16.msra.mxu1 %v9017_v63  ;;  %v743_v30 = vld [vmem:[#allocation11 + $0x160] sm:$0xff]  ;;  %v752_v34 = vld [vmem:[#allocation11 + $0x1a8] sm:$0xff]  ;;  %v742_v35 = vld [vmem:[#allocation11 + $0x158] sm:$0xff]  ;;  %v9153_v38 = vpack.c.bf16 %v737_v32, %v733_v27 }
 0x182   :  { %9142 = vmatpush1.bf16.msra.mxu0 %v9141_v2  ;;  %9020 = vmatprep.subr.bf16.mxu1 %v9019_v4  ;;  %v746_v36 = vld [vmem:[#allocation11 + $0x178] sm:$0xff]  ;;  %v9029_v37 = vpack.c.bf16 %v743_v30, %v739_v29  ;;  %v741_v39 = vld [vmem:[#allocation11 + $0x150] sm:$0xff]  ;;  %v9031_v40 = vpack.c.bf16 %v752_v34, %v748_v33  ;;  %v747_v41 = vld [vmem:[#allocation11 + $0x180] sm:$0xff] }
 0x183   :  { %9144 = vmatprep.subr.bf16.mxu0 %v9143_v7  ;;  %v751_v42 = vld [vmem:[#allocation11 + $0x1a0] sm:$0xff]  ;;  %v9155_v43 = vpack.c.bf16 %v746_v36, %v742_v35  ;;  %v745_v44 = vld [vmem:[#allocation11 + $0x170] sm:$0xff]  ;;  %v756_v45 = vld [vmem:[#allocation11 + $0x1c8] sm:$0xff] }
 0x184   :  { %v760_v46 = vld [vmem:[#allocation11 + $0x1e8] sm:$0xff]  ;;  %v750_v47 = vld [vmem:[#allocation11 + $0x198] sm:$0xff]  ;;  %v9033_v49 = vpack.c.bf16 %v751_v42, %v747_v41  ;;  %v9157_v50 = vpack.c.bf16 %v745_v44, %v741_v39  ;;  %v749_v51 = vld [vmem:[#allocation11 + $0x190] sm:$0xff] }
 0x185   :  { %9022 = vmatpush1.bf16.msra.mxu1 %v9021_v13  ;;  %v754_v48 = vld [vmem:[#allocation11 + $0x1b8] sm:$0xff]  ;;  %v9035_v52 = vpack.c.bf16 %v760_v46, %v756_v45  ;;  %v755_v53 = vld [vmem:[#allocation11 + $0x1c0] sm:$0xff]  ;;  %v753_v56 = vld [vmem:[#allocation11 + $0x1b0] sm:$0xff] }
 0x186   :  { %9146 = vmatpush1.bf16.msra.mxu0 %v9145_v14  ;;  %9024 = vmatprep.subr.bf16.mxu1 %v9023_v16  ;;  %v759_v54 = vld [vmem:[#allocation11 + $0x1e0] sm:$0xff]  ;;  %v9159_v55 = vpack.c.bf16 %v754_v48, %v750_v47  ;;  %v764_v57 = vld [vmem:[#allocation11 + $0x208] sm:$0xff]  ;;  %v758_v59 = vld [vmem:[#allocation11 + $0x1d8] sm:$0xff]  ;;  %v9161_v62 = vpack.c.bf16 %v753_v56, %v749_v51 }
 0x187   :  { %9148 = vmatprep.subr.bf16.mxu0 %v9147_v19  ;;  %v768_v58 = vld [vmem:[#allocation11 + $0x228] sm:$0xff]  ;;  %v762_v60 = vld [vmem:[#allocation11 + $0x1f8] sm:$0xff]  ;;  %v9037_v61 = vpack.c.bf16 %v759_v54, %v755_v53  ;;  %v757_v63 = vld [vmem:[#allocation11 + $0x1d0] sm:$0xff] }
 0x188   :  { %v9039_v2 = vpack.c.bf16 %v768_v58, %v764_v57  ;;  %v763_v3 = vld [vmem:[#allocation11 + $0x200] sm:$0xff]  ;;  %v9163_v5 = vpack.c.bf16 %v762_v60, %v758_v59  ;;  %v761_v6 = vld [vmem:[#allocation11 + $0x1f0] sm:$0xff]  ;;  %v772_v7 = vld [vmem:[#allocation11 + $0x248] sm:$0xff] }
 0x189   :  { %9026 = vmatpush1.bf16.msra.mxu1 %v9025_v25  ;;  %v767_v4 = vld [vmem:[#allocation11 + $0x220] sm:$0xff]  ;;  %v776_v8 = vld [vmem:[#allocation11 + $0x268] sm:$0xff]  ;;  %v766_v9 = vld [vmem:[#allocation11 + $0x218] sm:$0xff]  ;;  %v9165_v12 = vpack.c.bf16 %v761_v6, %v757_v63 }
 0x18a   :  { %9150 = vmatpush1.bf16.msra.mxu0 %v9149_v26  ;;  %9028 = vmatprep.subr.bf16.mxu1 %v9027_v28  ;;  %v770_v10 = vld [vmem:[#allocation11 + $0x238] sm:$0xff]  ;;  %v9041_v11 = vpack.c.bf16 %v767_v4, %v763_v3  ;;  %v765_v13 = vld [vmem:[#allocation11 + $0x210] sm:$0xff]  ;;  %v9043_v14 = vpack.c.bf16 %v776_v8, %v772_v7  ;;  %v771_v15 = vld [vmem:[#allocation11 + $0x240] sm:$0xff] }
 0x18b   :  { %9152 = vmatprep.subr.bf16.mxu0 %v9151_v31  ;;  %v775_v16 = vld [vmem:[#allocation11 + $0x260] sm:$0xff]  ;;  %v9167_v17 = vpack.c.bf16 %v770_v10, %v766_v9  ;;  %v769_v18 = vld [vmem:[#allocation11 + $0x230] sm:$0xff]  ;;  %v780_v19 = vld [vmem:[#allocation11 + $0x288] sm:$0xff] }
 0x18c   :  { %v784_v20 = vld [vmem:[#allocation11 + $0x2a8] sm:$0xff]  ;;  %v774_v21 = vld [vmem:[#allocation11 + $0x258] sm:$0xff]  ;;  %v9045_v23 = vpack.c.bf16 %v775_v16, %v771_v15  ;;  %v9169_v24 = vpack.c.bf16 %v769_v18, %v765_v13  ;;  %v773_v25 = vld [vmem:[#allocation11 + $0x250] sm:$0xff] }
 0x18d   :  { %9030 = vmatpush1.bf16.msra.mxu1 %v9029_v37  ;;  %v778_v22 = vld [vmem:[#allocation11 + $0x278] sm:$0xff]  ;;  %v9047_v26 = vpack.c.bf16 %v784_v20, %v780_v19  ;;  %v779_v27 = vld [vmem:[#allocation11 + $0x280] sm:$0xff]  ;;  %v777_v30 = vld [vmem:[#allocation11 + $0x270] sm:$0xff] }
 0x18e   :  { %9154 = vmatpush1.bf16.msra.mxu0 %v9153_v38  ;;  %9032 = vmatprep.subr.bf16.mxu1 %v9031_v40  ;;  %v783_v28 = vld [vmem:[#allocation11 + $0x2a0] sm:$0xff]  ;;  %v9171_v29 = vpack.c.bf16 %v778_v22, %v774_v21  ;;  %v788_v31 = vld [vmem:[#allocation11 + $0x2c8] sm:$0xff]  ;;  %v782_v33 = vld [vmem:[#allocation11 + $0x298] sm:$0xff]  ;;  %v9173_v36 = vpack.c.bf16 %v777_v30, %v773_v25 }
 0x18f   :  { %9156 = vmatprep.subr.bf16.mxu0 %v9155_v43  ;;  %v792_v32 = vld [vmem:[#allocation11 + $0x2e8] sm:$0xff]  ;;  %v786_v34 = vld [vmem:[#allocation11 + $0x2b8] sm:$0xff]  ;;  %v9049_v35 = vpack.c.bf16 %v783_v28, %v779_v27  ;;  %v781_v37 = vld [vmem:[#allocation11 + $0x290] sm:$0xff] }
 0x190   :  { %v9051_v38 = vpack.c.bf16 %v792_v32, %v788_v31  ;;  %v787_v39 = vld [vmem:[#allocation11 + $0x2c0] sm:$0xff]  ;;  %v9175_v41 = vpack.c.bf16 %v786_v34, %v782_v33  ;;  %v785_v42 = vld [vmem:[#allocation11 + $0x2b0] sm:$0xff]  ;;  %v796_v43 = vld [vmem:[#allocation11 + $0x308] sm:$0xff] }
 0x191   :  { %9034 = vmatpush1.bf16.msra.mxu1 %v9033_v49  ;;  %v791_v40 = vld [vmem:[#allocation11 + $0x2e0] sm:$0xff]  ;;  %v800_v44 = vld [vmem:[#allocation11 + $0x328] sm:$0xff]  ;;  %v790_v45 = vld [vmem:[#allocation11 + $0x2d8] sm:$0xff]  ;;  %v9177_v48 = vpack.c.bf16 %v785_v42, %v781_v37 }
 0x192   :  { %9158 = vmatpush1.bf16.msra.mxu0 %v9157_v50  ;;  %9036 = vmatprep.subr.bf16.mxu1 %v9035_v52  ;;  %v794_v46 = vld [vmem:[#allocation11 + $0x2f8] sm:$0xff]  ;;  %v9053_v47 = vpack.c.bf16 %v791_v40, %v787_v39  ;;  %v789_v49 = vld [vmem:[#allocation11 + $0x2d0] sm:$0xff]  ;;  %v9055_v50 = vpack.c.bf16 %v800_v44, %v796_v43  ;;  %v795_v51 = vld [vmem:[#allocation11 + $0x300] sm:$0xff]  ;;  %v465_v43 = vlaneseq }
 0x193   :  { %9160 = vmatprep.subr.bf16.mxu0 %v9159_v55  ;;  %v799_v52 = vld [vmem:[#allocation11 + $0x320] sm:$0xff]  ;;  %v9179_v53 = vpack.c.bf16 %v794_v46, %v790_v45  ;;  %v793_v54 = vld [vmem:[#allocation11 + $0x2f0] sm:$0xff]  ;;  %v804_v55 = vld [vmem:[#allocation11 + $0x348] sm:$0xff] }
 0x194   :  { %v808_v56 = vld [vmem:[#allocation11 + $0x368] sm:$0xff]  ;;  %v798_v57 = vld [vmem:[#allocation11 + $0x318] sm:$0xff]  ;;  %v9057_v59 = vpack.c.bf16 %v799_v52, %v795_v51  ;;  %v9181_v60 = vpack.c.bf16 %v793_v54, %v789_v49  ;;  %v803_v63 = vld [vmem:[#allocation11 + $0x340] sm:$0xff]  ;;  %v12641_v44 = vshrl.u32 %v465_v43, 7 }
 0x195   :  { %9038 = vmatpush1.bf16.msra.mxu1 %v9037_v61  ;;  %v802_v58 = vld [vmem:[#allocation11 + $0x338] sm:$0xff]  ;;  %v797_v61 = vld [vmem:[#allocation11 + $0x310] sm:$0xff]  ;;  %v816_v6 = vld [vmem:[#allocation11 + $0x3a8] sm:$0xff] }
 0x196   :  { %9162 = vmatpush1.bf16.msra.mxu0 %v9161_v62  ;;  %9040 = vmatprep.subr.bf16.mxu1 %v9039_v2  ;;  %v9059_v62 = vpack.c.bf16 %v808_v56, %v804_v55  ;;  %v807_v2 = vld [vmem:[#allocation11 + $0x360] sm:$0xff]  ;;  %v9183_v3 = vpack.c.bf16 %v802_v58, %v798_v57  ;;  %v801_v4 = vld [vmem:[#allocation11 + $0x330] sm:$0xff]  ;;  %v806_v7 = vld [vmem:[#allocation11 + $0x358] sm:$0xff]  ;;  %v12644_v45 = vsub.s32 0, %v12641_v44  ;;  %v12658_v55 = vsub.s32 3, %v12641_v44 }
 0x197   :  { %9164 = vmatprep.subr.bf16.mxu0 %v9163_v5  ;;  %v812_v5 = vld [vmem:[#allocation11 + $0x388] sm:$0xff]  ;;  %v810_v8 = vld [vmem:[#allocation11 + $0x378] sm:$0xff]  ;;  %v9061_v9 = vpack.c.bf16 %v807_v2, %v803_v63  ;;  %v9185_v10 = vpack.c.bf16 %v801_v4, %v797_v61  ;;  %v815_v13 = vld [vmem:[#allocation11 + $0x3a0] sm:$0xff] }
 0x198   :  { %v805_v15 = vld [vmem:[#allocation11 + $0x350] sm:$0xff]  ;;  %v818_v18 = vld [vmem:[#allocation11 + $0x3b8] sm:$0xff]  ;;  %v820_v25 = vld [vmem:[#allocation11 + $0x3c8] sm:$0xff]  ;;  %14801 = vst [vmem:[#allocation57_spill] sm:$0xff] %v12644_v45 }
 0x199   :  { %9042 = vmatpush1.bf16.msra.mxu1 %v9041_v11  ;;  %v9063_v11 = vpack.c.bf16 %v816_v6, %v812_v5  ;;  %v809_v16 = vld [vmem:[#allocation11 + $0x370] sm:$0xff]  ;;  %v822_v27 = vld [vmem:[#allocation11 + $0x3d8] sm:$0xff]  ;;  %v819_v30 = vld [vmem:[#allocation11 + $0x3c0] sm:$0xff]  ;;  %14803 = vst [vmem:[#allocation59_spill] sm:$0xff] %v12658_v55 }
 0x19a   :  { %9166 = vmatpush1.bf16.msra.mxu0 %v9165_v12  ;;  %9044 = vmatprep.subr.bf16.mxu1 %v9043_v14  ;;  %v811_v12 = vld [vmem:[#allocation11 + $0x380] sm:$0xff]  ;;  %v9187_v14 = vpack.c.bf16 %v810_v8, %v806_v7  ;;  %v9189_v20 = vpack.c.bf16 %v809_v16, %v805_v15  ;;  %v813_v22 = vld [vmem:[#allocation11 + $0x390] sm:$0xff]  ;;  %v828_v37 = vld [vmem:[#allocation11 + $0x408] sm:$0xff] }
 0x19b   :  { %9168 = vmatprep.subr.bf16.mxu0 %v9167_v17  ;;  %v814_v17 = vld [vmem:[#allocation11 + $0x398] sm:$0xff]  ;;  %v9065_v19 = vpack.c.bf16 %v815_v13, %v811_v12  ;;  %v823_v31 = vld [vmem:[#allocation11 + $0x3e0] sm:$0xff]  ;;  %v821_v34 = vld [vmem:[#allocation11 + $0x3d0] sm:$0xff] }
 0x19c   :  { %v9191_v21 = vpack.c.bf16 %v818_v18, %v814_v17  ;;  %v9069_v33 = vpack.c.bf16 %v823_v31, %v819_v30  ;;  %v830_v40 = vld [vmem:[#allocation11 + $0x418] sm:$0xff]  ;;  %v831_v54 = vld [vmem:[#allocation11 + $0x420] sm:$0xff]  ;;  %v829_v58 = vld [vmem:[#allocation11 + $0x410] sm:$0xff] }
 0x19d   :  { %9046 = vmatpush1.bf16.msra.mxu1 %v9045_v23  ;;  %v817_v23 = vld [vmem:[#allocation11 + $0x3b0] sm:$0xff]  ;;  %v12646_v46 = vld [vmem:[#allocation10] sm:$0xf]  ;;  %v835_v6 = vld [vmem:[#allocation11 + $0x440] sm:$0xff] }
 0x19e   :  { %9170 = vmatpush1.bf16.msra.mxu0 %v9169_v24  ;;  %9048 = vmatprep.subr.bf16.mxu1 %v9047_v26  ;;  %v9193_v24 = vpack.c.bf16 %v817_v23, %v813_v22  ;;  %v824_v26 = vld [vmem:[#allocation11 + $0x3e8] sm:$0xff]  ;;  %v838_v63 = vld [vmem:[#allocation11 + $0x458] sm:$0xff]  ;;  %v839_v7 = vld [vmem:[#allocation11 + $0x460] sm:$0xff]  ;;  %v480_v8 = vrot.slane %v12646_v46, %v12658_v55 }
 0x19f   :  { %9172 = vmatprep.subr.bf16.mxu0 %v9171_v29  ;;  %v9067_v28 = vpack.c.bf16 %v824_v26, %v820_v25  ;;  %v826_v29 = vld [vmem:[#allocation11 + $0x3f8] sm:$0xff]  ;;  %v837_v12 = vld [vmem:[#allocation11 + $0x450] sm:$0xff]  ;;  %v848_v15 = vld [vmem:[#allocation11 + $0x4a8] sm:$0xff] }
 0x1a0   :  { %v9195_v32 = vpack.c.bf16 %v826_v29, %v822_v27  ;;  %v842_v2 = vld [vmem:[#allocation11 + $0x478] sm:$0xff]  ;;  %v841_v13 = vld [vmem:[#allocation11 + $0x470] sm:$0xff]  ;;  %v843_v22 = vld [vmem:[#allocation11 + $0x480] sm:$0xff] }
 0x1a1   :  { %9050 = vmatpush1.bf16.msra.mxu1 %v9049_v35  ;;  %v825_v35 = vld [vmem:[#allocation11 + $0x3f0] sm:$0xff]  ;;  %v846_v16 = vld [vmem:[#allocation11 + $0x498] sm:$0xff]  ;;  %v847_v23 = vld [vmem:[#allocation11 + $0x4a0] sm:$0xff] }
 0x1a2   :  { %9174 = vmatpush1.bf16.msra.mxu0 %v9173_v36  ;;  %9052 = vmatprep.subr.bf16.mxu1 %v9051_v38  ;;  %v9197_v36 = vpack.c.bf16 %v825_v35, %v821_v34  ;;  %v832_v38 = vld [vmem:[#allocation11 + $0x428] sm:$0xff]  ;;  %v850_v17 = vld [vmem:[#allocation11 + $0x4b8] sm:$0xff]  ;;  %v845_v27 = vld [vmem:[#allocation11 + $0x490] sm:$0xff]  ;;  %v9081_v34 = vpack.c.bf16 %v847_v23, %v843_v22 }
 0x1a3   :  { %9176 = vmatprep.subr.bf16.mxu0 %v9175_v41  ;;  %v9071_v39 = vpack.c.bf16 %v832_v38, %v828_v37  ;;  %v834_v41 = vld [vmem:[#allocation11 + $0x438] sm:$0xff]  ;;  %v9207_v26 = vpack.c.bf16 %v850_v17, %v846_v16  ;;  %v852_v29 = vld [vmem:[#allocation11 + $0x4c8] sm:$0xff]  ;;  %v855_v37 = vld [vmem:[#allocation11 + $0x4e0] sm:$0xff] }
 0x1a4   :  { %v9199_v42 = vpack.c.bf16 %v834_v41, %v830_v40  ;;  %v856_v30 = vld [vmem:[#allocation11 + $0x4e8] sm:$0xff]  ;;  %v854_v31 = vld [vmem:[#allocation11 + $0x4d8] sm:$0xff]  ;;  %v853_v40 = vld [vmem:[#allocation11 + $0x4d0] sm:$0xff] }
 0x1a5   :  { %9054 = vmatpush1.bf16.msra.mxu1 %v9053_v47  ;;  %v12649_v47 = vsub.s32 1, %v12641_v44  ;;  %v9083_v38 = vpack.c.bf16 %v856_v30, %v852_v29  ;;  %v857_v41 = vld [vmem:[#allocation11 + $0x4f0] sm:$0xff]  ;;  %v864_v43 = vld [vmem:[#allocation11 + $0x528] sm:$0xff]  ;;  %v875_v16 = vld [vmem:[#allocation11 + $0x580] sm:$0xff] }
 0x1a6   :  { %9178 = vmatpush1.bf16.msra.mxu0 %v9177_v48  ;;  %9056 = vmatprep.subr.bf16.mxu1 %v9055_v50  ;;  %v468_v48 = vrot.slane %v12646_v46, %v12644_v45  ;;  %v879_v17 = vld [vmem:[#allocation11 + $0x5a0] sm:$0xff]  ;;  %v881_v22 = vld [vmem:[#allocation11 + $0x5b0] sm:$0xff]  ;;  %v884_v23 = vld [vmem:[#allocation11 + $0x5c8] sm:$0xff] }
 0x1a7   :  { %9180 = vmatprep.subr.bf16.mxu0 %v9179_v53  ;;  %14802 = vst [vmem:[#allocation58_spill] sm:$0xff] %v12649_v47  ;;  %v472_v49 = vrot.slane %v12646_v46, %v12649_v47  ;;  %v827_v53 = vld [vmem:[#allocation11 + $0x400] sm:$0xff] }
 0x1a8   :  { %v9073_v4 = vpack.c.bf16 %v831_v54, %v827_v53  ;;  %v859_v53 = vld [vmem:[#allocation11 + $0x500] sm:$0xff] }
 0x1a9   :  { %9058 = vmatpush1.bf16.msra.mxu1 %v9057_v59  ;;  %v833_v59 = vld [vmem:[#allocation11 + $0x430] sm:$0xff]  ;;  %v863_v54 = vld [vmem:[#allocation11 + $0x520] sm:$0xff] }
 0x1aa   :  { %9182 = vmatpush1.bf16.msra.mxu0 %v9181_v60  ;;  %9060 = vmatprep.subr.bf16.mxu1 %v9059_v62  ;;  %v836_v60 = vld [vmem:[#allocation11 + $0x448] sm:$0xff]  ;;  %v9201_v5 = vpack.c.bf16 %v833_v59, %v829_v58  ;;  %v861_v58 = vld [vmem:[#allocation11 + $0x510] sm:$0xff]  ;;  %v883_v29 = vld [vmem:[#allocation11 + $0x5c0] sm:$0xff] }
 0x1ab   :  { %9184 = vmatprep.subr.bf16.mxu0 %v9183_v3  ;;  %v840_v62 = vld [vmem:[#allocation11 + $0x468] sm:$0xff]  ;;  %v865_v59 = vld [vmem:[#allocation11 + $0x530] sm:$0xff]  ;;  %v887_v30 = vld [vmem:[#allocation11 + $0x5e0] sm:$0xff] }
 0x1ad   :  { %9062 = vmatpush1.bf16.msra.mxu1 %v9061_v9 }
 0x1ae   :  { %9186 = vmatpush1.bf16.msra.mxu0 %v9185_v10  ;;  %9064 = vmatprep.subr.bf16.mxu1 %v9063_v11  ;;  %v9075_v10 = vpack.c.bf16 %v840_v62, %v836_v60  ;;  %v9203_v11 = vpack.c.bf16 %v842_v2, %v838_v63  ;;  %v868_v60 = vld [vmem:[#allocation11 + $0x548] sm:$0xff]  ;;  %v870_v62 = vld [vmem:[#allocation11 + $0x558] sm:$0xff]  ;;  %v9089_v2 = vpack.c.bf16 %v863_v54, %v859_v53 }
 0x1af   :  { %9188 = vmatprep.subr.bf16.mxu0 %v9187_v14  ;;  %v844_v14 = vld [vmem:[#allocation11 + $0x488] sm:$0xff]  ;;  %v874_v63 = vld [vmem:[#allocation11 + $0x578] sm:$0xff] }
 0x1b0   :  { %v9079_v25 = vpack.c.bf16 %v848_v15, %v844_v14  ;;  %v904_v53 = vld [vmem:[#allocation11 + $0x668] sm:$0xff]  ;;  %v902_v54 = vld [vmem:[#allocation11 + $0x658] sm:$0xff] }
 0x1b1   :  { %9066 = vmatpush1.bf16.msra.mxu1 %v9065_v19 }
 0x1b2   :  { %9190 = vmatpush1.bf16.msra.mxu0 %v9189_v20  ;;  %9068 = vmatprep.subr.bf16.mxu1 %v9067_v28  ;;  %v9077_v20 = vpack.c.bf16 %v839_v7, %v835_v6  ;;  %v849_v28 = vld [vmem:[#allocation11 + $0x4b0] sm:$0xff]  ;;  %v9219_v7 = vpack.c.bf16 %v874_v63, %v870_v62 }
 0x1b3   :  { %9192 = vmatprep.subr.bf16.mxu0 %v9191_v21  ;;  %v9205_v21 = vpack.c.bf16 %v841_v13, %v837_v12  ;;  %v9209_v35 = vpack.c.bf16 %v849_v28, %v845_v27  ;;  %v878_v12 = vld [vmem:[#allocation11 + $0x598] sm:$0xff]  ;;  %v9097_v27 = vpack.c.bf16 %v879_v17, %v875_v16  ;;  %v901_v63 = vld [vmem:[#allocation11 + $0x650] sm:$0xff]  ;;  %v920_v16 = vld [vmem:[#allocation11 + $0x6e8] sm:$0xff] }
 0x1b4   :  { %v882_v13 = vld [vmem:[#allocation11 + $0x5b8] sm:$0xff] }
 0x1b5   :  { %9070 = vmatpush1.bf16.msra.mxu1 %v9069_v33  ;;  %v918_v17 = vld [vmem:[#allocation11 + $0x6d8] sm:$0xff] }
 0x1b6   :  { %9194 = vmatpush1.bf16.msra.mxu0 %v9193_v24  ;;  %9072 = vmatprep.subr.bf16.mxu1 %v9071_v39 }
 0x1b7   :  { %9196 = vmatprep.subr.bf16.mxu0 %v9195_v32  ;;  %v858_v32 = vld [vmem:[#allocation11 + $0x4f8] sm:$0xff] }
 0x1b8   :  { %v9211_v39 = vpack.c.bf16 %v858_v32, %v854_v31 }
 0x1ba   :  { %9198 = vmatpush1.bf16.msra.mxu0 %v9197_v36  ;;  %v851_v36 = vld [vmem:[#allocation11 + $0x4c0] sm:$0xff] }
 0x1bb   :  { %9200 = vmatprep.subr.bf16.mxu0 %v9199_v42  ;;  %v860_v42 = vld [vmem:[#allocation11 + $0x508] sm:$0xff] }
 0x248   :  { %v12655_v50 = vpop.f32.mrb[0].mxu0 }
 0x249   :  { %v8604_v51 = vpop.f32.mrb[1].mxu0 }
 0x24a   :  { %v555_v52 = vpop.f32.mrb[0].mxu1  ;;  %v9085_v51 = vpack.c.bf16 %v855_v37, %v851_v36  ;;  %v896_v36 = vld [vmem:[#allocation11 + $0x628] sm:$0xff]  ;;  %v894_v37 = vld [vmem:[#allocation11 + $0x618] sm:$0xff] }
 0x24b   :  { %v556_v56 = vadd.f32 %v555_v52, %v468_v48  ;;  %v557_v57 = vpop.f32.mrb[1].mxu1  ;;  %v862_v48 = vld [vmem:[#allocation11 + $0x518] sm:$0xff]  ;;  %v9213_v52 = vpack.c.bf16 %v857_v41, %v853_v40  ;;  %v891_v41 = vld [vmem:[#allocation11 + $0x600] sm:$0xff] }
 0x24c   :  { %v558_v61 = vadd.f32 %v557_v57, %v472_v49  ;;  %v866_v49 = vld [vmem:[#allocation11 + $0x538] sm:$0xff] }
 0x24d   :  { %v631_v9 = vmax.f32 %v556_v56, 0.0  ;;  %v9087_v56 = vpack.c.bf16 %v864_v43, %v860_v42  ;;  %v9215_v57 = vpack.c.bf16 %v866_v49, %v862_v48  ;;  %v895_v42 = vld [vmem:[#allocation11 + $0x620] sm:$0xff]  ;;  %v893_v49 = vld [vmem:[#allocation11 + $0x610] sm:$0xff] }
 0x24e   :  { %v632_v3 = vmax.f32 %v558_v61, 0.0  ;;  %v872_v61 = vld [vmem:[#allocation11 + $0x568] sm:$0xff] }
 0x24f   :  { %v9091_v6 = vpack.c.bf16 %v872_v61, %v868_v60  ;;  %v903_v60 = vld [vmem:[#allocation11 + $0x660] sm:$0xff] }
 0x250   :  { %1019 = vmatprep.mubr.f32.mxu1 %v632_v3  ;;  %1161 = vmatprep.mubr.f32.mxu0 %v632_v3  ;;  %v12662_v18 = vpop.f32.mrb[2].mxu0  ;;  %v9217_v3 = vpack.c.bf16 %v865_v59, %v861_v58  ;;  %v899_v59 = vld [vmem:[#allocation11 + $0x640] sm:$0xff] }
 0x251   :  { %1020 = vmatmul.mubr.f32.vlgmr.msra.gmra.mrb[2].mxu1 %v631_v9  ;;  %1162 = vmatmul.mubr.f32.vlgmr.msra.gmra.mrb[4].mxu0 %v631_v9  ;;  %v628_v19 = vpop.f32.mrb[3].mxu0  ;;  %v873_v9 = vld [vmem:[#allocation11 + $0x570] sm:$0xff] }
 0x252   :  { %9074 = vmatpush1.bf16.msra.mxu1 %v9073_v4  ;;  %9202 = vmatpush1.bf16.msra.mxu0 %v9201_v5  ;;  %v629_v24 = vadd.f32 %v628_v19, %v480_v8  ;;  %v867_v4 = vld [vmem:[#allocation11 + $0x540] sm:$0xff]  ;;  %v869_v8 = vld [vmem:[#allocation11 + $0x550] sm:$0xff] }
 0x253   :  { %9076 = vmatprep.subr.bf16.mxu1 %v9075_v10  ;;  %9204 = vmatprep.subr.bf16.mxu0 %v9203_v11  ;;  %v871_v5 = vld [vmem:[#allocation11 + $0x560] sm:$0xff]  ;;  %v876_v10 = vld [vmem:[#allocation11 + $0x588] sm:$0xff]  ;;  %v9221_v15 = vpack.c.bf16 %v873_v9, %v869_v8 }
 0x254   :  { %v634_v33 = vmax.f32 %v629_v24, 0.0  ;;  %v880_v11 = vld [vmem:[#allocation11 + $0x5a8] sm:$0xff]  ;;  %v9093_v14 = vpack.c.bf16 %v871_v5, %v867_v4  ;;  %v910_v5 = vld [vmem:[#allocation11 + $0x698] sm:$0xff]  ;;  %v907_v9 = vld [vmem:[#allocation11 + $0x680] sm:$0xff] }
 0x255   :  { %v9095_v19 = vpack.c.bf16 %v880_v11, %v876_v10  ;;  %v888_v24 = vld [vmem:[#allocation11 + $0x5e8] sm:$0xff]  ;;  %v911_v10 = vld [vmem:[#allocation11 + $0x6a0] sm:$0xff] }
 0x256   :  { %9078 = vmatpush1.bf16.msra.mxu1 %v9077_v20  ;;  %9206 = vmatpush1.bf16.msra.mxu0 %v9205_v21  ;;  %v9223_v20 = vpack.c.bf16 %v882_v13, %v878_v12  ;;  %v877_v21 = vld [vmem:[#allocation11 + $0x590] sm:$0xff]  ;;  %v9099_v31 = vpack.c.bf16 %v888_v24, %v884_v23  ;;  %v912_v4 = vld [vmem:[#allocation11 + $0x6a8] sm:$0xff]  ;;  %v919_v23 = vld [vmem:[#allocation11 + $0x6e0] sm:$0xff] }
 0x257   :  { %9080 = vmatprep.subr.bf16.mxu1 %v9079_v25  ;;  %9208 = vmatprep.subr.bf16.mxu0 %v9207_v26  ;;  %v886_v25 = vld [vmem:[#allocation11 + $0x5d8] sm:$0xff]  ;;  %v9225_v28 = vpack.c.bf16 %v881_v22, %v877_v21  ;;  %v909_v13 = vld [vmem:[#allocation11 + $0x690] sm:$0xff]  ;;  %v915_v22 = vld [vmem:[#allocation11 + $0x6c0] sm:$0xff] }
 0x258   :  { %1090 = vmatprep.mubr.f32.mxu1 %v634_v33  ;;  %1232 = vmatprep.mubr.f32.mxu0 %v634_v33  ;;  %v890_v26 = vld [vmem:[#allocation11 + $0x5f8] sm:$0xff]  ;;  %v885_v33 = vld [vmem:[#allocation11 + $0x5d0] sm:$0xff] }
 0x259   :  { %v9227_v32 = vpack.c.bf16 %v890_v26, %v886_v25  ;;  %v917_v26 = vld [vmem:[#allocation11 + $0x6d0] sm:$0xff] }
 0x25a   :  { %9082 = vmatpush1.bf16.msra.mxu1 %v9081_v34  ;;  %9210 = vmatpush1.bf16.msra.mxu0 %v9209_v35  ;;  %v889_v34 = vld [vmem:[#allocation11 + $0x5f0] sm:$0xff]  ;;  %v892_v35 = vld [vmem:[#allocation11 + $0x608] sm:$0xff] }
 0x25b   :  { %9084 = vmatprep.subr.bf16.mxu1 %v9083_v38  ;;  %9212 = vmatprep.subr.bf16.mxu0 %v9211_v39  ;;  %v898_v38 = vld [vmem:[#allocation11 + $0x638] sm:$0xff]  ;;  %v9101_v39 = vpack.c.bf16 %v887_v30, %v883_v29  ;;  %v9229_v40 = vpack.c.bf16 %v889_v34, %v885_v33  ;;  %v9103_v43 = vpack.c.bf16 %v896_v36, %v892_v35  ;;  %v928_v29 = vld [vmem:[#allocation11 + $0x728] sm:$0xff]  ;;  %v923_v34 = vld [vmem:[#allocation11 + $0x700] sm:$0xff] }
 0x25c   :  { %v9231_v48 = vpack.c.bf16 %v898_v38, %v894_v37  ;;  %v926_v30 = vld [vmem:[#allocation11 + $0x718] sm:$0xff]  ;;  %v927_v35 = vld [vmem:[#allocation11 + $0x720] sm:$0xff]  ;;  %v925_v38 = vld [vmem:[#allocation11 + $0x710] sm:$0xff] }
 0x25e   :  { %9086 = vmatpush1.bf16.msra.mxu1 %v9085_v51  ;;  %9214 = vmatpush1.bf16.msra.mxu0 %v9213_v52  ;;  %v897_v51 = vld [vmem:[#allocation11 + $0x630] sm:$0xff]  ;;  %v900_v52 = vld [vmem:[#allocation11 + $0x648] sm:$0xff] }
 0x25f   :  { %9088 = vmatprep.subr.bf16.mxu1 %v9087_v56  ;;  %9216 = vmatprep.subr.bf16.mxu0 %v9215_v57  ;;  %v906_v56 = vld [vmem:[#allocation11 + $0x678] sm:$0xff]  ;;  %v9105_v57 = vpack.c.bf16 %v895_v42, %v891_v41  ;;  %v9233_v58 = vpack.c.bf16 %v897_v51, %v893_v49  ;;  %v9107_v61 = vpack.c.bf16 %v904_v53, %v900_v52  ;;  %v936_v41 = vld [vmem:[#allocation11 + $0x768] sm:$0xff]  ;;  %v931_v51 = vld [vmem:[#allocation11 + $0x740] sm:$0xff] }
 0x260   :  { %v9235_v62 = vpack.c.bf16 %v906_v56, %v902_v54  ;;  %v934_v42 = vld [vmem:[#allocation11 + $0x758] sm:$0xff]  ;;  %v935_v52 = vld [vmem:[#allocation11 + $0x760] sm:$0xff]  ;;  %v933_v56 = vld [vmem:[#allocation11 + $0x750] sm:$0xff] }
 0x262   :  { %9090 = vmatpush1.bf16.msra.mxu1 %v9089_v2  ;;  %9218 = vmatpush1.bf16.msra.mxu0 %v9217_v3  ;;  %v905_v2 = vld [vmem:[#allocation11 + $0x670] sm:$0xff]  ;;  %v908_v3 = vld [vmem:[#allocation11 + $0x688] sm:$0xff] }
 0x263   :  { %9092 = vmatprep.subr.bf16.mxu1 %v9091_v6  ;;  %9220 = vmatprep.subr.bf16.mxu0 %v9219_v7  ;;  %v914_v6 = vld [vmem:[#allocation11 + $0x6b8] sm:$0xff]  ;;  %v9109_v7 = vpack.c.bf16 %v903_v60, %v899_v59  ;;  %v9237_v8 = vpack.c.bf16 %v905_v2, %v901_v63  ;;  %v9111_v11 = vpack.c.bf16 %v912_v4, %v908_v3  ;;  %v944_v59 = vld [vmem:[#allocation11 + $0x7a8] sm:$0xff]  ;;  %v939_v3 = vld [vmem:[#allocation11 + $0x780] sm:$0xff] }
 0x264   :  { %v9239_v12 = vpack.c.bf16 %v914_v6, %v910_v5  ;;  %v942_v60 = vld [vmem:[#allocation11 + $0x798] sm:$0xff]  ;;  %v9125_v63 = vpack.c.bf16 %v935_v52, %v931_v51  ;;  %v943_v4 = vld [vmem:[#allocation11 + $0x7a0] sm:$0xff]  ;;  %v652_v51 = vld [vmem:[%s14805_s22 + $0x88] sm:$0xff] }
 0x265   :  { %v656_v52 = vld [vmem:[%s14805_s22 + $0xa8] sm:$0xff] }
 0x266   :  { %9094 = vmatpush1.bf16.msra.mxu1 %v9093_v14  ;;  %9222 = vmatpush1.bf16.msra.mxu0 %v9221_v15  ;;  %v913_v14 = vld [vmem:[#allocation11 + $0x6b0] sm:$0xff]  ;;  %v916_v15 = vld [vmem:[#allocation11 + $0x6c8] sm:$0xff] }
 0x267   :  { %9096 = vmatprep.subr.bf16.mxu1 %v9095_v19  ;;  %9224 = vmatprep.subr.bf16.mxu0 %v9223_v20  ;;  %v922_v19 = vld [vmem:[#allocation11 + $0x6f8] sm:$0xff]  ;;  %v9113_v20 = vpack.c.bf16 %v911_v10, %v907_v9  ;;  %v9241_v21 = vpack.c.bf16 %v913_v14, %v909_v13  ;;  %v9115_v24 = vpack.c.bf16 %v920_v16, %v916_v15  ;;  %v948_v9 = vld [vmem:[#allocation11 + $0x7c8] sm:$0xff]  ;;  %v947_v15 = vld [vmem:[#allocation11 + $0x7c0] sm:$0xff] }
 0x268   :  { %v9243_v25 = vpack.c.bf16 %v922_v19, %v918_v17  ;;  %v952_v10 = vld [vmem:[#allocation11 + $0x7e8] sm:$0xff]  ;;  %v9129_v13 = vpack.c.bf16 %v943_v4, %v939_v3  ;;  %v951_v16 = vld [vmem:[#allocation11 + $0x7e0] sm:$0xff] }
 0x269   :  { %v9131_v17 = vpack.c.bf16 %v952_v10, %v948_v9  ;;  %v660_v3 = vld [vmem:[%s14805_s22 + $0xc8] sm:$0xff]  ;;  %v659_v9 = vld [vmem:[%s14805_s22 + $0xc0] sm:$0xff] }
 0x26a   :  { %9098 = vmatpush1.bf16.msra.mxu1 %v9097_v27  ;;  %9226 = vmatpush1.bf16.msra.mxu0 %v9225_v28  ;;  %v921_v27 = vld [vmem:[#allocation11 + $0x6f0] sm:$0xff]  ;;  %v924_v28 = vld [vmem:[#allocation11 + $0x708] sm:$0xff] }
 0x26b   :  { %9100 = vmatprep.subr.bf16.mxu1 %v9099_v31  ;;  %9228 = vmatprep.subr.bf16.mxu0 %v9227_v32  ;;  %v930_v31 = vld [vmem:[#allocation11 + $0x738] sm:$0xff]  ;;  %v9117_v32 = vpack.c.bf16 %v919_v23, %v915_v22  ;;  %v9245_v33 = vpack.c.bf16 %v921_v27, %v917_v26  ;;  %v9119_v36 = vpack.c.bf16 %v928_v29, %v924_v28  ;;  %v636_v22 = vld [vmem:[%s14805_s22 + $0x8] sm:$0xff]  ;;  %v635_v28 = vld [vmem:[%s14805_s22] sm:$0xff] }
 0x26c   :  { %v9247_v37 = vpack.c.bf16 %v930_v31, %v926_v30  ;;  %v640_v23 = vld [vmem:[%s14805_s22 + $0x28] sm:$0xff]  ;;  %v9133_v26 = vpack.c.bf16 %v951_v16, %v947_v15  ;;  %v639_v29 = vld [vmem:[%s14805_s22 + $0x20] sm:$0xff]  ;;  %v670_v16 = vld [vmem:[%s14805_s22 + $0x118] sm:$0xff] }
 0x26d   :  { %v9263_v30 = vpack.c.bf16 %v640_v23, %v636_v22  ;;  %v664_v4 = vld [vmem:[%s14805_s22 + $0xe8] sm:$0xff]  ;;  %v663_v10 = vld [vmem:[%s14805_s22 + $0xe0] sm:$0xff] }
 0x26e   :  { %9102 = vmatpush1.bf16.msra.mxu1 %v9101_v39  ;;  %9230 = vmatpush1.bf16.msra.mxu0 %v9229_v40  ;;  %v929_v39 = vld [vmem:[#allocation11 + $0x730] sm:$0xff]  ;;  %v932_v40 = vld [vmem:[#allocation11 + $0x748] sm:$0xff] }
 0x26f   :  { %9104 = vmatprep.subr.bf16.mxu1 %v9103_v43  ;;  %9232 = vmatprep.subr.bf16.mxu0 %v9231_v48  ;;  %v938_v43 = vld [vmem:[#allocation11 + $0x778] sm:$0xff]  ;;  %v9121_v48 = vpack.c.bf16 %v927_v35, %v923_v34  ;;  %v9249_v49 = vpack.c.bf16 %v929_v39, %v925_v38  ;;  %v9123_v53 = vpack.c.bf16 %v936_v41, %v932_v40  ;;  %v644_v34 = vld [vmem:[%s14805_s22 + $0x48] sm:$0xff]  ;;  %v643_v40 = vld [vmem:[%s14805_s22 + $0x40] sm:$0xff] }
 0x270   :  { %v9251_v54 = vpack.c.bf16 %v938_v43, %v934_v42  ;;  %v648_v35 = vld [vmem:[%s14805_s22 + $0x68] sm:$0xff]  ;;  %v9265_v38 = vpack.c.bf16 %v639_v29, %v635_v28  ;;  %v647_v41 = vld [vmem:[%s14805_s22 + $0x60] sm:$0xff]  ;;  %v678_v28 = vld [vmem:[%s14805_s22 + $0x158] sm:$0xff] }
 0x271   :  { %v9267_v42 = vpack.c.bf16 %v648_v35, %v644_v34  ;;  %v672_v15 = vld [vmem:[%s14805_s22 + $0x128] sm:$0xff]  ;;  %v671_v22 = vld [vmem:[%s14805_s22 + $0x120] sm:$0xff]  ;;  %v682_v29 = vld [vmem:[%s14805_s22 + $0x178] sm:$0xff] }
 0x272   :  { %9106 = vmatpush1.bf16.msra.mxu1 %v9105_v57  ;;  %9234 = vmatpush1.bf16.msra.mxu0 %v9233_v58  ;;  %v937_v57 = vld [vmem:[#allocation11 + $0x770] sm:$0xff]  ;;  %v940_v58 = vld [vmem:[#allocation11 + $0x788] sm:$0xff]  ;;  %v9315_v35 = vpack.c.bf16 %v682_v29, %v678_v28 }
 0x273   :  { %9108 = vmatprep.subr.bf16.mxu1 %v9107_v61  ;;  %9236 = vmatprep.subr.bf16.mxu0 %v9235_v62  ;;  %v946_v61 = vld [vmem:[#allocation11 + $0x7b8] sm:$0xff]  ;;  %v12665_v62 = vsub.s32 2, %v12641_v44  ;;  %v9253_v2 = vpack.c.bf16 %v937_v57, %v933_v56  ;;  %v9127_v5 = vpack.c.bf16 %v944_v59, %v940_v58  ;;  %v9269_v56 = vpack.c.bf16 %v647_v41, %v643_v40  ;;  %v651_v58 = vld [vmem:[%s14805_s22 + $0x80] sm:$0xff] }
 0x274   :  { %v9255_v6 = vpack.c.bf16 %v946_v61, %v942_v60  ;;  %v655_v59 = vld [vmem:[%s14805_s22 + $0xa0] sm:$0xff]  ;;  %v9271_v60 = vpack.c.bf16 %v656_v52, %v652_v51  ;;  %v690_v40 = vld [vmem:[%s14805_s22 + $0x1b8] sm:$0xff]  ;;  %v685_v52 = vld [vmem:[%s14805_s22 + $0x190] sm:$0xff] }
 0x275   :  { %14804 = vst [vmem:[#allocation60_spill] sm:$0xff] %v12665_v62  ;;  %v476_v44 = vrot.slane %v12646_v46, %v12665_v62  ;;  %v638_v46 = vld [vmem:[%s14805_s22 + $0x18] sm:$0xff]  ;;  %v1417_v29 = vld [vmem:[%s14806_s23 + $0x50] sm:$0xff] }
 0x276   :  { %9110 = vmatpush1.bf16.msra.mxu1 %v9109_v7  ;;  %9238 = vmatpush1.bf16.msra.mxu0 %v9237_v8  ;;  %v941_v7 = vld [vmem:[#allocation11 + $0x790] sm:$0xff] }
 0x277   :  { %9112 = vmatprep.subr.bf16.mxu1 %v9111_v11  ;;  %9240 = vmatprep.subr.bf16.mxu0 %v9239_v12  ;;  %v945_v8 = vld [vmem:[#allocation11 + $0x7b0] sm:$0xff]  ;;  %v950_v11 = vld [vmem:[#allocation11 + $0x7d8] sm:$0xff] }
 0x278   :  { %v954_v12 = vld [vmem:[#allocation11 + $0x7f8] sm:$0xff]  ;;  %v9257_v14 = vpack.c.bf16 %v945_v8, %v941_v7  ;;  %v9273_v7 = vpack.c.bf16 %v655_v59, %v651_v58 }
 0x279   :  { %v9259_v19 = vpack.c.bf16 %v954_v12, %v950_v11  ;;  %v9275_v11 = vpack.c.bf16 %v664_v4, %v660_v3  ;;  %v698_v58 = vld [vmem:[%s14805_s22 + $0x1f8] sm:$0xff] }
 0x27a   :  { %9114 = vmatpush1.bf16.msra.mxu1 %v9113_v20  ;;  %9242 = vmatpush1.bf16.msra.mxu0 %v9241_v21  ;;  %v949_v20 = vld [vmem:[#allocation11 + $0x7d0] sm:$0xff]  ;;  %v8274_v59 = vld [vmem:[#allocation7] ss:$0 sm:$0xff] }
 0x27b   :  { %9116 = vmatprep.subr.bf16.mxu1 %v9115_v24  ;;  %9244 = vmatprep.subr.bf16.mxu0 %v9243_v25  ;;  %v953_v21 = vld [vmem:[#allocation11 + $0x7f0] sm:$0xff]  ;;  %v642_v24 = vld [vmem:[%s14805_s22 + $0x38] sm:$0xff]  ;;  %v627_v25 = vadd.f32 %v12662_v18, %v476_v44 }
 0x27c   :  { %v9261_v27 = vpack.c.bf16 %v953_v21, %v949_v20  ;;  %v9295_v31 = vpack.c.bf16 %v642_v24, %v638_v46  ;;  %v646_v18 = vld [vmem:[%s14805_s22 + $0x58] sm:$0xff]  ;;  %v661_v44 = vld [vmem:[%s14805_s22 + $0xd0] sm:$0xff]  ;;  %v667_v21 = vld [vmem:[%s14805_s22 + $0x100] sm:$0xff] }
 0x27d   :  { %v669_v24 = vld [vmem:[%s14805_s22 + $0x110] sm:$0xff] }
 0x27e   :  { %9118 = vmatpush1.bf16.msra.mxu1 %v9117_v32  ;;  %9246 = vmatpush1.bf16.msra.mxu0 %v9245_v33  ;;  %v637_v32 = vld [vmem:[%s14805_s22 + $0x10] sm:$0xff] }
 0x27f   :  { %9120 = vmatprep.subr.bf16.mxu1 %v9119_v36  ;;  %9248 = vmatprep.subr.bf16.mxu0 %v9247_v37  ;;  %v641_v33 = vld [vmem:[%s14805_s22 + $0x30] sm:$0xff]  ;;  %v650_v36 = vld [vmem:[%s14805_s22 + $0x78] sm:$0xff]  ;;  %v633_v37 = vmax.f32 %v627_v25, 0.0 }
 0x280   :  { %v9297_v39 = vpack.c.bf16 %v641_v33, %v637_v32  ;;  %v9299_v43 = vpack.c.bf16 %v650_v36, %v646_v18  ;;  %v673_v25 = vld [vmem:[%s14805_s22 + $0x130] sm:$0xff]  ;;  %v675_v32 = vld [vmem:[%s14805_s22 + $0x140] sm:$0xff] }
 0x281   :  { %v679_v33 = vld [vmem:[%s14805_s22 + $0x160] sm:$0xff]  ;;  %v677_v18 = vld [vmem:[%s14805_s22 + $0x150] sm:$0xff] }
 0x282   :  { %9122 = vmatpush1.bf16.msra.mxu1 %v9121_v48  ;;  %9250 = vmatpush1.bf16.msra.mxu0 %v9249_v49  ;;  %v645_v48 = vld [vmem:[%s14805_s22 + $0x50] sm:$0xff]  ;;  %v9285_v41 = vpack.c.bf16 %v679_v33, %v675_v32  ;;  %v1428_v32 = vld [vmem:[%s14806_s23 + $0xa8] sm:$0xff]  ;;  %v1426_v33 = vld [vmem:[%s14806_s23 + $0x98] sm:$0xff] }
 0x283   :  { %9124 = vmatprep.subr.bf16.mxu1 %v9123_v53  ;;  %9252 = vmatprep.subr.bf16.mxu0 %v9251_v54  ;;  %v649_v49 = vld [vmem:[%s14805_s22 + $0x70] sm:$0xff]  ;;  %v654_v53 = vld [vmem:[%s14805_s22 + $0x98] sm:$0xff] }
 0x284   :  { %v658_v54 = vld [vmem:[%s14805_s22 + $0xb8] sm:$0xff]  ;;  %v9301_v57 = vpack.c.bf16 %v649_v49, %v645_v48  ;;  %v681_v36 = vld [vmem:[%s14805_s22 + $0x170] sm:$0xff]  ;;  %v687_v48 = vld [vmem:[%s14805_s22 + $0x1a0] sm:$0xff] }
 0x285   :  { %v9303_v61 = vpack.c.bf16 %v658_v54, %v654_v53  ;;  %v689_v53 = vld [vmem:[%s14805_s22 + $0x1b0] sm:$0xff]  ;;  %v692_v54 = vld [vmem:[%s14805_s22 + $0x1c8] sm:$0xff] }
 0x286   :  { %9126 = vmatpush1.bf16.msra.mxu1 %v9125_v63  ;;  %9254 = vmatpush1.bf16.msra.mxu0 %v9253_v2  ;;  %v653_v63 = vld [vmem:[%s14805_s22 + $0x90] sm:$0xff] }
 0x287   :  { %9128 = vmatprep.subr.bf16.mxu1 %v9127_v5  ;;  %9256 = vmatprep.subr.bf16.mxu0 %v9255_v6  ;;  %v657_v2 = vld [vmem:[%s14805_s22 + $0xb0] sm:$0xff]  ;;  %v662_v5 = vld [vmem:[%s14805_s22 + $0xd8] sm:$0xff] }
 0x288   :  { %v666_v6 = vld [vmem:[%s14805_s22 + $0xf8] sm:$0xff]  ;;  %v9305_v8 = vpack.c.bf16 %v657_v2, %v653_v63  ;;  %v691_v63 = vld [vmem:[%s14805_s22 + $0x1c0] sm:$0xff] }
 0x289   :  { %v9307_v12 = vpack.c.bf16 %v666_v6, %v662_v5  ;;  %v695_v2 = vld [vmem:[%s14805_s22 + $0x1e0] sm:$0xff]  ;;  %v693_v5 = vld [vmem:[%s14805_s22 + $0x1d0] sm:$0xff] }
 0x28a   :  { %9130 = vmatpush1.bf16.msra.mxu1 %v9129_v13  ;;  %9258 = vmatpush1.bf16.msra.mxu0 %v9257_v14  ;;  %v665_v13 = vld [vmem:[%s14805_s22 + $0xf0] sm:$0xff]  ;;  %v668_v14 = vld [vmem:[%s14805_s22 + $0x108] sm:$0xff] }
 0x28b   :  { %9132 = vmatprep.subr.bf16.mxu1 %v9131_v17  ;;  %9260 = vmatprep.subr.bf16.mxu0 %v9259_v19  ;;  %v674_v17 = vld [vmem:[%s14805_s22 + $0x138] sm:$0xff]  ;;  %v9277_v19 = vpack.c.bf16 %v663_v10, %v659_v9  ;;  %v9309_v20 = vpack.c.bf16 %v665_v13, %v661_v44  ;;  %v9279_v23 = vpack.c.bf16 %v672_v15, %v668_v14  ;;  %v697_v6 = vld [vmem:[%s14805_s22 + $0x1f0] sm:$0xff]  ;;  %v1407_v44 = vld [vmem:[%s14806_s23] sm:$0xff] }
 0x28c   :  { %v9311_v46 = vpack.c.bf16 %v674_v17, %v670_v16  ;;  %v1410_v9 = vld [vmem:[%s14806_s23 + $0x18] sm:$0xff]  ;;  %v1411_v13 = vld [vmem:[%s14806_s23 + $0x20] sm:$0xff]  ;;  %v442_v14 = vadd.f32 %v8274_v59, %v12655_v50  ;;  %v1409_v17 = vld [vmem:[%s14806_s23 + $0x10] sm:$0xff] }
 0x28d   :  { %v1414_v10 = vld [vmem:[%s14806_s23 + $0x38] sm:$0xff]  ;;  %v12753_v50 = vpack.c.bf16 %v1411_v13, %v1407_v44  ;;  %v1437_v59 = vld [vmem:[%s14806_s23 + $0xf0] sm:$0xff] }
 0x28e   :  { %9134 = vmatpush1.bf16.msra.mxu1 %v9133_v26  ;;  %9262 = vmatpush1.bf16.msra.mxu0 %v9261_v27  ;;  %v676_v26 = vld [vmem:[%s14805_s22 + $0x148] sm:$0xff]  ;;  %v12745_v16 = vpack.c.bf16 %v1414_v10, %v1410_v9  ;;  %v1441_v9 = vld [vmem:[%s14806_s23 + $0x110] sm:$0xff]  ;;  %v1450_v44 = vld [vmem:[%s14806_s23 + $0x158] sm:$0xff] }
 0x28f   :  { %9264 = vmatprep.subr.bf16.mxu1 %v9263_v30  ;;  %9296 = vmatprep.subr.bf16.mxu0 %v9295_v31  ;;  %v680_v27 = vld [vmem:[%s14805_s22 + $0x168] sm:$0xff]  ;;  %v9281_v30 = vpack.c.bf16 %v671_v22, %v667_v21  ;;  %v9313_v31 = vpack.c.bf16 %v673_v25, %v669_v24  ;;  %v1418_v22 = vld [vmem:[%s14806_s23 + $0x58] sm:$0xff]  ;;  %v1415_v24 = vld [vmem:[%s14806_s23 + $0x40] sm:$0xff] }
 0x290   :  { %v9283_v34 = vpack.c.bf16 %v680_v27, %v676_v26  ;;  %v1420_v21 = vld [vmem:[%s14806_s23 + $0x68] sm:$0xff]  ;;  %v1419_v25 = vld [vmem:[%s14806_s23 + $0x60] sm:$0xff]  ;;  %v445_v26 = vmax.f32 %v442_v14, 0.0  ;;  %v1445_v10 = vld [vmem:[%s14806_s23 + $0x130] sm:$0xff] }
 0x291   :  { %1091 = vmatmul.mubr.f32.vlgmr.msra.gmra.mrb[2].mxu1 %v633_v37  ;;  %1233 = vmatmul.mubr.f32.vlgmr.msra.gmra.mrb[4].mxu0 %v633_v37  ;;  %v684_v37 = vld [vmem:[%s14805_s22 + $0x188] sm:$0xff]  ;;  %v1454_v13 = vld [vmem:[%s14806_s23 + $0x178] sm:$0xff] }
 0x292   :  { %9266 = vmatpush1.bf16.msra.mxu1 %v9265_v38  ;;  %9298 = vmatpush1.bf16.msra.mxu0 %v9297_v39  ;;  %v688_v38 = vld [vmem:[%s14805_s22 + $0x1a8] sm:$0xff]  ;;  %v686_v39 = vld [vmem:[%s14805_s22 + $0x198] sm:$0xff] }
 0x293   :  { %9268 = vmatprep.subr.bf16.mxu1 %v9267_v42  ;;  %9300 = vmatprep.subr.bf16.mxu0 %v9299_v43  ;;  %v9317_v42 = vpack.c.bf16 %v681_v36, %v677_v18  ;;  %v683_v43 = vld [vmem:[%s14805_s22 + $0x180] sm:$0xff]  ;;  %v9287_v49 = vpack.c.bf16 %v688_v38, %v684_v37  ;;  %v9319_v51 = vpack.c.bf16 %v690_v40, %v686_v39  ;;  %v1425_v40 = vld [vmem:[%s14806_s23 + $0x90] sm:$0xff] }
 0x294   :  { %1303 = vmatprep.mubr.f32.mxu1 %v14598_v0  ;;  %1374 = vmatprep.mubr.f32.mxu0 %v14598_v0  ;;  %v1423_v36 = vld [vmem:[%s14806_s23 + $0x80] sm:$0xff] }
 0x295   :  { %v1427_v37 = vld [vmem:[%s14806_s23 + $0xa0] sm:$0xff] }
 0x296   :  { %9270 = vmatpush1.bf16.msra.mxu1 %v9269_v56  ;;  %9302 = vmatpush1.bf16.msra.mxu0 %v9301_v57  ;;  %v696_v56 = vld [vmem:[%s14805_s22 + $0x1e8] sm:$0xff]  ;;  %v694_v57 = vld [vmem:[%s14805_s22 + $0x1d8] sm:$0xff] }
 0x297   :  { %9272 = vmatprep.subr.bf16.mxu1 %v9271_v60  ;;  %9304 = vmatprep.subr.bf16.mxu0 %v9303_v61  ;;  %v9289_v60 = vpack.c.bf16 %v687_v48, %v683_v43  ;;  %v9321_v61 = vpack.c.bf16 %v689_v53, %v685_v52  ;;  %v9291_v3 = vpack.c.bf16 %v696_v56, %v692_v54  ;;  %v1436_v43 = vld [vmem:[%s14806_s23 + $0xe8] sm:$0xff]  ;;  %v1434_v48 = vld [vmem:[%s14806_s23 + $0xd8] sm:$0xff]  ;;  %v1431_v53 = vld [vmem:[%s14806_s23 + $0xc0] sm:$0xff] }
 0x298   :  { %v9323_v4 = vpack.c.bf16 %v698_v58, %v694_v57  ;;  %v1435_v54 = vld [vmem:[%s14806_s23 + $0xe0] sm:$0xff]  ;;  %v1433_v58 = vld [vmem:[%s14806_s23 + $0xd0] sm:$0xff] }
 0x29a   :  { %9274 = vmatpush1.bf16.msra.mxu1 %v9273_v7  ;;  %9306 = vmatpush1.bf16.msra.mxu0 %v9305_v8  ;;  %v1408_v7 = vld [vmem:[%s14806_s23 + $0x8] sm:$0xff] }
 0x29b   :  { %9276 = vmatprep.subr.bf16.mxu1 %v9275_v11  ;;  %9308 = vmatprep.subr.bf16.mxu0 %v9307_v12  ;;  %v1412_v8 = vld [vmem:[%s14806_s23 + $0x28] sm:$0xff]  ;;  %v9293_v11 = vpack.c.bf16 %v695_v2, %v691_v63  ;;  %v9325_v12 = vpack.c.bf16 %v697_v6, %v693_v5  ;;  %v1442_v63 = vld [vmem:[%s14806_s23 + $0x118] sm:$0xff]  ;;  %v1439_v5 = vld [vmem:[%s14806_s23 + $0x100] sm:$0xff] }
 0x29c   :  { %v12743_v15 = vpack.c.bf16 %v1412_v8, %v1408_v7  ;;  %v1446_v2 = vld [vmem:[%s14806_s23 + $0x138] sm:$0xff]  ;;  %v1443_v6 = vld [vmem:[%s14806_s23 + $0x120] sm:$0xff] }
 0x29d   :  { %v12825_v8 = vpack.c.bf16 %v1446_v2, %v1442_v63  ;;  %v12835_v14 = vpack.c.bf16 %v1443_v6, %v1439_v5  ;;  %v1465_v63 = vld [vmem:[%s14806_s23 + $0x1d0] sm:$0xff] }
 0x29e   :  { %9278 = vmatpush1.bf16.msra.mxu1 %v9277_v19  ;;  %9310 = vmatpush1.bf16.msra.mxu0 %v9309_v20  ;;  %v1413_v19 = vld [vmem:[%s14806_s23 + $0x30] sm:$0xff]  ;;  %v1416_v20 = vld [vmem:[%s14806_s23 + $0x48] sm:$0xff] }
 0x29f   :  { %9280 = vmatprep.subr.bf16.mxu1 %v9279_v23  ;;  %9312 = vmatprep.subr.bf16.mxu0 %v9311_v46  ;;  %v1422_v23 = vld [vmem:[%s14806_s23 + $0x78] sm:$0xff]  ;;  %v12755_v46 = vpack.c.bf16 %v1413_v19, %v1409_v17  ;;  %v12761_v27 = vpack.c.bf16 %v1420_v21, %v1416_v20  ;;  %14817 = vst [vmem:[#allocation71_spill] sm:$0xff] %v12825_v8  ;;  %14818 = vst [vmem:[#allocation72_spill] sm:$0xff] %v12835_v14  ;;  %v1447_v19 = vld [vmem:[%s14806_s23 + $0x140] sm:$0xff] }
 0x2a0   :  { %v12763_v28 = vpack.c.bf16 %v1422_v23, %v1418_v22  ;;  %v12837_v17 = vpack.c.bf16 %v1445_v10, %v1441_v9  ;;  %v1451_v20 = vld [vmem:[%s14806_s23 + $0x160] sm:$0xff]  ;;  %v12845_v22 = vpack.c.bf16 %v1454_v13, %v1450_v44  ;;  %v1449_v23 = vld [vmem:[%s14806_s23 + $0x150] sm:$0xff] }
 0x2a1   :  { %v1469_v2 = vld [vmem:[%s14806_s23 + $0x1f0] sm:$0xff]  ;;  %v1648_v44 = vld [vmem:[#allocation14 + $0x38] sm:$0xff]  ;;  %v1641_v13 = vld [vmem:[#allocation14] sm:$0xff] }
 0x2a2   :  { %9282 = vmatpush1.bf16.msra.mxu1 %v9281_v30  ;;  %9314 = vmatpush1.bf16.msra.mxu0 %v9313_v31  ;;  %v1421_v30 = vld [vmem:[%s14806_s23 + $0x70] sm:$0xff]  ;;  %v1424_v31 = vld [vmem:[%s14806_s23 + $0x88] sm:$0xff]  ;;  %14819 = vst [vmem:[#allocation73_spill] sm:$0xff] %v12837_v17  ;;  %14821 = vst [vmem:[#allocation75_spill] sm:$0xff] %v12845_v22  ;;  %v12893_v6 = vpack.c.bf16 %v1469_v2, %v1465_v63 }
 0x2a3   :  { %9284 = vmatprep.subr.bf16.mxu1 %v9283_v34  ;;  %9316 = vmatprep.subr.bf16.mxu0 %v9315_v35  ;;  %v1430_v34 = vld [vmem:[%s14806_s23 + $0xb8] sm:$0xff]  ;;  %v12773_v35 = vpack.c.bf16 %v1419_v25, %v1415_v24  ;;  %v12775_v18 = vpack.c.bf16 %v1421_v30, %v1417_v29  ;;  %v12781_v38 = vpack.c.bf16 %v1428_v32, %v1424_v31  ;;  %v1453_v24 = vld [vmem:[%s14806_s23 + $0x170] sm:$0xff]  ;;  %v1456_v25 = vld [vmem:[%s14806_s23 + $0x188] sm:$0xff] }
 0x2a4   :  { %v12783_v39 = vpack.c.bf16 %v1430_v34, %v1426_v33  ;;  %v1458_v29 = vld [vmem:[%s14806_s23 + $0x198] sm:$0xff]  ;;  %v12855_v31 = vpack.c.bf16 %v1451_v20, %v1447_v19  ;;  %v12857_v32 = vpack.c.bf16 %v1453_v24, %v1449_v23  ;;  %v1455_v33 = vld [vmem:[%s14806_s23 + $0x180] sm:$0xff]  ;;  %14831 = vst [vmem:[#allocation85_spill] sm:$0xff] %v12893_v6  ;;  %v1642_v9 = vld [vmem:[#allocation14 + $0x8] sm:$0xff] }
 0x2a5   :  { %14807 = vst [vmem:[#allocation61_spill] sm:$0xff] %v12775_v18  ;;  %14808 = vst [vmem:[#allocation62_spill] sm:$0xff] %v12781_v38  ;;  %v1462_v30 = vld [vmem:[%s14806_s23 + $0x1b8] sm:$0xff]  ;;  %v1459_v34 = vld [vmem:[%s14806_s23 + $0x1a0] sm:$0xff] }
 0x2a6   :  { %9286 = vmatpush1.bf16.msra.mxu1 %v9285_v41  ;;  %9318 = vmatpush1.bf16.msra.mxu0 %v9317_v42  ;;  %14809 = vst [vmem:[#allocation63_spill] sm:$0xff] %v12783_v39  ;;  %v1429_v41 = vld [vmem:[%s14806_s23 + $0xb0] sm:$0xff]  ;;  %v1432_v42 = vld [vmem:[%s14806_s23 + $0xc8] sm:$0xff]  ;;  %14822 = vst [vmem:[#allocation76_spill] sm:$0xff] %v12855_v31 }
 0x2a7   :  { %9288 = vmatprep.subr.bf16.mxu1 %v9287_v49  ;;  %9320 = vmatprep.subr.bf16.mxu0 %v9319_v51  ;;  %v1438_v49 = vld [vmem:[%s14806_s23 + $0xf8] sm:$0xff]  ;;  %v12795_v51 = vpack.c.bf16 %v1427_v37, %v1423_v36  ;;  %v12797_v52 = vpack.c.bf16 %v1429_v41, %v1425_v40  ;;  %v12803_v56 = vpack.c.bf16 %v1436_v43, %v1432_v42  ;;  %v1457_v40 = vld [vmem:[%s14806_s23 + $0x190] sm:$0xff]  ;;  %v1464_v42 = vld [vmem:[%s14806_s23 + $0x1c8] sm:$0xff] }
 0x2a8   :  { %v12805_v57 = vpack.c.bf16 %v1438_v49, %v1434_v48  ;;  %14823 = vst [vmem:[#allocation77_spill] sm:$0xff] %v12857_v32  ;;  %v12865_v37 = vpack.c.bf16 %v1462_v30, %v1458_v29  ;;  %v1461_v41 = vld [vmem:[%s14806_s23 + $0x1b0] sm:$0xff]  ;;  %v1468_v43 = vld [vmem:[%s14806_s23 + $0x1e8] sm:$0xff]  ;;  %v1466_v48 = vld [vmem:[%s14806_s23 + $0x1d8] sm:$0xff] }
 0x2a9   :  { %14810 = vst [vmem:[#allocation64_spill] sm:$0xff] %v12795_v51  ;;  %14811 = vst [vmem:[#allocation65_spill] sm:$0xff] %v12797_v52  ;;  %v1470_v49 = vld [vmem:[%s14806_s23 + $0x1f8] sm:$0xff]  ;;  %v1646_v10 = vld [vmem:[#allocation14 + $0x28] sm:$0xff] }
 0x2aa   :  { %9290 = vmatpush1.bf16.msra.mxu1 %v9289_v60  ;;  %9322 = vmatpush1.bf16.msra.mxu0 %v9321_v61  ;;  %14812 = vst [vmem:[#allocation66_spill] sm:$0xff] %v12803_v56  ;;  %14813 = vst [vmem:[#allocation67_spill] sm:$0xff] %v12805_v57  ;;  %v1440_v60 = vld [vmem:[%s14806_s23 + $0x108] sm:$0xff]  ;;  %v1643_v24 = vld [vmem:[#allocation14 + $0x10] sm:$0xff] }
 0x2ab   :  { %9292 = vmatprep.subr.bf16.mxu1 %v9291_v3  ;;  %9324 = vmatprep.subr.bf16.mxu0 %v9323_v4  ;;  %v1444_v61 = vld [vmem:[%s14806_s23 + $0x128] sm:$0xff]  ;;  %v12815_v3 = vpack.c.bf16 %v1435_v54, %v1431_v53  ;;  %v12817_v4 = vpack.c.bf16 %v1437_v59, %v1433_v58  ;;  %14825 = vst [vmem:[#allocation79_spill] sm:$0xff] %v12865_v37  ;;  %v1463_v58 = vld [vmem:[%s14806_s23 + $0x1c0] sm:$0xff] }
 0x2ac   :  { %v12823_v7 = vpack.c.bf16 %v1444_v61, %v1440_v60  ;;  %v12875_v53 = vpack.c.bf16 %v1459_v34, %v1455_v33  ;;  %v12877_v54 = vpack.c.bf16 %v1461_v41, %v1457_v40  ;;  %v12882_v59 = vpack.c.bf16 %v1468_v43, %v1464_v42  ;;  %v1467_v61 = vld [vmem:[%s14806_s23 + $0x1e0] sm:$0xff]  ;;  %v1650_v29 = vld [vmem:[#allocation14 + $0x48] sm:$0xff] }
 0x2ad   :  { %14814 = vst [vmem:[#allocation68_spill] sm:$0xff] %v12815_v3  ;;  %14815 = vst [vmem:[#allocation69_spill] sm:$0xff] %v12817_v4  ;;  %v12884_v60 = vpack.c.bf16 %v1470_v49, %v1466_v48  ;;  %v12891_v5 = vpack.c.bf16 %v1467_v61, %v1463_v58  ;;  %v1645_v19 = vld [vmem:[#allocation14 + $0x20] sm:$0xff]  ;;  %v1654_v30 = vld [vmem:[#allocation14 + $0x68] sm:$0xff] }
 0x2ae   :  { %9294 = vmatpush1.bf16.msra.mxu1 %v9293_v11  ;;  %9326 = vmatpush1.bf16.msra.mxu0 %v9325_v12  ;;  %14816 = vst [vmem:[#allocation70_spill] sm:$0xff] %v12823_v7  ;;  %v1448_v11 = vld [vmem:[%s14806_s23 + $0x148] sm:$0xff]  ;;  %14826 = vst [vmem:[#allocation80_spill] sm:$0xff] %v12875_v53  ;;  %v12907_v23 = vpack.c.bf16 %v1645_v19, %v1641_v13  ;;  %v1652_v33 = vld [vmem:[#allocation14 + $0x58] sm:$0xff]  ;;  %v12915_v34 = vpack.c.bf16 %v1654_v30, %v1650_v29 }
 0x2af   :  { %9328 = vmatprep.subr.bf16.mxu1 %v12743_v15  ;;  %9360 = vmatprep.subr.bf16.mxu0 %v12745_v16  ;;  %v1452_v12 = vld [vmem:[%s14806_s23 + $0x168] sm:$0xff]  ;;  %14827 = vst [vmem:[#allocation81_spill] sm:$0xff] %v12877_v54  ;;  %14828 = vst [vmem:[#allocation82_spill] sm:$0xff] %v12882_v59  ;;  %v1656_v40 = vld [vmem:[#allocation14 + $0x78] sm:$0xff] }
 0x2b0   :  { %v12843_v21 = vpack.c.bf16 %v1452_v12, %v1448_v11  ;;  %14829 = vst [vmem:[#allocation83_spill] sm:$0xff] %v12884_v60  ;;  %14830 = vst [vmem:[#allocation84_spill] sm:$0xff] %v12891_v5  ;;  %v1644_v11 = vld [vmem:[#allocation14 + $0x18] sm:$0xff]  ;;  %v12903_v12 = vpack.c.bf16 %v1646_v10, %v1642_v9  ;;  %v1649_v41 = vld [vmem:[#allocation14 + $0x40] sm:$0xff]  ;;  %v12917_v43 = vpack.c.bf16 %v1656_v40, %v1652_v33 }
 0x2b1   :  { %1304 = vmatmul.mubr.f32.vlgmr.msra.gmra.mrb[2].mxu1 %v445_v26  ;;  %1375 = vmatmul.mubr.f32.vlgmr.msra.gmra.mrb[4].mxu0 %v445_v26  ;;  %v1460_v26 = vld [vmem:[%s14806_s23 + $0x1a8] sm:$0xff]  ;;  %v12905_v20 = vpack.c.bf16 %v1648_v44, %v1644_v11  ;;  %14834 = vst [vmem:[#allocation88_spill] sm:$0xff] %v12907_v23  ;;  %14836 = vst [vmem:[#allocation90_spill] sm:$0xff] %v12915_v34  ;;  %v1651_v49 = vld [vmem:[#allocation14 + $0x50] sm:$0xff] }
 0x2b2   :  { %9330 = vmatpush1.bf16.msra.mxu1 %v12753_v50  ;;  %9362 = vmatpush1.bf16.msra.mxu0 %v12755_v46  ;;  %14820 = vst [vmem:[#allocation74_spill] sm:$0xff] %v12843_v21  ;;  %v12863_v36 = vpack.c.bf16 %v1460_v26, %v1456_v25  ;;  %14832 = vst [vmem:[#allocation86_spill] sm:$0xff] %v12903_v12  ;;  %v1647_v25 = vld [vmem:[#allocation14 + $0x30] sm:$0xff]  ;;  %v1653_v42 = vld [vmem:[#allocation14 + $0x60] sm:$0xff] }
 0x2b3   :  { %9332 = vmatprep.subr.bf16.mxu1 %v12761_v27  ;;  %9364 = vmatprep.subr.bf16.mxu0 %v12763_v28  ;;  %14833 = vst [vmem:[#allocation87_spill] sm:$0xff] %v12905_v20  ;;  %v12910_v26 = vpack.c.bf16 %v1647_v25, %v1643_v24  ;;  %14837 = vst [vmem:[#allocation91_spill] sm:$0xff] %v12917_v43  ;;  %v12919_v48 = vpack.c.bf16 %v1653_v42, %v1649_v41  ;;  %v1655_v58 = vld [vmem:[#allocation14 + $0x70] sm:$0xff]  ;;  %v1658_v63 = vld [vmem:[#allocation14 + $0x88] sm:$0xff] }
 0x2b4   :  { %1535 = vmatprep.mubr.f32.mxu1 %v14598_v0  ;;  %1606 = vmatprep.mubr.f32.mxu0 %v14598_v0  ;;  %14824 = vst [vmem:[#allocation78_spill] sm:$0xff] %v12863_v36  ;;  %v12922_v61 = vpack.c.bf16 %v1655_v58, %v1651_v49  ;;  %v1662_v2 = vld [vmem:[#allocation14 + $0xa8] sm:$0xff]  ;;  %v1660_v9 = vld [vmem:[#allocation14 + $0x98] sm:$0xff]  ;;  %v1657_v44 = vld [vmem:[#allocation14 + $0x80] sm:$0xff] }
 0x2b5   :  { %14835 = vst [vmem:[#allocation89_spill] sm:$0xff] %v12910_v26  ;;  %14838 = vst [vmem:[#allocation92_spill] sm:$0xff] %v12919_v48  ;;  %v12927_v10 = vpack.c.bf16 %v1662_v2, %v1658_v63  ;;  %v1664_v11 = vld [vmem:[#allocation14 + $0xb8] sm:$0xff]  ;;  %v1661_v13 = vld [vmem:[#allocation14 + $0xa0] sm:$0xff] }
 0x2b6   :  { %9334 = vmatpush1.bf16.msra.mxu1 %v12773_v35  ;;  %9366 = vmatpush1.bf16.msra.mxu0 %v12775_v18  ;;  %14839 = vst [vmem:[#allocation93_spill] sm:$0xff] %v12922_v61  ;;  %v12929_v19 = vpack.c.bf16 %v1664_v11, %v1660_v9  ;;  %v12931_v24 = vpack.c.bf16 %v1661_v13, %v1657_v44  ;;  %v1659_v25 = vld [vmem:[#allocation14 + $0x90] sm:$0xff]  ;;  %v1666_v33 = vld [vmem:[#allocation14 + $0xc8] sm:$0xff]  ;;  %v1668_v41 = vld [vmem:[#allocation14 + $0xd8] sm:$0xff] }
 0x2b7   :  { %9336 = vmatprep.subr.bf16.mxu1 %v12781_v38  ;;  %9368 = vmatprep.subr.bf16.mxu0 %v12783_v39  ;;  %14840 = vst [vmem:[#allocation94_spill] sm:$0xff] %v12927_v10  ;;  %v1663_v29 = vld [vmem:[#allocation14 + $0xb0] sm:$0xff]  ;;  %v1670_v40 = vld [vmem:[#allocation14 + $0xe8] sm:$0xff]  ;;  %v1672_v49 = vld [vmem:[#allocation14 + $0xf8] sm:$0xff] }
 0x2b8   :  { %14841 = vst [vmem:[#allocation95_spill] sm:$0xff] %v12929_v19  ;;  %14842 = vst [vmem:[#allocation96_spill] sm:$0xff] %v12931_v24  ;;  %v12934_v30 = vpack.c.bf16 %v1663_v29, %v1659_v25  ;;  %v12939_v42 = vpack.c.bf16 %v1670_v40, %v1666_v33  ;;  %v1665_v58 = vld [vmem:[#allocation14 + $0xc0] sm:$0xff]  ;;  %v12941_v2 = vpack.c.bf16 %v1672_v49, %v1668_v41  ;;  %v1667_v11 = vld [vmem:[#allocation14 + $0xd0] sm:$0xff] }
 0x2b9   :  { %v1669_v63 = vld [vmem:[#allocation14 + $0xe0] sm:$0xff]  ;;  %v1671_v44 = vld [vmem:[#allocation14 + $0xf0] sm:$0xff]  ;;  %v1674_v25 = vld [vmem:[#allocation14 + $0x108] sm:$0xff] }
 0x2ba   :  { %9338 = vmatpush1.bf16.msra.mxu1 %v12795_v51  ;;  %9370 = vmatpush1.bf16.msra.mxu0 %v12797_v52  ;;  %14843 = vst [vmem:[#allocation97_spill] sm:$0xff] %v12934_v30  ;;  %14844 = vst [vmem:[#allocation98_spill] sm:$0xff] %v12939_v42  ;;  %v12943_v9 = vpack.c.bf16 %v1669_v63, %v1665_v58  ;;  %v12946_v13 = vpack.c.bf16 %v1671_v44, %v1667_v11  ;;  %v1678_v29 = vld [vmem:[#allocation14 + $0x128] sm:$0xff]  ;;  %v1676_v33 = vld [vmem:[#allocation14 + $0x118] sm:$0xff] }
 0x2bb   :  { %9340 = vmatprep.subr.bf16.mxu1 %v12803_v56  ;;  %9372 = vmatprep.subr.bf16.mxu0 %v12805_v57  ;;  %14845 = vst [vmem:[#allocation99_spill] sm:$0xff] %v12941_v2  ;;  %v12951_v40 = vpack.c.bf16 %v1678_v29, %v1674_v25  ;;  %v1680_v41 = vld [vmem:[#allocation14 + $0x138] sm:$0xff]  ;;  %v1673_v49 = vld [vmem:[#allocation14 + $0x100] sm:$0xff]  ;;  %v1675_v11 = vld [vmem:[#allocation14 + $0x110] sm:$0xff] }
 0x2bc   :  { %14846 = vst [vmem:[#allocation100_spill] sm:$0xff] %v12943_v9  ;;  %14847 = vst [vmem:[#allocation101_spill] sm:$0xff] %v12946_v13  ;;  %v1677_v58 = vld [vmem:[#allocation14 + $0x120] sm:$0xff]  ;;  %v12953_v63 = vpack.c.bf16 %v1680_v41, %v1676_v33  ;;  %v1679_v44 = vld [vmem:[#allocation14 + $0x130] sm:$0xff] }
 0x2bd   :  { %14848 = vst [vmem:[#allocation102_spill] sm:$0xff] %v12951_v40  ;;  %v12955_v1 = vpack.c.bf16 %v1677_v58, %v1673_v49  ;;  %v1686_v25 = vld [vmem:[#allocation14 + $0x168] sm:$0xff]  ;;  %v1684_v29 = vld [vmem:[#allocation14 + $0x158] sm:$0xff]  ;;  %v1681_v41 = vld [vmem:[#allocation14 + $0x140] sm:$0xff] }
 0x2be   :  { %9342 = vmatpush1.bf16.msra.mxu1 %v12815_v3  ;;  %9374 = vmatpush1.bf16.msra.mxu0 %v12817_v4  ;;  %14849 = vst [vmem:[#allocation103_spill] sm:$0xff] %v12953_v63  ;;  %v1688_v33 = vld [vmem:[#allocation14 + $0x178] sm:$0xff]  ;;  %v1685_v49 = vld [vmem:[#allocation14 + $0x160] sm:$0xff] }
 0x2bf   :  { %9344 = vmatprep.subr.bf16.mxu1 %v12823_v7  ;;  %9376 = vmatprep.subr.bf16.mxu0 %v12825_v8  ;;  %14850 = vst [vmem:[#allocation104_spill] sm:$0xff] %v12955_v1  ;;  %v12965_v58 = vpack.c.bf16 %v1688_v33, %v1684_v29  ;;  %v1689_v29 = vld [vmem:[#allocation14 + $0x180] sm:$0xff] }
 0x2c0   :  { %v1693_v33 = vld [vmem:[#allocation14 + $0x1a0] sm:$0xff] }
 0x2c1   :  { %14853 = vst [vmem:[#allocation107_spill] sm:$0xff] %v12965_v58 }
 0x2c2   :  { %9346 = vmatpush1.bf16.msra.mxu1 %v12835_v14  ;;  %9378 = vmatpush1.bf16.msra.mxu0 %v12837_v17 }
 0x2c3   :  { %9348 = vmatprep.subr.bf16.mxu1 %v12843_v21  ;;  %9380 = vmatprep.subr.bf16.mxu0 %v12845_v22 }
 0x2c6   :  { %9350 = vmatpush1.bf16.msra.mxu1 %v12855_v31  ;;  %9382 = vmatpush1.bf16.msra.mxu0 %v12857_v32 }
 0x2c7   :  { %9352 = vmatprep.subr.bf16.mxu1 %v12863_v36  ;;  %9384 = vmatprep.subr.bf16.mxu0 %v12865_v37 }
 0x2ca   :  { %9354 = vmatpush1.bf16.msra.mxu1 %v12875_v53  ;;  %9386 = vmatpush1.bf16.msra.mxu0 %v12877_v54 }
 0x2cb   :  { %9356 = vmatprep.subr.bf16.mxu1 %v12882_v59  ;;  %9388 = vmatprep.subr.bf16.mxu0 %v12884_v60 }
 0x2ce   :  { %9358 = vmatpush1.bf16.msra.mxu1 %v12891_v5  ;;  %9390 = vmatpush1.bf16.msra.mxu0 %v12893_v6 }
 0x2cf   :  { %9392 = vmatprep.subr.bf16.mxu1 %v12903_v12  ;;  %9424 = vmatprep.subr.bf16.mxu0 %v12905_v20 }
 0x2d1   :  { %1536 = vmatmul.mubr.f32.vlgmr.msra.gmra.mrb[4].mxu1 %v14598_v0  ;;  %1607 = vmatmul.mubr.f32.vlgmr.msra.gmra.mrb[6].mxu0 %v14598_v0 }
 0x2d2   :  { %1791 = vmatprep.mubr.f32.mxu1 %v14598_v0  ;;  %1862 = vmatprep.mubr.f32.mxu0 %v14598_v0  ;;  %v12958_v0 = vpack.c.bf16 %v1679_v44, %v1675_v11  ;;  %v1683_v11 = vld [vmem:[#allocation14 + $0x150] sm:$0xff] }
 0x2d3   :  { %9394 = vmatpush1.bf16.msra.mxu1 %v12907_v23  ;;  %9426 = vmatpush1.bf16.msra.mxu0 %v12910_v26  ;;  %v1687_v44 = vld [vmem:[#allocation14 + $0x170] sm:$0xff] }
 0x2d4   :  { %9396 = vmatprep.subr.bf16.mxu1 %v12915_v34  ;;  %9428 = vmatprep.subr.bf16.mxu0 %v12917_v43  ;;  %14851 = vst [vmem:[#allocation105_spill] sm:$0xff] %v12958_v0 }
 0x2d7   :  { %9398 = vmatpush1.bf16.msra.mxu1 %v12919_v48  ;;  %9430 = vmatpush1.bf16.msra.mxu0 %v12922_v61 }
 0x2d8   :  { %9400 = vmatprep.subr.bf16.mxu1 %v12927_v10  ;;  %9432 = vmatprep.subr.bf16.mxu0 %v12929_v19  ;;  %v1872_v19 = vld [vmem:[#allocation16 + $0x18] sm:$0xff] }
 0x2d9   :  { %v1904_v10 = vld [vmem:[#allocation16 + $0x118] sm:$0xff] }
 0x2db   :  { %9402 = vmatpush1.bf16.msra.mxu1 %v12931_v24  ;;  %9434 = vmatpush1.bf16.msra.mxu0 %v12934_v30  ;;  %v1696_v30 = vld [vmem:[#allocation14 + $0x1b8] sm:$0xff]  ;;  %v1870_v24 = vld [vmem:[#allocation16 + $0x8] sm:$0xff] }
 0x2dc   :  { %9404 = vmatprep.subr.bf16.mxu1 %v12939_v42  ;;  %9436 = vmatprep.subr.bf16.mxu0 %v12941_v2  ;;  %v12967_v2 = vpack.c.bf16 %v1685_v49, %v1681_v41  ;;  %v1692_v42 = vld [vmem:[#allocation14 + $0x198] sm:$0xff]  ;;  %v1691_v41 = vld [vmem:[#allocation14 + $0x190] sm:$0xff]  ;;  %v12979_v49 = vpack.c.bf16 %v1693_v33, %v1689_v29 }
 0x2dd   :  { %v1703_v29 = vld [vmem:[#allocation14 + $0x1f0] sm:$0xff] }
 0x2de   :  { %14854 = vst [vmem:[#allocation108_spill] sm:$0xff] %v12967_v2  ;;  %14858 = vst [vmem:[#allocation112_spill] sm:$0xff] %v12979_v49 }
 0x2df   :  { %9406 = vmatpush1.bf16.msra.mxu1 %v12943_v9  ;;  %9438 = vmatpush1.bf16.msra.mxu0 %v12946_v13  ;;  %v1682_v13 = vld [vmem:[#allocation14 + $0x148] sm:$0xff] }
 0x2e0   :  { %9408 = vmatprep.subr.bf16.mxu1 %v12951_v40  ;;  %9440 = vmatprep.subr.bf16.mxu0 %v12953_v63  ;;  %v12963_v9 = vpack.c.bf16 %v1686_v25, %v1682_v13  ;;  %v1690_v40 = vld [vmem:[#allocation14 + $0x188] sm:$0xff]  ;;  %v12976_v25 = vpack.c.bf16 %v1696_v30, %v1692_v42  ;;  %v1700_v30 = vld [vmem:[#allocation14 + $0x1d8] sm:$0xff] }
 0x2e1   :  { %v1694_v63 = vld [vmem:[#allocation14 + $0x1a8] sm:$0xff]  ;;  %v1704_v42 = vld [vmem:[#allocation14 + $0x1f8] sm:$0xff] }
 0x2e2   :  { %14852 = vst [vmem:[#allocation106_spill] sm:$0xff] %v12963_v9  ;;  %v12974_v13 = vpack.c.bf16 %v1694_v63, %v1690_v40  ;;  %14857 = vst [vmem:[#allocation111_spill] sm:$0xff] %v12976_v25  ;;  %v1697_v63 = vld [vmem:[#allocation14 + $0x1c0] sm:$0xff] }
 0x2e3   :  { %9410 = vmatpush1.bf16.msra.mxu1 %v12955_v1  ;;  %9442 = vmatpush1.bf16.msra.mxu0 %v12958_v0  ;;  %v12970_v1 = vpack.c.bf16 %v1687_v44, %v1683_v11  ;;  %v1695_v11 = vld [vmem:[#allocation14 + $0x1b0] sm:$0xff]  ;;  %v1698_v44 = vld [vmem:[#allocation14 + $0x1c8] sm:$0xff]  ;;  %v1701_v0 = vld [vmem:[#allocation14 + $0x1e0] sm:$0xff] }
 0x2e4   :  { %9412 = vmatprep.subr.bf16.mxu1 %v12963_v9  ;;  %9444 = vmatprep.subr.bf16.mxu0 %v12965_v58  ;;  %14856 = vst [vmem:[#allocation110_spill] sm:$0xff] %v12974_v13  ;;  %v1702_v9 = vld [vmem:[#allocation14 + $0x1e8] sm:$0xff]  ;;  %v12983_v58 = vpack.c.bf16 %v1695_v11, %v1691_v41  ;;  %v12990_v33 = vpack.c.bf16 %v1701_v0, %v1697_v63  ;;  %v1876_v11 = vld [vmem:[#allocation16 + $0x38] sm:$0xff] }
 0x2e5   :  { %14855 = vst [vmem:[#allocation109_spill] sm:$0xff] %v12970_v1  ;;  %v12985_v40 = vpack.c.bf16 %v1702_v9, %v1698_v44  ;;  %v12999_v44 = vpack.c.bf16 %v1876_v11, %v1872_v19  ;;  %v1381_v63 = vld [vmem:[#allocation13] sm:$0xf] }
 0x2e6   :  { %14859 = vst [vmem:[#allocation113_spill] sm:$0xff] %v12983_v58  ;;  %14862 = vst [vmem:[#allocation116_spill] sm:$0xff] %v12990_v33 }
 0x2e7   :  { %9414 = vmatpush1.bf16.msra.mxu1 %v12967_v2  ;;  %9446 = vmatpush1.bf16.msra.mxu0 %v12970_v1  ;;  %14860 = vst [vmem:[#allocation114_spill] sm:$0xff] %v12985_v40  ;;  %v12987_v2 = vpack.c.bf16 %v1704_v42, %v1700_v30  ;;  %v1699_v1 = vld [vmem:[#allocation14 + $0x1d0] sm:$0xff]  ;;  %14865 = vst [vmem:[#allocation119_spill] sm:$0xff] %v12999_v44 }
 0x2e8   :  { %9416 = vmatprep.subr.bf16.mxu1 %v12974_v13  ;;  %9448 = vmatprep.subr.bf16.mxu0 %v12976_v25  ;;  %v1874_v13 = vld [vmem:[#allocation16 + $0x28] sm:$0xff]  ;;  %v12994_v9 = vpack.c.bf16 %v1703_v29, %v1699_v1  ;;  %v1892_v25 = vld [vmem:[#allocation16 + $0xb8] sm:$0xff] }
 0x2e9   :  { %14861 = vst [vmem:[#allocation115_spill] sm:$0xff] %v12987_v2  ;;  %v12996_v41 = vpack.c.bf16 %v1874_v13, %v1870_v24  ;;  %v1386_v24 = vrot.slane %v1381_v63, %v12644_v45  ;;  %v1390_v13 = vrot.slane %v1381_v63, %v12649_v47 }
 0x2ea   :  { %14863 = vst [vmem:[#allocation117_spill] sm:$0xff] %v12994_v9 }
 0x2eb   :  { %9418 = vmatpush1.bf16.msra.mxu1 %v12979_v49  ;;  %9450 = vmatpush1.bf16.msra.mxu0 %v12983_v58  ;;  %14864 = vst [vmem:[#allocation118_spill] sm:$0xff] %v12996_v41 }
 0x2ec   :  { %9420 = vmatprep.subr.bf16.mxu1 %v12985_v40  ;;  %9452 = vmatprep.subr.bf16.mxu0 %v12987_v2 }
 0x2ef   :  { %9422 = vmatpush1.bf16.msra.mxu1 %v12990_v33  ;;  %9454 = vmatpush1.bf16.msra.mxu0 %v12994_v9 }
 0x2f0   :  { %9456 = vmatprep.subr.bf16.mxu1 %v12996_v41  ;;  %9488 = vmatprep.subr.bf16.mxu0 %v12999_v44  ;;  %v1398_v44 = vrot.slane %v1381_v63, %v12658_v55 }
 0x384   :  { %v1305_v0 = vpop.f32.mrb[2].mxu1  ;;  %v1376_v30 = vpop.f32.mrb[4].mxu0 }
 0x385   :  { %v1307_v42 = vpop.f32.mrb[3].mxu1  ;;  %v1378_v1 = vpop.f32.mrb[5].mxu0  ;;  %v13007_v29 = vadd.f32 %v1386_v24, %v1305_v0  ;;  %v1394_v0 = vrot.slane %v1381_v63, %v12665_v62  ;;  %v1873_v63 = vld [vmem:[#allocation16 + $0x20] sm:$0xff]  ;;  %v1888_v62 = vld [vmem:[#allocation16 + $0x98] sm:$0xff] }
 0x386   :  { %v13009_v19 = vadd.f32 %v1390_v13, %v1307_v42  ;;  %v13014_v45 = vadd.f32 %v1398_v44, %v1378_v1 }
 0x387   :  { %14866 = vst [vmem:[#allocation120_spill] sm:$0xff] %v13007_v29  ;;  %v13018_v24 = vadd.f32 %v1394_v0, %v1376_v30  ;;  %v1875_v0 = vld [vmem:[#allocation16 + $0x30] sm:$0xff] }
 0x388   :  { %14867 = vst [vmem:[#allocation121_spill] sm:$0xff] %v13009_v19  ;;  %14868 = vst [vmem:[#allocation122_spill] sm:$0xff] %v13014_v45 }
 0x389   :  { %14869 = vst [vmem:[#allocation123_spill] sm:$0xff] %v13018_v24 }
 0x3a4   :  { %v1537_v11 = vpop.f32.mrb[4].mxu1  ;;  %v1608_v33 = vpop.f32.mrb[6].mxu0 }
 0x3a5   :  { %v1613_v9 = vadd.f32 %v1537_v11, %v13007_v29  ;;  %v1539_v41 = vpop.f32.mrb[5].mxu1  ;;  %v1610_v2 = vpop.f32.mrb[7].mxu0  ;;  %v1615_v11 = vadd.f32 %v1608_v33, %v13018_v24  ;;  %v1869_v33 = vld [vmem:[#allocation16] sm:$0xff] }
 0x3a6   :  { %v1614_v40 = vadd.f32 %v1539_v41, %v13009_v19  ;;  %v1616_v42 = vadd.f32 %v1610_v2, %v13014_v45  ;;  %v13024_v24 = vpack.c.bf16 %v1873_v63, %v1869_v33  ;;  %v1886_v45 = vld [vmem:[#allocation16 + $0x88] sm:$0xff] }
 0x3a7   :  { %v8278_v58 = vmul.f32 -1.442695, %v1613_v9  ;;  %v1890_v19 = vld [vmem:[#allocation16 + $0xa8] sm:$0xff] }
 0x3a8   :  { %v8279_v49 = vmul.f32 -1.442695, %v1614_v40  ;;  %v8280_v13 = vmul.f32 -1.442695, %v1616_v42  ;;  %v1878_v42 = vld [vmem:[#allocation16 + $0x48] sm:$0xff]  ;;  %14871 = vst [vmem:[#allocation125_spill] sm:$0xff] %v13024_v24 }
 0x3a9   :  { %11525 = vpow2.f32 %v8278_v58 }
 0x3aa   :  { %11527 = vpow2.f32 %v8279_v49 }
 0x3ab   :  { %11529 = vpow2.f32 %v8280_v13  ;;  %v1884_v13 = vld [vmem:[#allocation16 + $0x78] sm:$0xff] }
 0x3ac   :  { %11531 = vtanh.f32 %v1615_v11 }
 0x3b3   :  { %v11526_v29 = vpop.eup %11525 }
 0x3b4   :  { %v11528_v47 = vpop.eup %11527  ;;  %v1620_v55 = vadd.f32 1.0, %v11526_v29  ;;  %v1871_v29 = vld [vmem:[#allocation16 + $0x10] sm:$0xff] }
 0x3b5   :  { %v1626_v9 = vadd.f32 1.0, %v11528_v47  ;;  %v11530_v58 = vpop.eup %11529  ;;  %v1882_v47 = vld [vmem:[#allocation16 + $0x68] sm:$0xff] }
 0x3b6   :  { %11533 = vrcp.f32 %v1620_v55  ;;  %v11532_v40 = vpop.eup %11531  ;;  %v1633_v1 = vadd.f32 1.0, %v11530_v58  ;;  %v1880_v55 = vld [vmem:[#allocation16 + $0x58] sm:$0xff]  ;;  %v1877_v58 = vld [vmem:[#allocation16 + $0x40] sm:$0xff] }
 0x3b7   :  { %11535 = vrcp.f32 %v1626_v9 }
 0x3b8   :  { %11537 = vrcp.f32 %v1633_v1  ;;  %v13032_v1 = vpack.c.bf16 %v1884_v13, %v1880_v55  ;;  %v1887_v55 = vld [vmem:[#allocation16 + $0x90] sm:$0xff] }
 0x3b9   :  { %v1891_v13 = vld [vmem:[#allocation16 + $0xb0] sm:$0xff] }
 0x3ba   :  { %14874 = vst [vmem:[#allocation128_spill] sm:$0xff] %v13032_v1 }
 0x3c0   :  { %v11534_v49 = vpop.eup %11533 }
 0x3c1   :  { %v11536_v41 = vpop.eup %11535  ;;  %v1637_v44 = vmul.f32 %v11534_v49, %v11532_v40  ;;  %v13026_v40 = vpack.c.bf16 %v1875_v0, %v1871_v29  ;;  %v1881_v49 = vld [vmem:[#allocation16 + $0x60] sm:$0xff] }
 0x3c2   :  { %v1636_v2 = vmul.f32 0.0, %v11536_v41  ;;  %v11538_v11 = vpop.eup %11537  ;;  %v13038_v33 = vpack.c.bf16 %v1881_v49, %v1877_v58  ;;  %v1885_v29 = vld [vmem:[#allocation16 + $0x80] sm:$0xff]  ;;  %v14879_v58 = vmov 0.0  }
 0x3c3   :  { %14872 = vst [vmem:[#allocation126_spill] sm:$0xff] %v13026_v40  ;;  %v1889_v0 = vld [vmem:[#allocation16 + $0xa0] sm:$0xff] }
 0x3c4   :  { %v13021_v30 = vadd.f32 %v1637_v44, %v1636_v2  ;;  %v13030_v44 = vpack.c.bf16 %v1882_v47, %v1878_v42  ;;  %v1879_v2 = vld [vmem:[#allocation16 + $0x50] sm:$0xff]  ;;  %14875 = vst [vmem:[#allocation129_spill] sm:$0xff] %v13038_v33  ;;  %v13044_v42 = vpack.c.bf16 %v1890_v19, %v1886_v45  ;;  %v13046_v47 = vpack.c.bf16 %v1892_v25, %v1888_v62  ;;  %v1893_v62 = vld [vmem:[#allocation16 + $0xc0] sm:$0xff] }
 0x3c5   :  { %v13054_v45 = vpack.c.bf16 %v1891_v13, %v1887_v55  ;;  %v1897_v25 = vld [vmem:[#allocation16 + $0xe0] sm:$0xff] }
 0x3c6   :  { %14870 = vst [vmem:[#allocation124_spill] sm:$0xff] %v13021_v30  ;;  %11539 = vtanh.f32 %v13021_v30  ;;  %14873 = vst [vmem:[#allocation127_spill] sm:$0xff] %v13030_v44  ;;  %v1883_v30 = vld [vmem:[#allocation16 + $0x70] sm:$0xff]  ;;  %v1901_v55 = vld [vmem:[#allocation16 + $0x100] sm:$0xff] }
 0x3c7   :  { %v13040_v63 = vpack.c.bf16 %v1883_v30, %v1879_v2  ;;  %14877 = vst [vmem:[#allocation131_spill] sm:$0xff] %v13044_v42  ;;  %14878 = vst [vmem:[#allocation132_spill] sm:$0xff] %v13046_v47  ;;  %v13052_v30 = vpack.c.bf16 %v1889_v0, %v1885_v29  ;;  %v1895_v2 = vld [vmem:[#allocation16 + $0xd0] sm:$0xff]  ;;  %v13064_v29 = vpack.c.bf16 %v1897_v25, %v1893_v62  ;;  %v1905_v13 = vld [vmem:[#allocation16 + $0x120] sm:$0xff] }
 0x3c8   :  { %14881 = vst [vmem:[#allocation134_spill] sm:$0xff] %v13054_v45  ;;  %v1909_v25 = vld [vmem:[#allocation16 + $0x140] sm:$0xff] }
 0x3c9   :  { %14876 = vst [vmem:[#allocation130_spill] sm:$0xff] %v13040_v63  ;;  %14880 = vst [vmem:[#allocation133_spill] sm:$0xff] %v13052_v30 }
 0x3ca   :  { %14884 = vst [vmem:[#allocation137_spill] sm:$0xff] %v13064_v29 }
 0x3d0   :  { %v11540_v9 = vpop.eup %11539 }
 0x3d1   :  { %v13028_v41 = vmul.f32 %v11540_v9, %v11538_v11  ;;  %v1894_v11 = vld [vmem:[#allocation16 + $0xc8] sm:$0xff] }
 0x3d2   :  { %v1898_v9 = vld [vmem:[#allocation16 + $0xe8] sm:$0xff] }
 0x3d3   :  { %1792 = vmatmul.mubr.f32.vlgmr.msra.gmra.mrb[6].mxu1 %v13028_v41  ;;  %1863 = vmatmul.mubr.f32.vlgmr.msra.gmra.mrb[8].mxu0 %v13028_v41  ;;  %v13058_v19 = vpack.c.bf16 %v1898_v9, %v1894_v11  ;;  %v1903_v11 = vld [vmem:[#allocation16 + $0x110] sm:$0xff] }
 0x3d4   :  { %9458 = vmatpush1.bf16.msra.mxu1 %v13024_v24  ;;  %9490 = vmatpush1.bf16.msra.mxu0 %v13026_v40  ;;  %v1896_v24 = vld [vmem:[#allocation16 + $0xd8] sm:$0xff]  ;;  %v1907_v9 = vld [vmem:[#allocation16 + $0x130] sm:$0xff] }
 0x3d5   :  { %9460 = vmatprep.subr.bf16.mxu1 %v13030_v44  ;;  %9492 = vmatprep.subr.bf16.mxu0 %v13032_v1  ;;  %v1900_v40 = vld [vmem:[#allocation16 + $0xf8] sm:$0xff]  ;;  %14882 = vst [vmem:[#allocation135_spill] sm:$0xff] %v13058_v19  ;;  %v1899_v1 = vld [vmem:[#allocation16 + $0xf0] sm:$0xff]  ;;  %v1902_v44 = vld [vmem:[#allocation16 + $0x108] sm:$0xff]  ;;  %v13078_v62 = vpack.c.bf16 %v1907_v9, %v1903_v11 }
 0x3d6   :  { %1997 = vmatprep.mubr.f32.mxu1 %v14879_v58  ;;  %2068 = vmatprep.mubr.f32.mxu0 %v14879_v58  ;;  %v13060_v49 = vpack.c.bf16 %v1900_v40, %v1896_v24  ;;  %v13066_v0 = vpack.c.bf16 %v1899_v1, %v1895_v2  ;;  %v13076_v1 = vpack.c.bf16 %v1905_v13, %v1901_v55  ;;  %v1913_v2 = vld [vmem:[#allocation16 + $0x160] sm:$0xff] }
 0x3d7   :  { %14889 = vst [vmem:[#allocation142_spill] sm:$0xff] %v13078_v62  ;;  %v13088_v55 = vpack.c.bf16 %v1913_v2, %v1909_v25  ;;  %v1917_v11 = vld [vmem:[#allocation16 + $0x180] sm:$0xff] }
 0x3d8   :  { %9462 = vmatpush1.bf16.msra.mxu1 %v13038_v33  ;;  %9494 = vmatpush1.bf16.msra.mxu0 %v13040_v63  ;;  %14883 = vst [vmem:[#allocation136_spill] sm:$0xff] %v13060_v49  ;;  %v1906_v33 = vld [vmem:[#allocation16 + $0x128] sm:$0xff]  ;;  %v1908_v63 = vld [vmem:[#allocation16 + $0x138] sm:$0xff]  ;;  %14885 = vst [vmem:[#allocation138_spill] sm:$0xff] %v13066_v0 }
 0x3d9   :  { %9464 = vmatprep.subr.bf16.mxu1 %v13044_v42  ;;  %9496 = vmatprep.subr.bf16.mxu0 %v13046_v47  ;;  %v13070_v24 = vpack.c.bf16 %v1906_v33, %v1902_v44  ;;  %v13072_v40 = vpack.c.bf16 %v1908_v63, %v1904_v10  ;;  %v1910_v47 = vld [vmem:[#allocation16 + $0x148] sm:$0xff]  ;;  %v1912_v42 = vld [vmem:[#allocation16 + $0x158] sm:$0xff]  ;;  %14888 = vst [vmem:[#allocation141_spill] sm:$0xff] %v13076_v1  ;;  %v1911_v33 = vld [vmem:[#allocation16 + $0x150] sm:$0xff] }
 0x3da   :  { %v1915_v63 = vld [vmem:[#allocation16 + $0x170] sm:$0xff]  ;;  %v1921_v9 = vld [vmem:[#allocation16 + $0x1a0] sm:$0xff] }
 0x3db   :  { %14886 = vst [vmem:[#allocation139_spill] sm:$0xff] %v13070_v24  ;;  %14887 = vst [vmem:[#allocation140_spill] sm:$0xff] %v13072_v40  ;;  %v13090_v13 = vpack.c.bf16 %v1915_v63, %v1911_v33  ;;  %v13100_v25 = vpack.c.bf16 %v1921_v9, %v1917_v11  ;;  %v1925_v33 = vld [vmem:[#allocation16 + $0x1c0] sm:$0xff]  ;;  %v1931_v63 = vld [vmem:[#allocation16 + $0x1f0] sm:$0xff] }
 0x3dc   :  { %9466 = vmatpush1.bf16.msra.mxu1 %v13052_v30  ;;  %9498 = vmatpush1.bf16.msra.mxu0 %v13054_v45  ;;  %v1914_v30 = vld [vmem:[#allocation16 + $0x168] sm:$0xff]  ;;  %v1916_v45 = vld [vmem:[#allocation16 + $0x178] sm:$0xff] }
 0x3dd   :  { %9468 = vmatprep.subr.bf16.mxu1 %v13058_v19  ;;  %9500 = vmatprep.subr.bf16.mxu0 %v13060_v49  ;;  %v13082_v10 = vpack.c.bf16 %v1914_v30, %v1910_v47  ;;  %v13084_v44 = vpack.c.bf16 %v1916_v45, %v1912_v42  ;;  %v1918_v49 = vld [vmem:[#allocation16 + $0x188] sm:$0xff]  ;;  %v1920_v19 = vld [vmem:[#allocation16 + $0x198] sm:$0xff]  ;;  %v1919_v30 = vld [vmem:[#allocation16 + $0x190] sm:$0xff] }
 0x3de   :  { %v1923_v45 = vld [vmem:[#allocation16 + $0x1b0] sm:$0xff] }
 0x3df   :  { %14890 = vst [vmem:[#allocation143_spill] sm:$0xff] %v13082_v10  ;;  %v13102_v2 = vpack.c.bf16 %v1923_v45, %v1919_v30  ;;  %v14896_v30 = vld [vmem:[#allocation99_spill] sm:$0xff]  ;;  %v14897_v45 = vld [vmem:[#allocation100_spill] sm:$0xff] }
 0x3e0   :  { %9470 = vmatpush1.bf16.msra.mxu1 %v13064_v29  ;;  %9502 = vmatpush1.bf16.msra.mxu0 %v13066_v0  ;;  %v1922_v29 = vld [vmem:[#allocation16 + $0x1a8] sm:$0xff]  ;;  %v1924_v0 = vld [vmem:[#allocation16 + $0x1b8] sm:$0xff] }
 0x3e1   :  { %9472 = vmatprep.subr.bf16.mxu1 %v13070_v24  ;;  %9504 = vmatprep.subr.bf16.mxu0 %v13072_v40  ;;  %v13094_v42 = vpack.c.bf16 %v1922_v29, %v1918_v49  ;;  %v13096_v47 = vpack.c.bf16 %v1924_v0, %v1920_v19  ;;  %v1926_v40 = vld [vmem:[#allocation16 + $0x1c8] sm:$0xff]  ;;  %v1928_v24 = vld [vmem:[#allocation16 + $0x1d8] sm:$0xff]  ;;  %v1929_v29 = vld [vmem:[#allocation16 + $0x1e0] sm:$0xff] }
 0x3e2   :  { %v1927_v0 = vld [vmem:[#allocation16 + $0x1d0] sm:$0xff]  ;;  %v13112_v11 = vpack.c.bf16 %v1929_v29, %v1925_v33  ;;  %v14898_v33 = vld [vmem:[#allocation101_spill] sm:$0xff] }
 0x3e3   :  { %v13114_v9 = vpack.c.bf16 %v1931_v63, %v1927_v0  ;;  %v14899_v29 = vld [vmem:[#allocation102_spill] sm:$0xff]  ;;  %v14900_v0 = vld [vmem:[#allocation103_spill] sm:$0xff]  ;;  %v14901_v63 = vld [vmem:[#allocation104_spill] sm:$0xff] }
 0x3e4   :  { %9474 = vmatpush1.bf16.msra.mxu1 %v13076_v1  ;;  %9506 = vmatpush1.bf16.msra.mxu0 %v13078_v62  ;;  %v1930_v1 = vld [vmem:[#allocation16 + $0x1e8] sm:$0xff]  ;;  %v1932_v62 = vld [vmem:[#allocation16 + $0x1f8] sm:$0xff] }
 0x3e5   :  { %9476 = vmatprep.subr.bf16.mxu1 %v13082_v10  ;;  %9508 = vmatprep.subr.bf16.mxu0 %v13084_v44  ;;  %v13106_v19 = vpack.c.bf16 %v1930_v1, %v1926_v40  ;;  %v13108_v49 = vpack.c.bf16 %v1932_v62, %v1928_v24  ;;  %v14891_v24 = vld [vmem:[#allocation94_spill] sm:$0xff]  ;;  %v14892_v40 = vld [vmem:[#allocation95_spill] sm:$0xff]  ;;  %v14894_v1 = vld [vmem:[#allocation97_spill] sm:$0xff] }
 0x3e6   :  { %v14895_v62 = vld [vmem:[#allocation98_spill] sm:$0xff] }
 0x3e8   :  { %9478 = vmatpush1.bf16.msra.mxu1 %v13088_v55  ;;  %9510 = vmatpush1.bf16.msra.mxu0 %v13090_v13 }
 0x3e9   :  { %9480 = vmatprep.subr.bf16.mxu1 %v13094_v42  ;;  %9512 = vmatprep.subr.bf16.mxu0 %v13096_v47 }
 0x3ec   :  { %9482 = vmatpush1.bf16.msra.mxu1 %v13100_v25  ;;  %9514 = vmatpush1.bf16.msra.mxu0 %v13102_v2 }
 0x3ed   :  { %9484 = vmatprep.subr.bf16.mxu1 %v13106_v19  ;;  %9516 = vmatprep.subr.bf16.mxu0 %v13108_v49 }
 0x3f0   :  { %9486 = vmatpush1.bf16.msra.mxu1 %v13112_v11  ;;  %9518 = vmatpush1.bf16.msra.mxu0 %v13114_v9 }
 0x3f1   :  { %9520 = vmatprep.subr.bf16.mxu1 %v12743_v15  ;;  %9552 = vmatprep.subr.bf16.mxu0 %v12745_v16 }
 0x3f3   :  { %1998 = vmatmul.mubr.f32.vlgmr.msra.gmra.mrb[6].mxu1 %v14879_v58  ;;  %2069 = vmatmul.mubr.f32.vlgmr.msra.gmra.mrb[8].mxu0 %v14879_v58 }
 0x3f4   :  { %9522 = vmatpush1.bf16.msra.mxu1 %v12753_v50  ;;  %9554 = vmatpush1.bf16.msra.mxu0 %v12755_v46 }
 0x3f5   :  { %9524 = vmatprep.subr.bf16.mxu1 %v12761_v27  ;;  %9556 = vmatprep.subr.bf16.mxu0 %v12763_v28 }
 0x3f6   :  { %2167 = vmatprep.mubr.f32.mxu1 %v14879_v58  ;;  %2238 = vmatprep.mubr.f32.mxu0 %v14879_v58 }
 0x3f8   :  { %9526 = vmatpush1.bf16.msra.mxu1 %v12773_v35  ;;  %9558 = vmatpush1.bf16.msra.mxu0 %v12775_v18 }
 0x3f9   :  { %9528 = vmatprep.subr.bf16.mxu1 %v12781_v38  ;;  %9560 = vmatprep.subr.bf16.mxu0 %v12783_v39 }
 0x3fc   :  { %9530 = vmatpush1.bf16.msra.mxu1 %v12795_v51  ;;  %9562 = vmatpush1.bf16.msra.mxu0 %v12797_v52 }
 0x3fd   :  { %9532 = vmatprep.subr.bf16.mxu1 %v12803_v56  ;;  %9564 = vmatprep.subr.bf16.mxu0 %v12805_v57 }
 0x400   :  { %9534 = vmatpush1.bf16.msra.mxu1 %v12815_v3  ;;  %9566 = vmatpush1.bf16.msra.mxu0 %v12817_v4 }
 0x401   :  { %9536 = vmatprep.subr.bf16.mxu1 %v12823_v7  ;;  %9568 = vmatprep.subr.bf16.mxu0 %v12825_v8 }
 0x404   :  { %9538 = vmatpush1.bf16.msra.mxu1 %v12835_v14  ;;  %9570 = vmatpush1.bf16.msra.mxu0 %v12837_v17 }
 0x405   :  { %9540 = vmatprep.subr.bf16.mxu1 %v12843_v21  ;;  %9572 = vmatprep.subr.bf16.mxu0 %v12845_v22 }
 0x408   :  { %9542 = vmatpush1.bf16.msra.mxu1 %v12855_v31  ;;  %9574 = vmatpush1.bf16.msra.mxu0 %v12857_v32 }
 0x409   :  { %9544 = vmatprep.subr.bf16.mxu1 %v12863_v36  ;;  %9576 = vmatprep.subr.bf16.mxu0 %v12865_v37 }
 0x40c   :  { %9546 = vmatpush1.bf16.msra.mxu1 %v12875_v53  ;;  %9578 = vmatpush1.bf16.msra.mxu0 %v12877_v54 }
 0x40d   :  { %9548 = vmatprep.subr.bf16.mxu1 %v12882_v59  ;;  %9580 = vmatprep.subr.bf16.mxu0 %v12884_v60  ;;  %v14925_v60 = vld [vmem:[#allocation122_spill] sm:$0xff] }
 0x410   :  { %9550 = vmatpush1.bf16.msra.mxu1 %v12891_v5  ;;  %9582 = vmatpush1.bf16.msra.mxu0 %v12893_v6 }
 0x411   :  { %9584 = vmatprep.subr.bf16.mxu1 %v12903_v12  ;;  %9616 = vmatprep.subr.bf16.mxu0 %v12905_v20 }
 0x413   :  { %2168 = vmatmul.mubr.f32.vlgmr.msra.gmra.mrb[8].mxu1 %v13028_v41  ;;  %2239 = vmatmul.mubr.f32.vlgmr.msra.gmra.mrb[10].mxu0 %v13028_v41  ;;  %v14893_v41 = vld [vmem:[#allocation96_spill] sm:$0xff] }
 0x414   :  { %9586 = vmatpush1.bf16.msra.mxu1 %v12907_v23  ;;  %9618 = vmatpush1.bf16.msra.mxu0 %v12910_v26 }
 0x415   :  { %9588 = vmatprep.subr.bf16.mxu1 %v12915_v34  ;;  %9620 = vmatprep.subr.bf16.mxu0 %v12917_v43  ;;  %v14921_v43 = vld [vmem:[#allocation60_spill] sm:$0xff] }
 0x416   :  { %2355 = vmatprep.mubr.f32.mxu1 %v14879_v58  ;;  %2426 = vmatprep.mubr.f32.mxu0 %v14879_v58 }
 0x418   :  { %9590 = vmatpush1.bf16.msra.mxu1 %v12919_v48  ;;  %9622 = vmatpush1.bf16.msra.mxu0 %v12922_v61 }
 0x419   :  { %9592 = vmatprep.subr.bf16.mxu1 %v14891_v24  ;;  %9624 = vmatprep.subr.bf16.mxu0 %v14892_v40  ;;  %v14902_v24 = vld [vmem:[#allocation105_spill] sm:$0xff]  ;;  %v14903_v40 = vld [vmem:[#allocation106_spill] sm:$0xff] }
 0x41c   :  { %9594 = vmatpush1.bf16.msra.mxu1 %v14893_v41  ;;  %9626 = vmatpush1.bf16.msra.mxu0 %v14894_v1  ;;  %v14904_v41 = vld [vmem:[#allocation107_spill] sm:$0xff]  ;;  %v14905_v1 = vld [vmem:[#allocation108_spill] sm:$0xff] }
 0x41d   :  { %9596 = vmatprep.subr.bf16.mxu1 %v14895_v62  ;;  %9628 = vmatprep.subr.bf16.mxu0 %v14896_v30  ;;  %v14906_v62 = vld [vmem:[#allocation109_spill] sm:$0xff]  ;;  %v14907_v30 = vld [vmem:[#allocation110_spill] sm:$0xff] }
 0x420   :  { %9598 = vmatpush1.bf16.msra.mxu1 %v14897_v45  ;;  %9630 = vmatpush1.bf16.msra.mxu0 %v14898_v33  ;;  %v14908_v45 = vld [vmem:[#allocation111_spill] sm:$0xff]  ;;  %v14909_v33 = vld [vmem:[#allocation112_spill] sm:$0xff] }
 0x421   :  { %9600 = vmatprep.subr.bf16.mxu1 %v14899_v29  ;;  %9632 = vmatprep.subr.bf16.mxu0 %v14900_v0  ;;  %v14910_v29 = vld [vmem:[#allocation113_spill] sm:$0xff]  ;;  %v14911_v0 = vld [vmem:[#allocation114_spill] sm:$0xff] }
 0x424   :  { %9602 = vmatpush1.bf16.msra.mxu1 %v14901_v63  ;;  %9634 = vmatpush1.bf16.msra.mxu0 %v14902_v24  ;;  %v14912_v63 = vld [vmem:[#allocation115_spill] sm:$0xff]  ;;  %v14913_v24 = vld [vmem:[#allocation116_spill] sm:$0xff] }
 0x425   :  { %9604 = vmatprep.subr.bf16.mxu1 %v14903_v40  ;;  %9636 = vmatprep.subr.bf16.mxu0 %v14904_v41  ;;  %v14914_v40 = vld [vmem:[#allocation117_spill] sm:$0xff]  ;;  %v14915_v41 = vld [vmem:[#allocation118_spill] sm:$0xff] }
 0x428   :  { %9606 = vmatpush1.bf16.msra.mxu1 %v14905_v1  ;;  %9638 = vmatpush1.bf16.msra.mxu0 %v14906_v62  ;;  %v14916_v1 = vld [vmem:[#allocation119_spill] sm:$0xff]  ;;  %v13194_v62 = vld [vmem:[#allocation17] sm:$0xf] }
 0x429   :  { %9608 = vmatprep.subr.bf16.mxu1 %v14907_v30  ;;  %9640 = vmatprep.subr.bf16.mxu0 %v14908_v45  ;;  %v14917_v30 = vld [vmem:[#allocation57_spill] sm:$0xff] }
 0x42a   :  { %v13198_v45 = vrot.slane %v13194_v62, %v14917_v30  ;;  %v13208_v30 = vrot.slane %v13194_v62, %v14921_v43 }
 0x42c   :  { %9610 = vmatpush1.bf16.msra.mxu1 %v14909_v33  ;;  %9642 = vmatpush1.bf16.msra.mxu0 %v14910_v29  ;;  %14918 = vst [vmem:[#allocation144_spill] sm:$0xff] %v13198_v45  ;;  %v14919_v33 = vld [vmem:[#allocation58_spill] sm:$0xff]  ;;  %14922 = vst [vmem:[#allocation146_spill] sm:$0xff] %v13208_v30 }
 0x42d   :  { %9612 = vmatprep.subr.bf16.mxu1 %v14911_v0  ;;  %9644 = vmatprep.subr.bf16.mxu0 %v14912_v63  ;;  %v13202_v29 = vrot.slane %v13194_v62, %v14919_v33 }
 0x42f   :  { %14920 = vst [vmem:[#allocation145_spill] sm:$0xff] %v13202_v29 }
 0x430   :  { %9614 = vmatpush1.bf16.msra.mxu1 %v14913_v24  ;;  %9646 = vmatpush1.bf16.msra.mxu0 %v14914_v40 }
 0x431   :  { %9648 = vmatprep.subr.bf16.mxu1 %v14915_v41  ;;  %9680 = vmatprep.subr.bf16.mxu0 %v14916_v1 }
 0x4c6   :  { %v1999_v0 = vpop.f32.mrb[6].mxu1  ;;  %v2070_v63 = vpop.f32.mrb[8].mxu0 }
 0x4c7   :  { %v11367_v24 = vadd.f32 %v1999_v0, %v13198_v45  ;;  %v2001_v61 = vpop.f32.mrb[7].mxu1  ;;  %v2072_v40 = vpop.f32.mrb[9].mxu0  ;;  %v11369_v34 = vadd.f32 %v2070_v63, %v13208_v30  ;;  %v14923_v30 = vld [vmem:[#allocation120_spill] sm:$0xff] }
 0x4c8   :  { %v11368_v41 = vadd.f32 %v2001_v61, %v13202_v29 }
 0x4c9   :  { %v8281_v48 = vmul.f32 -1.442695, %v11367_v24 }
 0x4ca   :  { %v8282_v1 = vmul.f32 -1.442695, %v11368_v41 }
 0x4cb   :  { %11541 = vpow2.f32 %v8281_v48 }
 0x4cc   :  { %11543 = vpow2.f32 %v8282_v1 }
 0x4cd   :  { %11545 = vtanh.f32 %v11369_v34 }
 0x4d5   :  { %v11542_v33 = vpop.eup %11541 }
 0x4d6   :  { %v11544_v26 = vpop.eup %11543  ;;  %v2082_v23 = vadd.f32 1.0, %v11542_v33  ;;  %v14924_v33 = vld [vmem:[#allocation121_spill] sm:$0xff] }
 0x4d7   :  { %v2088_v20 = vadd.f32 1.0, %v11544_v26  ;;  %v11546_v0 = vpop.eup %11545 }
 0x4d8   :  { %11547 = vrcp.f32 %v2082_v23 }
 0x4d9   :  { %11549 = vrcp.f32 %v2088_v20 }
 0x4e2   :  { %v11548_v45 = vpop.eup %11547 }
 0x4e3   :  { %v11550_v61 = vpop.eup %11549  ;;  %v2099_v24 = vmul.f32 %v11548_v45, %v11546_v0 }
 0x4e4   :  { %v2098_v41 = vmul.f32 0.0, %v11550_v61 }
 0x4e6   :  { %v13211_v48 = vadd.f32 %v2099_v24, %v2098_v41  ;;  %v2169_v1 = vpop.f32.mrb[8].mxu1  ;;  %v2240_v29 = vpop.f32.mrb[10].mxu0  ;;  %v14926_v24 = vld [vmem:[#allocation123_spill] sm:$0xff] }
 0x4e7   :  { %v2249_v43 = vrot.slane %v2169_v1, 7  ;;  %v2171_v12 = vpop.f32.mrb[9].mxu1  ;;  %v2242_v6 = vpop.f32.mrb[11].mxu0  ;;  %v2251_v0 = vrot.slane %v2240_v29, 7 }
 0x4e8   :  { %v2250_v63 = vrot.slane %v2171_v12, 7  ;;  %v2252_v20 = vrot.slane %v2242_v6, 7  ;;  %v14927_v6 = vld [vmem:[#allocation124_spill] sm:$0xff] }
 0x4e9   :  { %v2257_v5 = vadd.f32 %v2249_v43, %v14923_v30  ;;  %v2259_v41 = vadd.f32 %v2251_v0, %v14926_v24 }
 0x4ea   :  { %v2258_v34 = vadd.f32 %v2250_v63, %v14924_v33  ;;  %v2260_v45 = vadd.f32 %v2252_v20, %v14925_v60 }
 0x4eb   :  { %v8284_v26 = vmul.f32 -1.442695, %v2257_v5 }
 0x4ec   :  { %v8285_v23 = vmul.f32 -1.442695, %v2258_v34  ;;  %v8286_v61 = vmul.f32 -1.442695, %v2260_v45  ;;  %v2281_v34 = vrot.slane %v14927_v6, 7 }
 0x4ed   :  { %11551 = vpow2.f32 %v8284_v26 }
 0x4ee   :  { %11553 = vpow2.f32 %v8285_v23 }
 0x4ef   :  { %11555 = vpow2.f32 %v8286_v61 }
 0x4f0   :  { %11557 = vtanh.f32 %v2259_v41 }
 0x4f7   :  { %v11552_v59 = vpop.eup %11551 }
 0x4f8   :  { %v11554_v1 = vpop.eup %11553  ;;  %v2264_v54 = vadd.f32 1.0, %v11552_v59  ;;  %v14928_v59 = vld [vmem:[#allocation59_spill] sm:$0xff] }
 0x4f9   :  { %v2270_v12 = vadd.f32 1.0, %v11554_v1  ;;  %v11556_v43 = vpop.eup %11555  ;;  %v13223_v0 = vrot.slane %v13194_v62, %v14928_v59  ;;  %v14932_v62 = vld [vmem:[#allocation128_spill] sm:$0xff]  ;;  %v14943_v59 = vld [vmem:[#allocation139_spill] sm:$0xff] }
 0x4fa   :  { %11559 = vrcp.f32 %v2264_v54  ;;  %v11558_v5 = vpop.eup %11557  ;;  %v2277_v20 = vadd.f32 1.0, %v11556_v43  ;;  %v14929_v43 = vld [vmem:[#allocation125_spill] sm:$0xff] }
 0x4fb   :  { %11561 = vrcp.f32 %v2270_v12  ;;  %v11370_v61 = vadd.f32 %v2072_v40, %v13223_v0  ;;  %v14933_v40 = vld [vmem:[#allocation129_spill] sm:$0xff] }
 0x4fc   :  { %11563 = vrcp.f32 %v2277_v20  ;;  %v14937_v20 = vld [vmem:[#allocation133_spill] sm:$0xff] }
 0x4fd   :  { %v8283_v12 = vmul.f32 -1.442695, %v11370_v61  ;;  %v14940_v61 = vld [vmem:[#allocation136_spill] sm:$0xff] }
 0x504   :  { %v11560_v63 = vpop.eup %11559 }
 0x505   :  { %v11562_v26 = vpop.eup %11561  ;;  %v2284_v23 = vmul.f32 %v11560_v63, %v11558_v5  ;;  %v14930_v5 = vld [vmem:[#allocation126_spill] sm:$0xff]  ;;  %v14931_v63 = vld [vmem:[#allocation127_spill] sm:$0xff] }
 0x506   :  { %v2283_v29 = vmul.f32 %v11562_v26, %v2281_v34  ;;  %v11564_v54 = vpop.eup %11563  ;;  %v14934_v34 = vld [vmem:[#allocation130_spill] sm:$0xff]  ;;  %v14935_v26 = vld [vmem:[#allocation131_spill] sm:$0xff] }
 0x508   :  { %v13218_v45 = vadd.f32 %v2284_v23, %v2283_v29  ;;  %v14936_v23 = vld [vmem:[#allocation132_spill] sm:$0xff]  ;;  %v14938_v29 = vld [vmem:[#allocation134_spill] sm:$0xff] }
 0x50a   :  { %11565 = vtanh.f32 %v13218_v45 }
 0x50b   :  { %11567 = vpow2.f32 %v8283_v12  ;;  %v14942_v12 = vld [vmem:[#allocation138_spill] sm:$0xff] }
 0x50c   :  { %11569 = vtanh.f32 %v13211_v48 }
 0x514   :  { %v11566_v41 = vpop.eup %11565 }
 0x515   :  { %v2287_v1 = vmul.f32 %v11566_v41, %v11564_v54  ;;  %v14939_v54 = vld [vmem:[#allocation135_spill] sm:$0xff]  ;;  %v11568_v41 = vpop.eup %11567 }
 0x517   :  { %v13226_v6 = vrot.slane %v2287_v1, 1  ;;  %v14941_v1 = vld [vmem:[#allocation137_spill] sm:$0xff] }
 0x519   :  { %2356 = vmatmul.mubr.f32.vlgmr.msra.gmra.mrb[10].mxu1 %v13226_v6  ;;  %2427 = vmatmul.mubr.f32.vlgmr.msra.gmra.mrb[12].mxu0 %v13226_v6 }
 0x51a   :  { %9650 = vmatpush1.bf16.msra.mxu1 %v14929_v43  ;;  %9682 = vmatpush1.bf16.msra.mxu0 %v14930_v5 }
 0x51b   :  { %9652 = vmatprep.subr.bf16.mxu1 %v14931_v63  ;;  %9684 = vmatprep.subr.bf16.mxu0 %v14932_v62 }
 0x51c   :  { %2497 = vmatprep.mubr.f32.mxu1 %v14879_v58  ;;  %2568 = vmatprep.mubr.f32.mxu0 %v14879_v58 }
 0x51e   :  { %9654 = vmatpush1.bf16.msra.mxu1 %v14933_v40  ;;  %9686 = vmatpush1.bf16.msra.mxu0 %v14934_v34  ;;  %v14944_v34 = vld [vmem:[#allocation140_spill] sm:$0xff] }
 0x51f   :  { %9656 = vmatprep.subr.bf16.mxu1 %v14935_v26  ;;  %9688 = vmatprep.subr.bf16.mxu0 %v14936_v23  ;;  %v2095_v26 = vadd.f32 1.0, %v11568_v41  ;;  %v14945_v23 = vld [vmem:[#allocation141_spill] sm:$0xff]  ;;  %v11570_v41 = vpop.eup %11569 }
 0x521   :  { %11571 = vrcp.f32 %v2095_v26 }
 0x522   :  { %9658 = vmatpush1.bf16.msra.mxu1 %v14937_v20  ;;  %9690 = vmatpush1.bf16.msra.mxu0 %v14938_v29  ;;  %v14946_v20 = vld [vmem:[#allocation142_spill] sm:$0xff] }
 0x523   :  { %9660 = vmatprep.subr.bf16.mxu1 %v14939_v54  ;;  %9692 = vmatprep.subr.bf16.mxu0 %v14940_v61 }
 0x526   :  { %9662 = vmatpush1.bf16.msra.mxu1 %v14941_v1  ;;  %9694 = vmatpush1.bf16.msra.mxu0 %v14942_v12 }
 0x527   :  { %9664 = vmatprep.subr.bf16.mxu1 %v14943_v59  ;;  %9696 = vmatprep.subr.bf16.mxu0 %v14944_v34 }
 0x52a   :  { %9666 = vmatpush1.bf16.msra.mxu1 %v14945_v23  ;;  %9698 = vmatpush1.bf16.msra.mxu0 %v14946_v20 }
 0x52b   :  { %9668 = vmatprep.subr.bf16.mxu1 %v13082_v10  ;;  %9700 = vmatprep.subr.bf16.mxu0 %v13084_v44  ;;  %v11572_v10 = vpop.eup %11571 }
 0x52c   :  { %v2102_v26 = vmul.f32 %v11572_v10, %v11570_v41  ;;  %v14947_v10 = vld [vmem:[#allocation81_spill] sm:$0xff]  ;;  %v14948_v41 = vld [vmem:[#allocation82_spill] sm:$0xff] }
 0x52e   :  { %9670 = vmatpush1.bf16.msra.mxu1 %v13088_v55  ;;  %9702 = vmatpush1.bf16.msra.mxu0 %v13090_v13 }
 0x52f   :  { %9672 = vmatprep.subr.bf16.mxu1 %v13094_v42  ;;  %9704 = vmatprep.subr.bf16.mxu0 %v13096_v47 }
 0x532   :  { %9674 = vmatpush1.bf16.msra.mxu1 %v13100_v25  ;;  %9706 = vmatpush1.bf16.msra.mxu0 %v13102_v2 }
 0x533   :  { %9676 = vmatprep.subr.bf16.mxu1 %v13106_v19  ;;  %9708 = vmatprep.subr.bf16.mxu0 %v13108_v49 }
 0x536   :  { %9678 = vmatpush1.bf16.msra.mxu1 %v13112_v11  ;;  %9710 = vmatpush1.bf16.msra.mxu0 %v13114_v9 }
 0x537   :  { %9712 = vmatprep.subr.bf16.mxu1 %v12743_v15  ;;  %9744 = vmatprep.subr.bf16.mxu0 %v12745_v16 }
 0x539   :  { %2498 = vmatmul.mubr.f32.vlgmr.msra.gmra.mrb[10].mxu1 %v2102_v26  ;;  %2569 = vmatmul.mubr.f32.vlgmr.msra.gmra.mrb[12].mxu0 %v2102_v26  ;;  %v14949_v26 = vld [vmem:[#allocation83_spill] sm:$0xff] }
 0x53a   :  { %9714 = vmatpush1.bf16.msra.mxu1 %v12753_v50  ;;  %9746 = vmatpush1.bf16.msra.mxu0 %v12755_v46 }
 0x53b   :  { %9716 = vmatprep.subr.bf16.mxu1 %v12761_v27  ;;  %9748 = vmatprep.subr.bf16.mxu0 %v12763_v28 }
 0x53c   :  { %2667 = vmatprep.mubr.f32.mxu1 %v14879_v58  ;;  %2738 = vmatprep.mubr.f32.mxu0 %v14879_v58 }
 0x53e   :  { %9718 = vmatpush1.bf16.msra.mxu1 %v12773_v35  ;;  %9750 = vmatpush1.bf16.msra.mxu0 %v12775_v18 }
 0x53f   :  { %9720 = vmatprep.subr.bf16.mxu1 %v12781_v38  ;;  %9752 = vmatprep.subr.bf16.mxu0 %v12783_v39 }
 0x542   :  { %9722 = vmatpush1.bf16.msra.mxu1 %v12795_v51  ;;  %9754 = vmatpush1.bf16.msra.mxu0 %v12797_v52 }
 0x543   :  { %9724 = vmatprep.subr.bf16.mxu1 %v12803_v56  ;;  %9756 = vmatprep.subr.bf16.mxu0 %v12805_v57 }
 0x546   :  { %9726 = vmatpush1.bf16.msra.mxu1 %v12815_v3  ;;  %9758 = vmatpush1.bf16.msra.mxu0 %v12817_v4 }
 0x547   :  { %9728 = vmatprep.subr.bf16.mxu1 %v12823_v7  ;;  %9760 = vmatprep.subr.bf16.mxu0 %v12825_v8  ;;  %v14987_v8 = vld [vmem:[#allocation145_spill] sm:$0xff] }
 0x54a   :  { %9730 = vmatpush1.bf16.msra.mxu1 %v12835_v14  ;;  %9762 = vmatpush1.bf16.msra.mxu0 %v12837_v17  ;;  %v14950_v17 = vld [vmem:[#allocation84_spill] sm:$0xff] }
 0x54b   :  { %9732 = vmatprep.subr.bf16.mxu1 %v12843_v21  ;;  %9764 = vmatprep.subr.bf16.mxu0 %v12845_v22  ;;  %v14951_v21 = vld [vmem:[#allocation85_spill] sm:$0xff]  ;;  %v14952_v22 = vld [vmem:[#allocation86_spill] sm:$0xff] }
 0x54e   :  { %9734 = vmatpush1.bf16.msra.mxu1 %v12855_v31  ;;  %9766 = vmatpush1.bf16.msra.mxu0 %v12857_v32  ;;  %v14953_v31 = vld [vmem:[#allocation87_spill] sm:$0xff]  ;;  %v14986_v32 = vld [vmem:[#allocation144_spill] sm:$0xff] }
 0x54f   :  { %9736 = vmatprep.subr.bf16.mxu1 %v12863_v36  ;;  %9768 = vmatprep.subr.bf16.mxu0 %v12865_v37  ;;  %v14954_v37 = vld [vmem:[#allocation88_spill] sm:$0xff]  ;;  %v14968_v36 = vld [vmem:[#allocation102_spill] sm:$0xff] }
 0x552   :  { %9738 = vmatpush1.bf16.msra.mxu1 %v12875_v53  ;;  %9770 = vmatpush1.bf16.msra.mxu0 %v14947_v10  ;;  %v14955_v53 = vld [vmem:[#allocation89_spill] sm:$0xff]  ;;  %v14956_v10 = vld [vmem:[#allocation90_spill] sm:$0xff] }
 0x553   :  { %9740 = vmatprep.subr.bf16.mxu1 %v14948_v41  ;;  %9772 = vmatprep.subr.bf16.mxu0 %v14949_v26  ;;  %v14957_v41 = vld [vmem:[#allocation91_spill] sm:$0xff]  ;;  %v14967_v26 = vld [vmem:[#allocation101_spill] sm:$0xff] }
 0x556   :  { %9742 = vmatpush1.bf16.msra.mxu1 %v14950_v17  ;;  %9774 = vmatpush1.bf16.msra.mxu0 %v14951_v21  ;;  %v14958_v21 = vld [vmem:[#allocation92_spill] sm:$0xff]  ;;  %v14961_v17 = vld [vmem:[#allocation95_spill] sm:$0xff] }
 0x557   :  { %9776 = vmatprep.subr.bf16.mxu1 %v14952_v22  ;;  %9808 = vmatprep.subr.bf16.mxu0 %v14953_v31  ;;  %v14959_v22 = vld [vmem:[#allocation93_spill] sm:$0xff]  ;;  %v14960_v31 = vld [vmem:[#allocation94_spill] sm:$0xff] }
 0x559   :  { %2668 = vmatmul.mubr.f32.vlgmr.msra.gmra.mrb[12].mxu1 %v13226_v6  ;;  %2739 = vmatmul.mubr.f32.vlgmr.msra.gmra.mrb[14].mxu0 %v13226_v6  ;;  %v14962_v6 = vld [vmem:[#allocation96_spill] sm:$0xff] }
 0x55a   :  { %9778 = vmatpush1.bf16.msra.mxu1 %v14954_v37  ;;  %9810 = vmatpush1.bf16.msra.mxu0 %v14955_v53  ;;  %v14963_v37 = vld [vmem:[#allocation97_spill] sm:$0xff]  ;;  %v14964_v53 = vld [vmem:[#allocation98_spill] sm:$0xff] }
 0x55b   :  { %9780 = vmatprep.subr.bf16.mxu1 %v14956_v10  ;;  %9812 = vmatprep.subr.bf16.mxu0 %v14957_v41  ;;  %v14965_v10 = vld [vmem:[#allocation99_spill] sm:$0xff]  ;;  %v14966_v41 = vld [vmem:[#allocation100_spill] sm:$0xff] }
 0x55c   :  { %2855 = vmatprep.mubr.f32.mxu1 %v14879_v58  ;;  %2926 = vmatprep.mubr.f32.mxu0 %v14879_v58 }
 0x55e   :  { %9782 = vmatpush1.bf16.msra.mxu1 %v14958_v21  ;;  %9814 = vmatpush1.bf16.msra.mxu0 %v14959_v22  ;;  %v14969_v21 = vld [vmem:[#allocation103_spill] sm:$0xff]  ;;  %v14970_v22 = vld [vmem:[#allocation104_spill] sm:$0xff] }
 0x55f   :  { %9784 = vmatprep.subr.bf16.mxu1 %v14960_v31  ;;  %9816 = vmatprep.subr.bf16.mxu0 %v14961_v17  ;;  %v14971_v31 = vld [vmem:[#allocation105_spill] sm:$0xff]  ;;  %v14972_v17 = vld [vmem:[#allocation106_spill] sm:$0xff] }
 0x562   :  { %9786 = vmatpush1.bf16.msra.mxu1 %v14962_v6  ;;  %9818 = vmatpush1.bf16.msra.mxu0 %v14963_v37  ;;  %v14973_v6 = vld [vmem:[#allocation107_spill] sm:$0xff]  ;;  %v14974_v37 = vld [vmem:[#allocation108_spill] sm:$0xff] }
 0x563   :  { %9788 = vmatprep.subr.bf16.mxu1 %v14964_v53  ;;  %9820 = vmatprep.subr.bf16.mxu0 %v14965_v10  ;;  %v14975_v53 = vld [vmem:[#allocation109_spill] sm:$0xff]  ;;  %v14976_v10 = vld [vmem:[#allocation110_spill] sm:$0xff] }
 0x566   :  { %9790 = vmatpush1.bf16.msra.mxu1 %v14966_v41  ;;  %9822 = vmatpush1.bf16.msra.mxu0 %v14967_v26  ;;  %v14977_v41 = vld [vmem:[#allocation111_spill] sm:$0xff]  ;;  %v14978_v26 = vld [vmem:[#allocation112_spill] sm:$0xff] }
 0x567   :  { %9792 = vmatprep.subr.bf16.mxu1 %v14968_v36  ;;  %9824 = vmatprep.subr.bf16.mxu0 %v14969_v21  ;;  %v14979_v36 = vld [vmem:[#allocation113_spill] sm:$0xff]  ;;  %v14980_v21 = vld [vmem:[#allocation114_spill] sm:$0xff] }
 0x56a   :  { %9794 = vmatpush1.bf16.msra.mxu1 %v14970_v22  ;;  %9826 = vmatpush1.bf16.msra.mxu0 %v14971_v31  ;;  %v14981_v22 = vld [vmem:[#allocation115_spill] sm:$0xff]  ;;  %v14982_v31 = vld [vmem:[#allocation116_spill] sm:$0xff] }
 0x56b   :  { %9796 = vmatprep.subr.bf16.mxu1 %v14972_v17  ;;  %9828 = vmatprep.subr.bf16.mxu0 %v14973_v6  ;;  %v14983_v17 = vld [vmem:[#allocation117_spill] sm:$0xff]  ;;  %v14984_v6 = vld [vmem:[#allocation118_spill] sm:$0xff] }
 0x56e   :  { %9798 = vmatpush1.bf16.msra.mxu1 %v14974_v37  ;;  %9830 = vmatpush1.bf16.msra.mxu0 %v14975_v53  ;;  %v14985_v37 = vld [vmem:[#allocation119_spill] sm:$0xff] }
 0x56f   :  { %9800 = vmatprep.subr.bf16.mxu1 %v14976_v10  ;;  %9832 = vmatprep.subr.bf16.mxu0 %v14977_v41 }
 0x572   :  { %9802 = vmatpush1.bf16.msra.mxu1 %v14978_v26  ;;  %9834 = vmatpush1.bf16.msra.mxu0 %v14979_v36 }
 0x573   :  { %9804 = vmatprep.subr.bf16.mxu1 %v14980_v21  ;;  %9836 = vmatprep.subr.bf16.mxu0 %v14981_v22  ;;  %v14988_v22 = vld [vmem:[#allocation146_spill] sm:$0xff] }
 0x576   :  { %9806 = vmatpush1.bf16.msra.mxu1 %v14982_v31  ;;  %9838 = vmatpush1.bf16.msra.mxu0 %v14983_v17 }
 0x577   :  { %9840 = vmatprep.subr.bf16.mxu1 %v14984_v6  ;;  %9872 = vmatprep.subr.bf16.mxu0 %v14985_v37 }
 0x60c   :  { %v2499_v53 = vpop.f32.mrb[10].mxu1  ;;  %v2570_v10 = vpop.f32.mrb[12].mxu0 }
 0x60d   :  { %v11371_v41 = vadd.f32 %v2499_v53, %v14986_v32  ;;  %v2501_v14 = vpop.f32.mrb[11].mxu1  ;;  %v2572_v26 = vpop.f32.mrb[13].mxu0  ;;  %v11373_v31 = vadd.f32 %v2570_v10, %v14988_v22 }
 0x60e   :  { %v11372_v36 = vadd.f32 %v2501_v14, %v14987_v8 }
 0x60f   :  { %v8287_v7 = vmul.f32 -1.442695, %v11371_v41 }
 0x610   :  { %v8288_v21 = vmul.f32 -1.442695, %v11372_v36 }
 0x611   :  { %11573 = vpow2.f32 %v8287_v7 }
 0x612   :  { %11575 = vpow2.f32 %v8288_v21 }
 0x613   :  { %11577 = vtanh.f32 %v11373_v31 }
 0x61b   :  { %v11574_v4 = vpop.eup %11573 }
 0x61c   :  { %v11576_v17 = vpop.eup %11575  ;;  %v2582_v3 = vadd.f32 1.0, %v11574_v4 }
 0x61d   :  { %v2588_v6 = vadd.f32 1.0, %v11576_v17  ;;  %v11578_v37 = vpop.eup %11577 }
 0x61e   :  { %11579 = vrcp.f32 %v2582_v3 }
 0x61f   :  { %11581 = vrcp.f32 %v2588_v6 }
 0x628   :  { %v11580_v57 = vpop.eup %11579 }
 0x629   :  { %v11582_v53 = vpop.eup %11581  ;;  %v2599_v32 = vmul.f32 %v11580_v57, %v11578_v37 }
 0x62a   :  { %v2598_v56 = vmul.f32 %v11582_v53, %v13211_v48 }
 0x62c   :  { %v13339_v14 = vadd.f32 %v2599_v32, %v2598_v56  ;;  %v2669_v36 = vpop.f32.mrb[12].mxu1  ;;  %v2740_v7 = vpop.f32.mrb[14].mxu0 }
 0x62d   :  { %v2749_v21 = vrot.slane %v2669_v36, 6  ;;  %v2671_v41 = vpop.f32.mrb[13].mxu1  ;;  %v2742_v10 = vpop.f32.mrb[15].mxu0  ;;  %v2751_v37 = vrot.slane %v2740_v7, 6 }
 0x62e   :  { %v2750_v22 = vrot.slane %v2671_v41, 6  ;;  %v2752_v6 = vrot.slane %v2742_v10, 6  ;;  %v2781_v10 = vrot.slane %v13218_v45, 7  ;;  %v14989_v45 = vld [vmem:[#allocation130_spill] sm:$0xff] }
 0x62f   :  { %v2757_v4 = vadd.f32 %v2749_v21, %v14923_v30  ;;  %v2759_v32 = vadd.f32 %v2751_v37, %v14926_v24  ;;  %v11374_v37 = vadd.f32 %v2572_v26, %v13223_v0  ;;  %v14990_v26 = vld [vmem:[#allocation131_spill] sm:$0xff] }
 0x630   :  { %v2758_v17 = vadd.f32 %v2750_v22, %v14924_v33  ;;  %v2760_v57 = vadd.f32 %v2752_v6, %v14925_v60 }
 0x631   :  { %v8290_v3 = vmul.f32 -1.442695, %v2757_v4 }
 0x632   :  { %v8291_v31 = vmul.f32 -1.442695, %v2758_v17  ;;  %v8292_v56 = vmul.f32 -1.442695, %v2760_v57 }
 0x633   :  { %11583 = vpow2.f32 %v8290_v3 }
 0x634   :  { %11585 = vpow2.f32 %v8291_v31 }
 0x635   :  { %11587 = vpow2.f32 %v8292_v56 }
 0x636   :  { %11589 = vtanh.f32 %v2759_v32 }
 0x63d   :  { %v11584_v48 = vpop.eup %11583 }
 0x63e   :  { %v11586_v53 = vpop.eup %11585  ;;  %v2764_v36 = vadd.f32 1.0, %v11584_v48  ;;  %v8289_v48 = vmul.f32 -1.442695, %v11374_v37  ;;  %v14997_v37 = vld [vmem:[#allocation69_spill] sm:$0xff] }
 0x63f   :  { %v2770_v41 = vadd.f32 1.0, %v11586_v53  ;;  %v11588_v22 = vpop.eup %11587 }
 0x640   :  { %11591 = vrcp.f32 %v2764_v36  ;;  %v11590_v21 = vpop.eup %11589  ;;  %v2777_v31 = vadd.f32 1.0, %v11588_v22  ;;  %v14991_v36 = vld [vmem:[#allocation132_spill] sm:$0xff] }
 0x641   :  { %11593 = vrcp.f32 %v2770_v41  ;;  %v14992_v41 = vld [vmem:[#allocation133_spill] sm:$0xff] }
 0x642   :  { %11595 = vrcp.f32 %v2777_v31  ;;  %v14994_v31 = vld [vmem:[#allocation66_spill] sm:$0xff] }
 0x64a   :  { %v11592_v4 = vpop.eup %11591 }
 0x64b   :  { %v11594_v17 = vpop.eup %11593  ;;  %v2784_v3 = vmul.f32 %v11592_v4, %v11590_v21  ;;  %v14993_v4 = vld [vmem:[#allocation143_spill] sm:$0xff] }
 0x64c   :  { %v2783_v7 = vmul.f32 %v11594_v17, %v2781_v10  ;;  %v11596_v57 = vpop.eup %11595 }
 0x64e   :  { %v13346_v6 = vadd.f32 %v2784_v3, %v2783_v7  ;;  %v14995_v7 = vld [vmem:[#allocation67_spill] sm:$0xff] }
 0x650   :  { %11597 = vtanh.f32 %v13346_v6 }
 0x651   :  { %11599 = vpow2.f32 %v8289_v48  ;;  %v15000_v48 = vld [vmem:[#allocation72_spill] sm:$0xff] }
 0x652   :  { %11601 = vtanh.f32 %v13339_v14 }
 0x65a   :  { %v11598_v56 = vpop.eup %11597 }
 0x65b   :  { %v2787_v32 = vmul.f32 %v11598_v56, %v11596_v57  ;;  %v11600_v22 = vpop.eup %11599  ;;  %v14996_v57 = vld [vmem:[#allocation68_spill] sm:$0xff]  ;;  %v14998_v56 = vld [vmem:[#allocation70_spill] sm:$0xff] }
 0x65c   :  { %v2595_v21 = vadd.f32 1.0, %v11600_v22  ;;  %v11602_v10 = vpop.eup %11601  ;;  %v15001_v22 = vld [vmem:[#allocation73_spill] sm:$0xff] }
 0x65d   :  { %v13350_v53 = vrot.slane %v2787_v32, 2  ;;  %v14999_v32 = vld [vmem:[#allocation71_spill] sm:$0xff] }
 0x65e   :  { %11603 = vrcp.f32 %v2595_v21  ;;  %v15002_v21 = vld [vmem:[#allocation74_spill] sm:$0xff] }
 0x65f   :  { %2856 = vmatmul.mubr.f32.vlgmr.msra.gmra.mrb[14].mxu1 %v13350_v53  ;;  %2927 = vmatmul.mubr.f32.vlgmr.msra.gmra.mrb[16].mxu0 %v13350_v53 }
 0x660   :  { %9842 = vmatpush1.bf16.msra.mxu1 %v14929_v43  ;;  %9874 = vmatpush1.bf16.msra.mxu0 %v14930_v5 }
 0x661   :  { %9844 = vmatprep.subr.bf16.mxu1 %v14931_v63  ;;  %9876 = vmatprep.subr.bf16.mxu0 %v14932_v62 }
 0x662   :  { %2997 = vmatprep.mubr.f32.mxu1 %v14879_v58  ;;  %3068 = vmatprep.mubr.f32.mxu0 %v14879_v58 }
 0x664   :  { %9846 = vmatpush1.bf16.msra.mxu1 %v14933_v40  ;;  %9878 = vmatpush1.bf16.msra.mxu0 %v14989_v45 }
 0x665   :  { %9848 = vmatprep.subr.bf16.mxu1 %v14990_v26  ;;  %9880 = vmatprep.subr.bf16.mxu0 %v14991_v36 }
 0x668   :  { %9850 = vmatpush1.bf16.msra.mxu1 %v14992_v41  ;;  %9882 = vmatpush1.bf16.msra.mxu0 %v14938_v29  ;;  %v11604_v17 = vpop.eup %11603 }
 0x669   :  { %9852 = vmatprep.subr.bf16.mxu1 %v14939_v54  ;;  %9884 = vmatprep.subr.bf16.mxu0 %v14940_v61  ;;  %v2602_v3 = vmul.f32 %v11604_v17, %v11602_v10  ;;  %v15003_v10 = vld [vmem:[#allocation75_spill] sm:$0xff]  ;;  %v15004_v17 = vld [vmem:[#allocation76_spill] sm:$0xff] }
 0x66c   :  { %9854 = vmatpush1.bf16.msra.mxu1 %v14941_v1  ;;  %9886 = vmatpush1.bf16.msra.mxu0 %v14942_v12 }
 0x66d   :  { %9856 = vmatprep.subr.bf16.mxu1 %v14943_v59  ;;  %9888 = vmatprep.subr.bf16.mxu0 %v14944_v34 }
 0x670   :  { %9858 = vmatpush1.bf16.msra.mxu1 %v14945_v23  ;;  %9890 = vmatpush1.bf16.msra.mxu0 %v14946_v20 }
 0x671   :  { %9860 = vmatprep.subr.bf16.mxu1 %v14993_v4  ;;  %9892 = vmatprep.subr.bf16.mxu0 %v13084_v44 }
 0x674   :  { %9862 = vmatpush1.bf16.msra.mxu1 %v13088_v55  ;;  %9894 = vmatpush1.bf16.msra.mxu0 %v13090_v13 }
 0x675   :  { %9864 = vmatprep.subr.bf16.mxu1 %v13094_v42  ;;  %9896 = vmatprep.subr.bf16.mxu0 %v13096_v47 }
 0x678   :  { %9866 = vmatpush1.bf16.msra.mxu1 %v13100_v25  ;;  %9898 = vmatpush1.bf16.msra.mxu0 %v13102_v2 }
 0x679   :  { %9868 = vmatprep.subr.bf16.mxu1 %v13106_v19  ;;  %9900 = vmatprep.subr.bf16.mxu0 %v13108_v49 }
 0x67c   :  { %9870 = vmatpush1.bf16.msra.mxu1 %v13112_v11  ;;  %9902 = vmatpush1.bf16.msra.mxu0 %v13114_v9 }
 0x67d   :  { %9904 = vmatprep.subr.bf16.mxu1 %v12743_v15  ;;  %9936 = vmatprep.subr.bf16.mxu0 %v12745_v16 }
 0x67f   :  { %2998 = vmatmul.mubr.f32.vlgmr.msra.gmra.mrb[14].mxu1 %v2602_v3  ;;  %3069 = vmatmul.mubr.f32.vlgmr.msra.gmra.mrb[16].mxu0 %v2602_v3  ;;  %v15005_v3 = vld [vmem:[#allocation77_spill] sm:$0xff] }
 0x680   :  { %9906 = vmatpush1.bf16.msra.mxu1 %v12753_v50  ;;  %9938 = vmatpush1.bf16.msra.mxu0 %v12755_v46 }
 0x681   :  { %9908 = vmatprep.subr.bf16.mxu1 %v12761_v27  ;;  %9940 = vmatprep.subr.bf16.mxu0 %v12763_v28 }
 0x682   :  { %3167 = vmatprep.mubr.f32.mxu1 %v14879_v58  ;;  %3238 = vmatprep.mubr.f32.mxu0 %v14879_v58 }
 0x684   :  { %9910 = vmatpush1.bf16.msra.mxu1 %v12773_v35  ;;  %9942 = vmatpush1.bf16.msra.mxu0 %v12775_v18 }
 0x685   :  { %9912 = vmatprep.subr.bf16.mxu1 %v12781_v38  ;;  %9944 = vmatprep.subr.bf16.mxu0 %v12783_v39 }
 0x688   :  { %9914 = vmatpush1.bf16.msra.mxu1 %v12795_v51  ;;  %9946 = vmatpush1.bf16.msra.mxu0 %v12797_v52 }
 0x689   :  { %9916 = vmatprep.subr.bf16.mxu1 %v14994_v31  ;;  %9948 = vmatprep.subr.bf16.mxu0 %v14995_v7  ;;  %v15006_v7 = vld [vmem:[#allocation78_spill] sm:$0xff] }
 0x68c   :  { %9918 = vmatpush1.bf16.msra.mxu1 %v14996_v57  ;;  %9950 = vmatpush1.bf16.msra.mxu0 %v14997_v37  ;;  %v15007_v57 = vld [vmem:[#allocation79_spill] sm:$0xff]  ;;  %v15008_v37 = vld [vmem:[#allocation80_spill] sm:$0xff] }
 0x68d   :  { %9920 = vmatprep.subr.bf16.mxu1 %v14998_v56  ;;  %9952 = vmatprep.subr.bf16.mxu0 %v14999_v32  ;;  %v15009_v56 = vld [vmem:[#allocation81_spill] sm:$0xff]  ;;  %v15010_v32 = vld [vmem:[#allocation82_spill] sm:$0xff] }
 0x690   :  { %9922 = vmatpush1.bf16.msra.mxu1 %v15000_v48  ;;  %9954 = vmatpush1.bf16.msra.mxu0 %v15001_v22  ;;  %v15011_v48 = vld [vmem:[#allocation83_spill] sm:$0xff]  ;;  %v15012_v22 = vld [vmem:[#allocation84_spill] sm:$0xff] }
 0x691   :  { %9924 = vmatprep.subr.bf16.mxu1 %v15002_v21  ;;  %9956 = vmatprep.subr.bf16.mxu0 %v15003_v10  ;;  %v15013_v21 = vld [vmem:[#allocation85_spill] sm:$0xff]  ;;  %v15014_v10 = vld [vmem:[#allocation86_spill] sm:$0xff] }
 0x694   :  { %9926 = vmatpush1.bf16.msra.mxu1 %v15004_v17  ;;  %9958 = vmatpush1.bf16.msra.mxu0 %v15005_v3  ;;  %v15015_v17 = vld [vmem:[#allocation87_spill] sm:$0xff]  ;;  %v15048_v3 = vld [vmem:[#allocation144_spill] sm:$0xff] }
 0x695   :  { %9928 = vmatprep.subr.bf16.mxu1 %v15006_v7  ;;  %9960 = vmatprep.subr.bf16.mxu0 %v15007_v57  ;;  %v15016_v57 = vld [vmem:[#allocation88_spill] sm:$0xff]  ;;  %v15030_v7 = vld [vmem:[#allocation102_spill] sm:$0xff] }
 0x698   :  { %9930 = vmatpush1.bf16.msra.mxu1 %v15008_v37  ;;  %9962 = vmatpush1.bf16.msra.mxu0 %v15009_v56  ;;  %v15017_v37 = vld [vmem:[#allocation89_spill] sm:$0xff]  ;;  %v15018_v56 = vld [vmem:[#allocation90_spill] sm:$0xff] }
 0x699   :  { %9932 = vmatprep.subr.bf16.mxu1 %v15010_v32  ;;  %9964 = vmatprep.subr.bf16.mxu0 %v15011_v48  ;;  %v15019_v32 = vld [vmem:[#allocation91_spill] sm:$0xff]  ;;  %v15029_v48 = vld [vmem:[#allocation101_spill] sm:$0xff] }
 0x69c   :  { %9934 = vmatpush1.bf16.msra.mxu1 %v15012_v22  ;;  %9966 = vmatpush1.bf16.msra.mxu0 %v15013_v21  ;;  %v15020_v21 = vld [vmem:[#allocation92_spill] sm:$0xff]  ;;  %v15023_v22 = vld [vmem:[#allocation95_spill] sm:$0xff] }
 0x69d   :  { %9968 = vmatprep.subr.bf16.mxu1 %v15014_v10  ;;  %10000 = vmatprep.subr.bf16.mxu0 %v15015_v17  ;;  %v15021_v10 = vld [vmem:[#allocation93_spill] sm:$0xff]  ;;  %v15022_v17 = vld [vmem:[#allocation94_spill] sm:$0xff] }
 0x69f   :  { %3168 = vmatmul.mubr.f32.vlgmr.msra.gmra.mrb[16].mxu1 %v13350_v53  ;;  %3239 = vmatmul.mubr.f32.vlgmr.msra.gmra.mrb[18].mxu0 %v13350_v53  ;;  %v15024_v53 = vld [vmem:[#allocation96_spill] sm:$0xff] }
 0x6a0   :  { %9970 = vmatpush1.bf16.msra.mxu1 %v15016_v57  ;;  %10002 = vmatpush1.bf16.msra.mxu0 %v15017_v37  ;;  %v15025_v57 = vld [vmem:[#allocation97_spill] sm:$0xff]  ;;  %v15026_v37 = vld [vmem:[#allocation98_spill] sm:$0xff] }
 0x6a1   :  { %9972 = vmatprep.subr.bf16.mxu1 %v15018_v56  ;;  %10004 = vmatprep.subr.bf16.mxu0 %v15019_v32  ;;  %v15027_v56 = vld [vmem:[#allocation99_spill] sm:$0xff]  ;;  %v15028_v32 = vld [vmem:[#allocation100_spill] sm:$0xff] }
 0x6a2   :  { %3355 = vmatprep.mubr.f32.mxu1 %v14879_v58  ;;  %3426 = vmatprep.mubr.f32.mxu0 %v14879_v58 }
 0x6a4   :  { %9974 = vmatpush1.bf16.msra.mxu1 %v15020_v21  ;;  %10006 = vmatpush1.bf16.msra.mxu0 %v15021_v10  ;;  %v15031_v21 = vld [vmem:[#allocation103_spill] sm:$0xff]  ;;  %v15032_v10 = vld [vmem:[#allocation104_spill] sm:$0xff] }
 0x6a5   :  { %9976 = vmatprep.subr.bf16.mxu1 %v15022_v17  ;;  %10008 = vmatprep.subr.bf16.mxu0 %v15023_v22  ;;  %v15033_v17 = vld [vmem:[#allocation105_spill] sm:$0xff]  ;;  %v15034_v22 = vld [vmem:[#allocation106_spill] sm:$0xff] }
 0x6a8   :  { %9978 = vmatpush1.bf16.msra.mxu1 %v15024_v53  ;;  %10010 = vmatpush1.bf16.msra.mxu0 %v15025_v57  ;;  %v15035_v53 = vld [vmem:[#allocation107_spill] sm:$0xff]  ;;  %v15036_v57 = vld [vmem:[#allocation108_spill] sm:$0xff] }
 0x6a9   :  { %9980 = vmatprep.subr.bf16.mxu1 %v15026_v37  ;;  %10012 = vmatprep.subr.bf16.mxu0 %v15027_v56  ;;  %v15037_v37 = vld [vmem:[#allocation109_spill] sm:$0xff]  ;;  %v15038_v56 = vld [vmem:[#allocation110_spill] sm:$0xff] }
 0x6ac   :  { %9982 = vmatpush1.bf16.msra.mxu1 %v15028_v32  ;;  %10014 = vmatpush1.bf16.msra.mxu0 %v15029_v48  ;;  %v15039_v32 = vld [vmem:[#allocation111_spill] sm:$0xff]  ;;  %v15040_v48 = vld [vmem:[#allocation112_spill] sm:$0xff] }
 0x6ad   :  { %9984 = vmatprep.subr.bf16.mxu1 %v15030_v7  ;;  %10016 = vmatprep.subr.bf16.mxu0 %v15031_v21  ;;  %v15041_v7 = vld [vmem:[#allocation113_spill] sm:$0xff]  ;;  %v15042_v21 = vld [vmem:[#allocation114_spill] sm:$0xff] }
 0x6b0   :  { %9986 = vmatpush1.bf16.msra.mxu1 %v15032_v10  ;;  %10018 = vmatpush1.bf16.msra.mxu0 %v15033_v17  ;;  %v15043_v10 = vld [vmem:[#allocation115_spill] sm:$0xff]  ;;  %v15044_v17 = vld [vmem:[#allocation116_spill] sm:$0xff] }
 0x6b1   :  { %9988 = vmatprep.subr.bf16.mxu1 %v15034_v22  ;;  %10020 = vmatprep.subr.bf16.mxu0 %v15035_v53  ;;  %v15045_v22 = vld [vmem:[#allocation117_spill] sm:$0xff]  ;;  %v15046_v53 = vld [vmem:[#allocation118_spill] sm:$0xff] }
 0x6b4   :  { %9990 = vmatpush1.bf16.msra.mxu1 %v15036_v57  ;;  %10022 = vmatpush1.bf16.msra.mxu0 %v15037_v37  ;;  %v15047_v57 = vld [vmem:[#allocation119_spill] sm:$0xff] }
 0x6b5   :  { %9992 = vmatprep.subr.bf16.mxu1 %v15038_v56  ;;  %10024 = vmatprep.subr.bf16.mxu0 %v15039_v32 }
 0x6b8   :  { %9994 = vmatpush1.bf16.msra.mxu1 %v15040_v48  ;;  %10026 = vmatpush1.bf16.msra.mxu0 %v15041_v7 }
 0x6b9   :  { %9996 = vmatprep.subr.bf16.mxu1 %v15042_v21  ;;  %10028 = vmatprep.subr.bf16.mxu0 %v15043_v10  ;;  %v15049_v10 = vld [vmem:[#allocation146_spill] sm:$0xff] }
 0x6bc   :  { %9998 = vmatpush1.bf16.msra.mxu1 %v15044_v17  ;;  %10030 = vmatpush1.bf16.msra.mxu0 %v15045_v22 }
 0x6bd   :  { %10032 = vmatprep.subr.bf16.mxu1 %v15046_v53  ;;  %10064 = vmatprep.subr.bf16.mxu0 %v15047_v57 }
 0x752   :  { %v2999_v37 = vpop.f32.mrb[14].mxu1  ;;  %v3070_v56 = vpop.f32.mrb[16].mxu0 }
 0x753   :  { %v11375_v32 = vadd.f32 %v2999_v37, %v15048_v3  ;;  %v3001_v31 = vpop.f32.mrb[15].mxu1  ;;  %v3072_v48 = vpop.f32.mrb[17].mxu0  ;;  %v11377_v17 = vadd.f32 %v3070_v56, %v15049_v10 }
 0x754   :  { %v11376_v7 = vadd.f32 %v3001_v31, %v14987_v8 }
 0x755   :  { %v8293_v52 = vmul.f32 -1.442695, %v11375_v32 }
 0x756   :  { %v8294_v21 = vmul.f32 -1.442695, %v11376_v7 }
 0x757   :  { %11605 = vpow2.f32 %v8293_v52 }
 0x758   :  { %11607 = vpow2.f32 %v8294_v21 }
 0x759   :  { %11609 = vtanh.f32 %v11377_v17 }
 0x761   :  { %v11606_v51 = vpop.eup %11605 }
 0x762   :  { %v11608_v22 = vpop.eup %11607  ;;  %v3082_v39 = vadd.f32 1.0, %v11606_v51 }
 0x763   :  { %v3088_v53 = vadd.f32 1.0, %v11608_v22  ;;  %v11610_v57 = vpop.eup %11609 }
 0x764   :  { %11611 = vrcp.f32 %v3082_v39 }
 0x765   :  { %11613 = vrcp.f32 %v3088_v53 }
 0x76e   :  { %v11612_v38 = vpop.eup %11611 }
 0x76f   :  { %v11614_v37 = vpop.eup %11613  ;;  %v3099_v3 = vmul.f32 %v11612_v38, %v11610_v57 }
 0x770   :  { %v3098_v18 = vmul.f32 %v11614_v37, %v13339_v14 }
 0x772   :  { %v13463_v31 = vadd.f32 %v3099_v3, %v3098_v18  ;;  %v3169_v7 = vpop.f32.mrb[16].mxu1  ;;  %v3240_v52 = vpop.f32.mrb[18].mxu0 }
 0x773   :  { %v3249_v32 = vrot.slane %v3169_v7, 5  ;;  %v3171_v21 = vpop.f32.mrb[17].mxu1  ;;  %v3242_v56 = vpop.f32.mrb[19].mxu0  ;;  %v3251_v14 = vrot.slane %v3240_v52, 5 }
 0x774   :  { %v3250_v10 = vrot.slane %v3171_v21, 5  ;;  %v3252_v53 = vrot.slane %v3242_v56, 5  ;;  %v3281_v56 = vrot.slane %v13346_v6, 7 }
 0x775   :  { %v3257_v51 = vadd.f32 %v3249_v32, %v14923_v30  ;;  %v3259_v57 = vadd.f32 %v3251_v14, %v14926_v24  ;;  %v11378_v14 = vadd.f32 %v3072_v48, %v13223_v0 }
 0x776   :  { %v3258_v22 = vadd.f32 %v3250_v10, %v14924_v33  ;;  %v3260_v38 = vadd.f32 %v3252_v53, %v14925_v60 }
 0x777   :  { %v8296_v39 = vmul.f32 -1.442695, %v3257_v51 }
 0x778   :  { %v8297_v17 = vmul.f32 -1.442695, %v3258_v22  ;;  %v8298_v18 = vmul.f32 -1.442695, %v3260_v38 }
 0x779   :  { %11615 = vpow2.f32 %v8296_v39 }
 0x77a   :  { %11617 = vpow2.f32 %v8297_v17 }
 0x77b   :  { %11619 = vpow2.f32 %v8298_v18 }
 0x77c   :  { %11621 = vtanh.f32 %v3259_v57 }
 0x783   :  { %v11616_v3 = vpop.eup %11615 }
 0x784   :  { %v11618_v37 = vpop.eup %11617  ;;  %v3264_v7 = vadd.f32 1.0, %v11616_v3  ;;  %v8295_v3 = vmul.f32 -1.442695, %v11378_v14  ;;  %v15058_v14 = vld [vmem:[#allocation69_spill] sm:$0xff] }
 0x785   :  { %v3270_v21 = vadd.f32 1.0, %v11618_v37  ;;  %v11620_v10 = vpop.eup %11619 }
 0x786   :  { %11623 = vrcp.f32 %v3264_v7  ;;  %v11622_v32 = vpop.eup %11621  ;;  %v3277_v17 = vadd.f32 1.0, %v11620_v10 }
 0x787   :  { %11625 = vrcp.f32 %v3270_v21 }
 0x788   :  { %11627 = vrcp.f32 %v3277_v17  ;;  %v15055_v17 = vld [vmem:[#allocation66_spill] sm:$0xff] }
 0x790   :  { %v11624_v51 = vpop.eup %11623 }
 0x791   :  { %v11626_v22 = vpop.eup %11625  ;;  %v3284_v39 = vmul.f32 %v11624_v51, %v11622_v32  ;;  %v15050_v32 = vld [vmem:[#allocation61_spill] sm:$0xff]  ;;  %v15051_v51 = vld [vmem:[#allocation62_spill] sm:$0xff] }
 0x792   :  { %v3283_v52 = vmul.f32 %v11626_v22, %v3281_v56  ;;  %v11628_v38 = vpop.eup %11627  ;;  %v15052_v56 = vld [vmem:[#allocation63_spill] sm:$0xff]  ;;  %v15053_v22 = vld [vmem:[#allocation64_spill] sm:$0xff] }
 0x794   :  { %v13470_v53 = vadd.f32 %v3284_v39, %v3283_v52  ;;  %v15054_v39 = vld [vmem:[#allocation65_spill] sm:$0xff]  ;;  %v15056_v52 = vld [vmem:[#allocation67_spill] sm:$0xff] }
 0x796   :  { %11629 = vtanh.f32 %v13470_v53 }
 0x797   :  { %11631 = vpow2.f32 %v8295_v3  ;;  %v15061_v3 = vld [vmem:[#allocation72_spill] sm:$0xff] }
 0x798   :  { %11633 = vtanh.f32 %v13463_v31 }
 0x7a0   :  { %v11630_v18 = vpop.eup %11629 }
 0x7a1   :  { %v3287_v57 = vmul.f32 %v11630_v18, %v11628_v38  ;;  %v11632_v6 = vpop.eup %11631  ;;  %v15057_v38 = vld [vmem:[#allocation68_spill] sm:$0xff]  ;;  %v15059_v18 = vld [vmem:[#allocation70_spill] sm:$0xff] }
 0x7a2   :  { %v3095_v48 = vadd.f32 1.0, %v11632_v6  ;;  %v11634_v7 = vpop.eup %11633  ;;  %v15062_v6 = vld [vmem:[#allocation73_spill] sm:$0xff] }
 0x7a3   :  { %v13474_v37 = vrot.slane %v3287_v57, 3  ;;  %v15060_v57 = vld [vmem:[#allocation71_spill] sm:$0xff] }
 0x7a4   :  { %11635 = vrcp.f32 %v3095_v48  ;;  %v15063_v48 = vld [vmem:[#allocation74_spill] sm:$0xff] }
 0x7a5   :  { %3356 = vmatmul.mubr.f32.vlgmr.msra.gmra.mrb[18].mxu1 %v13474_v37  ;;  %3427 = vmatmul.mubr.f32.vlgmr.msra.gmra.mrb[20].mxu0 %v13474_v37 }
 0x7a6   :  { %10034 = vmatpush1.bf16.msra.mxu1 %v14929_v43  ;;  %10066 = vmatpush1.bf16.msra.mxu0 %v14930_v5 }
 0x7a7   :  { %10036 = vmatprep.subr.bf16.mxu1 %v14931_v63  ;;  %10068 = vmatprep.subr.bf16.mxu0 %v14932_v62 }
 0x7a8   :  { %3497 = vmatprep.mubr.f32.mxu1 %v14879_v58  ;;  %3568 = vmatprep.mubr.f32.mxu0 %v14879_v58 }
 0x7aa   :  { %10038 = vmatpush1.bf16.msra.mxu1 %v14933_v40  ;;  %10070 = vmatpush1.bf16.msra.mxu0 %v14989_v45 }
 0x7ab   :  { %10040 = vmatprep.subr.bf16.mxu1 %v14990_v26  ;;  %10072 = vmatprep.subr.bf16.mxu0 %v14991_v36 }
 0x7ae   :  { %10042 = vmatpush1.bf16.msra.mxu1 %v14992_v41  ;;  %10074 = vmatpush1.bf16.msra.mxu0 %v14938_v29  ;;  %v11636_v21 = vpop.eup %11635 }
 0x7af   :  { %10044 = vmatprep.subr.bf16.mxu1 %v14939_v54  ;;  %10076 = vmatprep.subr.bf16.mxu0 %v14940_v61  ;;  %v3102_v10 = vmul.f32 %v11636_v21, %v11634_v7  ;;  %v15064_v7 = vld [vmem:[#allocation75_spill] sm:$0xff]  ;;  %v15065_v21 = vld [vmem:[#allocation76_spill] sm:$0xff] }
 0x7b2   :  { %10046 = vmatpush1.bf16.msra.mxu1 %v14941_v1  ;;  %10078 = vmatpush1.bf16.msra.mxu0 %v14942_v12 }
 0x7b3   :  { %10048 = vmatprep.subr.bf16.mxu1 %v14943_v59  ;;  %10080 = vmatprep.subr.bf16.mxu0 %v14944_v34 }
 0x7b6   :  { %10050 = vmatpush1.bf16.msra.mxu1 %v14945_v23  ;;  %10082 = vmatpush1.bf16.msra.mxu0 %v14946_v20 }
 0x7b7   :  { %10052 = vmatprep.subr.bf16.mxu1 %v14993_v4  ;;  %10084 = vmatprep.subr.bf16.mxu0 %v13084_v44 }
 0x7ba   :  { %10054 = vmatpush1.bf16.msra.mxu1 %v13088_v55  ;;  %10086 = vmatpush1.bf16.msra.mxu0 %v13090_v13 }
 0x7bb   :  { %10056 = vmatprep.subr.bf16.mxu1 %v13094_v42  ;;  %10088 = vmatprep.subr.bf16.mxu0 %v13096_v47 }
 0x7be   :  { %10058 = vmatpush1.bf16.msra.mxu1 %v13100_v25  ;;  %10090 = vmatpush1.bf16.msra.mxu0 %v13102_v2 }
 0x7bf   :  { %10060 = vmatprep.subr.bf16.mxu1 %v13106_v19  ;;  %10092 = vmatprep.subr.bf16.mxu0 %v13108_v49 }
 0x7c2   :  { %10062 = vmatpush1.bf16.msra.mxu1 %v13112_v11  ;;  %10094 = vmatpush1.bf16.msra.mxu0 %v13114_v9 }
 0x7c3   :  { %10096 = vmatprep.subr.bf16.mxu1 %v12743_v15  ;;  %10128 = vmatprep.subr.bf16.mxu0 %v12745_v16 }
 0x7c5   :  { %3498 = vmatmul.mubr.f32.vlgmr.msra.gmra.mrb[18].mxu1 %v3102_v10  ;;  %3569 = vmatmul.mubr.f32.vlgmr.msra.gmra.mrb[20].mxu0 %v3102_v10  ;;  %v15066_v10 = vld [vmem:[#allocation77_spill] sm:$0xff] }
 0x7c6   :  { %10098 = vmatpush1.bf16.msra.mxu1 %v12753_v50  ;;  %10130 = vmatpush1.bf16.msra.mxu0 %v12755_v46 }
 0x7c7   :  { %10100 = vmatprep.subr.bf16.mxu1 %v12761_v27  ;;  %10132 = vmatprep.subr.bf16.mxu0 %v12763_v28 }
 0x7c8   :  { %3667 = vmatprep.mubr.f32.mxu1 %v14879_v58  ;;  %3738 = vmatprep.mubr.f32.mxu0 %v14879_v58 }
 0x7ca   :  { %10102 = vmatpush1.bf16.msra.mxu1 %v12773_v35  ;;  %10134 = vmatpush1.bf16.msra.mxu0 %v15050_v32 }
 0x7cb   :  { %10104 = vmatprep.subr.bf16.mxu1 %v15051_v51  ;;  %10136 = vmatprep.subr.bf16.mxu0 %v15052_v56 }
 0x7ce   :  { %10106 = vmatpush1.bf16.msra.mxu1 %v15053_v22  ;;  %10138 = vmatpush1.bf16.msra.mxu0 %v15054_v39 }
 0x7cf   :  { %10108 = vmatprep.subr.bf16.mxu1 %v15055_v17  ;;  %10140 = vmatprep.subr.bf16.mxu0 %v15056_v52  ;;  %v15067_v52 = vld [vmem:[#allocation78_spill] sm:$0xff] }
 0x7d2   :  { %10110 = vmatpush1.bf16.msra.mxu1 %v15057_v38  ;;  %10142 = vmatpush1.bf16.msra.mxu0 %v15058_v14  ;;  %v15068_v38 = vld [vmem:[#allocation79_spill] sm:$0xff]  ;;  %v15069_v14 = vld [vmem:[#allocation80_spill] sm:$0xff] }
 0x7d3   :  { %10112 = vmatprep.subr.bf16.mxu1 %v15059_v18  ;;  %10144 = vmatprep.subr.bf16.mxu0 %v15060_v57  ;;  %v15070_v18 = vld [vmem:[#allocation81_spill] sm:$0xff]  ;;  %v15071_v57 = vld [vmem:[#allocation82_spill] sm:$0xff] }
 0x7d6   :  { %10114 = vmatpush1.bf16.msra.mxu1 %v15061_v3  ;;  %10146 = vmatpush1.bf16.msra.mxu0 %v15062_v6  ;;  %v15072_v3 = vld [vmem:[#allocation83_spill] sm:$0xff]  ;;  %v15073_v6 = vld [vmem:[#allocation84_spill] sm:$0xff] }
 0x7d7   :  { %10116 = vmatprep.subr.bf16.mxu1 %v15063_v48  ;;  %10148 = vmatprep.subr.bf16.mxu0 %v15064_v7  ;;  %v15074_v48 = vld [vmem:[#allocation85_spill] sm:$0xff]  ;;  %v15075_v7 = vld [vmem:[#allocation86_spill] sm:$0xff] }
 0x7da   :  { %10118 = vmatpush1.bf16.msra.mxu1 %v15065_v21  ;;  %10150 = vmatpush1.bf16.msra.mxu0 %v15066_v10  ;;  %v15076_v21 = vld [vmem:[#allocation87_spill] sm:$0xff]  ;;  %v15109_v10 = vld [vmem:[#allocation144_spill] sm:$0xff] }
 0x7db   :  { %10120 = vmatprep.subr.bf16.mxu1 %v15067_v52  ;;  %10152 = vmatprep.subr.bf16.mxu0 %v15068_v38  ;;  %v15077_v38 = vld [vmem:[#allocation88_spill] sm:$0xff]  ;;  %v15091_v52 = vld [vmem:[#allocation102_spill] sm:$0xff] }
 0x7de   :  { %10122 = vmatpush1.bf16.msra.mxu1 %v15069_v14  ;;  %10154 = vmatpush1.bf16.msra.mxu0 %v15070_v18  ;;  %v15078_v14 = vld [vmem:[#allocation89_spill] sm:$0xff]  ;;  %v15079_v18 = vld [vmem:[#allocation90_spill] sm:$0xff] }
 0x7df   :  { %10124 = vmatprep.subr.bf16.mxu1 %v15071_v57  ;;  %10156 = vmatprep.subr.bf16.mxu0 %v15072_v3  ;;  %v15080_v57 = vld [vmem:[#allocation91_spill] sm:$0xff]  ;;  %v15090_v3 = vld [vmem:[#allocation101_spill] sm:$0xff] }
 0x7e2   :  { %10126 = vmatpush1.bf16.msra.mxu1 %v15073_v6  ;;  %10158 = vmatpush1.bf16.msra.mxu0 %v15074_v48  ;;  %v15081_v48 = vld [vmem:[#allocation92_spill] sm:$0xff]  ;;  %v15084_v6 = vld [vmem:[#allocation95_spill] sm:$0xff] }
 0x7e3   :  { %10160 = vmatprep.subr.bf16.mxu1 %v15075_v7  ;;  %10192 = vmatprep.subr.bf16.mxu0 %v15076_v21  ;;  %v15082_v7 = vld [vmem:[#allocation93_spill] sm:$0xff]  ;;  %v15083_v21 = vld [vmem:[#allocation94_spill] sm:$0xff] }
 0x7e5   :  { %3668 = vmatmul.mubr.f32.vlgmr.msra.gmra.mrb[20].mxu1 %v13474_v37  ;;  %3739 = vmatmul.mubr.f32.vlgmr.msra.gmra.mrb[22].mxu0 %v13474_v37  ;;  %v15085_v37 = vld [vmem:[#allocation96_spill] sm:$0xff] }
 0x7e6   :  { %10162 = vmatpush1.bf16.msra.mxu1 %v15077_v38  ;;  %10194 = vmatpush1.bf16.msra.mxu0 %v15078_v14  ;;  %v15086_v38 = vld [vmem:[#allocation97_spill] sm:$0xff]  ;;  %v15087_v14 = vld [vmem:[#allocation98_spill] sm:$0xff] }
 0x7e7   :  { %10164 = vmatprep.subr.bf16.mxu1 %v15079_v18  ;;  %10196 = vmatprep.subr.bf16.mxu0 %v15080_v57  ;;  %v15088_v18 = vld [vmem:[#allocation99_spill] sm:$0xff]  ;;  %v15089_v57 = vld [vmem:[#allocation100_spill] sm:$0xff] }
 0x7e8   :  { %3855 = vmatprep.mubr.f32.mxu1 %v14879_v58  ;;  %3926 = vmatprep.mubr.f32.mxu0 %v14879_v58 }
 0x7ea   :  { %10166 = vmatpush1.bf16.msra.mxu1 %v15081_v48  ;;  %10198 = vmatpush1.bf16.msra.mxu0 %v15082_v7  ;;  %v15092_v48 = vld [vmem:[#allocation103_spill] sm:$0xff]  ;;  %v15093_v7 = vld [vmem:[#allocation104_spill] sm:$0xff] }
 0x7eb   :  { %10168 = vmatprep.subr.bf16.mxu1 %v15083_v21  ;;  %10200 = vmatprep.subr.bf16.mxu0 %v15084_v6  ;;  %v15094_v21 = vld [vmem:[#allocation105_spill] sm:$0xff]  ;;  %v15095_v6 = vld [vmem:[#allocation106_spill] sm:$0xff] }
 0x7ee   :  { %10170 = vmatpush1.bf16.msra.mxu1 %v15085_v37  ;;  %10202 = vmatpush1.bf16.msra.mxu0 %v15086_v38  ;;  %v15096_v37 = vld [vmem:[#allocation107_spill] sm:$0xff]  ;;  %v15097_v38 = vld [vmem:[#allocation108_spill] sm:$0xff] }
 0x7ef   :  { %10172 = vmatprep.subr.bf16.mxu1 %v15087_v14  ;;  %10204 = vmatprep.subr.bf16.mxu0 %v15088_v18  ;;  %v15098_v14 = vld [vmem:[#allocation109_spill] sm:$0xff]  ;;  %v15099_v18 = vld [vmem:[#allocation110_spill] sm:$0xff] }
 0x7f2   :  { %10174 = vmatpush1.bf16.msra.mxu1 %v15089_v57  ;;  %10206 = vmatpush1.bf16.msra.mxu0 %v15090_v3  ;;  %v15100_v57 = vld [vmem:[#allocation111_spill] sm:$0xff]  ;;  %v15101_v3 = vld [vmem:[#allocation112_spill] sm:$0xff] }
 0x7f3   :  { %10176 = vmatprep.subr.bf16.mxu1 %v15091_v52  ;;  %10208 = vmatprep.subr.bf16.mxu0 %v15092_v48  ;;  %v15102_v52 = vld [vmem:[#allocation113_spill] sm:$0xff]  ;;  %v15103_v48 = vld [vmem:[#allocation114_spill] sm:$0xff] }
 0x7f6   :  { %10178 = vmatpush1.bf16.msra.mxu1 %v15093_v7  ;;  %10210 = vmatpush1.bf16.msra.mxu0 %v15094_v21  ;;  %v15104_v7 = vld [vmem:[#allocation115_spill] sm:$0xff]  ;;  %v15105_v21 = vld [vmem:[#allocation116_spill] sm:$0xff] }
 0x7f7   :  { %10180 = vmatprep.subr.bf16.mxu1 %v15095_v6  ;;  %10212 = vmatprep.subr.bf16.mxu0 %v15096_v37  ;;  %v15106_v6 = vld [vmem:[#allocation117_spill] sm:$0xff]  ;;  %v15107_v37 = vld [vmem:[#allocation118_spill] sm:$0xff] }
 0x7fa   :  { %10182 = vmatpush1.bf16.msra.mxu1 %v15097_v38  ;;  %10214 = vmatpush1.bf16.msra.mxu0 %v15098_v14  ;;  %v15108_v38 = vld [vmem:[#allocation119_spill] sm:$0xff] }
 0x7fb   :  { %10184 = vmatprep.subr.bf16.mxu1 %v15099_v18  ;;  %10216 = vmatprep.subr.bf16.mxu0 %v15100_v57 }
 0x7fe   :  { %10186 = vmatpush1.bf16.msra.mxu1 %v15101_v3  ;;  %10218 = vmatpush1.bf16.msra.mxu0 %v15102_v52 }
 0x7ff   :  { %10188 = vmatprep.subr.bf16.mxu1 %v15103_v48  ;;  %10220 = vmatprep.subr.bf16.mxu0 %v15104_v7  ;;  %v15110_v7 = vld [vmem:[#allocation146_spill] sm:$0xff] }
 0x802   :  { %10190 = vmatpush1.bf16.msra.mxu1 %v15105_v21  ;;  %10222 = vmatpush1.bf16.msra.mxu0 %v15106_v6 }
 0x803   :  { %10224 = vmatprep.subr.bf16.mxu1 %v15107_v37  ;;  %10256 = vmatprep.subr.bf16.mxu0 %v15108_v38 }
 0x898   :  { %v3499_v14 = vpop.f32.mrb[18].mxu1  ;;  %v3570_v18 = vpop.f32.mrb[20].mxu0 }
 0x899   :  { %v11379_v57 = vadd.f32 %v3499_v14, %v15109_v10  ;;  %v3501_v17 = vpop.f32.mrb[19].mxu1  ;;  %v3572_v3 = vpop.f32.mrb[21].mxu0  ;;  %v11381_v21 = vadd.f32 %v3570_v18, %v15110_v7 }
 0x89a   :  { %v11380_v52 = vadd.f32 %v3501_v17, %v14987_v8 }
 0x89b   :  { %v8299_v39 = vmul.f32 -1.442695, %v11379_v57 }
 0x89c   :  { %v8300_v48 = vmul.f32 -1.442695, %v11380_v52 }
 0x89d   :  { %11637 = vpow2.f32 %v8299_v39 }
 0x89e   :  { %11639 = vpow2.f32 %v8300_v48 }
 0x89f   :  { %11641 = vtanh.f32 %v11381_v21 }
 0x8a7   :  { %v11638_v22 = vpop.eup %11637 }
 0x8a8   :  { %v11640_v6 = vpop.eup %11639  ;;  %v3582_v56 = vadd.f32 1.0, %v11638_v22 }
 0x8a9   :  { %v3588_v37 = vadd.f32 1.0, %v11640_v6  ;;  %v11642_v38 = vpop.eup %11641 }
 0x8aa   :  { %11643 = vrcp.f32 %v3582_v56 }
 0x8ab   :  { %11645 = vrcp.f32 %v3588_v37 }
 0x8b4   :  { %v11644_v51 = vpop.eup %11643 }
 0x8b5   :  { %v11646_v14 = vpop.eup %11645  ;;  %v3599_v10 = vmul.f32 %v11644_v51, %v11642_v38 }
 0x8b6   :  { %v3598_v32 = vmul.f32 %v11646_v14, %v13463_v31 }
 0x8b8   :  { %v13587_v17 = vadd.f32 %v3599_v10, %v3598_v32  ;;  %v3669_v52 = vpop.f32.mrb[20].mxu1  ;;  %v3740_v39 = vpop.f32.mrb[22].mxu0 }
 0x8b9   :  { %v3749_v57 = vrot.slane %v3669_v52, 4  ;;  %v3671_v48 = vpop.f32.mrb[21].mxu1  ;;  %v3742_v18 = vpop.f32.mrb[23].mxu0  ;;  %v3751_v31 = vrot.slane %v3740_v39, 4 }
 0x8ba   :  { %v3750_v7 = vrot.slane %v3671_v48, 4  ;;  %v3752_v37 = vrot.slane %v3742_v18, 4  ;;  %v3781_v18 = vrot.slane %v13470_v53, 7 }
 0x8bb   :  { %v3757_v22 = vadd.f32 %v3749_v57, %v14923_v30  ;;  %v3759_v38 = vadd.f32 %v3751_v31, %v14926_v24  ;;  %v11382_v31 = vadd.f32 %v3572_v3, %v13223_v0 }
 0x8bc   :  { %v3758_v6 = vadd.f32 %v3750_v7, %v14924_v33  ;;  %v3760_v51 = vadd.f32 %v3752_v37, %v14925_v60 }
 0x8bd   :  { %v8302_v56 = vmul.f32 -1.442695, %v3757_v22 }
 0x8be   :  { %v8303_v21 = vmul.f32 -1.442695, %v3758_v6  ;;  %v8304_v32 = vmul.f32 -1.442695, %v3760_v51 }
 0x8bf   :  { %11647 = vpow2.f32 %v8302_v56 }
 0x8c0   :  { %11649 = vpow2.f32 %v8303_v21 }
 0x8c1   :  { %11651 = vpow2.f32 %v8304_v32 }
 0x8c2   :  { %11653 = vtanh.f32 %v3759_v38 }
 0x8c9   :  { %v11648_v10 = vpop.eup %11647 }
 0x8ca   :  { %v11650_v14 = vpop.eup %11649  ;;  %v3764_v52 = vadd.f32 1.0, %v11648_v10  ;;  %v8301_v10 = vmul.f32 -1.442695, %v11382_v31  ;;  %v15119_v31 = vld [vmem:[#allocation69_spill] sm:$0xff] }
 0x8cb   :  { %v3770_v48 = vadd.f32 1.0, %v11650_v14  ;;  %v11652_v7 = vpop.eup %11651 }
 0x8cc   :  { %11655 = vrcp.f32 %v3764_v52  ;;  %v11654_v57 = vpop.eup %11653  ;;  %v3777_v21 = vadd.f32 1.0, %v11652_v7 }
 0x8cd   :  { %11657 = vrcp.f32 %v3770_v48 }
 0x8ce   :  { %11659 = vrcp.f32 %v3777_v21  ;;  %v15116_v21 = vld [vmem:[#allocation66_spill] sm:$0xff] }
 0x8d6   :  { %v11656_v22 = vpop.eup %11655 }
 0x8d7   :  { %v11658_v6 = vpop.eup %11657  ;;  %v3784_v56 = vmul.f32 %v11656_v22, %v11654_v57  ;;  %v15111_v57 = vld [vmem:[#allocation61_spill] sm:$0xff]  ;;  %v15112_v22 = vld [vmem:[#allocation62_spill] sm:$0xff] }
 0x8d8   :  { %v3783_v39 = vmul.f32 %v11658_v6, %v3781_v18  ;;  %v11660_v51 = vpop.eup %11659  ;;  %v15113_v18 = vld [vmem:[#allocation63_spill] sm:$0xff]  ;;  %v15114_v6 = vld [vmem:[#allocation64_spill] sm:$0xff] }
 0x8da   :  { %v13594_v37 = vadd.f32 %v3784_v56, %v3783_v39  ;;  %v15115_v56 = vld [vmem:[#allocation65_spill] sm:$0xff]  ;;  %v15117_v39 = vld [vmem:[#allocation67_spill] sm:$0xff] }
 0x8dc   :  { %11661 = vtanh.f32 %v13594_v37 }
 0x8dd   :  { %11663 = vpow2.f32 %v8301_v10  ;;  %v15122_v10 = vld [vmem:[#allocation72_spill] sm:$0xff] }
 0x8de   :  { %11665 = vtanh.f32 %v13587_v17 }
 0x8e6   :  { %v11662_v32 = vpop.eup %11661 }
 0x8e7   :  { %v3787_v38 = vmul.f32 %v11662_v32, %v11660_v51  ;;  %v11664_v53 = vpop.eup %11663  ;;  %v15118_v51 = vld [vmem:[#allocation68_spill] sm:$0xff]  ;;  %v15120_v32 = vld [vmem:[#allocation70_spill] sm:$0xff] }
 0x8e8   :  { %v3595_v3 = vadd.f32 1.0, %v11664_v53  ;;  %v11666_v52 = vpop.eup %11665  ;;  %v15123_v53 = vld [vmem:[#allocation73_spill] sm:$0xff] }
 0x8e9   :  { %v13598_v14 = vrot.slane %v3787_v38, 4  ;;  %v15121_v38 = vld [vmem:[#allocation71_spill] sm:$0xff] }
 0x8ea   :  { %11667 = vrcp.f32 %v3595_v3  ;;  %v15124_v3 = vld [vmem:[#allocation74_spill] sm:$0xff] }
 0x8eb   :  { %3856 = vmatmul.mubr.f32.vlgmr.msra.gmra.mrb[22].mxu1 %v13598_v14  ;;  %3927 = vmatmul.mubr.f32.vlgmr.msra.gmra.mrb[24].mxu0 %v13598_v14 }
 0x8ec   :  { %10226 = vmatpush1.bf16.msra.mxu1 %v14929_v43  ;;  %10258 = vmatpush1.bf16.msra.mxu0 %v14930_v5 }
 0x8ed   :  { %10228 = vmatprep.subr.bf16.mxu1 %v14931_v63  ;;  %10260 = vmatprep.subr.bf16.mxu0 %v14932_v62 }
 0x8ee   :  { %3997 = vmatprep.mubr.f32.mxu1 %v14879_v58  ;;  %4068 = vmatprep.mubr.f32.mxu0 %v14879_v58 }
 0x8f0   :  { %10230 = vmatpush1.bf16.msra.mxu1 %v14933_v40  ;;  %10262 = vmatpush1.bf16.msra.mxu0 %v14989_v45 }
 0x8f1   :  { %10232 = vmatprep.subr.bf16.mxu1 %v14990_v26  ;;  %10264 = vmatprep.subr.bf16.mxu0 %v14991_v36 }
 0x8f4   :  { %10234 = vmatpush1.bf16.msra.mxu1 %v14992_v41  ;;  %10266 = vmatpush1.bf16.msra.mxu0 %v14938_v29  ;;  %v11668_v48 = vpop.eup %11667 }
 0x8f5   :  { %10236 = vmatprep.subr.bf16.mxu1 %v14939_v54  ;;  %10268 = vmatprep.subr.bf16.mxu0 %v14940_v61  ;;  %v3602_v7 = vmul.f32 %v11668_v48, %v11666_v52  ;;  %v15125_v52 = vld [vmem:[#allocation75_spill] sm:$0xff]  ;;  %v15126_v48 = vld [vmem:[#allocation76_spill] sm:$0xff] }
 0x8f8   :  { %10238 = vmatpush1.bf16.msra.mxu1 %v14941_v1  ;;  %10270 = vmatpush1.bf16.msra.mxu0 %v14942_v12 }
 0x8f9   :  { %10240 = vmatprep.subr.bf16.mxu1 %v14943_v59  ;;  %10272 = vmatprep.subr.bf16.mxu0 %v14944_v34 }
 0x8fc   :  { %10242 = vmatpush1.bf16.msra.mxu1 %v14945_v23  ;;  %10274 = vmatpush1.bf16.msra.mxu0 %v14946_v20 }
 0x8fd   :  { %10244 = vmatprep.subr.bf16.mxu1 %v14993_v4  ;;  %10276 = vmatprep.subr.bf16.mxu0 %v13084_v44 }
 0x900   :  { %10246 = vmatpush1.bf16.msra.mxu1 %v13088_v55  ;;  %10278 = vmatpush1.bf16.msra.mxu0 %v13090_v13 }
 0x901   :  { %10248 = vmatprep.subr.bf16.mxu1 %v13094_v42  ;;  %10280 = vmatprep.subr.bf16.mxu0 %v13096_v47 }
 0x904   :  { %10250 = vmatpush1.bf16.msra.mxu1 %v13100_v25  ;;  %10282 = vmatpush1.bf16.msra.mxu0 %v13102_v2 }
 0x905   :  { %10252 = vmatprep.subr.bf16.mxu1 %v13106_v19  ;;  %10284 = vmatprep.subr.bf16.mxu0 %v13108_v49 }
 0x908   :  { %10254 = vmatpush1.bf16.msra.mxu1 %v13112_v11  ;;  %10286 = vmatpush1.bf16.msra.mxu0 %v13114_v9 }
 0x909   :  { %10288 = vmatprep.subr.bf16.mxu1 %v12743_v15  ;;  %10320 = vmatprep.subr.bf16.mxu0 %v12745_v16 }
 0x90b   :  { %3998 = vmatmul.mubr.f32.vlgmr.msra.gmra.mrb[22].mxu1 %v3602_v7  ;;  %4069 = vmatmul.mubr.f32.vlgmr.msra.gmra.mrb[24].mxu0 %v3602_v7  ;;  %v15127_v7 = vld [vmem:[#allocation77_spill] sm:$0xff] }
 0x90c   :  { %10290 = vmatpush1.bf16.msra.mxu1 %v12753_v50  ;;  %10322 = vmatpush1.bf16.msra.mxu0 %v12755_v46 }
 0x90d   :  { %10292 = vmatprep.subr.bf16.mxu1 %v12761_v27  ;;  %10324 = vmatprep.subr.bf16.mxu0 %v12763_v28 }
 0x90e   :  { %4167 = vmatprep.mubr.f32.mxu1 %v14879_v58  ;;  %4238 = vmatprep.mubr.f32.mxu0 %v14879_v58 }
 0x910   :  { %10294 = vmatpush1.bf16.msra.mxu1 %v12773_v35  ;;  %10326 = vmatpush1.bf16.msra.mxu0 %v15111_v57 }
 0x911   :  { %10296 = vmatprep.subr.bf16.mxu1 %v15112_v22  ;;  %10328 = vmatprep.subr.bf16.mxu0 %v15113_v18 }
 0x914   :  { %10298 = vmatpush1.bf16.msra.mxu1 %v15114_v6  ;;  %10330 = vmatpush1.bf16.msra.mxu0 %v15115_v56 }
 0x915   :  { %10300 = vmatprep.subr.bf16.mxu1 %v15116_v21  ;;  %10332 = vmatprep.subr.bf16.mxu0 %v15117_v39  ;;  %v15128_v39 = vld [vmem:[#allocation78_spill] sm:$0xff] }
 0x918   :  { %10302 = vmatpush1.bf16.msra.mxu1 %v15118_v51  ;;  %10334 = vmatpush1.bf16.msra.mxu0 %v15119_v31  ;;  %v15129_v51 = vld [vmem:[#allocation79_spill] sm:$0xff]  ;;  %v15130_v31 = vld [vmem:[#allocation80_spill] sm:$0xff] }
 0x919   :  { %10304 = vmatprep.subr.bf16.mxu1 %v15120_v32  ;;  %10336 = vmatprep.subr.bf16.mxu0 %v15121_v38  ;;  %v15131_v32 = vld [vmem:[#allocation81_spill] sm:$0xff]  ;;  %v15132_v38 = vld [vmem:[#allocation82_spill] sm:$0xff] }
 0x91c   :  { %10306 = vmatpush1.bf16.msra.mxu1 %v15122_v10  ;;  %10338 = vmatpush1.bf16.msra.mxu0 %v15123_v53  ;;  %v15133_v10 = vld [vmem:[#allocation83_spill] sm:$0xff]  ;;  %v15134_v53 = vld [vmem:[#allocation84_spill] sm:$0xff] }
 0x91d   :  { %10308 = vmatprep.subr.bf16.mxu1 %v15124_v3  ;;  %10340 = vmatprep.subr.bf16.mxu0 %v15125_v52  ;;  %v15135_v3 = vld [vmem:[#allocation85_spill] sm:$0xff]  ;;  %v15136_v52 = vld [vmem:[#allocation86_spill] sm:$0xff] }
 0x920   :  { %10310 = vmatpush1.bf16.msra.mxu1 %v15126_v48  ;;  %10342 = vmatpush1.bf16.msra.mxu0 %v15127_v7  ;;  %v15137_v48 = vld [vmem:[#allocation87_spill] sm:$0xff]  ;;  %v15170_v7 = vld [vmem:[#allocation144_spill] sm:$0xff] }
 0x921   :  { %10312 = vmatprep.subr.bf16.mxu1 %v15128_v39  ;;  %10344 = vmatprep.subr.bf16.mxu0 %v15129_v51  ;;  %v15138_v51 = vld [vmem:[#allocation88_spill] sm:$0xff]  ;;  %v15152_v39 = vld [vmem:[#allocation102_spill] sm:$0xff] }
 0x924   :  { %10314 = vmatpush1.bf16.msra.mxu1 %v15130_v31  ;;  %10346 = vmatpush1.bf16.msra.mxu0 %v15131_v32  ;;  %v15139_v31 = vld [vmem:[#allocation89_spill] sm:$0xff]  ;;  %v15140_v32 = vld [vmem:[#allocation90_spill] sm:$0xff] }
 0x925   :  { %10316 = vmatprep.subr.bf16.mxu1 %v15132_v38  ;;  %10348 = vmatprep.subr.bf16.mxu0 %v15133_v10  ;;  %v15141_v38 = vld [vmem:[#allocation91_spill] sm:$0xff]  ;;  %v15151_v10 = vld [vmem:[#allocation101_spill] sm:$0xff] }
 0x928   :  { %10318 = vmatpush1.bf16.msra.mxu1 %v15134_v53  ;;  %10350 = vmatpush1.bf16.msra.mxu0 %v15135_v3  ;;  %v15142_v3 = vld [vmem:[#allocation92_spill] sm:$0xff]  ;;  %v15145_v53 = vld [vmem:[#allocation95_spill] sm:$0xff] }
 0x929   :  { %10352 = vmatprep.subr.bf16.mxu1 %v15136_v52  ;;  %10384 = vmatprep.subr.bf16.mxu0 %v15137_v48  ;;  %v15143_v52 = vld [vmem:[#allocation93_spill] sm:$0xff]  ;;  %v15144_v48 = vld [vmem:[#allocation94_spill] sm:$0xff] }
 0x92b   :  { %4168 = vmatmul.mubr.f32.vlgmr.msra.gmra.mrb[24].mxu1 %v13598_v14  ;;  %4239 = vmatmul.mubr.f32.vlgmr.msra.gmra.mrb[26].mxu0 %v13598_v14  ;;  %v15146_v14 = vld [vmem:[#allocation96_spill] sm:$0xff] }
 0x92c   :  { %10354 = vmatpush1.bf16.msra.mxu1 %v15138_v51  ;;  %10386 = vmatpush1.bf16.msra.mxu0 %v15139_v31  ;;  %v15147_v51 = vld [vmem:[#allocation97_spill] sm:$0xff]  ;;  %v15148_v31 = vld [vmem:[#allocation98_spill] sm:$0xff] }
 0x92d   :  { %10356 = vmatprep.subr.bf16.mxu1 %v15140_v32  ;;  %10388 = vmatprep.subr.bf16.mxu0 %v15141_v38  ;;  %v15149_v32 = vld [vmem:[#allocation99_spill] sm:$0xff]  ;;  %v15150_v38 = vld [vmem:[#allocation100_spill] sm:$0xff] }
 0x92e   :  { %4355 = vmatprep.mubr.f32.mxu1 %v14879_v58  ;;  %4426 = vmatprep.mubr.f32.mxu0 %v14879_v58 }
 0x930   :  { %10358 = vmatpush1.bf16.msra.mxu1 %v15142_v3  ;;  %10390 = vmatpush1.bf16.msra.mxu0 %v15143_v52  ;;  %v15153_v3 = vld [vmem:[#allocation103_spill] sm:$0xff]  ;;  %v15154_v52 = vld [vmem:[#allocation104_spill] sm:$0xff] }
 0x931   :  { %10360 = vmatprep.subr.bf16.mxu1 %v15144_v48  ;;  %10392 = vmatprep.subr.bf16.mxu0 %v15145_v53  ;;  %v15155_v48 = vld [vmem:[#allocation105_spill] sm:$0xff]  ;;  %v15156_v53 = vld [vmem:[#allocation106_spill] sm:$0xff] }
 0x934   :  { %10362 = vmatpush1.bf16.msra.mxu1 %v15146_v14  ;;  %10394 = vmatpush1.bf16.msra.mxu0 %v15147_v51  ;;  %v15157_v14 = vld [vmem:[#allocation107_spill] sm:$0xff]  ;;  %v15158_v51 = vld [vmem:[#allocation108_spill] sm:$0xff] }
 0x935   :  { %10364 = vmatprep.subr.bf16.mxu1 %v15148_v31  ;;  %10396 = vmatprep.subr.bf16.mxu0 %v15149_v32  ;;  %v15159_v31 = vld [vmem:[#allocation109_spill] sm:$0xff]  ;;  %v15160_v32 = vld [vmem:[#allocation110_spill] sm:$0xff] }
 0x938   :  { %10366 = vmatpush1.bf16.msra.mxu1 %v15150_v38  ;;  %10398 = vmatpush1.bf16.msra.mxu0 %v15151_v10  ;;  %v15161_v38 = vld [vmem:[#allocation111_spill] sm:$0xff]  ;;  %v15162_v10 = vld [vmem:[#allocation112_spill] sm:$0xff] }
 0x939   :  { %10368 = vmatprep.subr.bf16.mxu1 %v15152_v39  ;;  %10400 = vmatprep.subr.bf16.mxu0 %v15153_v3  ;;  %v15163_v39 = vld [vmem:[#allocation113_spill] sm:$0xff]  ;;  %v15164_v3 = vld [vmem:[#allocation114_spill] sm:$0xff] }
 0x93c   :  { %10370 = vmatpush1.bf16.msra.mxu1 %v15154_v52  ;;  %10402 = vmatpush1.bf16.msra.mxu0 %v15155_v48  ;;  %v15165_v52 = vld [vmem:[#allocation115_spill] sm:$0xff]  ;;  %v15166_v48 = vld [vmem:[#allocation116_spill] sm:$0xff] }
 0x93d   :  { %10372 = vmatprep.subr.bf16.mxu1 %v15156_v53  ;;  %10404 = vmatprep.subr.bf16.mxu0 %v15157_v14  ;;  %v15167_v53 = vld [vmem:[#allocation117_spill] sm:$0xff]  ;;  %v15168_v14 = vld [vmem:[#allocation118_spill] sm:$0xff] }
 0x940   :  { %10374 = vmatpush1.bf16.msra.mxu1 %v15158_v51  ;;  %10406 = vmatpush1.bf16.msra.mxu0 %v15159_v31  ;;  %v15169_v51 = vld [vmem:[#allocation119_spill] sm:$0xff] }
 0x941   :  { %10376 = vmatprep.subr.bf16.mxu1 %v15160_v32  ;;  %10408 = vmatprep.subr.bf16.mxu0 %v15161_v38 }
 0x944   :  { %10378 = vmatpush1.bf16.msra.mxu1 %v15162_v10  ;;  %10410 = vmatpush1.bf16.msra.mxu0 %v15163_v39 }
 0x945   :  { %10380 = vmatprep.subr.bf16.mxu1 %v15164_v3  ;;  %10412 = vmatprep.subr.bf16.mxu0 %v15165_v52  ;;  %v15171_v52 = vld [vmem:[#allocation146_spill] sm:$0xff] }
 0x948   :  { %10382 = vmatpush1.bf16.msra.mxu1 %v15166_v48  ;;  %10414 = vmatpush1.bf16.msra.mxu0 %v15167_v53 }
 0x949   :  { %10416 = vmatprep.subr.bf16.mxu1 %v15168_v14  ;;  %10448 = vmatprep.subr.bf16.mxu0 %v15169_v51 }
 0x9de   :  { %v3999_v31 = vpop.f32.mrb[22].mxu1  ;;  %v4070_v32 = vpop.f32.mrb[24].mxu0 }
 0x9df   :  { %v11383_v38 = vadd.f32 %v3999_v31, %v15170_v7  ;;  %v4001_v21 = vpop.f32.mrb[23].mxu1  ;;  %v4072_v10 = vpop.f32.mrb[25].mxu0  ;;  %v11385_v48 = vadd.f32 %v4070_v32, %v15171_v52 }
 0x9e0   :  { %v11384_v39 = vadd.f32 %v4001_v21, %v14987_v8 }
 0x9e1   :  { %v8305_v56 = vmul.f32 -1.442695, %v11383_v38 }
 0x9e2   :  { %v8306_v3 = vmul.f32 -1.442695, %v11384_v39 }
 0x9e3   :  { %11669 = vpow2.f32 %v8305_v56 }
 0x9e4   :  { %11671 = vpow2.f32 %v8306_v3 }
 0x9e5   :  { %11673 = vtanh.f32 %v11385_v48 }
 0x9ed   :  { %v11670_v6 = vpop.eup %11669 }
 0x9ee   :  { %v11672_v53 = vpop.eup %11671  ;;  %v4082_v18 = vadd.f32 1.0, %v11670_v6 }
 0x9ef   :  { %v4088_v14 = vadd.f32 1.0, %v11672_v53  ;;  %v11674_v51 = vpop.eup %11673 }
 0x9f0   :  { %11675 = vrcp.f32 %v4082_v18 }
 0x9f1   :  { %11677 = vrcp.f32 %v4088_v14 }
 0x9fa   :  { %v11676_v22 = vpop.eup %11675 }
 0x9fb   :  { %v11678_v31 = vpop.eup %11677  ;;  %v4099_v7 = vmul.f32 %v11676_v22, %v11674_v51 }
 0x9fc   :  { %v4098_v57 = vmul.f32 %v11678_v31, %v13587_v17 }
 0x9fe   :  { %v13711_v21 = vadd.f32 %v4099_v7, %v4098_v57  ;;  %v4169_v39 = vpop.f32.mrb[24].mxu1  ;;  %v4240_v56 = vpop.f32.mrb[26].mxu0 }
 0x9ff   :  { %v4249_v38 = vrot.slane %v4169_v39, 3  ;;  %v4171_v3 = vpop.f32.mrb[25].mxu1  ;;  %v4242_v32 = vpop.f32.mrb[27].mxu0  ;;  %v4251_v17 = vrot.slane %v4240_v56, 3 }
 0xa00   :  { %v4250_v52 = vrot.slane %v4171_v3, 3  ;;  %v4252_v14 = vrot.slane %v4242_v32, 3  ;;  %v4281_v32 = vrot.slane %v13594_v37, 7 }
 0xa01   :  { %v4257_v6 = vadd.f32 %v4249_v38, %v14923_v30  ;;  %v4259_v51 = vadd.f32 %v4251_v17, %v14926_v24  ;;  %v11386_v17 = vadd.f32 %v4072_v10, %v13223_v0 }
 0xa02   :  { %v4258_v53 = vadd.f32 %v4250_v52, %v14924_v33  ;;  %v4260_v22 = vadd.f32 %v4252_v14, %v14925_v60 }
 0xa03   :  { %v8308_v18 = vmul.f32 -1.442695, %v4257_v6 }
 0xa04   :  { %v8309_v48 = vmul.f32 -1.442695, %v4258_v53  ;;  %v8310_v57 = vmul.f32 -1.442695, %v4260_v22 }
 0xa05   :  { %11679 = vpow2.f32 %v8308_v18 }
 0xa06   :  { %11681 = vpow2.f32 %v8309_v48 }
 0xa07   :  { %11683 = vpow2.f32 %v8310_v57 }
 0xa08   :  { %11685 = vtanh.f32 %v4259_v51 }
 0xa0f   :  { %v11680_v7 = vpop.eup %11679 }
 0xa10   :  { %v11682_v31 = vpop.eup %11681  ;;  %v4264_v39 = vadd.f32 1.0, %v11680_v7  ;;  %v8307_v7 = vmul.f32 -1.442695, %v11386_v17  ;;  %v15180_v17 = vld [vmem:[#allocation69_spill] sm:$0xff] }
 0xa11   :  { %v4270_v3 = vadd.f32 1.0, %v11682_v31  ;;  %v11684_v52 = vpop.eup %11683 }
 0xa12   :  { %11687 = vrcp.f32 %v4264_v39  ;;  %v11686_v38 = vpop.eup %11685  ;;  %v4277_v48 = vadd.f32 1.0, %v11684_v52 }
 0xa13   :  { %11689 = vrcp.f32 %v4270_v3 }
 0xa14   :  { %11691 = vrcp.f32 %v4277_v48  ;;  %v15177_v48 = vld [vmem:[#allocation66_spill] sm:$0xff] }
 0xa1c   :  { %v11688_v6 = vpop.eup %11687 }
 0xa1d   :  { %v11690_v53 = vpop.eup %11689  ;;  %v4284_v18 = vmul.f32 %v11688_v6, %v11686_v38  ;;  %v15172_v38 = vld [vmem:[#allocation61_spill] sm:$0xff]  ;;  %v15173_v6 = vld [vmem:[#allocation62_spill] sm:$0xff] }
 0xa1e   :  { %v4283_v56 = vmul.f32 %v11690_v53, %v4281_v32  ;;  %v11692_v22 = vpop.eup %11691  ;;  %v15174_v32 = vld [vmem:[#allocation63_spill] sm:$0xff]  ;;  %v15175_v53 = vld [vmem:[#allocation64_spill] sm:$0xff] }
 0xa20   :  { %v13718_v14 = vadd.f32 %v4284_v18, %v4283_v56  ;;  %v15176_v18 = vld [vmem:[#allocation65_spill] sm:$0xff]  ;;  %v15178_v56 = vld [vmem:[#allocation67_spill] sm:$0xff] }
 0xa22   :  { %11693 = vtanh.f32 %v13718_v14 }
 0xa23   :  { %11695 = vpow2.f32 %v8307_v7  ;;  %v15183_v7 = vld [vmem:[#allocation72_spill] sm:$0xff] }
 0xa24   :  { %11697 = vtanh.f32 %v13711_v21 }
 0xa2c   :  { %v11694_v57 = vpop.eup %11693 }
 0xa2d   :  { %v4287_v51 = vmul.f32 %v11694_v57, %v11692_v22  ;;  %v11696_v37 = vpop.eup %11695  ;;  %v15179_v22 = vld [vmem:[#allocation68_spill] sm:$0xff]  ;;  %v15181_v57 = vld [vmem:[#allocation70_spill] sm:$0xff] }
 0xa2e   :  { %v4095_v10 = vadd.f32 1.0, %v11696_v37  ;;  %v11698_v39 = vpop.eup %11697  ;;  %v15184_v37 = vld [vmem:[#allocation73_spill] sm:$0xff] }
 0xa2f   :  { %v13722_v31 = vrot.slane %v4287_v51, 5  ;;  %v15182_v51 = vld [vmem:[#allocation71_spill] sm:$0xff] }
 0xa30   :  { %11699 = vrcp.f32 %v4095_v10  ;;  %v15185_v10 = vld [vmem:[#allocation74_spill] sm:$0xff] }
 0xa31   :  { %4356 = vmatmul.mubr.f32.vlgmr.msra.gmra.mrb[26].mxu1 %v13722_v31  ;;  %4427 = vmatmul.mubr.f32.vlgmr.msra.gmra.mrb[28].mxu0 %v13722_v31 }
 0xa32   :  { %10418 = vmatpush1.bf16.msra.mxu1 %v14929_v43  ;;  %10450 = vmatpush1.bf16.msra.mxu0 %v14930_v5 }
 0xa33   :  { %10420 = vmatprep.subr.bf16.mxu1 %v14931_v63  ;;  %10452 = vmatprep.subr.bf16.mxu0 %v14932_v62 }
 0xa34   :  { %4497 = vmatprep.mubr.f32.mxu1 %v14879_v58  ;;  %4568 = vmatprep.mubr.f32.mxu0 %v14879_v58 }
 0xa36   :  { %10422 = vmatpush1.bf16.msra.mxu1 %v14933_v40  ;;  %10454 = vmatpush1.bf16.msra.mxu0 %v14989_v45 }
 0xa37   :  { %10424 = vmatprep.subr.bf16.mxu1 %v14990_v26  ;;  %10456 = vmatprep.subr.bf16.mxu0 %v14991_v36 }
 0xa3a   :  { %10426 = vmatpush1.bf16.msra.mxu1 %v14992_v41  ;;  %10458 = vmatpush1.bf16.msra.mxu0 %v14938_v29  ;;  %v11700_v3 = vpop.eup %11699 }
 0xa3b   :  { %10428 = vmatprep.subr.bf16.mxu1 %v14939_v54  ;;  %10460 = vmatprep.subr.bf16.mxu0 %v14940_v61  ;;  %v4102_v52 = vmul.f32 %v11700_v3, %v11698_v39  ;;  %v15186_v39 = vld [vmem:[#allocation75_spill] sm:$0xff]  ;;  %v15187_v3 = vld [vmem:[#allocation76_spill] sm:$0xff] }
 0xa3e   :  { %10430 = vmatpush1.bf16.msra.mxu1 %v14941_v1  ;;  %10462 = vmatpush1.bf16.msra.mxu0 %v14942_v12 }
 0xa3f   :  { %10432 = vmatprep.subr.bf16.mxu1 %v14943_v59  ;;  %10464 = vmatprep.subr.bf16.mxu0 %v14944_v34 }
 0xa42   :  { %10434 = vmatpush1.bf16.msra.mxu1 %v14945_v23  ;;  %10466 = vmatpush1.bf16.msra.mxu0 %v14946_v20 }
 0xa43   :  { %10436 = vmatprep.subr.bf16.mxu1 %v14993_v4  ;;  %10468 = vmatprep.subr.bf16.mxu0 %v13084_v44 }
 0xa46   :  { %10438 = vmatpush1.bf16.msra.mxu1 %v13088_v55  ;;  %10470 = vmatpush1.bf16.msra.mxu0 %v13090_v13 }
 0xa47   :  { %10440 = vmatprep.subr.bf16.mxu1 %v13094_v42  ;;  %10472 = vmatprep.subr.bf16.mxu0 %v13096_v47 }
 0xa4a   :  { %10442 = vmatpush1.bf16.msra.mxu1 %v13100_v25  ;;  %10474 = vmatpush1.bf16.msra.mxu0 %v13102_v2 }
 0xa4b   :  { %10444 = vmatprep.subr.bf16.mxu1 %v13106_v19  ;;  %10476 = vmatprep.subr.bf16.mxu0 %v13108_v49 }
 0xa4e   :  { %10446 = vmatpush1.bf16.msra.mxu1 %v13112_v11  ;;  %10478 = vmatpush1.bf16.msra.mxu0 %v13114_v9 }
 0xa4f   :  { %10480 = vmatprep.subr.bf16.mxu1 %v12743_v15  ;;  %10512 = vmatprep.subr.bf16.mxu0 %v12745_v16 }
 0xa51   :  { %4498 = vmatmul.mubr.f32.vlgmr.msra.gmra.mrb[26].mxu1 %v4102_v52  ;;  %4569 = vmatmul.mubr.f32.vlgmr.msra.gmra.mrb[28].mxu0 %v4102_v52  ;;  %v15188_v52 = vld [vmem:[#allocation77_spill] sm:$0xff] }
 0xa52   :  { %10482 = vmatpush1.bf16.msra.mxu1 %v12753_v50  ;;  %10514 = vmatpush1.bf16.msra.mxu0 %v12755_v46 }
 0xa53   :  { %10484 = vmatprep.subr.bf16.mxu1 %v12761_v27  ;;  %10516 = vmatprep.subr.bf16.mxu0 %v12763_v28 }
 0xa54   :  { %4667 = vmatprep.mubr.f32.mxu1 %v14879_v58  ;;  %4738 = vmatprep.mubr.f32.mxu0 %v14879_v58 }
 0xa56   :  { %10486 = vmatpush1.bf16.msra.mxu1 %v12773_v35  ;;  %10518 = vmatpush1.bf16.msra.mxu0 %v15172_v38 }
 0xa57   :  { %10488 = vmatprep.subr.bf16.mxu1 %v15173_v6  ;;  %10520 = vmatprep.subr.bf16.mxu0 %v15174_v32 }
 0xa5a   :  { %10490 = vmatpush1.bf16.msra.mxu1 %v15175_v53  ;;  %10522 = vmatpush1.bf16.msra.mxu0 %v15176_v18 }
 0xa5b   :  { %10492 = vmatprep.subr.bf16.mxu1 %v15177_v48  ;;  %10524 = vmatprep.subr.bf16.mxu0 %v15178_v56  ;;  %v15189_v56 = vld [vmem:[#allocation78_spill] sm:$0xff] }
 0xa5e   :  { %10494 = vmatpush1.bf16.msra.mxu1 %v15179_v22  ;;  %10526 = vmatpush1.bf16.msra.mxu0 %v15180_v17  ;;  %v15190_v22 = vld [vmem:[#allocation79_spill] sm:$0xff]  ;;  %v15191_v17 = vld [vmem:[#allocation80_spill] sm:$0xff] }
 0xa5f   :  { %10496 = vmatprep.subr.bf16.mxu1 %v15181_v57  ;;  %10528 = vmatprep.subr.bf16.mxu0 %v15182_v51  ;;  %v15192_v57 = vld [vmem:[#allocation81_spill] sm:$0xff]  ;;  %v15193_v51 = vld [vmem:[#allocation82_spill] sm:$0xff] }
 0xa62   :  { %10498 = vmatpush1.bf16.msra.mxu1 %v15183_v7  ;;  %10530 = vmatpush1.bf16.msra.mxu0 %v15184_v37  ;;  %v15194_v7 = vld [vmem:[#allocation83_spill] sm:$0xff]  ;;  %v15195_v37 = vld [vmem:[#allocation84_spill] sm:$0xff] }
 0xa63   :  { %10500 = vmatprep.subr.bf16.mxu1 %v15185_v10  ;;  %10532 = vmatprep.subr.bf16.mxu0 %v15186_v39  ;;  %v15196_v10 = vld [vmem:[#allocation85_spill] sm:$0xff]  ;;  %v15197_v39 = vld [vmem:[#allocation86_spill] sm:$0xff] }
 0xa66   :  { %10502 = vmatpush1.bf16.msra.mxu1 %v15187_v3  ;;  %10534 = vmatpush1.bf16.msra.mxu0 %v15188_v52  ;;  %v15198_v3 = vld [vmem:[#allocation87_spill] sm:$0xff]  ;;  %v15231_v52 = vld [vmem:[#allocation144_spill] sm:$0xff] }
 0xa67   :  { %10504 = vmatprep.subr.bf16.mxu1 %v15189_v56  ;;  %10536 = vmatprep.subr.bf16.mxu0 %v15190_v22  ;;  %v15199_v22 = vld [vmem:[#allocation88_spill] sm:$0xff]  ;;  %v15213_v56 = vld [vmem:[#allocation102_spill] sm:$0xff] }
 0xa6a   :  { %10506 = vmatpush1.bf16.msra.mxu1 %v15191_v17  ;;  %10538 = vmatpush1.bf16.msra.mxu0 %v15192_v57  ;;  %v15200_v17 = vld [vmem:[#allocation89_spill] sm:$0xff]  ;;  %v15201_v57 = vld [vmem:[#allocation90_spill] sm:$0xff] }
 0xa6b   :  { %10508 = vmatprep.subr.bf16.mxu1 %v15193_v51  ;;  %10540 = vmatprep.subr.bf16.mxu0 %v15194_v7  ;;  %v15202_v51 = vld [vmem:[#allocation91_spill] sm:$0xff]  ;;  %v15212_v7 = vld [vmem:[#allocation101_spill] sm:$0xff] }
 0xa6e   :  { %10510 = vmatpush1.bf16.msra.mxu1 %v15195_v37  ;;  %10542 = vmatpush1.bf16.msra.mxu0 %v15196_v10  ;;  %v15203_v10 = vld [vmem:[#allocation92_spill] sm:$0xff]  ;;  %v15206_v37 = vld [vmem:[#allocation95_spill] sm:$0xff] }
 0xa6f   :  { %10544 = vmatprep.subr.bf16.mxu1 %v15197_v39  ;;  %10576 = vmatprep.subr.bf16.mxu0 %v15198_v3  ;;  %v15204_v39 = vld [vmem:[#allocation93_spill] sm:$0xff]  ;;  %v15205_v3 = vld [vmem:[#allocation94_spill] sm:$0xff] }
 0xa71   :  { %4668 = vmatmul.mubr.f32.vlgmr.msra.gmra.mrb[28].mxu1 %v13722_v31  ;;  %4739 = vmatmul.mubr.f32.vlgmr.msra.gmra.mrb[30].mxu0 %v13722_v31  ;;  %v15207_v31 = vld [vmem:[#allocation96_spill] sm:$0xff] }
 0xa72   :  { %10546 = vmatpush1.bf16.msra.mxu1 %v15199_v22  ;;  %10578 = vmatpush1.bf16.msra.mxu0 %v15200_v17  ;;  %v15208_v22 = vld [vmem:[#allocation97_spill] sm:$0xff]  ;;  %v15209_v17 = vld [vmem:[#allocation98_spill] sm:$0xff] }
 0xa73   :  { %10548 = vmatprep.subr.bf16.mxu1 %v15201_v57  ;;  %10580 = vmatprep.subr.bf16.mxu0 %v15202_v51  ;;  %v15210_v57 = vld [vmem:[#allocation99_spill] sm:$0xff]  ;;  %v15211_v51 = vld [vmem:[#allocation100_spill] sm:$0xff] }
 0xa74   :  { %4855 = vmatprep.mubr.f32.mxu1 %v14879_v58  ;;  %4926 = vmatprep.mubr.f32.mxu0 %v14879_v58 }
 0xa76   :  { %10550 = vmatpush1.bf16.msra.mxu1 %v15203_v10  ;;  %10582 = vmatpush1.bf16.msra.mxu0 %v15204_v39  ;;  %v15214_v10 = vld [vmem:[#allocation103_spill] sm:$0xff]  ;;  %v15215_v39 = vld [vmem:[#allocation104_spill] sm:$0xff] }
 0xa77   :  { %10552 = vmatprep.subr.bf16.mxu1 %v15205_v3  ;;  %10584 = vmatprep.subr.bf16.mxu0 %v15206_v37  ;;  %v15216_v3 = vld [vmem:[#allocation105_spill] sm:$0xff]  ;;  %v15217_v37 = vld [vmem:[#allocation106_spill] sm:$0xff] }
 0xa7a   :  { %10554 = vmatpush1.bf16.msra.mxu1 %v15207_v31  ;;  %10586 = vmatpush1.bf16.msra.mxu0 %v15208_v22  ;;  %v15218_v31 = vld [vmem:[#allocation107_spill] sm:$0xff]  ;;  %v15219_v22 = vld [vmem:[#allocation108_spill] sm:$0xff] }
 0xa7b   :  { %10556 = vmatprep.subr.bf16.mxu1 %v15209_v17  ;;  %10588 = vmatprep.subr.bf16.mxu0 %v15210_v57  ;;  %v15220_v17 = vld [vmem:[#allocation109_spill] sm:$0xff]  ;;  %v15221_v57 = vld [vmem:[#allocation110_spill] sm:$0xff] }
 0xa7e   :  { %10558 = vmatpush1.bf16.msra.mxu1 %v15211_v51  ;;  %10590 = vmatpush1.bf16.msra.mxu0 %v15212_v7  ;;  %v15222_v51 = vld [vmem:[#allocation111_spill] sm:$0xff]  ;;  %v15223_v7 = vld [vmem:[#allocation112_spill] sm:$0xff] }
 0xa7f   :  { %10560 = vmatprep.subr.bf16.mxu1 %v15213_v56  ;;  %10592 = vmatprep.subr.bf16.mxu0 %v15214_v10  ;;  %v15224_v56 = vld [vmem:[#allocation113_spill] sm:$0xff]  ;;  %v15225_v10 = vld [vmem:[#allocation114_spill] sm:$0xff] }
 0xa82   :  { %10562 = vmatpush1.bf16.msra.mxu1 %v15215_v39  ;;  %10594 = vmatpush1.bf16.msra.mxu0 %v15216_v3  ;;  %v15226_v39 = vld [vmem:[#allocation115_spill] sm:$0xff]  ;;  %v15227_v3 = vld [vmem:[#allocation116_spill] sm:$0xff] }
 0xa83   :  { %10564 = vmatprep.subr.bf16.mxu1 %v15217_v37  ;;  %10596 = vmatprep.subr.bf16.mxu0 %v15218_v31  ;;  %v15228_v37 = vld [vmem:[#allocation117_spill] sm:$0xff]  ;;  %v15229_v31 = vld [vmem:[#allocation118_spill] sm:$0xff] }
 0xa86   :  { %10566 = vmatpush1.bf16.msra.mxu1 %v15219_v22  ;;  %10598 = vmatpush1.bf16.msra.mxu0 %v15220_v17  ;;  %v15230_v22 = vld [vmem:[#allocation119_spill] sm:$0xff] }
 0xa87   :  { %10568 = vmatprep.subr.bf16.mxu1 %v15221_v57  ;;  %10600 = vmatprep.subr.bf16.mxu0 %v15222_v51 }
 0xa8a   :  { %10570 = vmatpush1.bf16.msra.mxu1 %v15223_v7  ;;  %10602 = vmatpush1.bf16.msra.mxu0 %v15224_v56 }
 0xa8b   :  { %10572 = vmatprep.subr.bf16.mxu1 %v15225_v10  ;;  %10604 = vmatprep.subr.bf16.mxu0 %v15226_v39  ;;  %v15232_v39 = vld [vmem:[#allocation146_spill] sm:$0xff] }
 0xa8e   :  { %10574 = vmatpush1.bf16.msra.mxu1 %v15227_v3  ;;  %10606 = vmatpush1.bf16.msra.mxu0 %v15228_v37 }
 0xa8f   :  { %10608 = vmatprep.subr.bf16.mxu1 %v15229_v31  ;;  %10640 = vmatprep.subr.bf16.mxu0 %v15230_v22 }
 0xb24   :  { %v4499_v17 = vpop.f32.mrb[26].mxu1  ;;  %v4570_v57 = vpop.f32.mrb[28].mxu0 }
 0xb25   :  { %v11387_v51 = vadd.f32 %v4499_v17, %v15231_v52  ;;  %v4501_v48 = vpop.f32.mrb[27].mxu1  ;;  %v4572_v7 = vpop.f32.mrb[29].mxu0  ;;  %v11389_v3 = vadd.f32 %v4570_v57, %v15232_v39 }
 0xb26   :  { %v11388_v56 = vadd.f32 %v4501_v48, %v14987_v8 }
 0xb27   :  { %v8311_v18 = vmul.f32 -1.442695, %v11387_v51 }
 0xb28   :  { %v8312_v10 = vmul.f32 -1.442695, %v11388_v56 }
 0xb29   :  { %11701 = vpow2.f32 %v8311_v18 }
 0xb2a   :  { %11703 = vpow2.f32 %v8312_v10 }
 0xb2b   :  { %11705 = vtanh.f32 %v11389_v3 }
 0xb33   :  { %v11702_v53 = vpop.eup %11701 }
 0xb34   :  { %v11704_v37 = vpop.eup %11703  ;;  %v4582_v32 = vadd.f32 1.0, %v11702_v53 }
 0xb35   :  { %v4588_v31 = vadd.f32 1.0, %v11704_v37  ;;  %v11706_v22 = vpop.eup %11705 }
 0xb36   :  { %11707 = vrcp.f32 %v4582_v32 }
 0xb37   :  { %11709 = vrcp.f32 %v4588_v31 }
 0xb40   :  { %v11708_v6 = vpop.eup %11707 }
 0xb41   :  { %v11710_v17 = vpop.eup %11709  ;;  %v4599_v52 = vmul.f32 %v11708_v6, %v11706_v22 }
 0xb42   :  { %v4598_v38 = vmul.f32 %v11710_v17, %v13711_v21 }
 0xb44   :  { %v13835_v48 = vadd.f32 %v4599_v52, %v4598_v38  ;;  %v4669_v56 = vpop.f32.mrb[28].mxu1  ;;  %v4740_v18 = vpop.f32.mrb[30].mxu0 }
 0xb45   :  { %v4749_v51 = vrot.slane %v4669_v56, 2  ;;  %v4671_v10 = vpop.f32.mrb[29].mxu1  ;;  %v4742_v57 = vpop.f32.mrb[31].mxu0  ;;  %v4751_v21 = vrot.slane %v4740_v18, 2 }
 0xb46   :  { %v4750_v39 = vrot.slane %v4671_v10, 2  ;;  %v4752_v31 = vrot.slane %v4742_v57, 2  ;;  %v4781_v57 = vrot.slane %v13718_v14, 7 }
 0xb47   :  { %v4757_v53 = vadd.f32 %v4749_v51, %v14923_v30  ;;  %v4759_v22 = vadd.f32 %v4751_v21, %v14926_v24  ;;  %v11390_v21 = vadd.f32 %v4572_v7, %v13223_v0 }
 0xb48   :  { %v4758_v37 = vadd.f32 %v4750_v39, %v14924_v33  ;;  %v4760_v6 = vadd.f32 %v4752_v31, %v14925_v60 }
 0xb49   :  { %v8314_v32 = vmul.f32 -1.442695, %v4757_v53 }
 0xb4a   :  { %v8315_v3 = vmul.f32 -1.442695, %v4758_v37  ;;  %v8316_v38 = vmul.f32 -1.442695, %v4760_v6 }
 0xb4b   :  { %11711 = vpow2.f32 %v8314_v32 }
 0xb4c   :  { %11713 = vpow2.f32 %v8315_v3 }
 0xb4d   :  { %11715 = vpow2.f32 %v8316_v38 }
 0xb4e   :  { %11717 = vtanh.f32 %v4759_v22 }
 0xb55   :  { %v11712_v52 = vpop.eup %11711 }
 0xb56   :  { %v11714_v17 = vpop.eup %11713  ;;  %v4764_v56 = vadd.f32 1.0, %v11712_v52  ;;  %v8313_v52 = vmul.f32 -1.442695, %v11390_v21  ;;  %v15248_v21 = vld [vmem:[#allocation76_spill] sm:$0xff] }
 0xb57   :  { %v4770_v10 = vadd.f32 1.0, %v11714_v17  ;;  %v11716_v39 = vpop.eup %11715 }
 0xb58   :  { %11719 = vrcp.f32 %v4764_v56  ;;  %v11718_v51 = vpop.eup %11717  ;;  %v4777_v3 = vadd.f32 1.0, %v11716_v39 }
 0xb59   :  { %11721 = vrcp.f32 %v4770_v10 }
 0xb5a   :  { %11723 = vrcp.f32 %v4777_v3  ;;  %v15245_v3 = vld [vmem:[#allocation73_spill] sm:$0xff] }
 0xb62   :  { %v11720_v53 = vpop.eup %11719 }
 0xb63   :  { %v11722_v37 = vpop.eup %11721  ;;  %v4784_v32 = vmul.f32 %v11720_v53, %v11718_v51  ;;  %v15233_v51 = vld [vmem:[#allocation61_spill] sm:$0xff]  ;;  %v15236_v53 = vld [vmem:[#allocation64_spill] sm:$0xff] }
 0xb64   :  { %v4783_v18 = vmul.f32 %v11722_v37, %v4781_v57  ;;  %v11724_v6 = vpop.eup %11723  ;;  %v15241_v57 = vld [vmem:[#allocation69_spill] sm:$0xff]  ;;  %v15242_v37 = vld [vmem:[#allocation70_spill] sm:$0xff] }
 0xb66   :  { %v13842_v31 = vadd.f32 %v4784_v32, %v4783_v18  ;;  %v15244_v32 = vld [vmem:[#allocation72_spill] sm:$0xff]  ;;  %v15246_v18 = vld [vmem:[#allocation74_spill] sm:$0xff] }
 0xb68   :  { %11725 = vtanh.f32 %v13842_v31 }
 0xb69   :  { %11727 = vpow2.f32 %v8313_v52  ;;  %v15251_v52 = vld [vmem:[#allocation79_spill] sm:$0xff] }
 0xb6a   :  { %11729 = vtanh.f32 %v13835_v48 }
 0xb72   :  { %v11726_v38 = vpop.eup %11725 }
 0xb73   :  { %v4787_v22 = vmul.f32 %v11726_v38, %v11724_v6  ;;  %v11728_v14 = vpop.eup %11727  ;;  %v15247_v6 = vld [vmem:[#allocation75_spill] sm:$0xff]  ;;  %v15249_v38 = vld [vmem:[#allocation77_spill] sm:$0xff] }
 0xb74   :  { %v4595_v7 = vadd.f32 1.0, %v11728_v14  ;;  %v11730_v56 = vpop.eup %11729  ;;  %v15252_v14 = vld [vmem:[#allocation80_spill] sm:$0xff] }
 0xb75   :  { %v13846_v17 = vrot.slane %v4787_v22, 6  ;;  %v15250_v22 = vld [vmem:[#allocation78_spill] sm:$0xff] }
 0xb76   :  { %11731 = vrcp.f32 %v4595_v7  ;;  %v15253_v7 = vld [vmem:[#allocation81_spill] sm:$0xff] }
 0xb77   :  { %4856 = vmatmul.mubr.f32.vlgmr.msra.gmra.mrb[30].mxu1 %v13846_v17  ;;  %4927 = vmatmul.mubr.f32.vlgmr.msra.gmra.mrb[32].mxu0 %v13846_v17 }
 0xb78   :  { %10610 = vmatpush1.bf16.msra.mxu1 %v14929_v43  ;;  %10642 = vmatpush1.bf16.msra.mxu0 %v14930_v5 }
 0xb79   :  { %10612 = vmatprep.subr.bf16.mxu1 %v14931_v63  ;;  %10644 = vmatprep.subr.bf16.mxu0 %v14932_v62 }
 0xb7a   :  { %4997 = vmatprep.mubr.f32.mxu1 %v14879_v58  ;;  %5068 = vmatprep.mubr.f32.mxu0 %v14879_v58 }
 0xb7c   :  { %10614 = vmatpush1.bf16.msra.mxu1 %v14933_v40  ;;  %10646 = vmatpush1.bf16.msra.mxu0 %v14989_v45 }
 0xb7d   :  { %10616 = vmatprep.subr.bf16.mxu1 %v14990_v26  ;;  %10648 = vmatprep.subr.bf16.mxu0 %v14991_v36 }
 0xb80   :  { %10618 = vmatpush1.bf16.msra.mxu1 %v14992_v41  ;;  %10650 = vmatpush1.bf16.msra.mxu0 %v14938_v29  ;;  %v11732_v10 = vpop.eup %11731 }
 0xb81   :  { %10620 = vmatprep.subr.bf16.mxu1 %v14939_v54  ;;  %10652 = vmatprep.subr.bf16.mxu0 %v14940_v61  ;;  %v4602_v39 = vmul.f32 %v11732_v10, %v11730_v56  ;;  %v15254_v56 = vld [vmem:[#allocation82_spill] sm:$0xff]  ;;  %v15255_v10 = vld [vmem:[#allocation83_spill] sm:$0xff] }
 0xb84   :  { %10622 = vmatpush1.bf16.msra.mxu1 %v14941_v1  ;;  %10654 = vmatpush1.bf16.msra.mxu0 %v14942_v12 }
 0xb85   :  { %10624 = vmatprep.subr.bf16.mxu1 %v14943_v59  ;;  %10656 = vmatprep.subr.bf16.mxu0 %v14944_v34 }
 0xb88   :  { %10626 = vmatpush1.bf16.msra.mxu1 %v14945_v23  ;;  %10658 = vmatpush1.bf16.msra.mxu0 %v14946_v20 }
 0xb89   :  { %10628 = vmatprep.subr.bf16.mxu1 %v14993_v4  ;;  %10660 = vmatprep.subr.bf16.mxu0 %v13084_v44 }
 0xb8c   :  { %10630 = vmatpush1.bf16.msra.mxu1 %v13088_v55  ;;  %10662 = vmatpush1.bf16.msra.mxu0 %v13090_v13 }
 0xb8d   :  { %10632 = vmatprep.subr.bf16.mxu1 %v13094_v42  ;;  %10664 = vmatprep.subr.bf16.mxu0 %v13096_v47 }
 0xb90   :  { %10634 = vmatpush1.bf16.msra.mxu1 %v13100_v25  ;;  %10666 = vmatpush1.bf16.msra.mxu0 %v13102_v2 }
 0xb91   :  { %10636 = vmatprep.subr.bf16.mxu1 %v13106_v19  ;;  %10668 = vmatprep.subr.bf16.mxu0 %v13108_v49 }
 0xb94   :  { %10638 = vmatpush1.bf16.msra.mxu1 %v13112_v11  ;;  %10670 = vmatpush1.bf16.msra.mxu0 %v13114_v9 }
 0xb95   :  { %10672 = vmatprep.subr.bf16.mxu1 %v12743_v15  ;;  %10704 = vmatprep.subr.bf16.mxu0 %v12745_v16  ;;  %v15234_v15 = vld [vmem:[#allocation62_spill] sm:$0xff]  ;;  %v15235_v16 = vld [vmem:[#allocation63_spill] sm:$0xff] }
 0xb97   :  { %4998 = vmatmul.mubr.f32.vlgmr.msra.gmra.mrb[30].mxu1 %v4602_v39  ;;  %5069 = vmatmul.mubr.f32.vlgmr.msra.gmra.mrb[32].mxu0 %v4602_v39  ;;  %v15256_v39 = vld [vmem:[#allocation84_spill] sm:$0xff] }
 0xb98   :  { %10674 = vmatpush1.bf16.msra.mxu1 %v12753_v50  ;;  %10706 = vmatpush1.bf16.msra.mxu0 %v12755_v46  ;;  %v15237_v50 = vld [vmem:[#allocation65_spill] sm:$0xff]  ;;  %v15238_v46 = vld [vmem:[#allocation66_spill] sm:$0xff] }
 0xb99   :  { %10676 = vmatprep.subr.bf16.mxu1 %v12761_v27  ;;  %10708 = vmatprep.subr.bf16.mxu0 %v12763_v28  ;;  %v15239_v27 = vld [vmem:[#allocation67_spill] sm:$0xff]  ;;  %v15240_v28 = vld [vmem:[#allocation68_spill] sm:$0xff] }
 0xb9a   :  { %5167 = vmatprep.mubr.f32.mxu1 %v14879_v58  ;;  %5238 = vmatprep.mubr.f32.mxu0 %v14879_v58 }
 0xb9c   :  { %10678 = vmatpush1.bf16.msra.mxu1 %v12773_v35  ;;  %10710 = vmatpush1.bf16.msra.mxu0 %v15233_v51  ;;  %v15243_v35 = vld [vmem:[#allocation71_spill] sm:$0xff]  ;;  %v15257_v51 = vld [vmem:[#allocation85_spill] sm:$0xff] }
 0xb9d   :  { %10680 = vmatprep.subr.bf16.mxu1 %v15234_v15  ;;  %10712 = vmatprep.subr.bf16.mxu0 %v15235_v16  ;;  %v15258_v15 = vld [vmem:[#allocation86_spill] sm:$0xff]  ;;  %v15259_v16 = vld [vmem:[#allocation87_spill] sm:$0xff] }
 0xba0   :  { %10682 = vmatpush1.bf16.msra.mxu1 %v15236_v53  ;;  %10714 = vmatpush1.bf16.msra.mxu0 %v15237_v50  ;;  %v15260_v53 = vld [vmem:[#allocation88_spill] sm:$0xff]  ;;  %v15261_v50 = vld [vmem:[#allocation89_spill] sm:$0xff] }
 0xba1   :  { %10684 = vmatprep.subr.bf16.mxu1 %v15238_v46  ;;  %10716 = vmatprep.subr.bf16.mxu0 %v15239_v27  ;;  %v15262_v46 = vld [vmem:[#allocation90_spill] sm:$0xff]  ;;  %v15263_v27 = vld [vmem:[#allocation91_spill] sm:$0xff] }
 0xba4   :  { %10686 = vmatpush1.bf16.msra.mxu1 %v15240_v28  ;;  %10718 = vmatpush1.bf16.msra.mxu0 %v15241_v57  ;;  %v15264_v28 = vld [vmem:[#allocation92_spill] sm:$0xff]  ;;  %v15265_v57 = vld [vmem:[#allocation93_spill] sm:$0xff] }
 0xba5   :  { %10688 = vmatprep.subr.bf16.mxu1 %v15242_v37  ;;  %10720 = vmatprep.subr.bf16.mxu0 %v15243_v35  ;;  %v15266_v37 = vld [vmem:[#allocation94_spill] sm:$0xff]  ;;  %v15267_v35 = vld [vmem:[#allocation95_spill] sm:$0xff] }
 0xba8   :  { %10690 = vmatpush1.bf16.msra.mxu1 %v15244_v32  ;;  %10722 = vmatpush1.bf16.msra.mxu0 %v15245_v3  ;;  %v15269_v32 = vld [vmem:[#allocation97_spill] sm:$0xff]  ;;  %v15270_v3 = vld [vmem:[#allocation98_spill] sm:$0xff] }
 0xba9   :  { %10692 = vmatprep.subr.bf16.mxu1 %v15246_v18  ;;  %10724 = vmatprep.subr.bf16.mxu0 %v15247_v6  ;;  %v15271_v18 = vld [vmem:[#allocation99_spill] sm:$0xff]  ;;  %v15272_v6 = vld [vmem:[#allocation100_spill] sm:$0xff] }
 0xbac   :  { %10694 = vmatpush1.bf16.msra.mxu1 %v15248_v21  ;;  %10726 = vmatpush1.bf16.msra.mxu0 %v15249_v38  ;;  %v15273_v21 = vld [vmem:[#allocation101_spill] sm:$0xff]  ;;  %v15274_v38 = vld [vmem:[#allocation102_spill] sm:$0xff] }
 0xbad   :  { %10696 = vmatprep.subr.bf16.mxu1 %v15250_v22  ;;  %10728 = vmatprep.subr.bf16.mxu0 %v15251_v52  ;;  %v15275_v22 = vld [vmem:[#allocation103_spill] sm:$0xff]  ;;  %v15276_v52 = vld [vmem:[#allocation104_spill] sm:$0xff] }
 0xbb0   :  { %10698 = vmatpush1.bf16.msra.mxu1 %v15252_v14  ;;  %10730 = vmatpush1.bf16.msra.mxu0 %v15253_v7  ;;  %v15277_v14 = vld [vmem:[#allocation105_spill] sm:$0xff]  ;;  %v15278_v7 = vld [vmem:[#allocation106_spill] sm:$0xff] }
 0xbb1   :  { %10700 = vmatprep.subr.bf16.mxu1 %v15254_v56  ;;  %10732 = vmatprep.subr.bf16.mxu0 %v15255_v10  ;;  %v15279_v56 = vld [vmem:[#allocation107_spill] sm:$0xff]  ;;  %v15280_v10 = vld [vmem:[#allocation108_spill] sm:$0xff] }
 0xbb4   :  { %10702 = vmatpush1.bf16.msra.mxu1 %v15256_v39  ;;  %10734 = vmatpush1.bf16.msra.mxu0 %v15257_v51  ;;  %v15281_v39 = vld [vmem:[#allocation109_spill] sm:$0xff]  ;;  %v15282_v51 = vld [vmem:[#allocation110_spill] sm:$0xff] }
 0xbb5   :  { %10736 = vmatprep.subr.bf16.mxu1 %v15258_v15  ;;  %10768 = vmatprep.subr.bf16.mxu0 %v15259_v16  ;;  %v15283_v15 = vld [vmem:[#allocation111_spill] sm:$0xff]  ;;  %v15284_v16 = vld [vmem:[#allocation112_spill] sm:$0xff] }
 0xbb7   :  { %5168 = vmatmul.mubr.f32.vlgmr.msra.gmra.mrb[32].mxu1 %v13846_v17  ;;  %5239 = vmatmul.mubr.f32.vlgmr.msra.gmra.mrb[34].mxu0 %v13846_v17  ;;  %v15268_v17 = vld [vmem:[#allocation96_spill] sm:$0xff] }
 0xbb8   :  { %10738 = vmatpush1.bf16.msra.mxu1 %v15260_v53  ;;  %10770 = vmatpush1.bf16.msra.mxu0 %v15261_v50  ;;  %v15285_v53 = vld [vmem:[#allocation113_spill] sm:$0xff]  ;;  %v15286_v50 = vld [vmem:[#allocation114_spill] sm:$0xff] }
 0xbb9   :  { %10740 = vmatprep.subr.bf16.mxu1 %v15262_v46  ;;  %10772 = vmatprep.subr.bf16.mxu0 %v15263_v27  ;;  %v15287_v46 = vld [vmem:[#allocation115_spill] sm:$0xff]  ;;  %v15288_v27 = vld [vmem:[#allocation116_spill] sm:$0xff] }
 0xbba   :  { %5355 = vmatprep.mubr.f32.mxu1 %v14879_v58  ;;  %5426 = vmatprep.mubr.f32.mxu0 %v14879_v58 }
 0xbbc   :  { %10742 = vmatpush1.bf16.msra.mxu1 %v15264_v28  ;;  %10774 = vmatpush1.bf16.msra.mxu0 %v15265_v57  ;;  %v15289_v28 = vld [vmem:[#allocation117_spill] sm:$0xff]  ;;  %v15290_v57 = vld [vmem:[#allocation118_spill] sm:$0xff] }
 0xbbd   :  { %10744 = vmatprep.subr.bf16.mxu1 %v15266_v37  ;;  %10776 = vmatprep.subr.bf16.mxu0 %v15267_v35  ;;  %v15291_v37 = vld [vmem:[#allocation119_spill] sm:$0xff] }
 0xbc0   :  { %10746 = vmatpush1.bf16.msra.mxu1 %v15268_v17  ;;  %10778 = vmatpush1.bf16.msra.mxu0 %v15269_v32  ;;  %v15292_v32 = vld [vmem:[#allocation144_spill] sm:$0xff] }
 0xbc1   :  { %10748 = vmatprep.subr.bf16.mxu1 %v15270_v3  ;;  %10780 = vmatprep.subr.bf16.mxu0 %v15271_v18 }
 0xbc4   :  { %10750 = vmatpush1.bf16.msra.mxu1 %v15272_v6  ;;  %10782 = vmatpush1.bf16.msra.mxu0 %v15273_v21 }
 0xbc5   :  { %10752 = vmatprep.subr.bf16.mxu1 %v15274_v38  ;;  %10784 = vmatprep.subr.bf16.mxu0 %v15275_v22 }
 0xbc8   :  { %10754 = vmatpush1.bf16.msra.mxu1 %v15276_v52  ;;  %10786 = vmatpush1.bf16.msra.mxu0 %v15277_v14  ;;  %v15293_v52 = vld [vmem:[#allocation146_spill] sm:$0xff] }
 0xbc9   :  { %10756 = vmatprep.subr.bf16.mxu1 %v15278_v7  ;;  %10788 = vmatprep.subr.bf16.mxu0 %v15279_v56 }
 0xbcc   :  { %10758 = vmatpush1.bf16.msra.mxu1 %v15280_v10  ;;  %10790 = vmatpush1.bf16.msra.mxu0 %v15281_v39 }
 0xbcd   :  { %10760 = vmatprep.subr.bf16.mxu1 %v15282_v51  ;;  %10792 = vmatprep.subr.bf16.mxu0 %v15283_v15 }
 0xbd0   :  { %10762 = vmatpush1.bf16.msra.mxu1 %v15284_v16  ;;  %10794 = vmatpush1.bf16.msra.mxu0 %v15285_v53 }
 0xbd1   :  { %10764 = vmatprep.subr.bf16.mxu1 %v15286_v50  ;;  %10796 = vmatprep.subr.bf16.mxu0 %v15287_v46 }
 0xbd4   :  { %10766 = vmatpush1.bf16.msra.mxu1 %v15288_v27  ;;  %10798 = vmatpush1.bf16.msra.mxu0 %v15289_v28 }
 0xbd5   :  { %10800 = vmatprep.subr.bf16.mxu1 %v15290_v57  ;;  %10832 = vmatprep.subr.bf16.mxu0 %v15291_v37 }
 0xc6a   :  { %v4999_v35 = vpop.f32.mrb[30].mxu1  ;;  %v5070_v17 = vpop.f32.mrb[32].mxu0 }
 0xc6b   :  { %v11391_v3 = vadd.f32 %v4999_v35, %v15292_v32  ;;  %v5001_v18 = vpop.f32.mrb[31].mxu1  ;;  %v13956_v6 = vpop.f32.mrb[33].mxu0  ;;  %v11393_v14 = vadd.f32 %v5070_v17, %v15293_v52 }
 0xc6c   :  { %v11392_v21 = vadd.f32 %v5001_v18, %v14987_v8 }
 0xc6d   :  { %v8317_v38 = vmul.f32 -1.442695, %v11391_v3 }
 0xc6e   :  { %v8318_v22 = vmul.f32 -1.442695, %v11392_v21 }
 0xc6f   :  { %11733 = vpow2.f32 %v8317_v38 }
 0xc70   :  { %11735 = vpow2.f32 %v8318_v22 }
 0xc71   :  { %11737 = vtanh.f32 %v11393_v14 }
 0xc79   :  { %v11734_v7 = vpop.eup %11733 }
 0xc7a   :  { %v11736_v56 = vpop.eup %11735  ;;  %v5082_v10 = vadd.f32 1.0, %v11734_v7  ;;  %v5604_v7 = vld [vmem:[%s15294_s21] sm:$0xff] }
 0xc7b   :  { %v5088_v39 = vadd.f32 1.0, %v11736_v56  ;;  %v11738_v51 = vpop.eup %11737  ;;  %v8331_v56 = vld [vmem:[%s15294_s21 + $0x8] sm:$0xff] }
 0xc7c   :  { %11739 = vrcp.f32 %v5082_v10  ;;  %v12315_v10 = vmov 0  }
 0xc7d   :  { %11741 = vrcp.f32 %v5088_v39  ;;  %11523 = vset.pattern.permute.xlu0 %v12315_v10  ;;  %11524 = vset.pattern.permute.xlu1 %v12315_v10  ;;  %v6037_v39 = vsub.f32 1.0, %v5604_v7  ;;  %v5625_v10 = vld [vmem:[%s15295_s17 + $0xa0] sm:$0xff] }
 0xc7e   :  { %6033 = vperm.xlu0 %11523, %v5604_v7   ;;  %6368 = vperm.xlu1 %11524, %v8331_v56  }
 0xc82   :  { %6040 = vperm.xlu0 %11523, %v6037_v39  }
 0xc86   :  { %v11740_v15 = vpop.eup %11739 }
 0xc87   :  { %v11742_v16 = vpop.eup %11741  ;;  %v5099_v53 = vmul.f32 %v11740_v15, %v11738_v51  ;;  %v6372_v51 = vsub.f32 1.0, %v8331_v56  ;;  %v5621_v56 = vld [vmem:[%s15295_s17 + $0x80] sm:$0xff] }
 0xc88   :  { %v5098_v50 = vmul.f32 %v11742_v16, %v13835_v48 }
 0xc89   :  { %6375 = vperm.xlu1 %11524, %v6372_v51  }
 0xc8a   :  { %v13961_v46 = vadd.f32 %v5099_v53, %v5098_v50  ;;  %v5169_v27 = vpop.f32.mrb[32].mxu1  ;;  %v5240_v28 = vpop.f32.mrb[34].mxu0 }
 0xc8b   :  { %v5249_v57 = vrot.slane %v5169_v27, 1  ;;  %v5171_v37 = vpop.f32.mrb[33].mxu1  ;;  %v5242_v35 = vpop.f32.mrb[35].mxu0  ;;  %v5251_v14 = vrot.slane %v5240_v28, 1 }
 0xc8c   :  { %v5250_v17 = vrot.slane %v5171_v37, 1  ;;  %v5252_v22 = vrot.slane %v5242_v35, 1 }
 0xc8d   :  { %v5257_v3 = vadd.f32 %v5249_v57, %v14923_v30  ;;  %v5281_v57 = vrot.slane %v13842_v31, 7  ;;  %v5818_v31 = vld [vmem:[#allocation20 + $0xa8] sm:$0xff] }
 0xc8e   :  { %v5258_v18 = vadd.f32 %v5250_v17, %v14924_v33  ;;  %v5260_v48 = vadd.f32 %v5252_v22, %v14925_v60  ;;  %v5259_v33 = vadd.f32 %v5251_v14, %v14926_v24 }
 0xc8f   :  { %v8320_v21 = vmul.f32 -1.442695, %v5257_v3 }
 0xc90   :  { %v8321_v38 = vmul.f32 -1.442695, %v5258_v18  ;;  %v8322_v30 = vmul.f32 -1.442695, %v5260_v48 }
 0xc91   :  { %11743 = vpow2.f32 %v8320_v21  ;;  %v11394_v21 = vadd.f32 %v13956_v6, %v13223_v0 }
 0xc92   :  { %11745 = vpow2.f32 %v8321_v38 }
 0xc93   :  { %11747 = vpow2.f32 %v8322_v30  ;;  %v8319_v48 = vmul.f32 -1.442695, %v11394_v21  ;;  %v5813_v30 = vld [vmem:[#allocation20 + $0x80] sm:$0xff]  ;;  %v5830_v21 = vld [vmem:[#allocation20 + $0x108] sm:$0xff] }
 0xc94   :  { %11749 = vtanh.f32 %v5259_v33  ;;  %v5817_v33 = vld [vmem:[#allocation20 + $0xa0] sm:$0xff] }
 0xc9b   :  { %v11744_v15 = vpop.eup %11743 }
 0xc9c   :  { %v11746_v16 = vpop.eup %11745  ;;  %v5264_v53 = vadd.f32 1.0, %v11744_v15  ;;  %v5608_v15 = vld [vmem:[%s15295_s17 + $0x18] sm:$0xff] }
 0xc9d   :  { %v5270_v60 = vadd.f32 1.0, %v11746_v16  ;;  %v11748_v50 = vpop.eup %11747  ;;  %v5612_v16 = vld [vmem:[%s15295_s17 + $0x38] sm:$0xff] }
 0xc9e   :  { %11751 = vrcp.f32 %v5264_v53  ;;  %v11750_v27 = vpop.eup %11749  ;;  %v5277_v17 = vadd.f32 1.0, %v11748_v50  ;;  %v5822_v53 = vld [vmem:[#allocation20 + $0xc8] sm:$0xff]  ;;  %v14049_v50 = vpack.c.bf16 %v5625_v10, %v5621_v56  ;;  %v5849_v56 = vld [vmem:[#allocation20 + $0x1a0] sm:$0xff] }
 0xc9f   :  { %11753 = vrcp.f32 %v5270_v60  ;;  %v5826_v60 = vld [vmem:[#allocation20 + $0xe8] sm:$0xff] }
 0xca0   :  { %11755 = vrcp.f32 %v5277_v17  ;;  %v5821_v17 = vld [vmem:[#allocation20 + $0xc0] sm:$0xff] }
 0xca8   :  { %v11752_v28 = vpop.eup %11751 }
 0xca9   :  { %v11754_v37 = vpop.eup %11753  ;;  %v5284_v35 = vmul.f32 %v11752_v28, %v11750_v27  ;;  %v14051_v27 = vpack.c.bf16 %v5817_v33, %v5813_v30  ;;  %v5607_v28 = vld [vmem:[%s15295_s17 + $0x10] sm:$0xff] }
 0xcaa   :  { %v5283_v3 = vmul.f32 %v11754_v37, %v5281_v57  ;;  %v11756_v18 = vpop.eup %11755  ;;  %v5611_v57 = vld [vmem:[%s15295_s17 + $0x30] sm:$0xff]  ;;  %v14057_v37 = vpack.c.bf16 %v5612_v16, %v5608_v15  ;;  %v5854_v16 = vld [vmem:[#allocation20 + $0x1c8] sm:$0xff] }
 0xcab   :  { %v5799_v33 = vld [vmem:[#allocation20 + $0x10] sm:$0xff] }
 0xcac   :  { %v5285_v24 = vadd.f32 %v5284_v35, %v5283_v3  ;;  %v14059_v35 = vpack.c.bf16 %v5826_v60, %v5822_v53  ;;  %v5825_v3 = vld [vmem:[#allocation20 + $0xe0] sm:$0xff]  ;;  %v5803_v15 = vld [vmem:[#allocation20 + $0x30] sm:$0xff]  ;;  %v5858_v53 = vld [vmem:[#allocation20 + $0x1e8] sm:$0xff] }
 0xcad   :  { %v5808_v60 = vld [vmem:[#allocation20 + $0x58] sm:$0xff] }
 0xcae   :  { %11757 = vtanh.f32 %v5285_v24  ;;  %v5616_v24 = vld [vmem:[%s15295_s17 + $0x58] sm:$0xff] }
 0xcaf   :  { %11759 = vpow2.f32 %v8319_v48  ;;  %v14067_v48 = vpack.c.bf16 %v5611_v57, %v5607_v28  ;;  %v5812_v28 = vld [vmem:[#allocation20 + $0x78] sm:$0xff] }
 0xcb0   :  { %11761 = vtanh.f32 %v13961_v46 }
 0xcb8   :  { %v11758_v38 = vpop.eup %11757 }
 0xcb9   :  { %v5287_v22 = vmul.f32 %v11758_v38, %v11756_v18  ;;  %v5620_v18 = vld [vmem:[%s15295_s17 + $0x78] sm:$0xff]  ;;  %v5834_v38 = vld [vmem:[#allocation20 + $0x128] sm:$0xff] }
 0xcbb   :  { %v5289_v14 = vrot.slane %v5287_v22, 7  ;;  %v14065_v22 = vld [vmem:[#allocation19] sm:$0xff] }
 0xcbd   :  { %5356 = vmatmul.mubr.f32.vlgmr.msra.gmra.mrb[34].mxu1 %v5289_v14  ;;  %5427 = vmatmul.mubr.f32.vlgmr.msra.gmra.mrb[36].mxu0 %v5289_v14  ;;  %v14069_v14 = vpack.c.bf16 %v5825_v3, %v5821_v17  ;;  %v14114_v17 = vpack.c.bf16 %v5803_v15, %v5799_v33  ;;  %v5853_v3 = vld [vmem:[#allocation20 + $0x1c0] sm:$0xff]  ;;  %v5835_v33 = vld [vmem:[#allocation20 + $0x130] sm:$0xff]  ;;  %v5840_v15 = vld [vmem:[#allocation20 + $0x158] sm:$0xff] }
 0xcbe   :  { %10802 = vmatpush1.bf16.msra.mxu1 %v14929_v43  ;;  %10834 = vmatpush1.bf16.msra.mxu0 %v14930_v5  ;;  %v11760_v43 = vpop.eup %11759 }
 0xcbf   :  { %10804 = vmatprep.subr.bf16.mxu1 %v14931_v63  ;;  %10836 = vmatprep.subr.bf16.mxu0 %v14932_v62  ;;  %v5095_v5 = vadd.f32 1.0, %v11760_v43  ;;  %v5610_v63 = vld [vmem:[%s15295_s17 + $0x28] sm:$0xff]  ;;  %v5615_v43 = vld [vmem:[%s15295_s17 + $0x50] sm:$0xff] }
 0xcc0   :  { %5497 = vmatprep.mubr.f32.mxu1 %v14879_v58  ;;  %5568 = vmatprep.mubr.f32.mxu0 %v14879_v58  ;;  %v5798_v62 = vld [vmem:[#allocation20 + $0x8] sm:$0xff] }
 0xcc1   :  { %11763 = vrcp.f32 %v5095_v5  ;;  %v5619_v5 = vld [vmem:[%s15295_s17 + $0x70] sm:$0xff] }
 0xcc2   :  { %10806 = vmatpush1.bf16.msra.mxu1 %v14933_v40  ;;  %10838 = vmatpush1.bf16.msra.mxu0 %v14989_v45  ;;  %v5802_v40 = vld [vmem:[#allocation20 + $0x28] sm:$0xff] }
 0xcc3   :  { %10808 = vmatprep.subr.bf16.mxu1 %v14990_v26  ;;  %10840 = vmatprep.subr.bf16.mxu0 %v14991_v36  ;;  %v5809_v36 = vld [vmem:[#allocation20 + $0x60] sm:$0xff] }
 0xcc6   :  { %10810 = vmatpush1.bf16.msra.mxu1 %v14992_v41  ;;  %10842 = vmatpush1.bf16.msra.mxu0 %v14938_v29  ;;  %v5618_v29 = vld [vmem:[%s15295_s17 + $0x68] sm:$0xff] }
 0xcc7   :  { %10812 = vmatprep.subr.bf16.mxu1 %v14939_v54  ;;  %10844 = vmatprep.subr.bf16.mxu0 %v14940_v61  ;;  %v5613_v61 = vld [vmem:[%s15295_s17 + $0x40] sm:$0xff]  ;;  %v5626_v41 = vld [vmem:[%s15295_s17 + $0xa8] sm:$0xff] }
 0xcca   :  { %10814 = vmatpush1.bf16.msra.mxu1 %v14941_v1  ;;  %10846 = vmatpush1.bf16.msra.mxu0 %v14942_v12  ;;  %v5617_v1 = vld [vmem:[%s15295_s17 + $0x60] sm:$0xff] }
 0xccb   :  { %10816 = vmatprep.subr.bf16.mxu1 %v14943_v59  ;;  %10848 = vmatprep.subr.bf16.mxu0 %v14944_v34  ;;  %v5606_v59 = vld [vmem:[%s15295_s17 + $0x8] sm:$0xff]  ;;  %v5609_v34 = vld [vmem:[%s15295_s17 + $0x20] sm:$0xff]  ;;  %v14031_v6 = vpack.c.bf16 %v5617_v1, %v5613_v61 }
 0xccc   :  { %v5837_v61 = vld [vmem:[#allocation20 + $0x140] sm:$0xff] }
 0xccd   :  { %v5841_v1 = vld [vmem:[#allocation20 + $0x160] sm:$0xff] }
 0xcce   :  { %10818 = vmatpush1.bf16.msra.mxu1 %v14945_v23  ;;  %10850 = vmatpush1.bf16.msra.mxu0 %v14946_v20  ;;  %v5614_v23 = vld [vmem:[%s15295_s17 + $0x48] sm:$0xff]  ;;  %v11762_v20 = vpop.eup %11761 }
 0xccf   :  { %10820 = vmatprep.subr.bf16.mxu1 %v14993_v4  ;;  %10852 = vmatprep.subr.bf16.mxu0 %v13084_v44  ;;  %v5605_v44 = vld [vmem:[%s15295_s17] sm:$0xff]  ;;  %v11764_v54 = vpop.eup %11763  ;;  %v14023_v45 = vpack.c.bf16 %v5618_v29, %v5614_v23  ;;  %v14085_v23 = vpack.c.bf16 %v5619_v5, %v5615_v43  ;;  %v5623_v29 = vld [vmem:[%s15295_s17 + $0x90] sm:$0xff] }
 0xcd0   :  { %v5102_v12 = vmul.f32 %v11764_v54, %v11762_v20  ;;  %v5814_v4 = vld [vmem:[#allocation20 + $0x88] sm:$0xff]  ;;  %v5811_v43 = vld [vmem:[#allocation20 + $0x70] sm:$0xff]  ;;  %v5816_v5 = vld [vmem:[#allocation20 + $0x98] sm:$0xff] }
 0xcd1   :  { %v14041_v51 = vpack.c.bf16 %v5818_v31, %v5814_v4  ;;  %v14102_v4 = vpack.c.bf16 %v5841_v1, %v5837_v61  ;;  %v5845_v31 = vld [vmem:[#allocation20 + $0x180] sm:$0xff]  ;;  %v5823_v1 = vld [vmem:[#allocation20 + $0xd0] sm:$0xff] }
 0xcd2   :  { %10822 = vmatpush1.bf16.msra.mxu1 %v13088_v55  ;;  %10854 = vmatpush1.bf16.msra.mxu0 %v13090_v13  ;;  %v14007_v55 = vpack.c.bf16 %v5610_v63, %v5606_v59  ;;  %v14009_v13 = vpack.c.bf16 %v5802_v40, %v5798_v62  ;;  %v14075_v59 = vpack.c.bf16 %v5620_v18, %v5616_v24  ;;  %v5829_v62 = vld [vmem:[#allocation20 + $0x100] sm:$0xff] }
 0xcd3   :  { %10824 = vmatprep.subr.bf16.mxu1 %v13094_v42  ;;  %10856 = vmatprep.subr.bf16.mxu0 %v13096_v47  ;;  %v5797_v42 = vld [vmem:[#allocation20] sm:$0xff]  ;;  %v14077_v63 = vpack.c.bf16 %v5834_v38, %v5830_v21  ;;  %v14112_v57 = vpack.c.bf16 %v5849_v56, %v5845_v31  ;;  %v14118_v24 = vpack.c.bf16 %v5858_v53, %v5854_v16  ;;  %v5807_v38 = vld [vmem:[#allocation20 + $0x50] sm:$0xff]  ;;  %v5844_v16 = vld [vmem:[#allocation20 + $0x178] sm:$0xff] }
 0xcd4   :  { %v5801_v47 = vld [vmem:[#allocation20 + $0x20] sm:$0xff]  ;;  %v14120_v18 = vpack.c.bf16 %v5812_v28, %v5808_v60  ;;  %v5831_v56 = vld [vmem:[#allocation20 + $0x110] sm:$0xff]  ;;  %v14158_v60 = vpack.c.bf16 %v5844_v16, %v5840_v15 }
 0xcd5   :  { %v5833_v40 = vld [vmem:[#allocation20 + $0x120] sm:$0xff]  ;;  %v14154_v53 = vpack.c.bf16 %v5835_v33, %v5831_v56  ;;  %v5839_v28 = vld [vmem:[#allocation20 + $0x150] sm:$0xff] }
 0xcd6   :  { %10826 = vmatpush1.bf16.msra.mxu1 %v13100_v25  ;;  %10858 = vmatpush1.bf16.msra.mxu0 %v13102_v2  ;;  %v5806_v25 = vld [vmem:[#allocation20 + $0x48] sm:$0xff]  ;;  %v14087_v20 = vpack.c.bf16 %v5833_v40, %v5829_v62  ;;  %v5857_v21 = vld [vmem:[#allocation20 + $0x1e0] sm:$0xff]  ;;  %v5820_v62 = vld [vmem:[#allocation20 + $0xb8] sm:$0xff] }
 0xcd7   :  { %10828 = vmatprep.subr.bf16.mxu1 %v13106_v19  ;;  %10860 = vmatprep.subr.bf16.mxu0 %v13108_v49  ;;  %v5810_v2 = vld [vmem:[#allocation20 + $0x68] sm:$0xff]  ;;  %v14015_v19 = vpack.c.bf16 %v5609_v34, %v5605_v44  ;;  %v14017_v49 = vpack.c.bf16 %v5801_v47, %v5797_v42  ;;  %v5624_v44 = vld [vmem:[%s15295_s17 + $0x98] sm:$0xff]  ;;  %v14126_v40 = vpack.c.bf16 %v5857_v21, %v5853_v3  ;;  %v5843_v3 = vld [vmem:[#allocation20 + $0x170] sm:$0xff] }
 0xcd8   :  { %v14025_v26 = vpack.c.bf16 %v5810_v2, %v5806_v25  ;;  %v5628_v34 = vld [vmem:[%s15295_s17 + $0xb8] sm:$0xff]  ;;  %v5838_v42 = vld [vmem:[#allocation20 + $0x148] sm:$0xff]  ;;  %v5627_v25 = vld [vmem:[%s15295_s17 + $0xb0] sm:$0xff] }
 0xcd9   :  { %v5842_v47 = vld [vmem:[#allocation20 + $0x168] sm:$0xff]  ;;  %v14093_v2 = vpack.c.bf16 %v5628_v34, %v5624_v44  ;;  %15296 = vst [vmem:[#allocation120_spill] sm:$0xff] %v14126_v40  ;;  %v14128_v44 = vpack.c.bf16 %v5811_v43, %v5807_v38  ;;  %v14132_v34 = vpack.c.bf16 %v5820_v62, %v5816_v5  ;;  %v5848_v21 = vld [vmem:[#allocation20 + $0x198] sm:$0xff]  ;;  %v14162_v43 = vpack.c.bf16 %v5843_v3, %v5839_v28  ;;  %v5847_v62 = vld [vmem:[#allocation20 + $0x190] sm:$0xff] }
 0xcda   :  { %10830 = vmatpush1.bf16.msra.mxu1 %v13112_v11  ;;  %10862 = vmatpush1.bf16.msra.mxu0 %v13114_v9  ;;  %v5805_v11 = vld [vmem:[#allocation20 + $0x40] sm:$0xff]  ;;  %v5622_v9 = vld [vmem:[%s15295_s17 + $0x88] sm:$0xff]  ;;  %v14095_v54 = vpack.c.bf16 %v5842_v47, %v5838_v42  ;;  %v5852_v38 = vld [vmem:[#allocation20 + $0x1b8] sm:$0xff] }
 0xcdb   :  { %10864 = vmatprep.subr.bf16.mxu0 %v14007_v55  ;;  %10888 = vmatprep.subr.bf16.mxu1 %v14009_v13  ;;  %v14033_v7 = vpack.c.bf16 %v5809_v36, %v5805_v11  ;;  %v14039_v39 = vpack.c.bf16 %v5626_v41, %v5622_v9  ;;  %v5850_v11 = vld [vmem:[#allocation20 + $0x1a8] sm:$0xff]  ;;  %v5800_v36 = vld [vmem:[#allocation20 + $0x18] sm:$0xff]  ;;  %v14100_v41 = vpack.c.bf16 %v5627_v25, %v5623_v29  ;;  %v5815_v42 = vld [vmem:[#allocation20 + $0x90] sm:$0xff] }
 0xcdc   :  { %v5804_v9 = vld [vmem:[#allocation20 + $0x38] sm:$0xff]  ;;  %v5819_v47 = vld [vmem:[#allocation20 + $0xb0] sm:$0xff]  ;;  %v14166_v5 = vpack.c.bf16 %v5852_v38, %v5848_v21 }
 0xcdd   :  { %5498 = vmatmul.mubr.f32.vlgmr.msra.gmra.mrb[34].mxu1 %v5102_v12  ;;  %5569 = vmatmul.mubr.f32.vlgmr.msra.gmra.mrb[36].mxu0 %v5102_v12  ;;  %v5846_v12 = vld [vmem:[#allocation20 + $0x188] sm:$0xff]  ;;  %v14108_v30 = vpack.c.bf16 %v5804_v9, %v5800_v36  ;;  %v5824_v29 = vld [vmem:[#allocation20 + $0xd8] sm:$0xff]  ;;  %v6048_v56 = vld [vmem:[#allocation19 + $0x8] sm:$0xff] }
 0xcde   :  { %10866 = vmatpush1.bf16.msra.mxu0 %v14015_v19  ;;  %10890 = vmatpush1.bf16.msra.mxu1 %v14017_v49  ;;  %v14106_v10 = vpack.c.bf16 %v5850_v11, %v5846_v12  ;;  %v5828_v25 = vld [vmem:[#allocation20 + $0xf8] sm:$0xff]  ;;  %v5827_v12 = vld [vmem:[#allocation20 + $0xf0] sm:$0xff] }
 0xcdf   :  { %10868 = vmatprep.subr.bf16.mxu0 %v14023_v45  ;;  %10892 = vmatprep.subr.bf16.mxu1 %v14025_v26  ;;  %v14140_v61 = vpack.c.bf16 %v5828_v25, %v5824_v29  ;;  %v5832_v11 = vld [vmem:[#allocation20 + $0x118] sm:$0xff]  ;;  %v14145_v9 = vpack.c.bf16 %v5827_v12, %v5823_v1  ;;  %v5855_v12 = vld [vmem:[#allocation20 + $0x1d0] sm:$0xff] }
 0xce0   :  { %5719 = vmatprep.mubr.f32.mxu0 %v14879_v58  ;;  %5925 = vmatprep.mubr.f32.mxu1 %v14879_v58  ;;  %v5836_v36 = vld [vmem:[#allocation20 + $0x138] sm:$0xff] }
 0xce1   :  { %v14149_v31 = vpack.c.bf16 %v5836_v36, %v5832_v11  ;;  %v5860_v29 = vld [vmem:[#allocation20 + $0x1f8] sm:$0xff]  ;;  %v5859_v11 = vld [vmem:[#allocation20 + $0x1f0] sm:$0xff] }
 0xce2   :  { %10870 = vmatpush1.bf16.msra.mxu0 %v14031_v6  ;;  %10894 = vmatpush1.bf16.msra.mxu1 %v14033_v7  ;;  %v14176_v36 = vpack.c.bf16 %v5859_v11, %v5855_v12 }
 0xce3   :  { %10872 = vmatprep.subr.bf16.mxu0 %v14039_v39  ;;  %10896 = vmatprep.subr.bf16.mxu1 %v14041_v51 }
 0xce4   :  { %15297 = vst [vmem:[#allocation121_spill] sm:$0xff] %v14176_v36 }
 0xce6   :  { %10874 = vmatpush1.bf16.msra.mxu0 %v14049_v50  ;;  %10898 = vmatpush1.bf16.msra.mxu1 %v14051_v27 }
 0xce7   :  { %10876 = vmatprep.subr.bf16.mxu0 %v14057_v37  ;;  %10900 = vmatprep.subr.bf16.mxu1 %v14059_v35 }
 0xce9   :  { %8326 = vmatmul.mubr.msk.f32.vlgmr.msra.gmra.mrb[38].mxu0 %vm5651_vm3, %v14065_v22 }
 0xcea   :  { %10878 = vmatpush1.bf16.msra.mxu0 %v14067_v48  ;;  %10902 = vmatpush1.bf16.msra.mxu1 %v14069_v14 }
 0xceb   :  { %10880 = vmatprep.subr.bf16.mxu0 %v14075_v59  ;;  %10904 = vmatprep.subr.bf16.mxu1 %v14077_v63 }
 0xcec   :  { %5790 = vmatprep.mubr.f32.mxu0 %v14879_v58 }
 0xcee   :  { %10882 = vmatpush1.bf16.msra.mxu0 %v14085_v23  ;;  %10906 = vmatpush1.bf16.msra.mxu1 %v14087_v20 }
 0xcef   :  { %10884 = vmatprep.subr.bf16.mxu0 %v14093_v2  ;;  %10908 = vmatprep.subr.bf16.mxu1 %v14095_v54 }
 0xcf2   :  { %10886 = vmatpush1.bf16.msra.mxu0 %v14100_v41  ;;  %10910 = vmatpush1.bf16.msra.mxu1 %v14102_v4 }
 0xcf3   :  { %10912 = vmatprep.subr.bf16.mxu1 %v14106_v10  ;;  %10920 = vmatprep.subr.bf16.mxu0 %v14108_v30 }
 0xcf5   :  { %8327 = vmatmul.mubr.msk.f32.vlgmr.msra.gmra.mrb[40].mxu0 %vm5651_vm3, %v14065_v22  ;;  %v14137_v22 = vpack.c.bf16 %v5819_v47, %v5815_v42  ;;  %v5851_v42 = vld [vmem:[#allocation20 + $0x1b0] sm:$0xff]  ;;  %v5856_v47 = vld [vmem:[#allocation20 + $0x1d8] sm:$0xff] }
 0xcf6   :  { %10914 = vmatpush1.bf16.msra.mxu1 %v14112_v57  ;;  %10922 = vmatpush1.bf16.msra.mxu0 %v14114_v17  ;;  %v14170_v25 = vpack.c.bf16 %v5851_v42, %v5847_v62  ;;  %v14173_v1 = vpack.c.bf16 %v5860_v29, %v5856_v47 }
 0xcf7   :  { %10916 = vmatprep.subr.bf16.mxu1 %v14118_v24  ;;  %10924 = vmatprep.subr.bf16.mxu0 %v14120_v18 }
 0xcf8   :  { %5996 = vmatprep.mubr.f32.mxu0 %v14879_v58 }
 0xcfa   :  { %10918 = vmatpush1.bf16.msra.mxu1 %v14126_v40  ;;  %10926 = vmatpush1.bf16.msra.mxu0 %v14128_v44 }
 0xcfb   :  { %10928 = vmatprep.subr.bf16.mxu0 %v14132_v34  ;;  %10952 = vmatprep.subr.bf16.mxu1 %v14007_v55 }
 0xcfd   :  { %5926 = vmatmul.mubr.f32.vlgmr.msra.gmra.mrb[36].mxu1 %v14879_v58 }
 0xcfe   :  { %10930 = vmatpush1.bf16.msra.mxu0 %v14137_v22  ;;  %10954 = vmatpush1.bf16.msra.mxu1 %v14015_v19 }
 0xcff   :  { %10932 = vmatprep.subr.bf16.mxu0 %v14140_v61  ;;  %10956 = vmatprep.subr.bf16.mxu1 %v14023_v45 }
 0xd00   :  { %6118 = vmatprep.mubr.f32.mxu1 %v14879_v58 }
 0xd02   :  { %10934 = vmatpush1.bf16.msra.mxu0 %v14145_v9  ;;  %10958 = vmatpush1.bf16.msra.mxu1 %v14031_v6 }
 0xd03   :  { %10936 = vmatprep.subr.bf16.mxu0 %v14149_v31  ;;  %10960 = vmatprep.subr.bf16.mxu1 %v14039_v39 }
 0xd06   :  { %10938 = vmatpush1.bf16.msra.mxu0 %v14154_v53  ;;  %10962 = vmatpush1.bf16.msra.mxu1 %v14049_v50 }
 0xd07   :  { %10940 = vmatprep.subr.bf16.mxu0 %v14158_v60  ;;  %10976 = vmatprep.subr.bf16.mxu1 %v14009_v13 }
 0xd09   :  { %8332 = vmatmul.mubr.msk.f32.vlgmr.msra.gmra.mrb[38].mxu1 %vm5651_vm3, %v6048_v56 }
 0xd0a   :  { %10942 = vmatpush1.bf16.msra.mxu0 %v14162_v43  ;;  %10978 = vmatpush1.bf16.msra.mxu1 %v14017_v49 }
 0xd0b   :  { %10944 = vmatprep.subr.bf16.mxu0 %v14166_v5  ;;  %10980 = vmatprep.subr.bf16.mxu1 %v14025_v26 }
 0xd0c   :  { %6260 = vmatprep.mubr.f32.mxu1 %v14879_v58 }
 0xd0e   :  { %10946 = vmatpush1.bf16.msra.mxu0 %v14170_v25  ;;  %10982 = vmatpush1.bf16.msra.mxu1 %v14033_v7 }
 0xd0f   :  { %10948 = vmatprep.subr.bf16.mxu0 %v14173_v1  ;;  %10984 = vmatprep.subr.bf16.mxu1 %v14041_v51 }
 0xd12   :  { %10950 = vmatpush1.bf16.msra.mxu0 %v14176_v36  ;;  %10986 = vmatpush1.bf16.msra.mxu1 %v14051_v27 }
 0xd13   :  { %10964 = vmatprep.subr.bf16.mxu0 %v14057_v37  ;;  %10988 = vmatprep.subr.bf16.mxu1 %v14059_v35 }
 0xd15   :  { %5997 = vmatmul.mubr.f32.vlgmr.msra.gmra.mrb[40].mxu0 %v14879_v58 }
 0xd16   :  { %10966 = vmatpush1.bf16.msra.mxu0 %v14067_v48  ;;  %6189 = vmatprep.mubr.f32.mxu0 %v14879_v58 }
 0xd17   :  { %10968 = vmatprep.subr.bf16.mxu0 %v14075_v59  ;;  %10990 = vmatpush1.bf16.msra.mxu1 %v14069_v14 }
 0xd18   :  { %10992 = vmatprep.subr.bf16.mxu1 %v14077_v63 }
 0xd1a   :  { %10970 = vmatpush1.bf16.msra.mxu0 %v14085_v23 }
 0xd1b   :  { %10972 = vmatprep.subr.bf16.mxu0 %v14093_v2  ;;  %10994 = vmatpush1.bf16.msra.mxu1 %v14087_v20 }
 0xd1c   :  { %10996 = vmatprep.subr.bf16.mxu1 %v14095_v54 }
 0xd1e   :  { %10974 = vmatpush1.bf16.msra.mxu0 %v14100_v41 }
 0xd1f   :  { %11008 = vmatprep.subr.bf16.mxu0 %v14108_v30  ;;  %10998 = vmatpush1.bf16.msra.mxu1 %v14102_v4 }
 0xd20   :  { %11000 = vmatprep.subr.bf16.mxu1 %v14106_v10 }
 0xd21   :  { %8333 = vmatmul.mubr.msk.f32.vlgmr.msra.gmra.mrb[42].mxu0 %vm5651_vm3, %v6048_v56 }
 0xd22   :  { %11010 = vmatpush1.bf16.msra.mxu0 %v14114_v17  ;;  %6331 = vmatprep.mubr.f32.mxu0 %v14879_v58 }
 0xd23   :  { %11012 = vmatprep.subr.bf16.mxu0 %v14120_v18  ;;  %11002 = vmatpush1.bf16.msra.mxu1 %v14112_v57 }
 0xd24   :  { %11004 = vmatprep.subr.bf16.mxu1 %v14118_v24 }
 0xd26   :  { %11014 = vmatpush1.bf16.msra.mxu0 %v14128_v44 }
 0xd27   :  { %11016 = vmatprep.subr.bf16.mxu0 %v14132_v34  ;;  %11006 = vmatpush1.bf16.msra.mxu1 %v14126_v40 }
 0xd28   :  { %11040 = vmatprep.subr.bf16.mxu1 %v14007_v55 }
 0xd2a   :  { %11018 = vmatpush1.bf16.msra.mxu0 %v14137_v22 }
 0xd2b   :  { %11020 = vmatprep.subr.bf16.mxu0 %v14140_v61 }
 0xd2e   :  { %11022 = vmatpush1.bf16.msra.mxu0 %v14145_v9 }
 0xd2f   :  { %11024 = vmatprep.subr.bf16.mxu0 %v14149_v31 }
 0xd32   :  { %11026 = vmatpush1.bf16.msra.mxu0 %v14154_v53 }
 0xd33   :  { %11028 = vmatprep.subr.bf16.mxu0 %v14158_v60 }
 0xd36   :  { %11030 = vmatpush1.bf16.msra.mxu0 %v14162_v43 }
 0xd37   :  { %11032 = vmatprep.subr.bf16.mxu0 %v14166_v5 }
 0xd3a   :  { %11034 = vmatpush1.bf16.msra.mxu0 %v14170_v25 }
 0xd3b   :  { %11036 = vmatprep.subr.bf16.mxu0 %v14173_v1 }
 0xd3e   :  { %11038 = vmatpush1.bf16.msra.mxu0 %v14176_v36 }
 0xd3f   :  { %11052 = vmatprep.subr.bf16.mxu0 %v14057_v37 }
 0xdb0   :  { %v5499_v33 = vpop.f32.mrb[34].mxu1  ;;  %v5570_v15 = vpop.f32.mrb[36].mxu0 }
 0xdb1   :  { %v11395_v16 = vadd.f32 %v5499_v33, %v15292_v32  ;;  %v5501_v28 = vpop.f32.mrb[35].mxu1  ;;  %v5572_v3 = vpop.f32.mrb[37].mxu0  ;;  %v11397_v55 = vadd.f32 %v5570_v15, %v15293_v52 }
 0xdb2   :  { %v11396_v21 = vadd.f32 %v5501_v28, %v14987_v8  ;;  %v11398_v42 = vadd.f32 %v5572_v3, %v13223_v0  ;;  %v5629_v8 = vld [vmem:[%s15298_s26] sm:$0xf]  ;;  %v15299_v28 = vld [vmem:[#allocation57_spill] sm:$0xff]  ;;  %v15300_v3 = vld [vmem:[#allocation58_spill] sm:$0xff] }
 0xdb3   :  { %v8323_v38 = vmul.f32 -1.442695, %v11395_v16 }
 0xdb4   :  { %v8324_v62 = vmul.f32 -1.442695, %v11396_v21  ;;  %v8325_v47 = vmul.f32 -1.442695, %v11398_v42  ;;  %v14231_v21 = vrot.slane %v5629_v8, %v15299_v28 }
 0xdb5   :  { %11765 = vpow2.f32 %v8323_v38  ;;  %v14234_v38 = vrot.slane %v5629_v8, %v15300_v3 }
 0xdb6   :  { %11767 = vpow2.f32 %v8324_v62 }
 0xdb7   :  { %11769 = vpow2.f32 %v8325_v47 }
 0xdb8   :  { %11771 = vtanh.f32 %v11397_v55 }
 0xdbc   :  { %v5721_v29 = vpop.f32.mrb[38].mxu0 }
 0xdbd   :  { %v5723_v37 = vpop.f32.mrb[39].mxu0  ;;  %v5722_v47 = vadd.f32 %v5721_v29, %v14231_v21 }
 0xdbf   :  { %v11766_v12 = vpop.eup %11765 }
 0xdc0   :  { %v11768_v11 = vpop.eup %11767  ;;  %v5582_v56 = vadd.f32 1.0, %v11766_v12  ;;  %v5724_v12 = vadd.f32 %v5723_v37, %v14234_v38 }
 0xdc1   :  { %v5588_v32 = vadd.f32 1.0, %v11768_v11  ;;  %v11770_v33 = vpop.eup %11769 }
 0xdc2   :  { %11773 = vrcp.f32 %v5582_v56  ;;  %v11772_v16 = vpop.eup %11771  ;;  %v5595_v62 = vadd.f32 1.0, %v11770_v33 }
 0xdc3   :  { %11775 = vrcp.f32 %v5588_v32 }
 0xdc4   :  { %11777 = vrcp.f32 %v5595_v62  ;;  %v15302_v62 = vld [vmem:[#allocation59_spill] sm:$0xff] }
 0xdcc   :  { %v11774_v0 = vpop.eup %11773 }
 0xdcd   :  { %v11776_v52 = vpop.eup %11775  ;;  %v5599_v15 = vmul.f32 %v11774_v0, %v11772_v16 }
 0xdce   :  { %v5598_v42 = vmul.f32 %v11776_v52, %v13961_v46  ;;  %v11778_v3 = vpop.eup %11777  ;;  %v15301_v52 = vld [vmem:[#allocation60_spill] sm:$0xff] }
 0xdd0   :  { %v5600_v55 = vadd.f32 %v5599_v15, %v5598_v42  ;;  %v5927_v11 = vpop.f32.mrb[36].mxu1  ;;  %v14242_v15 = vrot.slane %v5629_v8, %v15301_v52  ;;  %v14245_v42 = vrot.slane %v5629_v8, %v15302_v62 }
 0xdd1   :  { %v6003_v56 = vadd.f32 %v5927_v11, %v5722_v47  ;;  %v5929_v32 = vpop.f32.mrb[37].mxu1  ;;  %v6034_v11 = vpop.permute.xlu0 %6033 }
 0xdd2   :  { %11779 = vtanh.f32 %v5600_v55  ;;  %v6004_v28 = vadd.f32 %v5929_v32, %v5724_v12 }
 0xdd3   :  { %v8328_v40 = vmul.f32 -1.442695, %v6003_v56 }
 0xdd4   :  { %v8329_v36 = vmul.f32 -1.442695, %v6004_v28 }
 0xdd6   :  { %11781 = vpow2.f32 %v8329_v36 }
 0xdd7   :  { %11783 = vpow2.f32 %v8328_v40 }
 0xddc   :  { %v11780_v16 = vpop.eup %11779 }
 0xddd   :  { %v14239_v33 = vmul.f32 %v11780_v16, %v11778_v3  ;;  %v6041_v3 = vpop.permute.xlu0 %6040 }
 0xdde   :  { %v6043_v52 = vmul.f32 0.0, %v6041_v3 }
 0xde0   :  { %v11782_v46 = vpop.eup %11781 }
 0xde1   :  { %v11784_v0 = vpop.eup %11783  ;;  %v6016_v29 = vadd.f32 1.0, %v11782_v46 }
 0xde2   :  { %v6010_v37 = vadd.f32 1.0, %v11784_v0 }
 0xde3   :  { %11785 = vrcp.f32 %v6016_v29 }
 0xde4   :  { %11787 = vrcp.f32 %v6010_v37 }
 0xde8   :  { %v5998_v47 = vpop.f32.mrb[40].mxu0 }
 0xde9   :  { %v11403_v55 = vadd.f32 %v5998_v47, %v14242_v15  ;;  %v6000_v36 = vpop.f32.mrb[41].mxu0 }
 0xdea   :  { %v11404_v40 = vadd.f32 %v6000_v36, %v14245_v42 }
 0xdeb   :  { %11789 = vtanh.f32 %v11403_v55 }
 0xdec   :  { %v8330_v12 = vmul.f32 -1.442695, %v11404_v40 }
 0xded   :  { %v11786_v56 = vpop.eup %11785 }
 0xdee   :  { %11791 = vpow2.f32 %v8330_v12  ;;  %v11788_v32 = vpop.eup %11787  ;;  %v6026_v16 = vmul.f32 0.0, %v11786_v56 }
 0xdf5   :  { %v11790_v28 = vpop.eup %11789 }
 0xdf6   :  { %v6027_v46 = vmul.f32 %v11790_v28, %v11788_v32  ;;  %v6789_v32 = vld [vmem:[%s15306_s3] sm:$0x7] }
 0xdf7   :  { %vm6790_vm4 = vcmp.gt.f32.partialorder %v6789_v32, 0.0 }
 0xdf8   :  { %v11792_v8 = vpop.eup %11791  ;;  %v6028_v0 = vadd.f32 %v6027_v46, %v6026_v16 }
 0xdf9   :  { %v6023_v29 = vadd.f32 1.0, %v11792_v8 }
 0xdfa   :  { %11793 = vtanh.f32 %v6028_v0  ;;  %v6045_v62 = vmul.f32 %v6034_v11, %v6028_v0 }
 0xdfb   :  { %11795 = vrcp.f32 %v6023_v29 }
 0xdfc   :  { %v14249_v37 = vadd.f32 %v6045_v62, %v6043_v52 }
 0xe04   :  { %v11794_v47 = vpop.eup %11793 }
 0xe05   :  { %v11796_v55 = vpop.eup %11795 }
 0xe06   :  { %v6030_v36 = vmul.f32 %v11796_v55, %v11794_v47 }
 0xe08   :  { %v6036_v40 = vmul.f32 %v6034_v11, %v6030_v36 }
 0xe0a   :  { %v14251_v12 = vadd.f32 %v6043_v52, %v6036_v40 }
 0xe0c   :  { %6261 = vmatmul.mubr.f32.vlgmr.msra.gmra.mrb[38].mxu1 %v14251_v12  ;;  %6332 = vmatmul.mubr.f32.vlgmr.msra.gmra.mrb[42].mxu0 %v14251_v12 }
 0xe0d   :  { %11042 = vmatpush1.bf16.msra.mxu1 %v14015_v19  ;;  %11054 = vmatpush1.bf16.msra.mxu0 %v14067_v48  ;;  %v6384_v19 = vld [vmem:[#allocation19 + $0x10] sm:$0xff] }
 0xe0e   :  { %11044 = vmatprep.subr.bf16.mxu1 %v14023_v45  ;;  %11056 = vmatprep.subr.bf16.mxu0 %v14075_v59 }
 0xe0f   :  { %6454 = vmatprep.mubr.f32.mxu1 %v14879_v58  ;;  %6525 = vmatprep.mubr.f32.mxu0 %v14879_v58 }
 0xe11   :  { %11046 = vmatpush1.bf16.msra.mxu1 %v14031_v6  ;;  %11058 = vmatpush1.bf16.msra.mxu0 %v14085_v23 }
 0xe12   :  { %11048 = vmatprep.subr.bf16.mxu1 %v14039_v39  ;;  %11060 = vmatprep.subr.bf16.mxu0 %v14093_v2 }
 0xe15   :  { %11050 = vmatpush1.bf16.msra.mxu1 %v14049_v50  ;;  %11062 = vmatpush1.bf16.msra.mxu0 %v14100_v41 }
 0xe16   :  { %11064 = vmatprep.subr.bf16.mxu1 %v14009_v13  ;;  %11096 = vmatprep.subr.bf16.mxu0 %v14108_v30  ;;  %v15303_v13 = vld [vmem:[#allocation120_spill] sm:$0xff] }
 0xe18   :  { %8338 = vmatmul.mubr.msk.f32.vlgmr.msra.gmra.mrb[40].mxu1 %vm5651_vm3, %v6384_v19  ;;  %8339 = vmatmul.mubr.msk.f32.vlgmr.msra.gmra.mrb[44].mxu0 %vm5651_vm3, %v6384_v19 }
 0xe19   :  { %11066 = vmatpush1.bf16.msra.mxu1 %v14017_v49  ;;  %11098 = vmatpush1.bf16.msra.mxu0 %v14114_v17  ;;  %v15304_v49 = vld [vmem:[#allocation121_spill] sm:$0xff] }
 0xe1a   :  { %11068 = vmatprep.subr.bf16.mxu1 %v14025_v26  ;;  %11100 = vmatprep.subr.bf16.mxu0 %v14120_v18 }
 0xe1b   :  { %6596 = vmatprep.mubr.f32.mxu1 %v14879_v58  ;;  %6667 = vmatprep.mubr.f32.mxu0 %v14879_v58 }
 0xe1d   :  { %11070 = vmatpush1.bf16.msra.mxu1 %v14033_v7  ;;  %11102 = vmatpush1.bf16.msra.mxu0 %v14128_v44 }
 0xe1e   :  { %11072 = vmatprep.subr.bf16.mxu1 %v14041_v51  ;;  %11104 = vmatprep.subr.bf16.mxu0 %v14132_v34 }
 0xe21   :  { %11074 = vmatpush1.bf16.msra.mxu1 %v14051_v27  ;;  %11106 = vmatpush1.bf16.msra.mxu0 %v14137_v22 }
 0xe22   :  { %11076 = vmatprep.subr.bf16.mxu1 %v14059_v35  ;;  %11108 = vmatprep.subr.bf16.mxu0 %v14140_v61 }
 0xe25   :  { %11078 = vmatpush1.bf16.msra.mxu1 %v14069_v14  ;;  %11110 = vmatpush1.bf16.msra.mxu0 %v14145_v9 }
 0xe26   :  { %11080 = vmatprep.subr.bf16.mxu1 %v14077_v63  ;;  %11112 = vmatprep.subr.bf16.mxu0 %v14149_v31 }
 0xe29   :  { %11082 = vmatpush1.bf16.msra.mxu1 %v14087_v20  ;;  %11114 = vmatpush1.bf16.msra.mxu0 %v14154_v53  ;;  %v6717_v53 = vld [vmem:[%s15305_s27] sm:$0xff] }
 0xe2a   :  { %11084 = vmatprep.subr.bf16.mxu1 %v14095_v54  ;;  %11116 = vmatprep.subr.bf16.mxu0 %v14158_v60  ;;  %v6716_v60 = vld [vmem:[#allocation22] sm:$0x7] }
 0xe2d   :  { %11086 = vmatpush1.bf16.msra.mxu1 %v14102_v4  ;;  %11118 = vmatpush1.bf16.msra.mxu0 %v14162_v43  ;;  %v15307_v43 = vmov 0.0|0.0  }
 0xe2e   :  { %11088 = vmatprep.subr.bf16.mxu1 %v14106_v10  ;;  %11120 = vmatprep.subr.bf16.mxu0 %v14166_v5 }
 0xe31   :  { %11090 = vmatpush1.bf16.msra.mxu1 %v14112_v57  ;;  %11122 = vmatpush1.bf16.msra.mxu0 %v14170_v25 }
 0xe32   :  { %11092 = vmatprep.subr.bf16.mxu1 %v14118_v24  ;;  %11124 = vmatprep.subr.bf16.mxu0 %v14173_v1  ;;  %v6369_v24 = vpop.permute.xlu1 %6368 }
 0xe35   :  { %11094 = vmatpush1.bf16.msra.mxu1 %v15303_v13  ;;  %11126 = vmatpush1.bf16.msra.mxu0 %v15304_v49 }
 0xe36   :  { %8605 = vmatprep.subr.mxu1 %v14879_v58  ;;  %8610 = vmatprep.subr.mxu0 %v14879_v58  ;;  %v6376_v22 = vpop.permute.xlu1 %6375 }
 0xe37   :  { %v6378_v61 = vmul.f32 %v6376_v22, %v14251_v12  ;;  %v6381_v13 = vmul.f32 %v6376_v22, %v14249_v37  ;;  %v6887_v22 = vld [vmem:[%s15308_s25 + $0x48] sm:$0xff] }
 0xedf   :  { %v6262_v45 = vpop.f32.mrb[38].mxu1  ;;  %v6333_v26 = vpop.f32.mrb[42].mxu0 }
 0xee0   :  { %v11405_v6 = vadd.f32 %v6262_v45, %v14231_v21  ;;  %v6264_v7 = vpop.f32.mrb[39].mxu1  ;;  %v6335_v39 = vpop.f32.mrb[43].mxu0  ;;  %v11407_v14 = vadd.f32 %v6333_v26, %v14242_v15  ;;  %v8337_v26 = vld [vmem:[%s15294_s21 + $0x10] sm:$0xff] }
 0xee1   :  { %v11406_v51 = vadd.f32 %v6264_v7, %v14234_v38  ;;  %v11408_v35 = vadd.f32 %v6335_v39, %v14245_v42 }
 0xee2   :  { %v8334_v50 = vmul.f32 -1.442695, %v11405_v6 }
 0xee3   :  { %v8335_v27 = vmul.f32 -1.442695, %v11406_v51  ;;  %v8336_v48 = vmul.f32 -1.442695, %v11408_v35 }
 0xee4   :  { %11797 = vpow2.f32 %v8334_v50 }
 0xee5   :  { %11799 = vpow2.f32 %v8335_v27 }
 0xee6   :  { %11801 = vpow2.f32 %v8336_v48 }
 0xee7   :  { %11803 = vtanh.f32 %v11407_v14 }
 0xeee   :  { %v11798_v59 = vpop.eup %11797 }
 0xeef   :  { %v11800_v63 = vpop.eup %11799  ;;  %v6345_v23 = vadd.f32 1.0, %v11798_v59 }
 0xef0   :  { %v6351_v20 = vadd.f32 1.0, %v11800_v63  ;;  %v11802_v2 = vpop.eup %11801 }
 0xef1   :  { %11805 = vrcp.f32 %v6345_v23  ;;  %v11804_v54 = vpop.eup %11803  ;;  %v6358_v30 = vadd.f32 1.0, %v11802_v2  ;;  %v6708_v23 = vsub.f32 1.0, %v8337_v26  ;;  %v6879_v2 = vld [vmem:[%s15308_s25 + $0x8] sm:$0xff] }
 0xef2   :  { %11807 = vrcp.f32 %v6351_v20  ;;  %v6878_v20 = vld [vmem:[%s15308_s25] sm:$0xff] }
 0xef3   :  { %11809 = vrcp.f32 %v6358_v30  ;;  %v6882_v30 = vld [vmem:[%s15308_s25 + $0x20] sm:$0xff] }
 0xefb   :  { %v11806_v41 = vpop.eup %11805 }
 0xefc   :  { %v11808_v4 = vpop.eup %11807  ;;  %v6362_v10 = vmul.f32 %v11806_v41, %v11804_v54  ;;  %v11128_v54 = vpack.c.bf16 %v6879_v2, %v6878_v20  ;;  %v6880_v41 = vld [vmem:[%s15308_s25 + $0x10] sm:$0xff] }
 0xefd   :  { %v6361_v57 = vmul.f32 %v11808_v4, %v14249_v37  ;;  %v11810_v18 = vpop.eup %11809  ;;  %v6881_v4 = vld [vmem:[%s15308_s25 + $0x18] sm:$0xff] }
 0xeff   :  { %v6363_v17 = vadd.f32 %v6362_v10, %v6361_v57  ;;  %v11131_v10 = vpack.c.bf16 %v6881_v4, %v6880_v41  ;;  %v6883_v57 = vld [vmem:[%s15308_s25 + $0x28] sm:$0xff]  ;;  %v7068_v41 = vld [vmem:[%s15310_s28 + $0x20] sm:$0xff] }
 0xf00   :  { %v7069_v4 = vld [vmem:[%s15310_s28 + $0x28] sm:$0xff] }
 0xf01   :  { %11811 = vtanh.f32 %v6363_v17  ;;  %v6380_v12 = vmul.f32 %v6369_v24, %v6363_v17  ;;  %v11134_v17 = vpack.c.bf16 %v6883_v57, %v6882_v30  ;;  %v7070_v30 = vld [vmem:[%s15310_s28 + $0x30] sm:$0xff]  ;;  %v7071_v57 = vld [vmem:[%s15310_s28 + $0x38] sm:$0xff] }
 0xf03   :  { %v6382_v45 = vadd.f32 %v6381_v13, %v6380_v12  ;;  %v6978_v13 = vld [vmem:[%s15309_s29 + $0x38] sm:$0xff] }
 0xf0b   :  { %v11812_v44 = vpop.eup %11811 }
 0xf0c   :  { %v6365_v34 = vmul.f32 %v11812_v44, %v11810_v18  ;;  %v6885_v18 = vld [vmem:[%s15308_s25 + $0x38] sm:$0xff] }
 0xf0e   :  { %v6371_v9 = vmul.f32 %v6369_v24, %v6365_v34  ;;  %v6884_v24 = vld [vmem:[%s15308_s25 + $0x30] sm:$0xff]  ;;  %v6886_v34 = vld [vmem:[%s15308_s25 + $0x40] sm:$0xff] }
 0xf0f   :  { %v11137_v44 = vpack.c.bf16 %v6885_v18, %v6884_v24  ;;  %v7072_v24 = vld [vmem:[%s15310_s28 + $0x40] sm:$0xff]  ;;  %v7073_v18 = vld [vmem:[%s15310_s28 + $0x48] sm:$0xff] }
 0xf10   :  { %v14311_v31 = vadd.f32 %v6378_v61, %v6371_v9  ;;  %v11140_v61 = vpack.c.bf16 %v6887_v22, %v6886_v34  ;;  %v6888_v9 = vld [vmem:[%s15308_s25 + $0x50] sm:$0xff]  ;;  %v7075_v22 = vld [vmem:[%s15310_s28 + $0x58] sm:$0xff] }
 0xf11   :  { %v7074_v34 = vld [vmem:[%s15310_s28 + $0x50] sm:$0xff] }
 0xf12   :  { %6597 = vmatmul.mubr.f32.vlgmr.msra.gmra.mrb[40].mxu1 %v14311_v31  ;;  %6668 = vmatmul.mubr.f32.vlgmr.msra.gmra.mrb[44].mxu0 %v14311_v31 }
 0xf13   :  { %8606 = vmatpush3.xpose.msra.mxu1 %v6717_v53  ;;  %8607 = vmatprep.mubr.msk.f32.mxu1 %vm12314_vm0, %v14879_v58  ;;  %v6889_v53 = vld [vmem:[%s15308_s25 + $0x58] sm:$0xff] }
 0xf14   :  { %8612 = vmatprep.mubr.msk.f32.mxu0 %vm12314_vm0, %v14879_v58  ;;  %11127 = vmatprep.subr.bf16.mxu1 %v15307_v43 }
 0xf16   :  { %8608 = vmatmul.mubr.f32.vlgmr.msra.gmra.mrb[42].mxu1 %v6716_v60  ;;  %v11143_v60 = vpack.c.bf16 %v6889_v53, %v6888_v9  ;;  %v7076_v9 = vld [vmem:[%s15310_s28 + $0x60] sm:$0xff]  ;;  %v7077_v53 = vld [vmem:[%s15310_s28 + $0x68] sm:$0xff] }
 0xf17   :  { %8647 = vmatprep.mubr.msk.f32.mxu1 %vm12314_vm0, %v14879_v58  ;;  %11129 = vmatpush3.bf16.msra.mxu1 %v11128_v54 }
 0xf18   :  { %11130 = vmatprep.subr.bf16.mxu1 %v15307_v43 }
 0xf1b   :  { %11132 = vmatpush3.bf16.msra.mxu1 %v11131_v10  ;;  %v11182_v10 = vpack.c.bf16 %v7069_v4, %v7068_v41 }
 0xf1c   :  { %11133 = vmatprep.subr.bf16.mxu1 %v15307_v43 }
 0xf1f   :  { %11135 = vmatpush3.bf16.msra.mxu1 %v11134_v17  ;;  %v11185_v17 = vpack.c.bf16 %v7071_v57, %v7070_v30 }
 0xf20   :  { %11136 = vmatprep.subr.bf16.mxu1 %v15307_v43 }
 0xf23   :  { %11138 = vmatpush3.bf16.msra.mxu1 %v11137_v44  ;;  %v11188_v44 = vpack.c.bf16 %v7073_v18, %v7072_v24 }
 0xf24   :  { %11139 = vmatprep.subr.bf16.mxu1 %v15307_v43 }
 0xf27   :  { %11141 = vmatpush3.bf16.msra.mxu1 %v11140_v61  ;;  %v11191_v61 = vpack.c.bf16 %v7075_v22, %v7074_v34  ;;  %v8352_v34 = vld [vmem:[%s15308_s25 + $0x88] sm:$0xff] }
 0xf28   :  { %11142 = vmatprep.subr.bf16.mxu1 %v15307_v43 }
 0xf2b   :  { %11144 = vmatpush3.bf16.msra.mxu1 %v11143_v60  ;;  %v11194_v60 = vpack.c.bf16 %v7077_v53, %v7076_v9  ;;  %v8353_v53 = vld [vmem:[%s15308_s25 + $0x90] sm:$0xff] }
 0xf2c   :  { %11145 = vmatprep.subr.bf16.mxu1 %v15307_v43 }
 0xfe5   :  { %v6598_v5 = vpop.f32.mrb[40].mxu1  ;;  %v6669_v25 = vpop.f32.mrb[44].mxu0 }
 0xfe6   :  { %v11409_v1 = vadd.f32 %v6598_v5, %v14231_v21  ;;  %v6600_v11 = vpop.f32.mrb[41].mxu1  ;;  %v6671_v56 = vpop.f32.mrb[45].mxu0  ;;  %v11411_v47 = vadd.f32 %v6669_v25, %v14242_v15  ;;  %v6890_v5 = vld [vmem:[%s15308_s25 + $0x60] sm:$0xff]  ;;  %v6891_v25 = vld [vmem:[%s15308_s25 + $0x68] sm:$0xff] }
 0xfe7   :  { %v11410_v28 = vadd.f32 %v6600_v11, %v14234_v38  ;;  %v11412_v29 = vadd.f32 %v6671_v56, %v14245_v42  ;;  %v6892_v11 = vld [vmem:[%s15308_s25 + $0x70] sm:$0xff]  ;;  %v6893_v56 = vld [vmem:[%s15308_s25 + $0x78] sm:$0xff] }
 0xfe8   :  { %v8340_v3 = vmul.f32 -1.442695, %v11409_v1  ;;  %v11146_v1 = vpack.c.bf16 %v6891_v25, %v6890_v5  ;;  %v11149_v32 = vpack.c.bf16 %v6893_v56, %v6892_v11  ;;  %v7078_v5 = vld [vmem:[%s15310_s28 + $0x70] sm:$0xff]  ;;  %v7079_v25 = vld [vmem:[%s15310_s28 + $0x78] sm:$0xff]  ;;  %v8369_v11 = vld [vmem:[%s15309_s29 + $0x80] sm:$0xff] }
 0xfe9   :  { %v8341_v16 = vmul.f32 -1.442695, %v11410_v28  ;;  %v6784_v46 = vpop.f32.mrb[42].mxu1  ;;  %v8342_v21 = vmul.f32 -1.442695, %v11412_v29  ;;  %v6972_v29 = vld [vmem:[%s15309_s29 + $0x8] sm:$0xff] }
 0xfea   :  { %11813 = vpow2.f32 %v8340_v3  ;;  %v6788_v8 = vmul.f32 0.088388346, %v6784_v46  ;;  %v8609_v0 = vpop.f32.mrb[43].mxu1  ;;  %11147 = vmatpush3.bf16.msra.mxu1 %v11146_v1  ;;  %v11197_v1 = vpack.c.bf16 %v7079_v25, %v7078_v5  ;;  %v8370_v56 = vld [vmem:[%s15309_s29 + $0x88] sm:$0xff]  ;;  %v8355_v25 = vld [vmem:[%s15308_s25 + $0xa0] sm:$0xff] }
 0xfeb   :  { %11815 = vpow2.f32 %v8341_v16  ;;  %11148 = vmatprep.subr.bf16.mxu1 %v15307_v43 }
 0xfec   :  { %v6791_v52 = vsel %vm6790_vm4, %v6788_v8, -1e+30  ;;  %11817 = vpow2.f32 %v8342_v21 }
 0xfed   :  { %v6793_v62 = vsel %vm6792_vm5, %v6791_v52, -inf  ;;  %11819 = vtanh.f32 %v11411_v47 }
 0xfee   :  { %6794 = vmax.xlane.f32.xlu0 %v6793_v62  ;;  %11150 = vmatpush3.bf16.msra.mxu1 %v11149_v32  ;;  %v11224_v32 = vpack.c.bf16 %v8370_v56, %v8369_v11  ;;  %v8357_v56 = vld [vmem:[%s15308_s25 + $0xb0] sm:$0xff] }
 0xfef   :  { %11175 = vmatprep.subr.bf16.mxu1 %v15307_v43 }
 0xff4   :  { %v11814_v38 = vpop.eup %11813 }
 0xff5   :  { %v11816_v55 = vpop.eup %11815  ;;  %v6681_v36 = vadd.f32 1.0, %v11814_v38  ;;  %v6973_v38 = vld [vmem:[%s15309_s29 + $0x10] sm:$0xff] }
 0xff6   :  { %v6687_v40 = vadd.f32 1.0, %v11816_v55  ;;  %v11818_v19 = vpop.eup %11817  ;;  %v6974_v55 = vld [vmem:[%s15309_s29 + $0x18] sm:$0xff] }
 0xff7   :  { %11821 = vrcp.f32 %v6681_v36  ;;  %v11820_v42 = vpop.eup %11819  ;;  %v6694_v39 = vadd.f32 1.0, %v11818_v19  ;;  %v6975_v36 = vld [vmem:[%s15309_s29 + $0x20] sm:$0xff]  ;;  %v6977_v19 = vld [vmem:[%s15309_s29 + $0x30] sm:$0xff] }
 0xff8   :  { %11823 = vrcp.f32 %v6687_v40  ;;  %v6976_v40 = vld [vmem:[%s15309_s29 + $0x28] sm:$0xff] }
 0xff9   :  { %11825 = vrcp.f32 %v6694_v39  ;;  %v11158_v12 = vpack.c.bf16 %v6976_v40, %v6975_v36  ;;  %v8381_v40 = vld [vmem:[%s15309_s29 + $0xe0] sm:$0xff] }
0x1001   :  { %v11822_v49 = vpop.eup %11821 }
0x1002   :  { %v11824_v6 = vpop.eup %11823  ;;  %v6698_v7 = vmul.f32 %v11822_v49, %v11820_v42  ;;  %v11161_v42 = vpack.c.bf16 %v6978_v13, %v6977_v19  ;;  %v6979_v49 = vld [vmem:[%s15309_s29 + $0x40] sm:$0xff]  ;;  %v8383_v13 = vld [vmem:[%s15309_s29 + $0xf0] sm:$0xff] }
0x1003   :  { %v6697_v15 = vmul.f32 %v11824_v6, %v6382_v45  ;;  %v11826_v50 = vpop.eup %11825  ;;  %v6980_v45 = vld [vmem:[%s15309_s29 + $0x48] sm:$0xff]  ;;  %v6981_v6 = vld [vmem:[%s15309_s29 + $0x50] sm:$0xff] }
0x1004   :  { %6704 = vperm.xlu0 %11523, %v8337_v26   ;;  %v11164_v26 = vpack.c.bf16 %v6980_v45, %v6979_v49  ;;  %v8345_v45 = vld [vmem:[%s15311_s1] ss:$0 sm:$0xff] }
0x1005   :  { %v6699_v51 = vadd.f32 %v6698_v7, %v6697_v15  ;;  %v6982_v7 = vld [vmem:[%s15309_s29 + $0x58] sm:$0xff]  ;;  %v6983_v15 = vld [vmem:[%s15309_s29 + $0x60] sm:$0xff] }
0x1006   :  { %v11167_v39 = vpack.c.bf16 %v6982_v7, %v6981_v6  ;;  %v8344_v7 = vld [vmem:[%s15312_s14] ss:$0 sm:$0xff] }
0x1007   :  { %11827 = vtanh.f32 %v6699_v51  ;;  %v6984_v51 = vld [vmem:[%s15309_s29 + $0x68] sm:$0xff] }
0x1011   :  { %v11828_v27 = vpop.eup %11827 }
0x1012   :  { %v6701_v35 = vmul.f32 %v11828_v27, %v11826_v50  ;;  %v11170_v50 = vpack.c.bf16 %v6984_v51, %v6983_v15  ;;  %v6985_v27 = vld [vmem:[%s15309_s29 + $0x70] sm:$0xff] }
0x107b   :  { %v6795_v37 = vpop.xlane.xlu0 %6794 }
0x107c   :  { %v6796_v48 = vsub.f32 %v6791_v52, %v6795_v37  ;;  %v6971_v52 = vld [vmem:[%s15309_s29] sm:$0xff] }
0x107d   :  { %v11152_v21 = vpack.c.bf16 %v6972_v29, %v6971_v52  ;;  %v8375_v52 = vld [vmem:[%s15309_s29 + $0xb0] sm:$0xff]  ;;  %v8376_v29 = vld [vmem:[%s15309_s29 + $0xb8] sm:$0xff] }
0x107e   :  { %v6797_v14 = vmul.f32 1.442695, %v6796_v48  ;;  %v7064_v48 = vld [vmem:[%s15310_s28] sm:$0xff] }
0x1080   :  { %11829 = vpow2.f32 %v6797_v14  ;;  %v7065_v14 = vld [vmem:[%s15310_s28 + $0x8] sm:$0xff] }
0x1083   :  { %v6705_v3 = vpop.permute.xlu0 %6704 }
0x1084   :  { %v6707_v46 = vmul.f32 %v6705_v3, %v6701_v35  ;;  %v6986_v35 = vld [vmem:[%s15309_s29 + $0x78] sm:$0xff] }
0x1085   :  { %v11173_v37 = vpack.c.bf16 %v6986_v35, %v6985_v27  ;;  %v8372_v3 = vld [vmem:[%s15309_s29 + $0x98] sm:$0xff]  ;;  %v8346_v27 = vld [vmem:[%s15313_s2] ss:$0 sm:$0xff] }
0x108a   :  { %v11830_v59 = vpop.eup %11829 }
0x108b   :  { %v6799_v63 = vsel %vm6792_vm5, %v11830_v59, 0.0 }
0x108c   :  { %6800 = vadd.xlane.f32.xlu1 %v6799_v63  ;;  %v7066_v63 = vld [vmem:[%s15310_s28 + $0x10] sm:$0xff] }
0x109d   :  { %6711 = vperm.xlu1 %11524, %v6708_v23   ;;  %v7067_v23 = vld [vmem:[%s15310_s28 + $0x18] sm:$0xff] }
0x109e   :  { %v11179_v54 = vpack.c.bf16 %v7067_v23, %v7066_v63 }
0x1119   :  { %v6801_v28 = vpop.xlane.xlu1 %6800 }
0x111a   :  { %11831 = vrcp.f32 %v6801_v28  ;;  %v8371_v28 = vld [vmem:[%s15309_s29 + $0x90] sm:$0xff] }
0x111d   :  { %v6712_v16 = vpop.permute.xlu1 %6711 }
0x111e   :  { %v6714_v8 = vmul.f32 %v6712_v16, %v14311_v31  ;;  %v11155_v31 = vpack.c.bf16 %v6974_v55, %v6973_v38  ;;  %v11227_v16 = vpack.c.bf16 %v8372_v3, %v8371_v28  ;;  %v8379_v55 = vld [vmem:[%s15309_s29 + $0xd0] sm:$0xff]  ;;  %v8359_v3 = vld [vmem:[%s15308_s25 + $0xc0] sm:$0xff] }
0x1120   :  { %v6715_v0 = vadd.f32 %v6714_v8, %v6707_v46  ;;  %v8373_v46 = vld [vmem:[%s15309_s29 + $0xa0] sm:$0xff]  ;;  %v8374_v8 = vld [vmem:[%s15309_s29 + $0xa8] sm:$0xff] }
0x1122   :  { %8611 = vmatpush3.msra.mxu0 %v6715_v0  ;;  %v11230_v0 = vpack.c.bf16 %v8374_v8, %v8373_v46  ;;  %v8361_v8 = vld [vmem:[%s15308_s25 + $0xd0] sm:$0xff] }
0x1123   :  { %11151 = vmatprep.subr.bf16.mxu0 %v15307_v43 }
0x1124   :  { %v11832_v62 = vpop.eup %11831 }
0x1125   :  { %v6803_v47 = vmul.f32 %v11832_v62, %v11830_v59  ;;  %v11176_v59 = vpack.c.bf16 %v7065_v14, %v7064_v48  ;;  %v11233_v62 = vpack.c.bf16 %v8376_v29, %v8375_v52  ;;  %v8386_v14 = vld [vmem:[%s15311_s1 + $0x1] ss:$0 sm:$0xff] }
0x1126   :  { %v8363_v29 = vld [vmem:[%s15308_s25 + $0xe0] sm:$0xff] }
0x1127   :  { %8613 = vmatmul.mubr.msk.f32.vlgmr.msra.gmra.mrb[46].mxu0 %vm6804_vm6, %v6803_v47  ;;  %v8378_v47 = vld [vmem:[%s15309_s29 + $0xc8] sm:$0xff] }
0x1128   :  { %11153 = vmatpush3.bf16.msra.mxu0 %v11152_v21  ;;  %8682 = vmatprep.mubr.msk.f32.mxu0 %vm12314_vm0, %v14879_v58  ;;  %v8377_v21 = vld [vmem:[%s15309_s29 + $0xc0] sm:$0xff] }
0x1129   :  { %11154 = vmatprep.subr.bf16.mxu0 %v15307_v43  ;;  %v11236_v38 = vpack.c.bf16 %v8378_v47, %v8377_v21  ;;  %v8365_v47 = vld [vmem:[%s15308_s25 + $0xf0] sm:$0xff] }
0x112c   :  { %11156 = vmatpush3.bf16.msra.mxu0 %v11155_v31  ;;  %v8380_v31 = vld [vmem:[%s15309_s29 + $0xd8] sm:$0xff] }
0x112d   :  { %11157 = vmatprep.subr.bf16.mxu0 %v15307_v43  ;;  %v11239_v36 = vpack.c.bf16 %v8380_v31, %v8379_v55  ;;  %v8387_v31 = vld [vmem:[%s15310_s28 + $0x80] sm:$0xff] }
0x1130   :  { %11159 = vmatpush3.bf16.msra.mxu0 %v11158_v12  ;;  %v8382_v12 = vld [vmem:[%s15309_s29 + $0xe8] sm:$0xff] }
0x1131   :  { %11160 = vmatprep.subr.bf16.mxu0 %v15307_v43  ;;  %v11242_v19 = vpack.c.bf16 %v8382_v12, %v8381_v40  ;;  %v8389_v12 = vld [vmem:[%s15310_s28 + $0x90] sm:$0xff] }
0x1134   :  { %11162 = vmatpush3.bf16.msra.mxu0 %v11161_v42  ;;  %v8384_v42 = vld [vmem:[%s15309_s29 + $0xf8] sm:$0xff] }
0x1135   :  { %11163 = vmatprep.subr.bf16.mxu0 %v15307_v43  ;;  %v11245_v49 = vpack.c.bf16 %v8384_v42, %v8383_v13  ;;  %v8391_v42 = vld [vmem:[%s15310_s28 + $0xa0] sm:$0xff] }
0x1138   :  { %11165 = vmatpush3.bf16.msra.mxu0 %v11164_v26 }
0x1139   :  { %11166 = vmatprep.subr.bf16.mxu0 %v15307_v43 }
0x113c   :  { %11168 = vmatpush3.bf16.msra.mxu0 %v11167_v39 }
0x113d   :  { %11169 = vmatprep.subr.bf16.mxu0 %v15307_v43 }
0x1140   :  { %11171 = vmatpush3.bf16.msra.mxu0 %v11170_v50 }
0x1141   :  { %11172 = vmatprep.subr.bf16.mxu0 %v15307_v43 }
0x1144   :  { %11174 = vmatpush3.bf16.msra.mxu0 %v11173_v37 }
0x1145   :  { %8720 = vmatprep.subr.mxu0 %v14879_v58 }
0x11fa   :  { %v14388_v20 = vpop.f32.mrb[46].mxu0 }
0x11fb   :  { %v8614_v2 = vpop.f32.mrb[47].mxu0  ;;  %8648 = vmatmul.mubr.f32.vlgmr.msra.gmra.mrb[44].mxu1 %v14388_v20  ;;  %8683 = vmatmul.mubr.f32.vlgmr.msra.gmra.mrb[48].mxu0 %v14388_v20 }
0x11fc   :  { %11177 = vmatpush3.bf16.msra.mxu1 %v11176_v59  ;;  %8717 = vmatprep.mubr.msk.f32.mxu1 %vm12314_vm0, %v14879_v58 }
0x11fd   :  { %11178 = vmatprep.subr.bf16.mxu1 %v15307_v43  ;;  %8722 = vmatprep.mubr.msk.f32.mxu0 %vm12314_vm0, %v14879_v58 }
0x1200   :  { %11180 = vmatpush3.bf16.msra.mxu1 %v11179_v54 }
0x1201   :  { %11181 = vmatprep.subr.bf16.mxu1 %v15307_v43 }
0x1204   :  { %11183 = vmatpush3.bf16.msra.mxu1 %v11182_v10 }
0x1205   :  { %11184 = vmatprep.subr.bf16.mxu1 %v15307_v43 }
0x1208   :  { %11186 = vmatpush3.bf16.msra.mxu1 %v11185_v17 }
0x1209   :  { %11187 = vmatprep.subr.bf16.mxu1 %v15307_v43 }
0x120c   :  { %11189 = vmatpush3.bf16.msra.mxu1 %v11188_v44  ;;  %v8351_v44 = vld [vmem:[%s15308_s25 + $0x80] sm:$0xff] }
0x120d   :  { %11190 = vmatprep.subr.bf16.mxu1 %v15307_v43 }
0x1210   :  { %11192 = vmatpush3.bf16.msra.mxu1 %v11191_v61  ;;  %v11200_v61 = vpack.c.bf16 %v8352_v34, %v8351_v44  ;;  %v7332_v44 = vld [vmem:[#allocation23 + $0x38] sm:$0xff] }
0x1211   :  { %11193 = vmatprep.subr.bf16.mxu1 %v15307_v43 }
0x1214   :  { %11195 = vmatpush3.bf16.msra.mxu1 %v11194_v60  ;;  %v8354_v60 = vld [vmem:[%s15308_s25 + $0x98] sm:$0xff] }
0x1215   :  { %11196 = vmatprep.subr.bf16.mxu1 %v15307_v43  ;;  %v11203_v5 = vpack.c.bf16 %v8354_v60, %v8353_v53  ;;  %v7957_v53 = vld [vmem:[#allocation25 + $0x18] sm:$0xff] }
0x1218   :  { %11198 = vmatpush3.bf16.msra.mxu1 %v11197_v1  ;;  %v8356_v1 = vld [vmem:[%s15308_s25 + $0xa8] sm:$0xff] }
0x1219   :  { %11223 = vmatprep.subr.bf16.mxu1 %v15307_v43  ;;  %v11206_v11 = vpack.c.bf16 %v8356_v1, %v8355_v25  ;;  %v7958_v1 = vld [vmem:[#allocation25 + $0x20] sm:$0xff] }
0x121b   :  { %8718 = vmatmul.mubr.f32.vlgmr.msra.gmra.mrb[46].mxu1 %v14388_v20 }
0x121c   :  { %11225 = vmatpush3.bf16.msra.mxu1 %v11224_v32  ;;  %8797 = vmatprep.mubr.msk.f32.mxu1 %vm12314_vm0, %v14879_v58  ;;  %v8358_v32 = vld [vmem:[%s15308_s25 + $0xb8] sm:$0xff] }
0x121d   :  { %11226 = vmatprep.subr.bf16.mxu1 %v15307_v43  ;;  %v11209_v28 = vpack.c.bf16 %v8358_v32, %v8357_v56  ;;  %v7960_v32 = vld [vmem:[#allocation25 + $0x30] sm:$0xff] }
0x1220   :  { %11228 = vmatpush3.bf16.msra.mxu1 %v11227_v16  ;;  %v8360_v16 = vld [vmem:[%s15308_s25 + $0xc8] sm:$0xff] }
0x1221   :  { %11229 = vmatprep.subr.bf16.mxu1 %v15307_v43  ;;  %v11212_v46 = vpack.c.bf16 %v8360_v16, %v8359_v3  ;;  %v7962_v16 = vld [vmem:[#allocation25 + $0x40] sm:$0xff] }
0x1224   :  { %11231 = vmatpush3.bf16.msra.mxu1 %v11230_v0  ;;  %v8362_v0 = vld [vmem:[%s15308_s25 + $0xd8] sm:$0xff] }
0x1225   :  { %11232 = vmatprep.subr.bf16.mxu1 %v15307_v43  ;;  %v11215_v52 = vpack.c.bf16 %v8362_v0, %v8361_v8  ;;  %v7964_v0 = vld [vmem:[#allocation25 + $0x50] sm:$0xff] }
0x1228   :  { %11234 = vmatpush3.bf16.msra.mxu1 %v11233_v62  ;;  %v8364_v62 = vld [vmem:[%s15308_s25 + $0xe8] sm:$0xff] }
0x1229   :  { %11235 = vmatprep.subr.bf16.mxu1 %v15307_v43  ;;  %v11218_v21 = vpack.c.bf16 %v8364_v62, %v8363_v29  ;;  %v7966_v62 = vld [vmem:[#allocation25 + $0x60] sm:$0xff] }
0x122c   :  { %11237 = vmatpush3.bf16.msra.mxu1 %v11236_v38  ;;  %v8366_v38 = vld [vmem:[%s15308_s25 + $0xf8] sm:$0xff] }
0x122d   :  { %11238 = vmatprep.subr.bf16.mxu1 %v15307_v43  ;;  %v11221_v55 = vpack.c.bf16 %v8366_v38, %v8365_v47  ;;  %v7968_v38 = vld [vmem:[#allocation25 + $0x70] sm:$0xff] }
0x1230   :  { %11240 = vmatpush3.bf16.msra.mxu1 %v11239_v36  ;;  %v8388_v36 = vld [vmem:[%s15310_s28 + $0x88] sm:$0xff] }
0x1231   :  { %11241 = vmatprep.subr.bf16.mxu1 %v15307_v43  ;;  %v11248_v40 = vpack.c.bf16 %v8388_v36, %v8387_v31  ;;  %v8368_v36 = vld [vmem:[%s15312_s14 + $0x1] ss:$0 sm:$0xff] }
0x1234   :  { %11243 = vmatpush3.bf16.msra.mxu1 %v11242_v19  ;;  %v8390_v19 = vld [vmem:[%s15310_s28 + $0x98] sm:$0xff] }
0x1235   :  { %11244 = vmatprep.subr.bf16.mxu1 %v15307_v43  ;;  %v11251_v13 = vpack.c.bf16 %v8390_v19, %v8389_v12 }
0x1238   :  { %11246 = vmatpush3.bf16.msra.mxu1 %v11245_v49  ;;  %v8392_v49 = vld [vmem:[%s15310_s28 + $0xa8] sm:$0xff] }
0x1239   :  { %8835 = vmatprep.subr.mxu1 %v14879_v58 }
0x123b   :  { %8798 = vmatmul.mubr.f32.vlgmr.msra.gmra.mrb[48].mxu1 %v14388_v20 }
0x123c   :  { %8837 = vmatprep.mubr.msk.f32.mxu1 %vm12314_vm0, %v14879_v58 }
0x12ce   :  { %v6967_v26 = vpop.f32.mrb[44].mxu1  ;;  %v7060_v6 = vpop.f32.mrb[48].mxu0 }
0x12cf   :  { %v7061_v39 = vadd.f32 %v8345_v45, %v7060_v6  ;;  %v8649_v15 = vpop.f32.mrb[45].mxu1  ;;  %v8684_v51 = vpop.f32.mrb[49].mxu0  ;;  %v6968_v50 = vadd.f32 %v8344_v7, %v6967_v26  ;;  %v11254_v45 = vpack.c.bf16 %v8392_v49, %v8391_v42  ;;  %v8393_v26 = vld [vmem:[%s15310_s28 + $0xb0] sm:$0xff]  ;;  %v8394_v6 = vld [vmem:[%s15310_s28 + $0xb8] sm:$0xff] }
0x12d0   :  { %v11257_v7 = vpack.c.bf16 %v8394_v6, %v8393_v26  ;;  %v8396_v15 = vld [vmem:[%s15310_s28 + $0xc8] sm:$0xff] }
0x12d1   :  { %8721 = vmatpush3.xpose.msk.msra.mxu0 %vm7157_vm7, %v7061_v39  ;;  %v8395_v39 = vld [vmem:[%s15310_s28 + $0xc0] sm:$0xff] }
0x12d2   :  { %8725 = vmatprep.subr.mxu0 %v14879_v58  ;;  %v11260_v51 = vpack.c.bf16 %v8396_v15, %v8395_v39 }
0x12d4   :  { %8723 = vmatmul.mubr.msk.f32.vlgmr.msra.gmra.mrb[50].mxu0 %vm7157_vm7, %v6968_v50  ;;  %v8397_v50 = vld [vmem:[%s15310_s28 + $0xd0] sm:$0xff] }
0x12d5   :  { %8727 = vmatprep.mubr.msk.f32.mxu0 %vm12314_vm0, %v14879_v58 }
0x12ee   :  { %v7153_v35 = vpop.f32.mrb[46].mxu1 }
0x12ef   :  { %v7154_v37 = vadd.f32 %v8346_v27, %v7153_v35  ;;  %v8719_v48 = vpop.f32.mrb[47].mxu1  ;;  %v8398_v27 = vld [vmem:[%s15310_s28 + $0xd8] sm:$0xff] }
0x12f0   :  { %v11263_v35 = vpack.c.bf16 %v8398_v27, %v8397_v50  ;;  %v8400_v48 = vld [vmem:[%s15310_s28 + $0xe8] sm:$0xff] }
0x12f1   :  { %8726 = vmatpush3.msk.msra.mxu0 %vm7251_vm8, %v7154_v37  ;;  %v8399_v37 = vld [vmem:[%s15310_s28 + $0xe0] sm:$0xff] }
0x12f2   :  { %11199 = vmatprep.subr.bf16.mxu0 %v15307_v43 }
0x130e   :  { %v7519_v59 = vpop.f32.mrb[48].mxu1 }
0x130f   :  { %v7520_v63 = vadd.f32 %v8386_v14, %v7519_v59  ;;  %v8799_v23 = vpop.f32.mrb[49].mxu1  ;;  %v11266_v14 = vpack.c.bf16 %v8400_v48, %v8399_v37  ;;  %v8401_v59 = vld [vmem:[%s15310_s28 + $0xf0] sm:$0xff] }
0x1311   :  { %8836 = vmatpush3.xpose.msk.msra.mxu1 %vm7157_vm7, %v7520_v63  ;;  %v8402_v63 = vld [vmem:[%s15310_s28 + $0xf8] sm:$0xff] }
0x1312   :  { %8840 = vmatprep.subr.mxu1 %v14879_v58  ;;  %v11269_v23 = vpack.c.bf16 %v8402_v63, %v8401_v59  ;;  %v7783_v63 = vld [vmem:[#allocation23 + $0x40] sm:$0xff] }
0x13a7   :  { %v7230_v2 = vpop.f32.mrb[50].mxu0 }
0x13a8   :  { %v7234_v54 = vmul.f32 0.125, %v7230_v2  ;;  %v8724_v41 = vpop.f32.mrb[51].mxu0  ;;  %v7325_v2 = vld [vmem:[#allocation23] sm:$0xff] }
0x13aa   :  { %v7236_v4 = vsel %vm7235_vm9, %v7234_v54, -inf }
0x13ab   :  { %7237 = vmax.xlane.f32.xlu0 %v7236_v4  ;;  %v7327_v4 = vld [vmem:[#allocation23 + $0x10] sm:$0xff] }
0x1438   :  { %v7238_v10 = vpop.xlane.xlu0 %7237 }
0x1439   :  { %v7239_v30 = vsub.f32 %v7234_v54, %v7238_v10  ;;  %v7326_v54 = vld [vmem:[#allocation23 + $0x8] sm:$0xff]  ;;  %v7328_v10 = vld [vmem:[#allocation23 + $0x18] sm:$0xff] }
0x143a   :  { %v11284_v41 = vpack.c.bf16 %v7326_v54, %v7325_v2 }
0x143b   :  { %v7240_v57 = vmul.f32 1.442695, %v7239_v30  ;;  %v11287_v30 = vpack.c.bf16 %v7328_v10, %v7327_v4  ;;  %v7785_v4 = vld [vmem:[#allocation23 + $0x50] sm:$0xff]  ;;  %v7786_v10 = vld [vmem:[#allocation23 + $0x58] sm:$0xff] }
0x143d   :  { %11833 = vpow2.f32 %v7240_v57  ;;  %v7329_v57 = vld [vmem:[#allocation23 + $0x20] sm:$0xff] }
0x1447   :  { %v11834_v17 = vpop.eup %11833 }
0x1448   :  { %v7242_v24 = vsel %vm7235_vm9, %v11834_v17, 0.0 }
0x1449   :  { %7243 = vadd.xlane.f32.xlu1 %v7242_v24 }
0x14d6   :  { %v7244_v18 = vpop.xlane.xlu1 %7243 }
0x14d7   :  { %11835 = vrcp.f32 %v7244_v18  ;;  %v7331_v18 = vld [vmem:[#allocation23 + $0x30] sm:$0xff] }
0x14d8   :  { %v11293_v34 = vpack.c.bf16 %v7332_v44, %v7331_v18  ;;  %v7789_v18 = vld [vmem:[#allocation23 + $0x70] sm:$0xff]  ;;  %v7790_v44 = vld [vmem:[#allocation23 + $0x78] sm:$0xff] }
0x14e1   :  { %v11836_v22 = vpop.eup %11835 }
0x14e2   :  { %v7246_v9 = vmul.f32 %v11836_v22, %v11834_v17  ;;  %v7330_v17 = vld [vmem:[#allocation23 + $0x28] sm:$0xff] }
0x14e3   :  { %v11290_v24 = vpack.c.bf16 %v7330_v17, %v7329_v57  ;;  %v7955_v22 = vld [vmem:[#allocation25 + $0x8] sm:$0xff]  ;;  %v7787_v57 = vld [vmem:[#allocation23 + $0x60] sm:$0xff] }
0x14e4   :  { %8728 = vmatmul.mubr.msk.f32.vlgmr.msra.gmra.mrb[52].mxu0 %vm7247_vm10, %v7246_v9  ;;  %v7956_v9 = vld [vmem:[#allocation25 + $0x10] sm:$0xff]  ;;  %v7788_v17 = vld [vmem:[#allocation23 + $0x68] sm:$0xff] }
0x14e5   :  { %11201 = vmatpush3.bf16.msra.mxu0 %v11200_v61  ;;  %8762 = vmatprep.mubr.msk.f32.mxu0 %vm12314_vm0, %v14879_v58  ;;  %v11323_v25 = vpack.c.bf16 %v7957_v53, %v7956_v9  ;;  %v7972_v9 = vld [vmem:[#allocation26 + $0x10] sm:$0xff]  ;;  %v7973_v53 = vld [vmem:[#allocation26 + $0x18] sm:$0xff] }
0x14e6   :  { %11202 = vmatprep.subr.bf16.mxu0 %v15307_v43 }
0x14e9   :  { %11204 = vmatpush3.bf16.msra.mxu0 %v11203_v5 }
0x14ea   :  { %11205 = vmatprep.subr.bf16.mxu0 %v15307_v43 }
0x14ed   :  { %11207 = vmatpush3.bf16.msra.mxu0 %v11206_v11  ;;  %v7959_v11 = vld [vmem:[#allocation25 + $0x28] sm:$0xff] }
0x14ee   :  { %11208 = vmatprep.subr.bf16.mxu0 %v15307_v43  ;;  %v11326_v56 = vpack.c.bf16 %v7959_v11, %v7958_v1  ;;  %v7974_v1 = vld [vmem:[#allocation26 + $0x20] sm:$0xff]  ;;  %v7975_v11 = vld [vmem:[#allocation26 + $0x28] sm:$0xff] }
0x14f1   :  { %11210 = vmatpush3.bf16.msra.mxu0 %v11209_v28  ;;  %v7961_v28 = vld [vmem:[#allocation25 + $0x38] sm:$0xff] }
0x14f2   :  { %11211 = vmatprep.subr.bf16.mxu0 %v15307_v43  ;;  %v11329_v3 = vpack.c.bf16 %v7961_v28, %v7960_v32  ;;  %v7976_v32 = vld [vmem:[#allocation26 + $0x30] sm:$0xff]  ;;  %v7977_v28 = vld [vmem:[#allocation26 + $0x38] sm:$0xff] }
0x14f5   :  { %11213 = vmatpush3.bf16.msra.mxu0 %v11212_v46  ;;  %v7963_v46 = vld [vmem:[#allocation25 + $0x48] sm:$0xff] }
0x14f6   :  { %11214 = vmatprep.subr.bf16.mxu0 %v15307_v43  ;;  %v11332_v8 = vpack.c.bf16 %v7963_v46, %v7962_v16  ;;  %v7978_v16 = vld [vmem:[#allocation26 + $0x40] sm:$0xff]  ;;  %v7979_v46 = vld [vmem:[#allocation26 + $0x48] sm:$0xff] }
0x14f9   :  { %11216 = vmatpush3.bf16.msra.mxu0 %v11215_v52  ;;  %v7965_v52 = vld [vmem:[#allocation25 + $0x58] sm:$0xff] }
0x14fa   :  { %11217 = vmatprep.subr.bf16.mxu0 %v15307_v43  ;;  %v11335_v29 = vpack.c.bf16 %v7965_v52, %v7964_v0  ;;  %v7980_v0 = vld [vmem:[#allocation26 + $0x50] sm:$0xff]  ;;  %v7981_v52 = vld [vmem:[#allocation26 + $0x58] sm:$0xff] }
0x14fd   :  { %11219 = vmatpush3.bf16.msra.mxu0 %v11218_v21  ;;  %v7967_v21 = vld [vmem:[#allocation25 + $0x68] sm:$0xff] }
0x14fe   :  { %11220 = vmatprep.subr.bf16.mxu0 %v15307_v43  ;;  %v11338_v47 = vpack.c.bf16 %v7967_v21, %v7966_v62  ;;  %v7982_v62 = vld [vmem:[#allocation26 + $0x60] sm:$0xff]  ;;  %v7983_v21 = vld [vmem:[#allocation26 + $0x68] sm:$0xff] }
0x1501   :  { %11222 = vmatpush3.bf16.msra.mxu0 %v11221_v55  ;;  %v7969_v55 = vld [vmem:[#allocation25 + $0x78] sm:$0xff] }
0x1502   :  { %11247 = vmatprep.subr.bf16.mxu0 %v15307_v43  ;;  %v11341_v31 = vpack.c.bf16 %v7969_v55, %v7968_v38  ;;  %v7984_v38 = vld [vmem:[#allocation26 + $0x70] sm:$0xff]  ;;  %v7985_v55 = vld [vmem:[#allocation26 + $0x78] sm:$0xff] }
0x1504   :  { %8763 = vmatmul.mubr.f32.vlgmr.msra.gmra.mrb[54].mxu0 %v14388_v20 }
0x1505   :  { %11249 = vmatpush3.bf16.msra.mxu0 %v11248_v40  ;;  %8832 = vmatprep.mubr.msk.f32.mxu0 %vm12314_vm0, %v14879_v58 }
0x1506   :  { %11250 = vmatprep.subr.bf16.mxu0 %v15307_v43 }
0x1509   :  { %11252 = vmatpush3.bf16.msra.mxu0 %v11251_v13  ;;  %v8404_v13 = vld [vmem:[%s15313_s2 + $0x1] ss:$0 sm:$0xff] }
0x150a   :  { %11253 = vmatprep.subr.bf16.mxu0 %v15307_v43 }
0x150d   :  { %11255 = vmatpush3.bf16.msra.mxu0 %v11254_v45 }
0x150e   :  { %11256 = vmatprep.subr.bf16.mxu0 %v15307_v43 }
0x1511   :  { %11258 = vmatpush3.bf16.msra.mxu0 %v11257_v7 }
0x1512   :  { %11259 = vmatprep.subr.bf16.mxu0 %v15307_v43 }
0x1515   :  { %11261 = vmatpush3.bf16.msra.mxu0 %v11260_v51 }
0x1516   :  { %11262 = vmatprep.subr.bf16.mxu0 %v15307_v43 }
0x1519   :  { %11264 = vmatpush3.bf16.msra.mxu0 %v11263_v35 }
0x151a   :  { %11265 = vmatprep.subr.bf16.mxu0 %v15307_v43 }
0x151d   :  { %11267 = vmatpush3.bf16.msra.mxu0 %v11266_v14 }
0x151e   :  { %11268 = vmatprep.subr.bf16.mxu0 %v15307_v43 }
0x1521   :  { %11270 = vmatpush3.bf16.msra.mxu0 %v11269_v23  ;;  %v7784_v23 = vld [vmem:[#allocation23 + $0x48] sm:$0xff] }
0x1522   :  { %11283 = vmatprep.subr.bf16.mxu0 %v15307_v43  ;;  %v11272_v54 = vpack.c.bf16 %v7784_v23, %v7783_v63  ;;  %v8135_v23 = vld [vmem:[#allocation28 + $0x30] sm:$0xff] }
0x1524   :  { %8833 = vmatmul.mubr.f32.vlgmr.msra.gmra.mrb[56].mxu0 %v14388_v20  ;;  %v7954_v20 = vld [vmem:[#allocation25] sm:$0xff] }
0x1525   :  { %11285 = vmatpush3.bf16.msra.mxu0 %v11284_v41  ;;  %8880 = vmatprep.mubr.msk.f32.mxu0 %vm12314_vm0, %v14879_v58  ;;  %v11320_v61 = vpack.c.bf16 %v7955_v22, %v7954_v20  ;;  %v7970_v20 = vld [vmem:[#allocation26] sm:$0xff]  ;;  %v7971_v22 = vld [vmem:[#allocation26 + $0x8] sm:$0xff] }
0x1526   :  { %11286 = vmatprep.subr.bf16.mxu0 %v15307_v43 }
0x1529   :  { %11288 = vmatpush3.bf16.msra.mxu0 %v11287_v30  ;;  %v11275_v30 = vpack.c.bf16 %v7786_v10, %v7785_v4  ;;  %v8138_v4 = vld [vmem:[#allocation28 + $0x48] sm:$0xff] }
0x152a   :  { %11289 = vmatprep.subr.bf16.mxu0 %v15307_v43 }
0x152d   :  { %11291 = vmatpush3.bf16.msra.mxu0 %v11290_v24  ;;  %v11278_v24 = vpack.c.bf16 %v7788_v17, %v7787_v57  ;;  %v8141_v17 = vld [vmem:[#allocation28 + $0x60] sm:$0xff] }
0x152e   :  { %11292 = vmatprep.subr.bf16.mxu0 %v15307_v43 }
0x1531   :  { %11294 = vmatpush3.bf16.msra.mxu0 %v11293_v34  ;;  %v11281_v34 = vpack.c.bf16 %v7790_v44, %v7789_v18  ;;  %v8143_v44 = vld [vmem:[#allocation28 + $0x70] sm:$0xff] }
0x1532   :  { %11319 = vmatprep.subr.bf16.mxu0 %v15307_v43 }
0x15b7   :  { %v7321_v60 = vpop.f32.mrb[52].mxu0 }
0x15b8   :  { %v8729_v5 = vpop.f32.mrb[53].mxu0  ;;  %8881 = vmatmul.mubr.msk.f32.vlgmr.msra.gmra.mrb[58].mxu0 %vm7157_vm7, %v7321_v60 }
0x15b9   :  { %11321 = vmatpush3.bf16.msra.mxu0 %v11320_v61  ;;  %8950 = vmatprep.mubr.msk.f32.mxu0 %vm12314_vm0, %v14879_v58  ;;  %v11296_v61 = vpack.c.bf16 %v7971_v22, %v7970_v20 }
0x15ba   :  { %11322 = vmatprep.subr.bf16.mxu0 %v15307_v43 }
0x15bd   :  { %11324 = vmatpush3.bf16.msra.mxu0 %v11323_v25  ;;  %v11299_v25 = vpack.c.bf16 %v7973_v53, %v7972_v9 }
0x15be   :  { %11325 = vmatprep.subr.bf16.mxu0 %v15307_v43 }
0x15c1   :  { %11327 = vmatpush3.bf16.msra.mxu0 %v11326_v56  ;;  %v11302_v56 = vpack.c.bf16 %v7975_v11, %v7974_v1 }
0x15c2   :  { %11328 = vmatprep.subr.bf16.mxu0 %v15307_v43 }
0x15c5   :  { %11330 = vmatpush3.bf16.msra.mxu0 %v11329_v3  ;;  %v11305_v3 = vpack.c.bf16 %v7977_v28, %v7976_v32 }
0x15c6   :  { %11331 = vmatprep.subr.bf16.mxu0 %v15307_v43 }
0x15c9   :  { %11333 = vmatpush3.bf16.msra.mxu0 %v11332_v8  ;;  %v11308_v8 = vpack.c.bf16 %v7979_v46, %v7978_v16 }
0x15ca   :  { %11334 = vmatprep.subr.bf16.mxu0 %v15307_v43 }
0x15cd   :  { %11336 = vmatpush3.bf16.msra.mxu0 %v11335_v29  ;;  %v11311_v29 = vpack.c.bf16 %v7981_v52, %v7980_v0 }
0x15ce   :  { %11337 = vmatprep.subr.bf16.mxu0 %v15307_v43 }
0x15d1   :  { %11339 = vmatpush3.bf16.msra.mxu0 %v11338_v47  ;;  %v11314_v47 = vpack.c.bf16 %v7983_v21, %v7982_v62 }
0x15d2   :  { %11340 = vmatprep.subr.bf16.mxu0 %v15307_v43 }
0x15d5   :  { %11342 = vmatpush3.bf16.msra.mxu0 %v11341_v31  ;;  %v11317_v31 = vpack.c.bf16 %v7985_v55, %v7984_v38 }
0x15d7   :  { %v7424_v40 = vpop.f32.mrb[54].mxu0 }
0x15d8   :  { %v7425_v12 = vadd.f32 %v8368_v36, %v7424_v40  ;;  %v8764_v19 = vpop.f32.mrb[55].mxu0  ;;  %8951 = vmatmul.mubr.f32.vlgmr.msra.gmra.mrb[60].mxu0 %v14239_v33  ;;  %v8411_v40 = vld [vmem:[%s15314_s24] ss:$0 sm:$0xff] }
0x15da   :  { %8838 = vmatmul.mubr.msk.f32.vlgmr.msra.gmra.mrb[50].mxu1 %vm7157_vm7, %v7425_v12 }
0x15db   :  { %8842 = vmatprep.mubr.msk.f32.mxu1 %vm12314_vm0, %v14879_v58 }
0x15f7   :  { %v7614_v42 = vpop.f32.mrb[56].mxu0 }
0x15f8   :  { %v7615_v49 = vadd.f32 %v8404_v13, %v7614_v42  ;;  %v8834_v45 = vpop.f32.mrb[57].mxu0 }
0x15fa   :  { %8841 = vmatpush3.msk.msra.mxu1 %vm7251_vm8, %v7615_v49 }
0x15fb   :  { %11271 = vmatprep.subr.bf16.mxu1 %v15307_v43 }
0x168b   :  { %v14540_v26 = vpop.f32.mrb[58].mxu0 }
0x168c   :  { %v8882_v6 = vpop.f32.mrb[59].mxu0 }
0x16ab   :  { %v14542_v7 = vpop.f32.mrb[60].mxu0 }
0x16ac   :  { %v8952_v39 = vpop.f32.mrb[61].mxu0 }
0x16ad   :  { %v7690_v33 = vpop.f32.mrb[50].mxu1 }
0x16ae   :  { %v7694_v15 = vmul.f32 0.125, %v7690_v33  ;;  %v8839_v51 = vpop.f32.mrb[51].mxu1 }
0x16af   :  { %v8130_v51 = vld [vmem:[#allocation28 + $0x8] sm:$0xff] }
0x16b0   :  { %v7695_v50 = vsel %vm7235_vm9, %v7694_v15, -inf }
0x16b1   :  { %7696 = vmax.xlane.f32.xlu0 %v7695_v50 }
0x173e   :  { %v7697_v27 = vpop.xlane.xlu0 %7696 }
0x173f   :  { %v7698_v35 = vsub.f32 %v7694_v15, %v7697_v27  ;;  %v8129_v15 = vld [vmem:[#allocation28] sm:$0xff] }
0x1740   :  { %v11344_v27 = vpack.c.bf16 %v8130_v51, %v8129_v15 }
0x1741   :  { %v7699_v37 = vmul.f32 1.442695, %v7698_v35 }
0x1743   :  { %11837 = vpow2.f32 %v7699_v37  ;;  %v8131_v37 = vld [vmem:[#allocation28 + $0x10] sm:$0xff] }
0x174d   :  { %v11838_v48 = vpop.eup %11837 }
0x174e   :  { %v7701_v14 = vsel %vm7235_vm9, %v11838_v48, 0.0 }
0x174f   :  { %7702 = vadd.xlane.f32.xlu0 %v7701_v14 }
0x17dc   :  { %v7703_v59 = vpop.xlane.xlu0 %7702 }
0x17dd   :  { %11839 = vrcp.f32 %v7703_v59  ;;  %v8134_v59 = vld [vmem:[#allocation28 + $0x28] sm:$0xff] }
0x17e7   :  { %v11840_v2 = vpop.eup %11839 }
0x17e8   :  { %v7705_v41 = vmul.f32 %v11840_v2, %v11838_v48  ;;  %v8132_v48 = vld [vmem:[#allocation28 + $0x18] sm:$0xff] }
0x17e9   :  { %v11347_v14 = vpack.c.bf16 %v8132_v48, %v8131_v37  ;;  %v8136_v2 = vld [vmem:[#allocation28 + $0x38] sm:$0xff] }
0x17ea   :  { %8843 = vmatmul.mubr.msk.f32.vlgmr.msra.gmra.mrb[52].mxu1 %vm7247_vm10, %v7705_v41  ;;  %v8137_v41 = vld [vmem:[#allocation28 + $0x40] sm:$0xff] }
0x17eb   :  { %11273 = vmatpush3.bf16.msra.mxu1 %v11272_v54  ;;  %8861 = vmatprep.mubr.msk.f32.mxu1 %vm12314_vm0, %v14879_v58  ;;  %v11353_v54 = vpack.c.bf16 %v8136_v2, %v8135_v23  ;;  %v11356_v10 = vpack.c.bf16 %v8138_v4, %v8137_v41 }
0x17ec   :  { %11274 = vmatprep.subr.bf16.mxu1 %v15307_v43 }
0x17ef   :  { %11276 = vmatpush3.bf16.msra.mxu1 %v11275_v30  ;;  %v8140_v30 = vld [vmem:[#allocation28 + $0x58] sm:$0xff] }
0x17f0   :  { %11277 = vmatprep.subr.bf16.mxu1 %v15307_v43 }
0x17f3   :  { %11279 = vmatpush3.bf16.msra.mxu1 %v11278_v24  ;;  %v8142_v24 = vld [vmem:[#allocation28 + $0x68] sm:$0xff] }
0x17f4   :  { %11280 = vmatprep.subr.bf16.mxu1 %v15307_v43  ;;  %v11362_v18 = vpack.c.bf16 %v8142_v24, %v8141_v17 }
0x17f7   :  { %11282 = vmatpush3.bf16.msra.mxu1 %v11281_v34  ;;  %v8144_v34 = vld [vmem:[#allocation28 + $0x78] sm:$0xff] }
0x17f8   :  { %11295 = vmatprep.subr.bf16.mxu1 %v15307_v43  ;;  %v11365_v20 = vpack.c.bf16 %v8144_v34, %v8143_v44 }
0x18bd   :  { %v7778_v60 = vpop.f32.mrb[52].mxu1 }
0x18be   :  { %v8844_v5 = vpop.f32.mrb[53].mxu1  ;;  %8862 = vmatmul.mubr.msk.f32.vlgmr.msra.gmra.mrb[54].mxu1 %vm7157_vm7, %v7778_v60 }
0x18bf   :  { %11297 = vmatpush3.bf16.msra.mxu1 %v11296_v61  ;;  %8915 = vmatprep.mubr.msk.f32.mxu1 %vm12314_vm0, %v14879_v58  ;;  %v8126_v61 = vld [vmem:[%s12480_s5] sm:$0x1] }
0x18c0   :  { %11298 = vmatprep.subr.bf16.mxu1 %v15307_v43 }
0x18c3   :  { %11300 = vmatpush3.bf16.msra.mxu1 %v11299_v25  ;;  %v8145_v25 = vld [vmem:[%s12490_s4] sm:$0x1] }
0x18c4   :  { %11301 = vmatprep.subr.bf16.mxu1 %v15307_v43 }
0x18c7   :  { %11303 = vmatpush3.bf16.msra.mxu1 %v11302_v56 }
0x18c8   :  { %11304 = vmatprep.subr.bf16.mxu1 %v15307_v43 }
0x18cb   :  { %11306 = vmatpush3.bf16.msra.mxu1 %v11305_v3 }
0x18cc   :  { %11307 = vmatprep.subr.bf16.mxu1 %v15307_v43 }
0x18cf   :  { %11309 = vmatpush3.bf16.msra.mxu1 %v11308_v8 }
0x18d0   :  { %11310 = vmatprep.subr.bf16.mxu1 %v15307_v43 }
0x18d3   :  { %11312 = vmatpush3.bf16.msra.mxu1 %v11311_v29 }
0x18d4   :  { %11313 = vmatprep.subr.bf16.mxu1 %v15307_v43 }
0x18d7   :  { %11315 = vmatpush3.bf16.msra.mxu1 %v11314_v47 }
0x18d8   :  { %11316 = vmatprep.subr.bf16.mxu1 %v15307_v43 }
0x18db   :  { %11318 = vmatpush3.bf16.msra.mxu1 %v11317_v31 }
0x18dc   :  { %11343 = vmatprep.subr.bf16.mxu1 %v15307_v43 }
0x1991   :  { %v7860_v36 = vpop.f32.mrb[54].mxu1 }
0x1992   :  { %v7934_v12 = vadd.f32 %v14540_v26, %v7860_v36  ;;  %v8863_v19 = vpop.f32.mrb[55].mxu1  ;;  %v8133_v26 = vld [vmem:[#allocation28 + $0x20] sm:$0xff] }
0x1993   :  { %v11350_v63 = vpack.c.bf16 %v8134_v59, %v8133_v26 }
0x1994   :  { %v7944_v13 = vadd.f32 %v8411_v40, %v7934_v12 }
0x1996   :  { %v7945_v42 = vsel %vm7251_vm8, %v7944_v13, 0.0 }
0x1997   :  { %v7946_v49 = vrot.slane %v7945_v42, 4 }
0x1999   :  { %v7947_v45 = vadd.f32 %v7946_v49, %v7945_v42 }
0x199b   :  { %v7948_v6 = vrot.slane %v7947_v45, 2 }
0x199d   :  { %v7949_v39 = vadd.f32 %v7948_v6, %v7947_v45 }
0x199f   :  { %v7950_v33 = vrot.slane %v7949_v39, 1 }
0x19a1   :  { %v7951_v50 = vadd.f32 %v7950_v33, %v7949_v39 }
0x19a3   :  { %v7953_v35 = vmul.f32 0.33333334, %v7951_v50 }
0x19a5   :  { %8916 = vmatmul.mubr.f32.vlgmr.msra.gmra.mrb[56].mxu1 %v7953_v35 }
0x19a6   :  { %11345 = vmatpush3.bf16.msra.mxu1 %v11344_v27  ;;  %8985 = vmatprep.mubr.msk.f32.mxu1 %vm12314_vm0, %v14879_v58  ;;  %v8139_v58 = vld [vmem:[#allocation28 + $0x50] sm:$0xff] }
0x19a7   :  { %11346 = vmatprep.subr.bf16.mxu1 %v15307_v43  ;;  %v11359_v57 = vpack.c.bf16 %v8140_v30, %v8139_v58 }
0x19aa   :  { %11348 = vmatpush3.bf16.msra.mxu1 %v11347_v14 }
0x19ab   :  { %11349 = vmatprep.subr.bf16.mxu1 %v15307_v43 }
0x19ae   :  { %11351 = vmatpush3.bf16.msra.mxu1 %v11350_v63 }
0x19af   :  { %11352 = vmatprep.subr.bf16.mxu1 %v15307_v43 }
0x19b2   :  { %11354 = vmatpush3.bf16.msra.mxu1 %v11353_v54 }
0x19b3   :  { %11355 = vmatprep.subr.bf16.mxu1 %v15307_v43 }
0x19b6   :  { %11357 = vmatpush3.bf16.msra.mxu1 %v11356_v10 }
0x19b7   :  { %11358 = vmatprep.subr.bf16.mxu1 %v15307_v43 }
0x19ba   :  { %11360 = vmatpush3.bf16.msra.mxu1 %v11359_v57 }
0x19bb   :  { %11361 = vmatprep.subr.bf16.mxu1 %v15307_v43 }
0x19be   :  { %11363 = vmatpush3.bf16.msra.mxu1 %v11362_v18 }
0x19bf   :  { %11364 = vmatprep.subr.bf16.mxu1 %v15307_v43 }
0x19c2   :  { %11366 = vmatpush3.bf16.msra.mxu1 %v11365_v20 }
0x1a78   :  { %v8052_v22 = vpop.f32.mrb[56].mxu1 }
0x1a79   :  { %v8123_v9 = vadd.f32 %v14542_v7, %v8052_v22  ;;  %v8917_v53 = vpop.f32.mrb[57].mxu1 }
0x1a7b   :  { %v8127_v60 = vadd.f32 %v8126_v61, %v8123_v9 }
0x1a7d   :  { %v8128_v5 = vmax.f32 %v8127_v60, 0.0 }
0x1a7f   :  { %8986 = vmatmul.mubr.f32.vlgmr.msra.gmra.mrb[58].mxu1 %v8128_v5 }
0x1b52   :  { %v8212_v1 = vpop.f32.mrb[58].mxu1 }
0x1b53   :  { %v8213_v11 = vadd.f32 %v8212_v1, %v8145_v25  ;;  %v8987_v56 = vpop.f32.mrb[59].mxu1 }
0x1b55   :  { %8216 = vst [vmem:[#allocation29] sm:$0x1] %v8213_v11 }
0x1b56   :  { %12226 = shalt.err (!%p12223_p0)
}
0x1b57   :  { %s12227_s5 = scalar_lea.hbm %s12495_s20, 16 }
0x1b58   :  { %p12228_p1 = scmp.ne.s32.totalorder %s12495_s20, %s12227_s5  ;;  %p12231_p2 = scmp.lt.u32.totalorder %s12227_s5, %s12495_s20 }
0x1b5a   :  { %p12233_p3 = pnand %p12231_p2, %p12228_p1 }
0x1b5c   :  { %12236 = shalt.err (!%p12233_p3)
}
0x1b5d   :  { %8226 = dma.vmem_to_hbm [thread:$0]  %s8224_s13, 16, %s12495_s20, [#allocation4]  }
0x1b5e   :  { %12255 = dma.done.wait [#allocation4], 16  }
0x1b5f   :  { %12256 = vsyncadd [#allocation4], 4294967280 }
0x1b60   :  { %8230 = vsyncpa [#allocation3], 1 }
0x1b61   :  { %8231 = vsyncpa [#allocation6], 1 }
0x1b62   :  { %8232 = vsyncpa [#allocation9], 1 }
0x1b63   :  { %8233 = vsyncpa [#allocation12], 1 }
0x1b64   :  { %8234 = vsyncpa [#allocation15], 1 }
0x1b65   :  { %8235 = vsyncpa [#allocation18], 1 }
0x1b66   :  { %8236 = vsyncpa [#allocation21], 1 }
0x1b67   :  { %8237 = vsyncpa [#allocation24], 1 }
0x1b68   :  { %8238 = vsyncpa [#allocation27], 1 }
0x1b69   :  { %8239 = vsyncpa [#allocation4], 1 }

</bundles_post_ra>
